<compile_context>
chip_gen: v7x
topology: tpu7x:2x2x1
jax: 0.10.0
libtpu: 0.0.40
codegen_flags: <defaults>
</compile_context>

<pallas_src>
import functools
import math

import jax
import jax.numpy as jnp
from jax.experimental import pallas as pl
from jax.experimental.pallas import tpu as pltpu

D_MODEL = 32
NHEAD = 4
D_HEAD = D_MODEL // NHEAD
D_FFN = 64
N_SELF_LAYERS = 2
N_CROSS_LAYERS = 1
LN_EPS = 1e-5

_BLOCK_KEYS = ("wqkv", "bqkv", "wo", "bo", "ln1_g", "ln1_b",
               "w1", "b1", "w2", "b2", "ln2_g", "ln2_b")


# ----------------------------------------------------------------------------
# In-kernel helpers (operate on loaded f32 arrays + weight refs)
# ----------------------------------------------------------------------------

def _sdpa(qkv_q, qkv_kv, wo_ref, bo_ref):
    """Multi-head scaled-dot-product attention + output projection.

    qkv_q:  (Lq, 3D) fused projections of the query input (scale folded into q).
    qkv_kv: (Lk, 3D) fused projections of the key/value input.
    wo_ref: (H, dh, D) per-head slices of the [in, out] output projection.
    """
    lq = qkv_q.shape[0]
    out = jnp.zeros((lq, D_MODEL), jnp.float32) + bo_ref[...]
    for h in range(NHEAD):                                    # static, tiny
        q_h = qkv_q[:, h * D_HEAD:(h + 1) * D_HEAD]
        k_h = qkv_kv[:, D_MODEL + h * D_HEAD:D_MODEL + (h + 1) * D_HEAD]
        v_h = qkv_kv[:, 2 * D_MODEL + h * D_HEAD:2 * D_MODEL + (h + 1) * D_HEAD]
        s = jnp.dot(q_h, k_h.T, preferred_element_type=jnp.float32)   # (Lq, Lk)
        s = s - jnp.max(s, axis=-1, keepdims=True)
        p = jnp.exp(s)
        p = p / jnp.sum(p, axis=-1, keepdims=True)
        o_h = jnp.dot(p, v_h, preferred_element_type=jnp.float32)     # (Lq, dh)
        # accumulate through the per-head output-projection slab (no lane concat)
        out = out + jnp.dot(o_h, wo_ref[h], preferred_element_type=jnp.float32)
    return out


def _add_ln(x, y, g_ref, b_ref):
    z = x + y
    mu = jnp.mean(z, axis=-1, keepdims=True)
    var = jnp.mean(jnp.square(z - mu), axis=-1, keepdims=True)
    z = (z - mu) * jax.lax.rsqrt(var + LN_EPS)
    return z * g_ref[...] + b_ref[...]


def _ffn(x, w1_ref, b1_ref, w2_ref, b2_ref):
    h = jnp.dot(x, w1_ref[...], preferred_element_type=jnp.float32) + b1_ref[...]
    h = jnp.maximum(h, 0.0)                                            # ReLU
    return jnp.dot(h, w2_ref[...], preferred_element_type=jnp.float32) + b2_ref[...]


def _encoder(x, blk):
    """nn.TransformerEncoderLayer (post-norm, ReLU, eval-mode dropout)."""
    wqkv, bqkv, wo, bo, g1, be1, w1, b1, w2, b2, g2, be2 = blk
    qkv = jnp.dot(x, wqkv[...], preferred_element_type=jnp.float32) + bqkv[...]
    a = _sdpa(qkv, qkv, wo, bo)
    x = _add_ln(x, a, g1, be1)
    return _add_ln(x, _ffn(x, w1, b1, w2, b2), g2, be2)


def _co_half(xq, xkv, blk):
    """CoTransformerHalfLayer: LN1(q + MHA(q, kv, kv)); LN2(x + FFN(x))."""
    wqkv, bqkv, wo, bo, g1, be1, w1, b1, w2, b2, g2, be2 = blk
    qkv_q = jnp.dot(xq, wqkv[...], preferred_element_type=jnp.float32) + bqkv[...]
    qkv_kv = jnp.dot(xkv, wqkv[...], preferred_element_type=jnp.float32) + bqkv[...]
    a = _sdpa(qkv_q, qkv_kv, wo, bo)
    x = _add_ln(xq, a, g1, be1)
    return _add_ln(x, _ffn(x, w1, b1, w2, b2), g2, be2)


# ----------------------------------------------------------------------------
# Fused forward kernel: one grid step == one batch element, full network
# ----------------------------------------------------------------------------

def _fused_kernel(*refs, n_self, n_cross):
    left_ref, right_ref = refs[0], refs[1]
    out_ref = refs[-1]
    w = refs[2:-1]
    self_blk = w[0:12]
    co_blk = w[12:24]
    trm_blk = w[24:36]
    wl_ref, wr_ref, b_out_ref = w[36], w[37], w[38]

    left = left_ref[0].astype(jnp.float32)      # (Ll, D)
    right = right_ref[0].astype(jnp.float32)    # (Lr, D)
    ll = left.shape[0]

    # --- shared-weight self-attention stacks: left & right rows stacked -------
    x = jnp.concatenate([left, right], axis=0)  # (Ll+Lr, D)
    wqkv, bqkv, wo, bo, g1, be1, w1, b1, w2, b2, g2, be2 = self_blk
    for _ in range(n_self):
        qkv = jnp.dot(x, wqkv[...], preferred_element_type=jnp.float32) + bqkv[...]
        a = jnp.concatenate(
            [_sdpa(qkv[:ll], qkv[:ll], wo, bo),        # left attends within left
             _sdpa(qkv[ll:], qkv[ll:], wo, bo)],       # right attends within right
            axis=0)
        x = _add_ln(x, a, g1, be1)
        x = _add_ln(x, _ffn(x, w1, b1, w2, b2), g2, be2)
    left, right = x[:ll], x[ll:]

    # --- cross (co-attention) layers ------------------------------------------
    for _ in range(n_cross):
        left = _co_half(left, right, co_blk)
        left = _encoder(left, trm_blk)
        right = _co_half(right, left, co_blk)
        right = _encoder(right, trm_blk)

    # --- output head: Linear(cat([left, right], -1)) == left@Wl + right@Wr + b
    out = (jnp.dot(left, wl_ref[...], preferred_element_type=jnp.float32)
           + jnp.dot(right, wr_ref[...], preferred_element_type=jnp.float32)
           + b_out_ref[...])
    out_ref[0] = out.astype(out_ref.dtype)


# ----------------------------------------------------------------------------
# pallas_call wrapper
# ----------------------------------------------------------------------------

def _w_spec(arr):
    nd = arr.ndim
    return pl.BlockSpec(arr.shape, lambda b, _nd=nd: (0,) * _nd)


def _block_list(p):
    return [p[k] for k in _BLOCK_KEYS]


def parallel_transformer(left, right, params):
    B, Ll, Dm = left.shape
    _, Lr, _ = right.shape
    arrays = (_block_list(params["self_blk"])
              + _block_list(params["co_blk"])
              + _block_list(params["trm_blk"])
              + [params["out_wl"], params["out_wr"], params["out_b"]])
    w_specs = [_w_spec(a) for a in arrays]
    kernel = functools.partial(_fused_kernel,
                               n_self=N_SELF_LAYERS, n_cross=N_CROSS_LAYERS)
    return pl.pallas_call(
        kernel,
        out_shape=jax.ShapeDtypeStruct((B, Ll, Dm), left.dtype),
        grid=(B,),
        in_specs=[pl.BlockSpec((1, Ll, Dm), lambda b: (b, 0, 0)),
                  pl.BlockSpec((1, Lr, Dm), lambda b: (b, 0, 0))] + w_specs,
        out_specs=pl.BlockSpec((1, Ll, Dm), lambda b: (b, 0, 0)),
        compiler_params=pltpu.CompilerParams(dimension_semantics=("parallel",)),
    )(left, right, *arrays)


# ----------------------------------------------------------------------------
# Deterministic parameter init (kernel-friendly layout; mirrors deepcopy sharing)
#   - all dense weights stored [in_features, out_features]  (x @ W + b)
#   - Q/K/V fused into one (D, 3D) weight; attention scale folded into the Q part
#   - output projection pre-split per head: (H, dh, D)
#   - concat head split into Wl, Wr halves of the (2D, D) output linear
# ----------------------------------------------------------------------------

def _init_dense(key, d_in, d_out, scale=0.05):
    kw, kb = jax.random.split(key)
    w = jax.random.normal(kw, (d_in, d_out), jnp.float32) * scale
    b = jax.random.normal(kb, (1, d_out), jnp.float32) * scale
    return w, b


def _init_ln():
    return jnp.ones((1, D_MODEL), jnp.float32), jnp.zeros((1, D_MODEL), jnp.float32)


def _init_block(key):
    kqkv, ko, k1, k2 = jax.random.split(key, 4)
    wqkv, bqkv = _init_dense(kqkv, D_MODEL, 3 * D_MODEL)
    scale = 1.0 / math.sqrt(D_HEAD)
    wqkv = wqkv.at[:, :D_MODEL].multiply(scale)        # fold 1/sqrt(dh) into Wq
    bqkv = bqkv.at[:, :D_MODEL].multiply(scale)
    wo, bo = _init_dense(ko, D_MODEL, D_MODEL)
    wo = wo.reshape(NHEAD, D_HEAD, D_MODEL)            # per-head slabs of Wo
    w1, b1 = _init_dense(k1, D_MODEL, D_FFN)
    w2, b2 = _init_dense(k2, D_FFN, D_MODEL)
    g1, be1 = _init_ln()
    g2, be2 = _init_ln()
    return dict(wqkv=wqkv, bqkv=bqkv, wo=wo, bo=bo,
                ln1_g=g1, ln1_b=be1, w1=w1, b1=b1, w2=w2, b2=b2,
                ln2_g=g2, ln2_b=be2)


def init_params(key):
    k_self, k_co, k_trm, k_out = jax.random.split(key, 4)
    kl, kr, kb = jax.random.split(k_out, 3)
    return dict(
        self_blk=_init_block(k_self),     # shared by all left/right self layers
        co_blk=_init_block(k_co),         # LeftCo == deepcopy RightCo
        trm_blk=_init_block(k_trm),       # LeftTRM == deepcopy RightTRM
        out_wl=jax.random.normal(kl, (D_MODEL, D_MODEL), jnp.float32) * 0.05,
        out_wr=jax.random.normal(kr, (D_MODEL, D_MODEL), jnp.float32) * 0.05,
        out_b=jax.random.normal(kb, (1, D_MODEL), jnp.float32) * 0.05,
    )


# ----------------------------------------------------------------------------

if __name__ == "__main__":
    key = jax.random.PRNGKey(0)
    k_left, k_right, k_params = jax.random.split(key, 3)

    B, Ll, Lr = 2, 8, 8
    left = jax.random.normal(k_left, (B, Ll, D_MODEL), jnp.float32)
    right = jax.random.normal(k_right, (B, Lr, D_MODEL), jnp.float32)

    params = init_params(k_params)

    fwd = jax.jit(parallel_transformer)
    out = jax.block_until_ready(fwd(left, right, params))

    assert out.shape == (B, Ll, D_MODEL), out.shape
    assert bool(jnp.all(jnp.isfinite(out)))
    print("KERNEL_OK")
</pallas_src>

<mosaic_0001>
module attributes {stable_mosaic.version = 11 : i64} {
  func.func @_fused_kernel(%arg0: i32, %arg1: memref<1x8x32xf32, #tpu.memory_space<vmem>>, %arg2: memref<1x8x32xf32, #tpu.memory_space<vmem>>, %arg3: memref<32x96xf32, #tpu.memory_space<vmem>>, %arg4: memref<1x96xf32, #tpu.memory_space<vmem>>, %arg5: memref<4x8x32xf32, #tpu.memory_space<vmem>>, %arg6: memref<1x32xf32, #tpu.memory_space<vmem>>, %arg7: memref<1x32xf32, #tpu.memory_space<vmem>>, %arg8: memref<1x32xf32, #tpu.memory_space<vmem>>, %arg9: memref<32x64xf32, #tpu.memory_space<vmem>>, %arg10: memref<1x64xf32, #tpu.memory_space<vmem>>, %arg11: memref<64x32xf32, #tpu.memory_space<vmem>>, %arg12: memref<1x32xf32, #tpu.memory_space<vmem>>, %arg13: memref<1x32xf32, #tpu.memory_space<vmem>>, %arg14: memref<1x32xf32, #tpu.memory_space<vmem>>, %arg15: memref<32x96xf32, #tpu.memory_space<vmem>>, %arg16: memref<1x96xf32, #tpu.memory_space<vmem>>, %arg17: memref<4x8x32xf32, #tpu.memory_space<vmem>>, %arg18: memref<1x32xf32, #tpu.memory_space<vmem>>, %arg19: memref<1x32xf32, #tpu.memory_space<vmem>>, %arg20: memref<1x32xf32, #tpu.memory_space<vmem>>, %arg21: memref<32x64xf32, #tpu.memory_space<vmem>>, %arg22: memref<1x64xf32, #tpu.memory_space<vmem>>, %arg23: memref<64x32xf32, #tpu.memory_space<vmem>>, %arg24: memref<1x32xf32, #tpu.memory_space<vmem>>, %arg25: memref<1x32xf32, #tpu.memory_space<vmem>>, %arg26: memref<1x32xf32, #tpu.memory_space<vmem>>, %arg27: memref<32x96xf32, #tpu.memory_space<vmem>>, %arg28: memref<1x96xf32, #tpu.memory_space<vmem>>, %arg29: memref<4x8x32xf32, #tpu.memory_space<vmem>>, %arg30: memref<1x32xf32, #tpu.memory_space<vmem>>, %arg31: memref<1x32xf32, #tpu.memory_space<vmem>>, %arg32: memref<1x32xf32, #tpu.memory_space<vmem>>, %arg33: memref<32x64xf32, #tpu.memory_space<vmem>>, %arg34: memref<1x64xf32, #tpu.memory_space<vmem>>, %arg35: memref<64x32xf32, #tpu.memory_space<vmem>>, %arg36: memref<1x32xf32, #tpu.memory_space<vmem>>, %arg37: memref<1x32xf32, #tpu.memory_space<vmem>>, %arg38: memref<1x32xf32, #tpu.memory_space<vmem>>, %arg39: memref<32x32xf32, #tpu.memory_space<vmem>>, %arg40: memref<32x32xf32, #tpu.memory_space<vmem>>, %arg41: memref<1x32xf32, #tpu.memory_space<vmem>>, %arg42: memref<1x8x32xf32, #tpu.memory_space<vmem>>) attributes {dimension_semantics = [#tpu.dimension_semantics<parallel>], iteration_bounds = array<i64: 2>, scalar_prefetch = 0 : i64, scratch_operands = 0 : i64, tpu.core_type = #tpu.core_type<tc>, window_params = [{transform_indices = @transform_0, window_bounds = array<i64: 1, 8, 32>}, {transform_indices = @transform_1, window_bounds = array<i64: 1, 8, 32>}, {pipeline_mode = #tpu.pipeline_mode<synchronous>, transform_indices = @transform_2, window_bounds = array<i64: 32, 96>}, {pipeline_mode = #tpu.pipeline_mode<synchronous>, transform_indices = @transform_3, window_bounds = array<i64: 1, 96>}, {pipeline_mode = #tpu.pipeline_mode<synchronous>, transform_indices = @transform_4, window_bounds = array<i64: 4, 8, 32>}, {pipeline_mode = #tpu.pipeline_mode<synchronous>, transform_indices = @transform_5, window_bounds = array<i64: 1, 32>}, {pipeline_mode = #tpu.pipeline_mode<synchronous>, transform_indices = @transform_6, window_bounds = array<i64: 1, 32>}, {pipeline_mode = #tpu.pipeline_mode<synchronous>, transform_indices = @transform_7, window_bounds = array<i64: 1, 32>}, {pipeline_mode = #tpu.pipeline_mode<synchronous>, transform_indices = @transform_8, window_bounds = array<i64: 32, 64>}, {pipeline_mode = #tpu.pipeline_mode<synchronous>, transform_indices = @transform_9, window_bounds = array<i64: 1, 64>}, {pipeline_mode = #tpu.pipeline_mode<synchronous>, transform_indices = @transform_10, window_bounds = array<i64: 64, 32>}, {pipeline_mode = #tpu.pipeline_mode<synchronous>, transform_indices = @transform_11, window_bounds = array<i64: 1, 32>}, {pipeline_mode = #tpu.pipeline_mode<synchronous>, transform_indices = @transform_12, window_bounds = array<i64: 1, 32>}, {pipeline_mode = #tpu.pipeline_mode<synchronous>, transform_indices = @transform_13, window_bounds = array<i64: 1, 32>}, {pipeline_mode = #tpu.pipeline_mode<synchronous>, transform_indices = @transform_14, window_bounds = array<i64: 32, 96>}, {pipeline_mode = #tpu.pipeline_mode<synchronous>, transform_indices = @transform_15, window_bounds = array<i64: 1, 96>}, {pipeline_mode = #tpu.pipeline_mode<synchronous>, transform_indices = @transform_16, window_bounds = array<i64: 4, 8, 32>}, {pipeline_mode = #tpu.pipeline_mode<synchronous>, transform_indices = @transform_17, window_bounds = array<i64: 1, 32>}, {pipeline_mode = #tpu.pipeline_mode<synchronous>, transform_indices = @transform_18, window_bounds = array<i64: 1, 32>}, {pipeline_mode = #tpu.pipeline_mode<synchronous>, transform_indices = @transform_19, window_bounds = array<i64: 1, 32>}, {pipeline_mode = #tpu.pipeline_mode<synchronous>, transform_indices = @transform_20, window_bounds = array<i64: 32, 64>}, {pipeline_mode = #tpu.pipeline_mode<synchronous>, transform_indices = @transform_21, window_bounds = array<i64: 1, 64>}, {pipeline_mode = #tpu.pipeline_mode<synchronous>, transform_indices = @transform_22, window_bounds = array<i64: 64, 32>}, {pipeline_mode = #tpu.pipeline_mode<synchronous>, transform_indices = @transform_23, window_bounds = array<i64: 1, 32>}, {pipeline_mode = #tpu.pipeline_mode<synchronous>, transform_indices = @transform_24, window_bounds = array<i64: 1, 32>}, {pipeline_mode = #tpu.pipeline_mode<synchronous>, transform_indices = @transform_25, window_bounds = array<i64: 1, 32>}, {pipeline_mode = #tpu.pipeline_mode<synchronous>, transform_indices = @transform_26, window_bounds = array<i64: 32, 96>}, {pipeline_mode = #tpu.pipeline_mode<synchronous>, transform_indices = @transform_27, window_bounds = array<i64: 1, 96>}, {pipeline_mode = #tpu.pipeline_mode<synchronous>, transform_indices = @transform_28, window_bounds = array<i64: 4, 8, 32>}, {pipeline_mode = #tpu.pipeline_mode<synchronous>, transform_indices = @transform_29, window_bounds = array<i64: 1, 32>}, {pipeline_mode = #tpu.pipeline_mode<synchronous>, transform_indices = @transform_30, window_bounds = array<i64: 1, 32>}, {pipeline_mode = #tpu.pipeline_mode<synchronous>, transform_indices = @transform_31, window_bounds = array<i64: 1, 32>}, {pipeline_mode = #tpu.pipeline_mode<synchronous>, transform_indices = @transform_32, window_bounds = array<i64: 32, 64>}, {pipeline_mode = #tpu.pipeline_mode<synchronous>, transform_indices = @transform_33, window_bounds = array<i64: 1, 64>}, {pipeline_mode = #tpu.pipeline_mode<synchronous>, transform_indices = @transform_34, window_bounds = array<i64: 64, 32>}, {pipeline_mode = #tpu.pipeline_mode<synchronous>, transform_indices = @transform_35, window_bounds = array<i64: 1, 32>}, {pipeline_mode = #tpu.pipeline_mode<synchronous>, transform_indices = @transform_36, window_bounds = array<i64: 1, 32>}, {pipeline_mode = #tpu.pipeline_mode<synchronous>, transform_indices = @transform_37, window_bounds = array<i64: 1, 32>}, {pipeline_mode = #tpu.pipeline_mode<synchronous>, transform_indices = @transform_38, window_bounds = array<i64: 32, 32>}, {pipeline_mode = #tpu.pipeline_mode<synchronous>, transform_indices = @transform_39, window_bounds = array<i64: 32, 32>}, {pipeline_mode = #tpu.pipeline_mode<synchronous>, transform_indices = @transform_40, window_bounds = array<i64: 1, 32>}, {transform_indices = @transform_41, window_bounds = array<i64: 1, 8, 32>}]} {
    %c0 = arith.constant 0 : index
    %c0_0 = arith.constant 0 : index
    %c0_1 = arith.constant 0 : index
    %0 = vector.load %arg1[%c0, %c0_0, %c0_1] : memref<1x8x32xf32, #tpu.memory_space<vmem>>, vector<1x8x32xf32>
    %1 = vector.shape_cast %0 : vector<1x8x32xf32> to vector<8x32xf32>
    %c0_2 = arith.constant 0 : index
    %c0_3 = arith.constant 0 : index
    %c0_4 = arith.constant 0 : index
    %2 = vector.load %arg2[%c0_2, %c0_3, %c0_4] : memref<1x8x32xf32, #tpu.memory_space<vmem>>, vector<1x8x32xf32>
    %3 = vector.shape_cast %2 : vector<1x8x32xf32> to vector<8x32xf32>
    %4 = tpu.concatenate %1, %3 in 0 : vector<8x32xf32>, vector<8x32xf32> -> vector<16x32xf32>
    %c0_5 = arith.constant 0 : index
    %c0_6 = arith.constant 0 : index
    %5 = vector.load %arg3[%c0_5, %c0_6] : memref<32x96xf32, #tpu.memory_space<vmem>>, vector<32x96xf32>
    %cst = arith.constant dense<0.000000e+00> : vector<16x96xf32>
    %6 = tpu.matmul %4, %5, %cst {dimension_numbers = #tpu.dot_dimension_numbers<[1], [0], [0], [1], [0, 0, 1, 1], [], []>} : vector<16x32xf32>, vector<32x96xf32>, vector<16x96xf32> -> vector<16x96xf32>
    %c0_7 = arith.constant 0 : index
    %c0_8 = arith.constant 0 : index
    %7 = vector.load %arg4[%c0_7, %c0_8] : memref<1x96xf32, #tpu.memory_space<vmem>>, vector<1x96xf32>
    %8 = vector.broadcast %7 : vector<1x96xf32> to vector<16x96xf32>
    %9 = arith.addf %6, %8 : vector<16x96xf32>
    %10 = vector.extract_strided_slice %9 {offsets = [0, 0], sizes = [8, 96], strides = [1, 1]} : vector<16x96xf32> to vector<8x96xf32>
    %11 = vector.extract_strided_slice %9 {offsets = [0, 0], sizes = [8, 96], strides = [1, 1]} : vector<16x96xf32> to vector<8x96xf32>
    %cst_9 = arith.constant 0.000000e+00 : f32
    %12 = vector.broadcast %cst_9 : f32 to vector<8x32xf32>
    %c0_10 = arith.constant 0 : index
    %c0_11 = arith.constant 0 : index
    %13 = vector.load %arg6[%c0_10, %c0_11] : memref<1x32xf32, #tpu.memory_space<vmem>>, vector<1x32xf32>
    %14 = vector.broadcast %13 : vector<1x32xf32> to vector<8x32xf32>
    %15 = arith.addf %12, %14 : vector<8x32xf32>
    %16 = vector.extract_strided_slice %10 {offsets = [0, 0], sizes = [8, 8], strides = [1, 1]} : vector<8x96xf32> to vector<8x8xf32>
    %17 = vector.extract_strided_slice %11 {offsets = [0, 32], sizes = [8, 8], strides = [1, 1]} : vector<8x96xf32> to vector<8x8xf32>
    %18 = vector.extract_strided_slice %11 {offsets = [0, 64], sizes = [8, 8], strides = [1, 1]} : vector<8x96xf32> to vector<8x8xf32>
    %19 = tpu.transpose %17, [1, 0] : vector<8x8xf32> -> vector<8x8xf32>
    %cst_12 = arith.constant dense<0.000000e+00> : vector<8x8xf32>
    %20 = tpu.matmul %16, %19, %cst_12 {dimension_numbers = #tpu.dot_dimension_numbers<[1], [0], [0], [1], [0, 0, 1, 1], [], []>} : vector<8x8xf32>, vector<8x8xf32>, vector<8x8xf32> -> vector<8x8xf32>
    %cst_13 = arith.constant dense<0xFF800000> : vector<8xf32>
    %21 = vector.multi_reduction <maximumf>, %20, %cst_13 [1] : vector<8x8xf32> to vector<8xf32>
    %22 = vector.shape_cast %21 : vector<8xf32> to vector<8x1xf32>
    %23 = vector.broadcast %22 : vector<8x1xf32> to vector<8x8xf32>
    %24 = arith.subf %20, %23 : vector<8x8xf32>
    %25 = math.exp %24 : vector<8x8xf32>
    %cst_14 = arith.constant dense<0.000000e+00> : vector<8xf32>
    %26 = vector.multi_reduction <add>, %25, %cst_14 [1] : vector<8x8xf32> to vector<8xf32>
    %27 = vector.shape_cast %26 : vector<8xf32> to vector<8x1xf32>
    %28 = vector.broadcast %27 : vector<8x1xf32> to vector<8x8xf32>
    %29 = arith.divf %25, %28 : vector<8x8xf32>
    %cst_15 = arith.constant dense<0.000000e+00> : vector<8x8xf32>
    %30 = tpu.matmul %29, %18, %cst_15 {dimension_numbers = #tpu.dot_dimension_numbers<[1], [0], [0], [1], [0, 0, 1, 1], [], []>} : vector<8x8xf32>, vector<8x8xf32>, vector<8x8xf32> -> vector<8x8xf32>
    %c0_16 = arith.constant 0 : index
    %c0_17 = arith.constant 0 : index
    %c0_18 = arith.constant 0 : index
    %31 = vector.load %arg5[%c0_16, %c0_17, %c0_18] : memref<4x8x32xf32, #tpu.memory_space<vmem>>, vector<1x8x32xf32>
    %32 = vector.shape_cast %31 : vector<1x8x32xf32> to vector<8x32xf32>
    %cst_19 = arith.constant dense<0.000000e+00> : vector<8x32xf32>
    %33 = tpu.matmul %30, %32, %cst_19 {dimension_numbers = #tpu.dot_dimension_numbers<[1], [0], [0], [1], [0, 0, 1, 1], [], []>} : vector<8x8xf32>, vector<8x32xf32>, vector<8x32xf32> -> vector<8x32xf32>
    %34 = arith.addf %15, %33 : vector<8x32xf32>
    %35 = vector.extract_strided_slice %10 {offsets = [0, 8], sizes = [8, 8], strides = [1, 1]} : vector<8x96xf32> to vector<8x8xf32>
    %36 = vector.extract_strided_slice %11 {offsets = [0, 40], sizes = [8, 8], strides = [1, 1]} : vector<8x96xf32> to vector<8x8xf32>
    %37 = vector.extract_strided_slice %11 {offsets = [0, 72], sizes = [8, 8], strides = [1, 1]} : vector<8x96xf32> to vector<8x8xf32>
    %38 = tpu.transpose %36, [1, 0] : vector<8x8xf32> -> vector<8x8xf32>
    %cst_20 = arith.constant dense<0.000000e+00> : vector<8x8xf32>
    %39 = tpu.matmul %35, %38, %cst_20 {dimension_numbers = #tpu.dot_dimension_numbers<[1], [0], [0], [1], [0, 0, 1, 1], [], []>} : vector<8x8xf32>, vector<8x8xf32>, vector<8x8xf32> -> vector<8x8xf32>
    %cst_21 = arith.constant dense<0xFF800000> : vector<8xf32>
    %40 = vector.multi_reduction <maximumf>, %39, %cst_21 [1] : vector<8x8xf32> to vector<8xf32>
    %41 = vector.shape_cast %40 : vector<8xf32> to vector<8x1xf32>
    %42 = vector.broadcast %41 : vector<8x1xf32> to vector<8x8xf32>
    %43 = arith.subf %39, %42 : vector<8x8xf32>
    %44 = math.exp %43 : vector<8x8xf32>
    %cst_22 = arith.constant dense<0.000000e+00> : vector<8xf32>
    %45 = vector.multi_reduction <add>, %44, %cst_22 [1] : vector<8x8xf32> to vector<8xf32>
    %46 = vector.shape_cast %45 : vector<8xf32> to vector<8x1xf32>
    %47 = vector.broadcast %46 : vector<8x1xf32> to vector<8x8xf32>
    %48 = arith.divf %44, %47 : vector<8x8xf32>
    %cst_23 = arith.constant dense<0.000000e+00> : vector<8x8xf32>
    %49 = tpu.matmul %48, %37, %cst_23 {dimension_numbers = #tpu.dot_dimension_numbers<[1], [0], [0], [1], [0, 0, 1, 1], [], []>} : vector<8x8xf32>, vector<8x8xf32>, vector<8x8xf32> -> vector<8x8xf32>
    %c1 = arith.constant 1 : index
    %c0_24 = arith.constant 0 : index
    %c0_25 = arith.constant 0 : index
    %50 = vector.load %arg5[%c1, %c0_24, %c0_25] : memref<4x8x32xf32, #tpu.memory_space<vmem>>, vector<1x8x32xf32>
    %51 = vector.shape_cast %50 : vector<1x8x32xf32> to vector<8x32xf32>
    %cst_26 = arith.constant dense<0.000000e+00> : vector<8x32xf32>
    %52 = tpu.matmul %49, %51, %cst_26 {dimension_numbers = #tpu.dot_dimension_numbers<[1], [0], [0], [1], [0, 0, 1, 1], [], []>} : vector<8x8xf32>, vector<8x32xf32>, vector<8x32xf32> -> vector<8x32xf32>
    %53 = arith.addf %34, %52 : vector<8x32xf32>
    %54 = vector.extract_strided_slice %10 {offsets = [0, 16], sizes = [8, 8], strides = [1, 1]} : vector<8x96xf32> to vector<8x8xf32>
    %55 = vector.extract_strided_slice %11 {offsets = [0, 48], sizes = [8, 8], strides = [1, 1]} : vector<8x96xf32> to vector<8x8xf32>
    %56 = vector.extract_strided_slice %11 {offsets = [0, 80], sizes = [8, 8], strides = [1, 1]} : vector<8x96xf32> to vector<8x8xf32>
    %57 = tpu.transpose %55, [1, 0] : vector<8x8xf32> -> vector<8x8xf32>
    %cst_27 = arith.constant dense<0.000000e+00> : vector<8x8xf32>
    %58 = tpu.matmul %54, %57, %cst_27 {dimension_numbers = #tpu.dot_dimension_numbers<[1], [0], [0], [1], [0, 0, 1, 1], [], []>} : vector<8x8xf32>, vector<8x8xf32>, vector<8x8xf32> -> vector<8x8xf32>
    %cst_28 = arith.constant dense<0xFF800000> : vector<8xf32>
    %59 = vector.multi_reduction <maximumf>, %58, %cst_28 [1] : vector<8x8xf32> to vector<8xf32>
    %60 = vector.shape_cast %59 : vector<8xf32> to vector<8x1xf32>
    %61 = vector.broadcast %60 : vector<8x1xf32> to vector<8x8xf32>
    %62 = arith.subf %58, %61 : vector<8x8xf32>
    %63 = math.exp %62 : vector<8x8xf32>
    %cst_29 = arith.constant dense<0.000000e+00> : vector<8xf32>
    %64 = vector.multi_reduction <add>, %63, %cst_29 [1] : vector<8x8xf32> to vector<8xf32>
    %65 = vector.shape_cast %64 : vector<8xf32> to vector<8x1xf32>
    %66 = vector.broadcast %65 : vector<8x1xf32> to vector<8x8xf32>
    %67 = arith.divf %63, %66 : vector<8x8xf32>
    %cst_30 = arith.constant dense<0.000000e+00> : vector<8x8xf32>
    %68 = tpu.matmul %67, %56, %cst_30 {dimension_numbers = #tpu.dot_dimension_numbers<[1], [0], [0], [1], [0, 0, 1, 1], [], []>} : vector<8x8xf32>, vector<8x8xf32>, vector<8x8xf32> -> vector<8x8xf32>
    %c2 = arith.constant 2 : index
    %c0_31 = arith.constant 0 : index
    %c0_32 = arith.constant 0 : index
    %69 = vector.load %arg5[%c2, %c0_31, %c0_32] : memref<4x8x32xf32, #tpu.memory_space<vmem>>, vector<1x8x32xf32>
    %70 = vector.shape_cast %69 : vector<1x8x32xf32> to vector<8x32xf32>
    %cst_33 = arith.constant dense<0.000000e+00> : vector<8x32xf32>
    %71 = tpu.matmul %68, %70, %cst_33 {dimension_numbers = #tpu.dot_dimension_numbers<[1], [0], [0], [1], [0, 0, 1, 1], [], []>} : vector<8x8xf32>, vector<8x32xf32>, vector<8x32xf32> -> vector<8x32xf32>
    %72 = arith.addf %53, %71 : vector<8x32xf32>
    %73 = vector.extract_strided_slice %10 {offsets = [0, 24], sizes = [8, 8], strides = [1, 1]} : vector<8x96xf32> to vector<8x8xf32>
    %74 = vector.extract_strided_slice %11 {offsets = [0, 56], sizes = [8, 8], strides = [1, 1]} : vector<8x96xf32> to vector<8x8xf32>
    %75 = vector.extract_strided_slice %11 {offsets = [0, 88], sizes = [8, 8], strides = [1, 1]} : vector<8x96xf32> to vector<8x8xf32>
    %76 = tpu.transpose %74, [1, 0] : vector<8x8xf32> -> vector<8x8xf32>
    %cst_34 = arith.constant dense<0.000000e+00> : vector<8x8xf32>
    %77 = tpu.matmul %73, %76, %cst_34 {dimension_numbers = #tpu.dot_dimension_numbers<[1], [0], [0], [1], [0, 0, 1, 1], [], []>} : vector<8x8xf32>, vector<8x8xf32>, vector<8x8xf32> -> vector<8x8xf32>
    %cst_35 = arith.constant dense<0xFF800000> : vector<8xf32>
    %78 = vector.multi_reduction <maximumf>, %77, %cst_35 [1] : vector<8x8xf32> to vector<8xf32>
    %79 = vector.shape_cast %78 : vector<8xf32> to vector<8x1xf32>
    %80 = vector.broadcast %79 : vector<8x1xf32> to vector<8x8xf32>
    %81 = arith.subf %77, %80 : vector<8x8xf32>
    %82 = math.exp %81 : vector<8x8xf32>
    %cst_36 = arith.constant dense<0.000000e+00> : vector<8xf32>
    %83 = vector.multi_reduction <add>, %82, %cst_36 [1] : vector<8x8xf32> to vector<8xf32>
    %84 = vector.shape_cast %83 : vector<8xf32> to vector<8x1xf32>
    %85 = vector.broadcast %84 : vector<8x1xf32> to vector<8x8xf32>
    %86 = arith.divf %82, %85 : vector<8x8xf32>
    %cst_37 = arith.constant dense<0.000000e+00> : vector<8x8xf32>
    %87 = tpu.matmul %86, %75, %cst_37 {dimension_numbers = #tpu.dot_dimension_numbers<[1], [0], [0], [1], [0, 0, 1, 1], [], []>} : vector<8x8xf32>, vector<8x8xf32>, vector<8x8xf32> -> vector<8x8xf32>
    %c3 = arith.constant 3 : index
    %c0_38 = arith.constant 0 : index
    %c0_39 = arith.constant 0 : index
    %88 = vector.load %arg5[%c3, %c0_38, %c0_39] : memref<4x8x32xf32, #tpu.memory_space<vmem>>, vector<1x8x32xf32>
    %89 = vector.shape_cast %88 : vector<1x8x32xf32> to vector<8x32xf32>
    %cst_40 = arith.constant dense<0.000000e+00> : vector<8x32xf32>
    %90 = tpu.matmul %87, %89, %cst_40 {dimension_numbers = #tpu.dot_dimension_numbers<[1], [0], [0], [1], [0, 0, 1, 1], [], []>} : vector<8x8xf32>, vector<8x32xf32>, vector<8x32xf32> -> vector<8x32xf32>
    %91 = arith.addf %72, %90 : vector<8x32xf32>
    %92 = vector.extract_strided_slice %9 {offsets = [8, 0], sizes = [8, 96], strides = [1, 1]} : vector<16x96xf32> to vector<8x96xf32>
    %93 = vector.extract_strided_slice %9 {offsets = [8, 0], sizes = [8, 96], strides = [1, 1]} : vector<16x96xf32> to vector<8x96xf32>
    %cst_41 = arith.constant 0.000000e+00 : f32
    %94 = vector.broadcast %cst_41 : f32 to vector<8x32xf32>
    %c0_42 = arith.constant 0 : index
    %c0_43 = arith.constant 0 : index
    %95 = vector.load %arg6[%c0_42, %c0_43] : memref<1x32xf32, #tpu.memory_space<vmem>>, vector<1x32xf32>
    %96 = vector.broadcast %95 : vector<1x32xf32> to vector<8x32xf32>
    %97 = arith.addf %94, %96 : vector<8x32xf32>
    %98 = vector.extract_strided_slice %92 {offsets = [0, 0], sizes = [8, 8], strides = [1, 1]} : vector<8x96xf32> to vector<8x8xf32>
    %99 = vector.extract_strided_slice %93 {offsets = [0, 32], sizes = [8, 8], strides = [1, 1]} : vector<8x96xf32> to vector<8x8xf32>
    %100 = vector.extract_strided_slice %93 {offsets = [0, 64], sizes = [8, 8], strides = [1, 1]} : vector<8x96xf32> to vector<8x8xf32>
    %101 = tpu.transpose %99, [1, 0] : vector<8x8xf32> -> vector<8x8xf32>
    %cst_44 = arith.constant dense<0.000000e+00> : vector<8x8xf32>
    %102 = tpu.matmul %98, %101, %cst_44 {dimension_numbers = #tpu.dot_dimension_numbers<[1], [0], [0], [1], [0, 0, 1, 1], [], []>} : vector<8x8xf32>, vector<8x8xf32>, vector<8x8xf32> -> vector<8x8xf32>
    %cst_45 = arith.constant dense<0xFF800000> : vector<8xf32>
    %103 = vector.multi_reduction <maximumf>, %102, %cst_45 [1] : vector<8x8xf32> to vector<8xf32>
    %104 = vector.shape_cast %103 : vector<8xf32> to vector<8x1xf32>
    %105 = vector.broadcast %104 : vector<8x1xf32> to vector<8x8xf32>
    %106 = arith.subf %102, %105 : vector<8x8xf32>
    %107 = math.exp %106 : vector<8x8xf32>
    %cst_46 = arith.constant dense<0.000000e+00> : vector<8xf32>
    %108 = vector.multi_reduction <add>, %107, %cst_46 [1] : vector<8x8xf32> to vector<8xf32>
    %109 = vector.shape_cast %108 : vector<8xf32> to vector<8x1xf32>
    %110 = vector.broadcast %109 : vector<8x1xf32> to vector<8x8xf32>
    %111 = arith.divf %107, %110 : vector<8x8xf32>
    %cst_47 = arith.constant dense<0.000000e+00> : vector<8x8xf32>
    %112 = tpu.matmul %111, %100, %cst_47 {dimension_numbers = #tpu.dot_dimension_numbers<[1], [0], [0], [1], [0, 0, 1, 1], [], []>} : vector<8x8xf32>, vector<8x8xf32>, vector<8x8xf32> -> vector<8x8xf32>
    %c0_48 = arith.constant 0 : index
    %c0_49 = arith.constant 0 : index
    %c0_50 = arith.constant 0 : index
    %113 = vector.load %arg5[%c0_48, %c0_49, %c0_50] : memref<4x8x32xf32, #tpu.memory_space<vmem>>, vector<1x8x32xf32>
    %114 = vector.shape_cast %113 : vector<1x8x32xf32> to vector<8x32xf32>
    %cst_51 = arith.constant dense<0.000000e+00> : vector<8x32xf32>
    %115 = tpu.matmul %112, %114, %cst_51 {dimension_numbers = #tpu.dot_dimension_numbers<[1], [0], [0], [1], [0, 0, 1, 1], [], []>} : vector<8x8xf32>, vector<8x32xf32>, vector<8x32xf32> -> vector<8x32xf32>
    %116 = arith.addf %97, %115 : vector<8x32xf32>
    %117 = vector.extract_strided_slice %92 {offsets = [0, 8], sizes = [8, 8], strides = [1, 1]} : vector<8x96xf32> to vector<8x8xf32>
    %118 = vector.extract_strided_slice %93 {offsets = [0, 40], sizes = [8, 8], strides = [1, 1]} : vector<8x96xf32> to vector<8x8xf32>
    %119 = vector.extract_strided_slice %93 {offsets = [0, 72], sizes = [8, 8], strides = [1, 1]} : vector<8x96xf32> to vector<8x8xf32>
    %120 = tpu.transpose %118, [1, 0] : vector<8x8xf32> -> vector<8x8xf32>
    %cst_52 = arith.constant dense<0.000000e+00> : vector<8x8xf32>
    %121 = tpu.matmul %117, %120, %cst_52 {dimension_numbers = #tpu.dot_dimension_numbers<[1], [0], [0], [1], [0, 0, 1, 1], [], []>} : vector<8x8xf32>, vector<8x8xf32>, vector<8x8xf32> -> vector<8x8xf32>
    %cst_53 = arith.constant dense<0xFF800000> : vector<8xf32>
    %122 = vector.multi_reduction <maximumf>, %121, %cst_53 [1] : vector<8x8xf32> to vector<8xf32>
    %123 = vector.shape_cast %122 : vector<8xf32> to vector<8x1xf32>
    %124 = vector.broadcast %123 : vector<8x1xf32> to vector<8x8xf32>
    %125 = arith.subf %121, %124 : vector<8x8xf32>
    %126 = math.exp %125 : vector<8x8xf32>
    %cst_54 = arith.constant dense<0.000000e+00> : vector<8xf32>
    %127 = vector.multi_reduction <add>, %126, %cst_54 [1] : vector<8x8xf32> to vector<8xf32>
    %128 = vector.shape_cast %127 : vector<8xf32> to vector<8x1xf32>
    %129 = vector.broadcast %128 : vector<8x1xf32> to vector<8x8xf32>
    %130 = arith.divf %126, %129 : vector<8x8xf32>
    %cst_55 = arith.constant dense<0.000000e+00> : vector<8x8xf32>
    %131 = tpu.matmul %130, %119, %cst_55 {dimension_numbers = #tpu.dot_dimension_numbers<[1], [0], [0], [1], [0, 0, 1, 1], [], []>} : vector<8x8xf32>, vector<8x8xf32>, vector<8x8xf32> -> vector<8x8xf32>
    %c1_56 = arith.constant 1 : index
    %c0_57 = arith.constant 0 : index
    %c0_58 = arith.constant 0 : index
    %132 = vector.load %arg5[%c1_56, %c0_57, %c0_58] : memref<4x8x32xf32, #tpu.memory_space<vmem>>, vector<1x8x32xf32>
    %133 = vector.shape_cast %132 : vector<1x8x32xf32> to vector<8x32xf32>
    %cst_59 = arith.constant dense<0.000000e+00> : vector<8x32xf32>
    %134 = tpu.matmul %131, %133, %cst_59 {dimension_numbers = #tpu.dot_dimension_numbers<[1], [0], [0], [1], [0, 0, 1, 1], [], []>} : vector<8x8xf32>, vector<8x32xf32>, vector<8x32xf32> -> vector<8x32xf32>
    %135 = arith.addf %116, %134 : vector<8x32xf32>
    %136 = vector.extract_strided_slice %92 {offsets = [0, 16], sizes = [8, 8], strides = [1, 1]} : vector<8x96xf32> to vector<8x8xf32>
    %137 = vector.extract_strided_slice %93 {offsets = [0, 48], sizes = [8, 8], strides = [1, 1]} : vector<8x96xf32> to vector<8x8xf32>
    %138 = vector.extract_strided_slice %93 {offsets = [0, 80], sizes = [8, 8], strides = [1, 1]} : vector<8x96xf32> to vector<8x8xf32>
    %139 = tpu.transpose %137, [1, 0] : vector<8x8xf32> -> vector<8x8xf32>
    %cst_60 = arith.constant dense<0.000000e+00> : vector<8x8xf32>
    %140 = tpu.matmul %136, %139, %cst_60 {dimension_numbers = #tpu.dot_dimension_numbers<[1], [0], [0], [1], [0, 0, 1, 1], [], []>} : vector<8x8xf32>, vector<8x8xf32>, vector<8x8xf32> -> vector<8x8xf32>
    %cst_61 = arith.constant dense<0xFF800000> : vector<8xf32>
    %141 = vector.multi_reduction <maximumf>, %140, %cst_61 [1] : vector<8x8xf32> to vector<8xf32>
    %142 = vector.shape_cast %141 : vector<8xf32> to vector<8x1xf32>
    %143 = vector.broadcast %142 : vector<8x1xf32> to vector<8x8xf32>
    %144 = arith.subf %140, %143 : vector<8x8xf32>
    %145 = math.exp %144 : vector<8x8xf32>
    %cst_62 = arith.constant dense<0.000000e+00> : vector<8xf32>
    %146 = vector.multi_reduction <add>, %145, %cst_62 [1] : vector<8x8xf32> to vector<8xf32>
    %147 = vector.shape_cast %146 : vector<8xf32> to vector<8x1xf32>
    %148 = vector.broadcast %147 : vector<8x1xf32> to vector<8x8xf32>
    %149 = arith.divf %145, %148 : vector<8x8xf32>
    %cst_63 = arith.constant dense<0.000000e+00> : vector<8x8xf32>
    %150 = tpu.matmul %149, %138, %cst_63 {dimension_numbers = #tpu.dot_dimension_numbers<[1], [0], [0], [1], [0, 0, 1, 1], [], []>} : vector<8x8xf32>, vector<8x8xf32>, vector<8x8xf32> -> vector<8x8xf32>
    %c2_64 = arith.constant 2 : index
    %c0_65 = arith.constant 0 : index
    %c0_66 = arith.constant 0 : index
    %151 = vector.load %arg5[%c2_64, %c0_65, %c0_66] : memref<4x8x32xf32, #tpu.memory_space<vmem>>, vector<1x8x32xf32>
    %152 = vector.shape_cast %151 : vector<1x8x32xf32> to vector<8x32xf32>
    %cst_67 = arith.constant dense<0.000000e+00> : vector<8x32xf32>
    %153 = tpu.matmul %150, %152, %cst_67 {dimension_numbers = #tpu.dot_dimension_numbers<[1], [0], [0], [1], [0, 0, 1, 1], [], []>} : vector<8x8xf32>, vector<8x32xf32>, vector<8x32xf32> -> vector<8x32xf32>
    %154 = arith.addf %135, %153 : vector<8x32xf32>
    %155 = vector.extract_strided_slice %92 {offsets = [0, 24], sizes = [8, 8], strides = [1, 1]} : vector<8x96xf32> to vector<8x8xf32>
    %156 = vector.extract_strided_slice %93 {offsets = [0, 56], sizes = [8, 8], strides = [1, 1]} : vector<8x96xf32> to vector<8x8xf32>
    %157 = vector.extract_strided_slice %93 {offsets = [0, 88], sizes = [8, 8], strides = [1, 1]} : vector<8x96xf32> to vector<8x8xf32>
    %158 = tpu.transpose %156, [1, 0] : vector<8x8xf32> -> vector<8x8xf32>
    %cst_68 = arith.constant dense<0.000000e+00> : vector<8x8xf32>
    %159 = tpu.matmul %155, %158, %cst_68 {dimension_numbers = #tpu.dot_dimension_numbers<[1], [0], [0], [1], [0, 0, 1, 1], [], []>} : vector<8x8xf32>, vector<8x8xf32>, vector<8x8xf32> -> vector<8x8xf32>
    %cst_69 = arith.constant dense<0xFF800000> : vector<8xf32>
    %160 = vector.multi_reduction <maximumf>, %159, %cst_69 [1] : vector<8x8xf32> to vector<8xf32>
    %161 = vector.shape_cast %160 : vector<8xf32> to vector<8x1xf32>
    %162 = vector.broadcast %161 : vector<8x1xf32> to vector<8x8xf32>
    %163 = arith.subf %159, %162 : vector<8x8xf32>
    %164 = math.exp %163 : vector<8x8xf32>
    %cst_70 = arith.constant dense<0.000000e+00> : vector<8xf32>
    %165 = vector.multi_reduction <add>, %164, %cst_70 [1] : vector<8x8xf32> to vector<8xf32>
    %166 = vector.shape_cast %165 : vector<8xf32> to vector<8x1xf32>
    %167 = vector.broadcast %166 : vector<8x1xf32> to vector<8x8xf32>
    %168 = arith.divf %164, %167 : vector<8x8xf32>
    %cst_71 = arith.constant dense<0.000000e+00> : vector<8x8xf32>
    %169 = tpu.matmul %168, %157, %cst_71 {dimension_numbers = #tpu.dot_dimension_numbers<[1], [0], [0], [1], [0, 0, 1, 1], [], []>} : vector<8x8xf32>, vector<8x8xf32>, vector<8x8xf32> -> vector<8x8xf32>
    %c3_72 = arith.constant 3 : index
    %c0_73 = arith.constant 0 : index
    %c0_74 = arith.constant 0 : index
    %170 = vector.load %arg5[%c3_72, %c0_73, %c0_74] : memref<4x8x32xf32, #tpu.memory_space<vmem>>, vector<1x8x32xf32>
    %171 = vector.shape_cast %170 : vector<1x8x32xf32> to vector<8x32xf32>
    %cst_75 = arith.constant dense<0.000000e+00> : vector<8x32xf32>
    %172 = tpu.matmul %169, %171, %cst_75 {dimension_numbers = #tpu.dot_dimension_numbers<[1], [0], [0], [1], [0, 0, 1, 1], [], []>} : vector<8x8xf32>, vector<8x32xf32>, vector<8x32xf32> -> vector<8x32xf32>
    %173 = arith.addf %154, %172 : vector<8x32xf32>
    %174 = tpu.concatenate %91, %173 in 0 : vector<8x32xf32>, vector<8x32xf32> -> vector<16x32xf32>
    %175 = arith.addf %4, %174 : vector<16x32xf32>
    %cst_76 = arith.constant dense<0.000000e+00> : vector<16xf32>
    %176 = vector.multi_reduction <add>, %175, %cst_76 [1] : vector<16x32xf32> to vector<16xf32>
    %177 = vector.shape_cast %176 : vector<16xf32> to vector<16x1xf32>
    %cst_77 = arith.constant 3.200000e+01 : f32
    %178 = vector.broadcast %cst_77 : f32 to vector<16x1xf32>
    %179 = arith.divf %177, %178 : vector<16x1xf32>
    %180 = vector.broadcast %179 : vector<16x1xf32> to vector<16x32xf32>
    %181 = arith.subf %175, %180 : vector<16x32xf32>
    %182 = arith.mulf %181, %181 : vector<16x32xf32>
    %cst_78 = arith.constant dense<0.000000e+00> : vector<16xf32>
    %183 = vector.multi_reduction <add>, %182, %cst_78 [1] : vector<16x32xf32> to vector<16xf32>
    %184 = vector.shape_cast %183 : vector<16xf32> to vector<16x1xf32>
    %cst_79 = arith.constant 3.200000e+01 : f32
    %185 = vector.broadcast %cst_79 : f32 to vector<16x1xf32>
    %186 = arith.divf %184, %185 : vector<16x1xf32>
    %187 = vector.broadcast %179 : vector<16x1xf32> to vector<16x32xf32>
    %188 = arith.subf %175, %187 : vector<16x32xf32>
    %cst_80 = arith.constant 9.99999974E-6 : f32
    %189 = vector.broadcast %cst_80 : f32 to vector<16x1xf32>
    %190 = arith.addf %186, %189 : vector<16x1xf32>
    %191 = math.rsqrt %190 : vector<16x1xf32>
    %192 = vector.broadcast %191 : vector<16x1xf32> to vector<16x32xf32>
    %193 = arith.mulf %188, %192 : vector<16x32xf32>
    %c0_81 = arith.constant 0 : index
    %c0_82 = arith.constant 0 : index
    %194 = vector.load %arg7[%c0_81, %c0_82] : memref<1x32xf32, #tpu.memory_space<vmem>>, vector<1x32xf32>
    %195 = vector.broadcast %194 : vector<1x32xf32> to vector<16x32xf32>
    %196 = arith.mulf %193, %195 : vector<16x32xf32>
    %c0_83 = arith.constant 0 : index
    %c0_84 = arith.constant 0 : index
    %197 = vector.load %arg8[%c0_83, %c0_84] : memref<1x32xf32, #tpu.memory_space<vmem>>, vector<1x32xf32>
    %198 = vector.broadcast %197 : vector<1x32xf32> to vector<16x32xf32>
    %199 = arith.addf %196, %198 : vector<16x32xf32>
    %c0_85 = arith.constant 0 : index
    %c0_86 = arith.constant 0 : index
    %200 = vector.load %arg9[%c0_85, %c0_86] : memref<32x64xf32, #tpu.memory_space<vmem>>, vector<32x64xf32>
    %cst_87 = arith.constant dense<0.000000e+00> : vector<16x64xf32>
    %201 = tpu.matmul %199, %200, %cst_87 {dimension_numbers = #tpu.dot_dimension_numbers<[1], [0], [0], [1], [0, 0, 1, 1], [], []>} : vector<16x32xf32>, vector<32x64xf32>, vector<16x64xf32> -> vector<16x64xf32>
    %c0_88 = arith.constant 0 : index
    %c0_89 = arith.constant 0 : index
    %202 = vector.load %arg10[%c0_88, %c0_89] : memref<1x64xf32, #tpu.memory_space<vmem>>, vector<1x64xf32>
    %203 = vector.broadcast %202 : vector<1x64xf32> to vector<16x64xf32>
    %204 = arith.addf %201, %203 : vector<16x64xf32>
    %cst_90 = arith.constant 0.000000e+00 : f32
    %205 = vector.broadcast %cst_90 : f32 to vector<16x64xf32>
    %206 = arith.maximumf %204, %205 : vector<16x64xf32>
    %c0_91 = arith.constant 0 : index
    %c0_92 = arith.constant 0 : index
    %207 = vector.load %arg11[%c0_91, %c0_92] : memref<64x32xf32, #tpu.memory_space<vmem>>, vector<64x32xf32>
    %cst_93 = arith.constant dense<0.000000e+00> : vector<16x32xf32>
    %208 = tpu.matmul %206, %207, %cst_93 {dimension_numbers = #tpu.dot_dimension_numbers<[1], [0], [0], [1], [0, 0, 1, 1], [], []>} : vector<16x64xf32>, vector<64x32xf32>, vector<16x32xf32> -> vector<16x32xf32>
    %c0_94 = arith.constant 0 : index
    %c0_95 = arith.constant 0 : index
    %209 = vector.load %arg12[%c0_94, %c0_95] : memref<1x32xf32, #tpu.memory_space<vmem>>, vector<1x32xf32>
    %210 = vector.broadcast %209 : vector<1x32xf32> to vector<16x32xf32>
    %211 = arith.addf %208, %210 : vector<16x32xf32>
    %212 = arith.addf %199, %211 : vector<16x32xf32>
    %cst_96 = arith.constant dense<0.000000e+00> : vector<16xf32>
    %213 = vector.multi_reduction <add>, %212, %cst_96 [1] : vector<16x32xf32> to vector<16xf32>
    %214 = vector.shape_cast %213 : vector<16xf32> to vector<16x1xf32>
    %cst_97 = arith.constant 3.200000e+01 : f32
    %215 = vector.broadcast %cst_97 : f32 to vector<16x1xf32>
    %216 = arith.divf %214, %215 : vector<16x1xf32>
    %217 = vector.broadcast %216 : vector<16x1xf32> to vector<16x32xf32>
    %218 = arith.subf %212, %217 : vector<16x32xf32>
    %219 = arith.mulf %218, %218 : vector<16x32xf32>
    %cst_98 = arith.constant dense<0.000000e+00> : vector<16xf32>
    %220 = vector.multi_reduction <add>, %219, %cst_98 [1] : vector<16x32xf32> to vector<16xf32>
    %221 = vector.shape_cast %220 : vector<16xf32> to vector<16x1xf32>
    %cst_99 = arith.constant 3.200000e+01 : f32
    %222 = vector.broadcast %cst_99 : f32 to vector<16x1xf32>
    %223 = arith.divf %221, %222 : vector<16x1xf32>
    %224 = vector.broadcast %216 : vector<16x1xf32> to vector<16x32xf32>
    %225 = arith.subf %212, %224 : vector<16x32xf32>
    %cst_100 = arith.constant 9.99999974E-6 : f32
    %226 = vector.broadcast %cst_100 : f32 to vector<16x1xf32>
    %227 = arith.addf %223, %226 : vector<16x1xf32>
    %228 = math.rsqrt %227 : vector<16x1xf32>
    %229 = vector.broadcast %228 : vector<16x1xf32> to vector<16x32xf32>
    %230 = arith.mulf %225, %229 : vector<16x32xf32>
    %c0_101 = arith.constant 0 : index
    %c0_102 = arith.constant 0 : index
    %231 = vector.load %arg13[%c0_101, %c0_102] : memref<1x32xf32, #tpu.memory_space<vmem>>, vector<1x32xf32>
    %232 = vector.broadcast %231 : vector<1x32xf32> to vector<16x32xf32>
    %233 = arith.mulf %230, %232 : vector<16x32xf32>
    %c0_103 = arith.constant 0 : index
    %c0_104 = arith.constant 0 : index
    %234 = vector.load %arg14[%c0_103, %c0_104] : memref<1x32xf32, #tpu.memory_space<vmem>>, vector<1x32xf32>
    %235 = vector.broadcast %234 : vector<1x32xf32> to vector<16x32xf32>
    %236 = arith.addf %233, %235 : vector<16x32xf32>
    %c0_105 = arith.constant 0 : index
    %c0_106 = arith.constant 0 : index
    %237 = vector.load %arg3[%c0_105, %c0_106] : memref<32x96xf32, #tpu.memory_space<vmem>>, vector<32x96xf32>
    %cst_107 = arith.constant dense<0.000000e+00> : vector<16x96xf32>
    %238 = tpu.matmul %236, %237, %cst_107 {dimension_numbers = #tpu.dot_dimension_numbers<[1], [0], [0], [1], [0, 0, 1, 1], [], []>} : vector<16x32xf32>, vector<32x96xf32>, vector<16x96xf32> -> vector<16x96xf32>
    %c0_108 = arith.constant 0 : index
    %c0_109 = arith.constant 0 : index
    %239 = vector.load %arg4[%c0_108, %c0_109] : memref<1x96xf32, #tpu.memory_space<vmem>>, vector<1x96xf32>
    %240 = vector.broadcast %239 : vector<1x96xf32> to vector<16x96xf32>
    %241 = arith.addf %238, %240 : vector<16x96xf32>
    %242 = vector.extract_strided_slice %241 {offsets = [0, 0], sizes = [8, 96], strides = [1, 1]} : vector<16x96xf32> to vector<8x96xf32>
    %243 = vector.extract_strided_slice %241 {offsets = [0, 0], sizes = [8, 96], strides = [1, 1]} : vector<16x96xf32> to vector<8x96xf32>
    %cst_110 = arith.constant 0.000000e+00 : f32
    %244 = vector.broadcast %cst_110 : f32 to vector<8x32xf32>
    %c0_111 = arith.constant 0 : index
    %c0_112 = arith.constant 0 : index
    %245 = vector.load %arg6[%c0_111, %c0_112] : memref<1x32xf32, #tpu.memory_space<vmem>>, vector<1x32xf32>
    %246 = vector.broadcast %245 : vector<1x32xf32> to vector<8x32xf32>
    %247 = arith.addf %244, %246 : vector<8x32xf32>
    %248 = vector.extract_strided_slice %242 {offsets = [0, 0], sizes = [8, 8], strides = [1, 1]} : vector<8x96xf32> to vector<8x8xf32>
    %249 = vector.extract_strided_slice %243 {offsets = [0, 32], sizes = [8, 8], strides = [1, 1]} : vector<8x96xf32> to vector<8x8xf32>
    %250 = vector.extract_strided_slice %243 {offsets = [0, 64], sizes = [8, 8], strides = [1, 1]} : vector<8x96xf32> to vector<8x8xf32>
    %251 = tpu.transpose %249, [1, 0] : vector<8x8xf32> -> vector<8x8xf32>
    %cst_113 = arith.constant dense<0.000000e+00> : vector<8x8xf32>
    %252 = tpu.matmul %248, %251, %cst_113 {dimension_numbers = #tpu.dot_dimension_numbers<[1], [0], [0], [1], [0, 0, 1, 1], [], []>} : vector<8x8xf32>, vector<8x8xf32>, vector<8x8xf32> -> vector<8x8xf32>
    %cst_114 = arith.constant dense<0xFF800000> : vector<8xf32>
    %253 = vector.multi_reduction <maximumf>, %252, %cst_114 [1] : vector<8x8xf32> to vector<8xf32>
    %254 = vector.shape_cast %253 : vector<8xf32> to vector<8x1xf32>
    %255 = vector.broadcast %254 : vector<8x1xf32> to vector<8x8xf32>
    %256 = arith.subf %252, %255 : vector<8x8xf32>
    %257 = math.exp %256 : vector<8x8xf32>
    %cst_115 = arith.constant dense<0.000000e+00> : vector<8xf32>
    %258 = vector.multi_reduction <add>, %257, %cst_115 [1] : vector<8x8xf32> to vector<8xf32>
    %259 = vector.shape_cast %258 : vector<8xf32> to vector<8x1xf32>
    %260 = vector.broadcast %259 : vector<8x1xf32> to vector<8x8xf32>
    %261 = arith.divf %257, %260 : vector<8x8xf32>
    %cst_116 = arith.constant dense<0.000000e+00> : vector<8x8xf32>
    %262 = tpu.matmul %261, %250, %cst_116 {dimension_numbers = #tpu.dot_dimension_numbers<[1], [0], [0], [1], [0, 0, 1, 1], [], []>} : vector<8x8xf32>, vector<8x8xf32>, vector<8x8xf32> -> vector<8x8xf32>
    %c0_117 = arith.constant 0 : index
    %c0_118 = arith.constant 0 : index
    %c0_119 = arith.constant 0 : index
    %263 = vector.load %arg5[%c0_117, %c0_118, %c0_119] : memref<4x8x32xf32, #tpu.memory_space<vmem>>, vector<1x8x32xf32>
    %264 = vector.shape_cast %263 : vector<1x8x32xf32> to vector<8x32xf32>
    %cst_120 = arith.constant dense<0.000000e+00> : vector<8x32xf32>
    %265 = tpu.matmul %262, %264, %cst_120 {dimension_numbers = #tpu.dot_dimension_numbers<[1], [0], [0], [1], [0, 0, 1, 1], [], []>} : vector<8x8xf32>, vector<8x32xf32>, vector<8x32xf32> -> vector<8x32xf32>
    %266 = arith.addf %247, %265 : vector<8x32xf32>
    %267 = vector.extract_strided_slice %242 {offsets = [0, 8], sizes = [8, 8], strides = [1, 1]} : vector<8x96xf32> to vector<8x8xf32>
    %268 = vector.extract_strided_slice %243 {offsets = [0, 40], sizes = [8, 8], strides = [1, 1]} : vector<8x96xf32> to vector<8x8xf32>
    %269 = vector.extract_strided_slice %243 {offsets = [0, 72], sizes = [8, 8], strides = [1, 1]} : vector<8x96xf32> to vector<8x8xf32>
    %270 = tpu.transpose %268, [1, 0] : vector<8x8xf32> -> vector<8x8xf32>
    %cst_121 = arith.constant dense<0.000000e+00> : vector<8x8xf32>
    %271 = tpu.matmul %267, %270, %cst_121 {dimension_numbers = #tpu.dot_dimension_numbers<[1], [0], [0], [1], [0, 0, 1, 1], [], []>} : vector<8x8xf32>, vector<8x8xf32>, vector<8x8xf32> -> vector<8x8xf32>
    %cst_122 = arith.constant dense<0xFF800000> : vector<8xf32>
    %272 = vector.multi_reduction <maximumf>, %271, %cst_122 [1] : vector<8x8xf32> to vector<8xf32>
    %273 = vector.shape_cast %272 : vector<8xf32> to vector<8x1xf32>
    %274 = vector.broadcast %273 : vector<8x1xf32> to vector<8x8xf32>
    %275 = arith.subf %271, %274 : vector<8x8xf32>
    %276 = math.exp %275 : vector<8x8xf32>
    %cst_123 = arith.constant dense<0.000000e+00> : vector<8xf32>
    %277 = vector.multi_reduction <add>, %276, %cst_123 [1] : vector<8x8xf32> to vector<8xf32>
    %278 = vector.shape_cast %277 : vector<8xf32> to vector<8x1xf32>
    %279 = vector.broadcast %278 : vector<8x1xf32> to vector<8x8xf32>
    %280 = arith.divf %276, %279 : vector<8x8xf32>
    %cst_124 = arith.constant dense<0.000000e+00> : vector<8x8xf32>
    %281 = tpu.matmul %280, %269, %cst_124 {dimension_numbers = #tpu.dot_dimension_numbers<[1], [0], [0], [1], [0, 0, 1, 1], [], []>} : vector<8x8xf32>, vector<8x8xf32>, vector<8x8xf32> -> vector<8x8xf32>
    %c1_125 = arith.constant 1 : index
    %c0_126 = arith.constant 0 : index
    %c0_127 = arith.constant 0 : index
    %282 = vector.load %arg5[%c1_125, %c0_126, %c0_127] : memref<4x8x32xf32, #tpu.memory_space<vmem>>, vector<1x8x32xf32>
    %283 = vector.shape_cast %282 : vector<1x8x32xf32> to vector<8x32xf32>
    %cst_128 = arith.constant dense<0.000000e+00> : vector<8x32xf32>
    %284 = tpu.matmul %281, %283, %cst_128 {dimension_numbers = #tpu.dot_dimension_numbers<[1], [0], [0], [1], [0, 0, 1, 1], [], []>} : vector<8x8xf32>, vector<8x32xf32>, vector<8x32xf32> -> vector<8x32xf32>
    %285 = arith.addf %266, %284 : vector<8x32xf32>
    %286 = vector.extract_strided_slice %242 {offsets = [0, 16], sizes = [8, 8], strides = [1, 1]} : vector<8x96xf32> to vector<8x8xf32>
    %287 = vector.extract_strided_slice %243 {offsets = [0, 48], sizes = [8, 8], strides = [1, 1]} : vector<8x96xf32> to vector<8x8xf32>
    %288 = vector.extract_strided_slice %243 {offsets = [0, 80], sizes = [8, 8], strides = [1, 1]} : vector<8x96xf32> to vector<8x8xf32>
    %289 = tpu.transpose %287, [1, 0] : vector<8x8xf32> -> vector<8x8xf32>
    %cst_129 = arith.constant dense<0.000000e+00> : vector<8x8xf32>
    %290 = tpu.matmul %286, %289, %cst_129 {dimension_numbers = #tpu.dot_dimension_numbers<[1], [0], [0], [1], [0, 0, 1, 1], [], []>} : vector<8x8xf32>, vector<8x8xf32>, vector<8x8xf32> -> vector<8x8xf32>
    %cst_130 = arith.constant dense<0xFF800000> : vector<8xf32>
    %291 = vector.multi_reduction <maximumf>, %290, %cst_130 [1] : vector<8x8xf32> to vector<8xf32>
    %292 = vector.shape_cast %291 : vector<8xf32> to vector<8x1xf32>
    %293 = vector.broadcast %292 : vector<8x1xf32> to vector<8x8xf32>
    %294 = arith.subf %290, %293 : vector<8x8xf32>
    %295 = math.exp %294 : vector<8x8xf32>
    %cst_131 = arith.constant dense<0.000000e+00> : vector<8xf32>
    %296 = vector.multi_reduction <add>, %295, %cst_131 [1] : vector<8x8xf32> to vector<8xf32>
    %297 = vector.shape_cast %296 : vector<8xf32> to vector<8x1xf32>
    %298 = vector.broadcast %297 : vector<8x1xf32> to vector<8x8xf32>
    %299 = arith.divf %295, %298 : vector<8x8xf32>
    %cst_132 = arith.constant dense<0.000000e+00> : vector<8x8xf32>
    %300 = tpu.matmul %299, %288, %cst_132 {dimension_numbers = #tpu.dot_dimension_numbers<[1], [0], [0], [1], [0, 0, 1, 1], [], []>} : vector<8x8xf32>, vector<8x8xf32>, vector<8x8xf32> -> vector<8x8xf32>
    %c2_133 = arith.constant 2 : index
    %c0_134 = arith.constant 0 : index
    %c0_135 = arith.constant 0 : index
    %301 = vector.load %arg5[%c2_133, %c0_134, %c0_135] : memref<4x8x32xf32, #tpu.memory_space<vmem>>, vector<1x8x32xf32>
    %302 = vector.shape_cast %301 : vector<1x8x32xf32> to vector<8x32xf32>
    %cst_136 = arith.constant dense<0.000000e+00> : vector<8x32xf32>
    %303 = tpu.matmul %300, %302, %cst_136 {dimension_numbers = #tpu.dot_dimension_numbers<[1], [0], [0], [1], [0, 0, 1, 1], [], []>} : vector<8x8xf32>, vector<8x32xf32>, vector<8x32xf32> -> vector<8x32xf32>
    %304 = arith.addf %285, %303 : vector<8x32xf32>
    %305 = vector.extract_strided_slice %242 {offsets = [0, 24], sizes = [8, 8], strides = [1, 1]} : vector<8x96xf32> to vector<8x8xf32>
    %306 = vector.extract_strided_slice %243 {offsets = [0, 56], sizes = [8, 8], strides = [1, 1]} : vector<8x96xf32> to vector<8x8xf32>
    %307 = vector.extract_strided_slice %243 {offsets = [0, 88], sizes = [8, 8], strides = [1, 1]} : vector<8x96xf32> to vector<8x8xf32>
    %308 = tpu.transpose %306, [1, 0] : vector<8x8xf32> -> vector<8x8xf32>
    %cst_137 = arith.constant dense<0.000000e+00> : vector<8x8xf32>
    %309 = tpu.matmul %305, %308, %cst_137 {dimension_numbers = #tpu.dot_dimension_numbers<[1], [0], [0], [1], [0, 0, 1, 1], [], []>} : vector<8x8xf32>, vector<8x8xf32>, vector<8x8xf32> -> vector<8x8xf32>
    %cst_138 = arith.constant dense<0xFF800000> : vector<8xf32>
    %310 = vector.multi_reduction <maximumf>, %309, %cst_138 [1] : vector<8x8xf32> to vector<8xf32>
    %311 = vector.shape_cast %310 : vector<8xf32> to vector<8x1xf32>
    %312 = vector.broadcast %311 : vector<8x1xf32> to vector<8x8xf32>
    %313 = arith.subf %309, %312 : vector<8x8xf32>
    %314 = math.exp %313 : vector<8x8xf32>
    %cst_139 = arith.constant dense<0.000000e+00> : vector<8xf32>
    %315 = vector.multi_reduction <add>, %314, %cst_139 [1] : vector<8x8xf32> to vector<8xf32>
    %316 = vector.shape_cast %315 : vector<8xf32> to vector<8x1xf32>
    %317 = vector.broadcast %316 : vector<8x1xf32> to vector<8x8xf32>
    %318 = arith.divf %314, %317 : vector<8x8xf32>
    %cst_140 = arith.constant dense<0.000000e+00> : vector<8x8xf32>
    %319 = tpu.matmul %318, %307, %cst_140 {dimension_numbers = #tpu.dot_dimension_numbers<[1], [0], [0], [1], [0, 0, 1, 1], [], []>} : vector<8x8xf32>, vector<8x8xf32>, vector<8x8xf32> -> vector<8x8xf32>
    %c3_141 = arith.constant 3 : index
    %c0_142 = arith.constant 0 : index
    %c0_143 = arith.constant 0 : index
    %320 = vector.load %arg5[%c3_141, %c0_142, %c0_143] : memref<4x8x32xf32, #tpu.memory_space<vmem>>, vector<1x8x32xf32>
    %321 = vector.shape_cast %320 : vector<1x8x32xf32> to vector<8x32xf32>
    %cst_144 = arith.constant dense<0.000000e+00> : vector<8x32xf32>
    %322 = tpu.matmul %319, %321, %cst_144 {dimension_numbers = #tpu.dot_dimension_numbers<[1], [0], [0], [1], [0, 0, 1, 1], [], []>} : vector<8x8xf32>, vector<8x32xf32>, vector<8x32xf32> -> vector<8x32xf32>
    %323 = arith.addf %304, %322 : vector<8x32xf32>
    %324 = vector.extract_strided_slice %241 {offsets = [8, 0], sizes = [8, 96], strides = [1, 1]} : vector<16x96xf32> to vector<8x96xf32>
    %325 = vector.extract_strided_slice %241 {offsets = [8, 0], sizes = [8, 96], strides = [1, 1]} : vector<16x96xf32> to vector<8x96xf32>
    %cst_145 = arith.constant 0.000000e+00 : f32
    %326 = vector.broadcast %cst_145 : f32 to vector<8x32xf32>
    %c0_146 = arith.constant 0 : index
    %c0_147 = arith.constant 0 : index
    %327 = vector.load %arg6[%c0_146, %c0_147] : memref<1x32xf32, #tpu.memory_space<vmem>>, vector<1x32xf32>
    %328 = vector.broadcast %327 : vector<1x32xf32> to vector<8x32xf32>
    %329 = arith.addf %326, %328 : vector<8x32xf32>
    %330 = vector.extract_strided_slice %324 {offsets = [0, 0], sizes = [8, 8], strides = [1, 1]} : vector<8x96xf32> to vector<8x8xf32>
    %331 = vector.extract_strided_slice %325 {offsets = [0, 32], sizes = [8, 8], strides = [1, 1]} : vector<8x96xf32> to vector<8x8xf32>
    %332 = vector.extract_strided_slice %325 {offsets = [0, 64], sizes = [8, 8], strides = [1, 1]} : vector<8x96xf32> to vector<8x8xf32>
    %333 = tpu.transpose %331, [1, 0] : vector<8x8xf32> -> vector<8x8xf32>
    %cst_148 = arith.constant dense<0.000000e+00> : vector<8x8xf32>
    %334 = tpu.matmul %330, %333, %cst_148 {dimension_numbers = #tpu.dot_dimension_numbers<[1], [0], [0], [1], [0, 0, 1, 1], [], []>} : vector<8x8xf32>, vector<8x8xf32>, vector<8x8xf32> -> vector<8x8xf32>
    %cst_149 = arith.constant dense<0xFF800000> : vector<8xf32>
    %335 = vector.multi_reduction <maximumf>, %334, %cst_149 [1] : vector<8x8xf32> to vector<8xf32>
    %336 = vector.shape_cast %335 : vector<8xf32> to vector<8x1xf32>
    %337 = vector.broadcast %336 : vector<8x1xf32> to vector<8x8xf32>
    %338 = arith.subf %334, %337 : vector<8x8xf32>
    %339 = math.exp %338 : vector<8x8xf32>
    %cst_150 = arith.constant dense<0.000000e+00> : vector<8xf32>
    %340 = vector.multi_reduction <add>, %339, %cst_150 [1] : vector<8x8xf32> to vector<8xf32>
    %341 = vector.shape_cast %340 : vector<8xf32> to vector<8x1xf32>
    %342 = vector.broadcast %341 : vector<8x1xf32> to vector<8x8xf32>
    %343 = arith.divf %339, %342 : vector<8x8xf32>
    %cst_151 = arith.constant dense<0.000000e+00> : vector<8x8xf32>
    %344 = tpu.matmul %343, %332, %cst_151 {dimension_numbers = #tpu.dot_dimension_numbers<[1], [0], [0], [1], [0, 0, 1, 1], [], []>} : vector<8x8xf32>, vector<8x8xf32>, vector<8x8xf32> -> vector<8x8xf32>
    %c0_152 = arith.constant 0 : index
    %c0_153 = arith.constant 0 : index
    %c0_154 = arith.constant 0 : index
    %345 = vector.load %arg5[%c0_152, %c0_153, %c0_154] : memref<4x8x32xf32, #tpu.memory_space<vmem>>, vector<1x8x32xf32>
    %346 = vector.shape_cast %345 : vector<1x8x32xf32> to vector<8x32xf32>
    %cst_155 = arith.constant dense<0.000000e+00> : vector<8x32xf32>
    %347 = tpu.matmul %344, %346, %cst_155 {dimension_numbers = #tpu.dot_dimension_numbers<[1], [0], [0], [1], [0, 0, 1, 1], [], []>} : vector<8x8xf32>, vector<8x32xf32>, vector<8x32xf32> -> vector<8x32xf32>
    %348 = arith.addf %329, %347 : vector<8x32xf32>
    %349 = vector.extract_strided_slice %324 {offsets = [0, 8], sizes = [8, 8], strides = [1, 1]} : vector<8x96xf32> to vector<8x8xf32>
    %350 = vector.extract_strided_slice %325 {offsets = [0, 40], sizes = [8, 8], strides = [1, 1]} : vector<8x96xf32> to vector<8x8xf32>
    %351 = vector.extract_strided_slice %325 {offsets = [0, 72], sizes = [8, 8], strides = [1, 1]} : vector<8x96xf32> to vector<8x8xf32>
    %352 = tpu.transpose %350, [1, 0] : vector<8x8xf32> -> vector<8x8xf32>
    %cst_156 = arith.constant dense<0.000000e+00> : vector<8x8xf32>
    %353 = tpu.matmul %349, %352, %cst_156 {dimension_numbers = #tpu.dot_dimension_numbers<[1], [0], [0], [1], [0, 0, 1, 1], [], []>} : vector<8x8xf32>, vector<8x8xf32>, vector<8x8xf32> -> vector<8x8xf32>
    %cst_157 = arith.constant dense<0xFF800000> : vector<8xf32>
    %354 = vector.multi_reduction <maximumf>, %353, %cst_157 [1] : vector<8x8xf32> to vector<8xf32>
    %355 = vector.shape_cast %354 : vector<8xf32> to vector<8x1xf32>
    %356 = vector.broadcast %355 : vector<8x1xf32> to vector<8x8xf32>
    %357 = arith.subf %353, %356 : vector<8x8xf32>
    %358 = math.exp %357 : vector<8x8xf32>
    %cst_158 = arith.constant dense<0.000000e+00> : vector<8xf32>
    %359 = vector.multi_reduction <add>, %358, %cst_158 [1] : vector<8x8xf32> to vector<8xf32>
    %360 = vector.shape_cast %359 : vector<8xf32> to vector<8x1xf32>
    %361 = vector.broadcast %360 : vector<8x1xf32> to vector<8x8xf32>
    %362 = arith.divf %358, %361 : vector<8x8xf32>
    %cst_159 = arith.constant dense<0.000000e+00> : vector<8x8xf32>
    %363 = tpu.matmul %362, %351, %cst_159 {dimension_numbers = #tpu.dot_dimension_numbers<[1], [0], [0], [1], [0, 0, 1, 1], [], []>} : vector<8x8xf32>, vector<8x8xf32>, vector<8x8xf32> -> vector<8x8xf32>
    %c1_160 = arith.constant 1 : index
    %c0_161 = arith.constant 0 : index
    %c0_162 = arith.constant 0 : index
    %364 = vector.load %arg5[%c1_160, %c0_161, %c0_162] : memref<4x8x32xf32, #tpu.memory_space<vmem>>, vector<1x8x32xf32>
    %365 = vector.shape_cast %364 : vector<1x8x32xf32> to vector<8x32xf32>
    %cst_163 = arith.constant dense<0.000000e+00> : vector<8x32xf32>
    %366 = tpu.matmul %363, %365, %cst_163 {dimension_numbers = #tpu.dot_dimension_numbers<[1], [0], [0], [1], [0, 0, 1, 1], [], []>} : vector<8x8xf32>, vector<8x32xf32>, vector<8x32xf32> -> vector<8x32xf32>
    %367 = arith.addf %348, %366 : vector<8x32xf32>
    %368 = vector.extract_strided_slice %324 {offsets = [0, 16], sizes = [8, 8], strides = [1, 1]} : vector<8x96xf32> to vector<8x8xf32>
    %369 = vector.extract_strided_slice %325 {offsets = [0, 48], sizes = [8, 8], strides = [1, 1]} : vector<8x96xf32> to vector<8x8xf32>
    %370 = vector.extract_strided_slice %325 {offsets = [0, 80], sizes = [8, 8], strides = [1, 1]} : vector<8x96xf32> to vector<8x8xf32>
    %371 = tpu.transpose %369, [1, 0] : vector<8x8xf32> -> vector<8x8xf32>
    %cst_164 = arith.constant dense<0.000000e+00> : vector<8x8xf32>
    %372 = tpu.matmul %368, %371, %cst_164 {dimension_numbers = #tpu.dot_dimension_numbers<[1], [0], [0], [1], [0, 0, 1, 1], [], []>} : vector<8x8xf32>, vector<8x8xf32>, vector<8x8xf32> -> vector<8x8xf32>
    %cst_165 = arith.constant dense<0xFF800000> : vector<8xf32>
    %373 = vector.multi_reduction <maximumf>, %372, %cst_165 [1] : vector<8x8xf32> to vector<8xf32>
    %374 = vector.shape_cast %373 : vector<8xf32> to vector<8x1xf32>
    %375 = vector.broadcast %374 : vector<8x1xf32> to vector<8x8xf32>
    %376 = arith.subf %372, %375 : vector<8x8xf32>
    %377 = math.exp %376 : vector<8x8xf32>
    %cst_166 = arith.constant dense<0.000000e+00> : vector<8xf32>
    %378 = vector.multi_reduction <add>, %377, %cst_166 [1] : vector<8x8xf32> to vector<8xf32>
    %379 = vector.shape_cast %378 : vector<8xf32> to vector<8x1xf32>
    %380 = vector.broadcast %379 : vector<8x1xf32> to vector<8x8xf32>
    %381 = arith.divf %377, %380 : vector<8x8xf32>
    %cst_167 = arith.constant dense<0.000000e+00> : vector<8x8xf32>
    %382 = tpu.matmul %381, %370, %cst_167 {dimension_numbers = #tpu.dot_dimension_numbers<[1], [0], [0], [1], [0, 0, 1, 1], [], []>} : vector<8x8xf32>, vector<8x8xf32>, vector<8x8xf32> -> vector<8x8xf32>
    %c2_168 = arith.constant 2 : index
    %c0_169 = arith.constant 0 : index
    %c0_170 = arith.constant 0 : index
    %383 = vector.load %arg5[%c2_168, %c0_169, %c0_170] : memref<4x8x32xf32, #tpu.memory_space<vmem>>, vector<1x8x32xf32>
    %384 = vector.shape_cast %383 : vector<1x8x32xf32> to vector<8x32xf32>
    %cst_171 = arith.constant dense<0.000000e+00> : vector<8x32xf32>
    %385 = tpu.matmul %382, %384, %cst_171 {dimension_numbers = #tpu.dot_dimension_numbers<[1], [0], [0], [1], [0, 0, 1, 1], [], []>} : vector<8x8xf32>, vector<8x32xf32>, vector<8x32xf32> -> vector<8x32xf32>
    %386 = arith.addf %367, %385 : vector<8x32xf32>
    %387 = vector.extract_strided_slice %324 {offsets = [0, 24], sizes = [8, 8], strides = [1, 1]} : vector<8x96xf32> to vector<8x8xf32>
    %388 = vector.extract_strided_slice %325 {offsets = [0, 56], sizes = [8, 8], strides = [1, 1]} : vector<8x96xf32> to vector<8x8xf32>
    %389 = vector.extract_strided_slice %325 {offsets = [0, 88], sizes = [8, 8], strides = [1, 1]} : vector<8x96xf32> to vector<8x8xf32>
    %390 = tpu.transpose %388, [1, 0] : vector<8x8xf32> -> vector<8x8xf32>
    %cst_172 = arith.constant dense<0.000000e+00> : vector<8x8xf32>
    %391 = tpu.matmul %387, %390, %cst_172 {dimension_numbers = #tpu.dot_dimension_numbers<[1], [0], [0], [1], [0, 0, 1, 1], [], []>} : vector<8x8xf32>, vector<8x8xf32>, vector<8x8xf32> -> vector<8x8xf32>
    %cst_173 = arith.constant dense<0xFF800000> : vector<8xf32>
    %392 = vector.multi_reduction <maximumf>, %391, %cst_173 [1] : vector<8x8xf32> to vector<8xf32>
    %393 = vector.shape_cast %392 : vector<8xf32> to vector<8x1xf32>
    %394 = vector.broadcast %393 : vector<8x1xf32> to vector<8x8xf32>
    %395 = arith.subf %391, %394 : vector<8x8xf32>
    %396 = math.exp %395 : vector<8x8xf32>
    %cst_174 = arith.constant dense<0.000000e+00> : vector<8xf32>
    %397 = vector.multi_reduction <add>, %396, %cst_174 [1] : vector<8x8xf32> to vector<8xf32>
    %398 = vector.shape_cast %397 : vector<8xf32> to vector<8x1xf32>
    %399 = vector.broadcast %398 : vector<8x1xf32> to vector<8x8xf32>
    %400 = arith.divf %396, %399 : vector<8x8xf32>
    %cst_175 = arith.constant dense<0.000000e+00> : vector<8x8xf32>
    %401 = tpu.matmul %400, %389, %cst_175 {dimension_numbers = #tpu.dot_dimension_numbers<[1], [0], [0], [1], [0, 0, 1, 1], [], []>} : vector<8x8xf32>, vector<8x8xf32>, vector<8x8xf32> -> vector<8x8xf32>
    %c3_176 = arith.constant 3 : index
    %c0_177 = arith.constant 0 : index
    %c0_178 = arith.constant 0 : index
    %402 = vector.load %arg5[%c3_176, %c0_177, %c0_178] : memref<4x8x32xf32, #tpu.memory_space<vmem>>, vector<1x8x32xf32>
    %403 = vector.shape_cast %402 : vector<1x8x32xf32> to vector<8x32xf32>
    %cst_179 = arith.constant dense<0.000000e+00> : vector<8x32xf32>
    %404 = tpu.matmul %401, %403, %cst_179 {dimension_numbers = #tpu.dot_dimension_numbers<[1], [0], [0], [1], [0, 0, 1, 1], [], []>} : vector<8x8xf32>, vector<8x32xf32>, vector<8x32xf32> -> vector<8x32xf32>
    %405 = arith.addf %386, %404 : vector<8x32xf32>
    %406 = tpu.concatenate %323, %405 in 0 : vector<8x32xf32>, vector<8x32xf32> -> vector<16x32xf32>
    %407 = arith.addf %236, %406 : vector<16x32xf32>
    %cst_180 = arith.constant dense<0.000000e+00> : vector<16xf32>
    %408 = vector.multi_reduction <add>, %407, %cst_180 [1] : vector<16x32xf32> to vector<16xf32>
    %409 = vector.shape_cast %408 : vector<16xf32> to vector<16x1xf32>
    %cst_181 = arith.constant 3.200000e+01 : f32
    %410 = vector.broadcast %cst_181 : f32 to vector<16x1xf32>
    %411 = arith.divf %409, %410 : vector<16x1xf32>
    %412 = vector.broadcast %411 : vector<16x1xf32> to vector<16x32xf32>
    %413 = arith.subf %407, %412 : vector<16x32xf32>
    %414 = arith.mulf %413, %413 : vector<16x32xf32>
    %cst_182 = arith.constant dense<0.000000e+00> : vector<16xf32>
    %415 = vector.multi_reduction <add>, %414, %cst_182 [1] : vector<16x32xf32> to vector<16xf32>
    %416 = vector.shape_cast %415 : vector<16xf32> to vector<16x1xf32>
    %cst_183 = arith.constant 3.200000e+01 : f32
    %417 = vector.broadcast %cst_183 : f32 to vector<16x1xf32>
    %418 = arith.divf %416, %417 : vector<16x1xf32>
    %419 = vector.broadcast %411 : vector<16x1xf32> to vector<16x32xf32>
    %420 = arith.subf %407, %419 : vector<16x32xf32>
    %cst_184 = arith.constant 9.99999974E-6 : f32
    %421 = vector.broadcast %cst_184 : f32 to vector<16x1xf32>
    %422 = arith.addf %418, %421 : vector<16x1xf32>
    %423 = math.rsqrt %422 : vector<16x1xf32>
    %424 = vector.broadcast %423 : vector<16x1xf32> to vector<16x32xf32>
    %425 = arith.mulf %420, %424 : vector<16x32xf32>
    %c0_185 = arith.constant 0 : index
    %c0_186 = arith.constant 0 : index
    %426 = vector.load %arg7[%c0_185, %c0_186] : memref<1x32xf32, #tpu.memory_space<vmem>>, vector<1x32xf32>
    %427 = vector.broadcast %426 : vector<1x32xf32> to vector<16x32xf32>
    %428 = arith.mulf %425, %427 : vector<16x32xf32>
    %c0_187 = arith.constant 0 : index
    %c0_188 = arith.constant 0 : index
    %429 = vector.load %arg8[%c0_187, %c0_188] : memref<1x32xf32, #tpu.memory_space<vmem>>, vector<1x32xf32>
    %430 = vector.broadcast %429 : vector<1x32xf32> to vector<16x32xf32>
    %431 = arith.addf %428, %430 : vector<16x32xf32>
    %c0_189 = arith.constant 0 : index
    %c0_190 = arith.constant 0 : index
    %432 = vector.load %arg9[%c0_189, %c0_190] : memref<32x64xf32, #tpu.memory_space<vmem>>, vector<32x64xf32>
    %cst_191 = arith.constant dense<0.000000e+00> : vector<16x64xf32>
    %433 = tpu.matmul %431, %432, %cst_191 {dimension_numbers = #tpu.dot_dimension_numbers<[1], [0], [0], [1], [0, 0, 1, 1], [], []>} : vector<16x32xf32>, vector<32x64xf32>, vector<16x64xf32> -> vector<16x64xf32>
    %c0_192 = arith.constant 0 : index
    %c0_193 = arith.constant 0 : index
    %434 = vector.load %arg10[%c0_192, %c0_193] : memref<1x64xf32, #tpu.memory_space<vmem>>, vector<1x64xf32>
    %435 = vector.broadcast %434 : vector<1x64xf32> to vector<16x64xf32>
    %436 = arith.addf %433, %435 : vector<16x64xf32>
    %cst_194 = arith.constant 0.000000e+00 : f32
    %437 = vector.broadcast %cst_194 : f32 to vector<16x64xf32>
    %438 = arith.maximumf %436, %437 : vector<16x64xf32>
    %c0_195 = arith.constant 0 : index
    %c0_196 = arith.constant 0 : index
    %439 = vector.load %arg11[%c0_195, %c0_196] : memref<64x32xf32, #tpu.memory_space<vmem>>, vector<64x32xf32>
    %cst_197 = arith.constant dense<0.000000e+00> : vector<16x32xf32>
    %440 = tpu.matmul %438, %439, %cst_197 {dimension_numbers = #tpu.dot_dimension_numbers<[1], [0], [0], [1], [0, 0, 1, 1], [], []>} : vector<16x64xf32>, vector<64x32xf32>, vector<16x32xf32> -> vector<16x32xf32>
    %c0_198 = arith.constant 0 : index
    %c0_199 = arith.constant 0 : index
    %441 = vector.load %arg12[%c0_198, %c0_199] : memref<1x32xf32, #tpu.memory_space<vmem>>, vector<1x32xf32>
    %442 = vector.broadcast %441 : vector<1x32xf32> to vector<16x32xf32>
    %443 = arith.addf %440, %442 : vector<16x32xf32>
    %444 = arith.addf %431, %443 : vector<16x32xf32>
    %cst_200 = arith.constant dense<0.000000e+00> : vector<16xf32>
    %445 = vector.multi_reduction <add>, %444, %cst_200 [1] : vector<16x32xf32> to vector<16xf32>
    %446 = vector.shape_cast %445 : vector<16xf32> to vector<16x1xf32>
    %cst_201 = arith.constant 3.200000e+01 : f32
    %447 = vector.broadcast %cst_201 : f32 to vector<16x1xf32>
    %448 = arith.divf %446, %447 : vector<16x1xf32>
    %449 = vector.broadcast %448 : vector<16x1xf32> to vector<16x32xf32>
    %450 = arith.subf %444, %449 : vector<16x32xf32>
    %451 = arith.mulf %450, %450 : vector<16x32xf32>
    %cst_202 = arith.constant dense<0.000000e+00> : vector<16xf32>
    %452 = vector.multi_reduction <add>, %451, %cst_202 [1] : vector<16x32xf32> to vector<16xf32>
    %453 = vector.shape_cast %452 : vector<16xf32> to vector<16x1xf32>
    %cst_203 = arith.constant 3.200000e+01 : f32
    %454 = vector.broadcast %cst_203 : f32 to vector<16x1xf32>
    %455 = arith.divf %453, %454 : vector<16x1xf32>
    %456 = vector.broadcast %448 : vector<16x1xf32> to vector<16x32xf32>
    %457 = arith.subf %444, %456 : vector<16x32xf32>
    %cst_204 = arith.constant 9.99999974E-6 : f32
    %458 = vector.broadcast %cst_204 : f32 to vector<16x1xf32>
    %459 = arith.addf %455, %458 : vector<16x1xf32>
    %460 = math.rsqrt %459 : vector<16x1xf32>
    %461 = vector.broadcast %460 : vector<16x1xf32> to vector<16x32xf32>
    %462 = arith.mulf %457, %461 : vector<16x32xf32>
    %c0_205 = arith.constant 0 : index
    %c0_206 = arith.constant 0 : index
    %463 = vector.load %arg13[%c0_205, %c0_206] : memref<1x32xf32, #tpu.memory_space<vmem>>, vector<1x32xf32>
    %464 = vector.broadcast %463 : vector<1x32xf32> to vector<16x32xf32>
    %465 = arith.mulf %462, %464 : vector<16x32xf32>
    %c0_207 = arith.constant 0 : index
    %c0_208 = arith.constant 0 : index
    %466 = vector.load %arg14[%c0_207, %c0_208] : memref<1x32xf32, #tpu.memory_space<vmem>>, vector<1x32xf32>
    %467 = vector.broadcast %466 : vector<1x32xf32> to vector<16x32xf32>
    %468 = arith.addf %465, %467 : vector<16x32xf32>
    %469 = vector.extract_strided_slice %468 {offsets = [0, 0], sizes = [8, 32], strides = [1, 1]} : vector<16x32xf32> to vector<8x32xf32>
    %470 = vector.extract_strided_slice %468 {offsets = [8, 0], sizes = [8, 32], strides = [1, 1]} : vector<16x32xf32> to vector<8x32xf32>
    %c0_209 = arith.constant 0 : index
    %c0_210 = arith.constant 0 : index
    %471 = vector.load %arg15[%c0_209, %c0_210] : memref<32x96xf32, #tpu.memory_space<vmem>>, vector<32x96xf32>
    %cst_211 = arith.constant dense<0.000000e+00> : vector<8x96xf32>
    %472 = tpu.matmul %469, %471, %cst_211 {dimension_numbers = #tpu.dot_dimension_numbers<[1], [0], [0], [1], [0, 0, 1, 1], [], []>} : vector<8x32xf32>, vector<32x96xf32>, vector<8x96xf32> -> vector<8x96xf32>
    %c0_212 = arith.constant 0 : index
    %c0_213 = arith.constant 0 : index
    %473 = vector.load %arg16[%c0_212, %c0_213] : memref<1x96xf32, #tpu.memory_space<vmem>>, vector<1x96xf32>
    %474 = vector.broadcast %473 : vector<1x96xf32> to vector<8x96xf32>
    %475 = arith.addf %472, %474 : vector<8x96xf32>
    %c0_214 = arith.constant 0 : index
    %c0_215 = arith.constant 0 : index
    %476 = vector.load %arg15[%c0_214, %c0_215] : memref<32x96xf32, #tpu.memory_space<vmem>>, vector<32x96xf32>
    %cst_216 = arith.constant dense<0.000000e+00> : vector<8x96xf32>
    %477 = tpu.matmul %470, %476, %cst_216 {dimension_numbers = #tpu.dot_dimension_numbers<[1], [0], [0], [1], [0, 0, 1, 1], [], []>} : vector<8x32xf32>, vector<32x96xf32>, vector<8x96xf32> -> vector<8x96xf32>
    %c0_217 = arith.constant 0 : index
    %c0_218 = arith.constant 0 : index
    %478 = vector.load %arg16[%c0_217, %c0_218] : memref<1x96xf32, #tpu.memory_space<vmem>>, vector<1x96xf32>
    %479 = vector.broadcast %478 : vector<1x96xf32> to vector<8x96xf32>
    %480 = arith.addf %477, %479 : vector<8x96xf32>
    %cst_219 = arith.constant 0.000000e+00 : f32
    %481 = vector.broadcast %cst_219 : f32 to vector<8x32xf32>
    %c0_220 = arith.constant 0 : index
    %c0_221 = arith.constant 0 : index
    %482 = vector.load %arg18[%c0_220, %c0_221] : memref<1x32xf32, #tpu.memory_space<vmem>>, vector<1x32xf32>
    %483 = vector.broadcast %482 : vector<1x32xf32> to vector<8x32xf32>
    %484 = arith.addf %481, %483 : vector<8x32xf32>
    %485 = vector.extract_strided_slice %475 {offsets = [0, 0], sizes = [8, 8], strides = [1, 1]} : vector<8x96xf32> to vector<8x8xf32>
    %486 = vector.extract_strided_slice %480 {offsets = [0, 32], sizes = [8, 8], strides = [1, 1]} : vector<8x96xf32> to vector<8x8xf32>
    %487 = vector.extract_strided_slice %480 {offsets = [0, 64], sizes = [8, 8], strides = [1, 1]} : vector<8x96xf32> to vector<8x8xf32>
    %488 = tpu.transpose %486, [1, 0] : vector<8x8xf32> -> vector<8x8xf32>
    %cst_222 = arith.constant dense<0.000000e+00> : vector<8x8xf32>
    %489 = tpu.matmul %485, %488, %cst_222 {dimension_numbers = #tpu.dot_dimension_numbers<[1], [0], [0], [1], [0, 0, 1, 1], [], []>} : vector<8x8xf32>, vector<8x8xf32>, vector<8x8xf32> -> vector<8x8xf32>
    %cst_223 = arith.constant dense<0xFF800000> : vector<8xf32>
    %490 = vector.multi_reduction <maximumf>, %489, %cst_223 [1] : vector<8x8xf32> to vector<8xf32>
    %491 = vector.shape_cast %490 : vector<8xf32> to vector<8x1xf32>
    %492 = vector.broadcast %491 : vector<8x1xf32> to vector<8x8xf32>
    %493 = arith.subf %489, %492 : vector<8x8xf32>
    %494 = math.exp %493 : vector<8x8xf32>
    %cst_224 = arith.constant dense<0.000000e+00> : vector<8xf32>
    %495 = vector.multi_reduction <add>, %494, %cst_224 [1] : vector<8x8xf32> to vector<8xf32>
    %496 = vector.shape_cast %495 : vector<8xf32> to vector<8x1xf32>
    %497 = vector.broadcast %496 : vector<8x1xf32> to vector<8x8xf32>
    %498 = arith.divf %494, %497 : vector<8x8xf32>
    %cst_225 = arith.constant dense<0.000000e+00> : vector<8x8xf32>
    %499 = tpu.matmul %498, %487, %cst_225 {dimension_numbers = #tpu.dot_dimension_numbers<[1], [0], [0], [1], [0, 0, 1, 1], [], []>} : vector<8x8xf32>, vector<8x8xf32>, vector<8x8xf32> -> vector<8x8xf32>
    %c0_226 = arith.constant 0 : index
    %c0_227 = arith.constant 0 : index
    %c0_228 = arith.constant 0 : index
    %500 = vector.load %arg17[%c0_226, %c0_227, %c0_228] : memref<4x8x32xf32, #tpu.memory_space<vmem>>, vector<1x8x32xf32>
    %501 = vector.shape_cast %500 : vector<1x8x32xf32> to vector<8x32xf32>
    %cst_229 = arith.constant dense<0.000000e+00> : vector<8x32xf32>
    %502 = tpu.matmul %499, %501, %cst_229 {dimension_numbers = #tpu.dot_dimension_numbers<[1], [0], [0], [1], [0, 0, 1, 1], [], []>} : vector<8x8xf32>, vector<8x32xf32>, vector<8x32xf32> -> vector<8x32xf32>
    %503 = arith.addf %484, %502 : vector<8x32xf32>
    %504 = vector.extract_strided_slice %475 {offsets = [0, 8], sizes = [8, 8], strides = [1, 1]} : vector<8x96xf32> to vector<8x8xf32>
    %505 = vector.extract_strided_slice %480 {offsets = [0, 40], sizes = [8, 8], strides = [1, 1]} : vector<8x96xf32> to vector<8x8xf32>
    %506 = vector.extract_strided_slice %480 {offsets = [0, 72], sizes = [8, 8], strides = [1, 1]} : vector<8x96xf32> to vector<8x8xf32>
    %507 = tpu.transpose %505, [1, 0] : vector<8x8xf32> -> vector<8x8xf32>
    %cst_230 = arith.constant dense<0.000000e+00> : vector<8x8xf32>
    %508 = tpu.matmul %504, %507, %cst_230 {dimension_numbers = #tpu.dot_dimension_numbers<[1], [0], [0], [1], [0, 0, 1, 1], [], []>} : vector<8x8xf32>, vector<8x8xf32>, vector<8x8xf32> -> vector<8x8xf32>
    %cst_231 = arith.constant dense<0xFF800000> : vector<8xf32>
    %509 = vector.multi_reduction <maximumf>, %508, %cst_231 [1] : vector<8x8xf32> to vector<8xf32>
    %510 = vector.shape_cast %509 : vector<8xf32> to vector<8x1xf32>
    %511 = vector.broadcast %510 : vector<8x1xf32> to vector<8x8xf32>
    %512 = arith.subf %508, %511 : vector<8x8xf32>
    %513 = math.exp %512 : vector<8x8xf32>
    %cst_232 = arith.constant dense<0.000000e+00> : vector<8xf32>
    %514 = vector.multi_reduction <add>, %513, %cst_232 [1] : vector<8x8xf32> to vector<8xf32>
    %515 = vector.shape_cast %514 : vector<8xf32> to vector<8x1xf32>
    %516 = vector.broadcast %515 : vector<8x1xf32> to vector<8x8xf32>
    %517 = arith.divf %513, %516 : vector<8x8xf32>
    %cst_233 = arith.constant dense<0.000000e+00> : vector<8x8xf32>
    %518 = tpu.matmul %517, %506, %cst_233 {dimension_numbers = #tpu.dot_dimension_numbers<[1], [0], [0], [1], [0, 0, 1, 1], [], []>} : vector<8x8xf32>, vector<8x8xf32>, vector<8x8xf32> -> vector<8x8xf32>
    %c1_234 = arith.constant 1 : index
    %c0_235 = arith.constant 0 : index
    %c0_236 = arith.constant 0 : index
    %519 = vector.load %arg17[%c1_234, %c0_235, %c0_236] : memref<4x8x32xf32, #tpu.memory_space<vmem>>, vector<1x8x32xf32>
    %520 = vector.shape_cast %519 : vector<1x8x32xf32> to vector<8x32xf32>
    %cst_237 = arith.constant dense<0.000000e+00> : vector<8x32xf32>
    %521 = tpu.matmul %518, %520, %cst_237 {dimension_numbers = #tpu.dot_dimension_numbers<[1], [0], [0], [1], [0, 0, 1, 1], [], []>} : vector<8x8xf32>, vector<8x32xf32>, vector<8x32xf32> -> vector<8x32xf32>
    %522 = arith.addf %503, %521 : vector<8x32xf32>
    %523 = vector.extract_strided_slice %475 {offsets = [0, 16], sizes = [8, 8], strides = [1, 1]} : vector<8x96xf32> to vector<8x8xf32>
    %524 = vector.extract_strided_slice %480 {offsets = [0, 48], sizes = [8, 8], strides = [1, 1]} : vector<8x96xf32> to vector<8x8xf32>
    %525 = vector.extract_strided_slice %480 {offsets = [0, 80], sizes = [8, 8], strides = [1, 1]} : vector<8x96xf32> to vector<8x8xf32>
    %526 = tpu.transpose %524, [1, 0] : vector<8x8xf32> -> vector<8x8xf32>
    %cst_238 = arith.constant dense<0.000000e+00> : vector<8x8xf32>
    %527 = tpu.matmul %523, %526, %cst_238 {dimension_numbers = #tpu.dot_dimension_numbers<[1], [0], [0], [1], [0, 0, 1, 1], [], []>} : vector<8x8xf32>, vector<8x8xf32>, vector<8x8xf32> -> vector<8x8xf32>
    %cst_239 = arith.constant dense<0xFF800000> : vector<8xf32>
    %528 = vector.multi_reduction <maximumf>, %527, %cst_239 [1] : vector<8x8xf32> to vector<8xf32>
    %529 = vector.shape_cast %528 : vector<8xf32> to vector<8x1xf32>
    %530 = vector.broadcast %529 : vector<8x1xf32> to vector<8x8xf32>
    %531 = arith.subf %527, %530 : vector<8x8xf32>
    %532 = math.exp %531 : vector<8x8xf32>
    %cst_240 = arith.constant dense<0.000000e+00> : vector<8xf32>
    %533 = vector.multi_reduction <add>, %532, %cst_240 [1] : vector<8x8xf32> to vector<8xf32>
    %534 = vector.shape_cast %533 : vector<8xf32> to vector<8x1xf32>
    %535 = vector.broadcast %534 : vector<8x1xf32> to vector<8x8xf32>
    %536 = arith.divf %532, %535 : vector<8x8xf32>
    %cst_241 = arith.constant dense<0.000000e+00> : vector<8x8xf32>
    %537 = tpu.matmul %536, %525, %cst_241 {dimension_numbers = #tpu.dot_dimension_numbers<[1], [0], [0], [1], [0, 0, 1, 1], [], []>} : vector<8x8xf32>, vector<8x8xf32>, vector<8x8xf32> -> vector<8x8xf32>
    %c2_242 = arith.constant 2 : index
    %c0_243 = arith.constant 0 : index
    %c0_244 = arith.constant 0 : index
    %538 = vector.load %arg17[%c2_242, %c0_243, %c0_244] : memref<4x8x32xf32, #tpu.memory_space<vmem>>, vector<1x8x32xf32>
    %539 = vector.shape_cast %538 : vector<1x8x32xf32> to vector<8x32xf32>
    %cst_245 = arith.constant dense<0.000000e+00> : vector<8x32xf32>
    %540 = tpu.matmul %537, %539, %cst_245 {dimension_numbers = #tpu.dot_dimension_numbers<[1], [0], [0], [1], [0, 0, 1, 1], [], []>} : vector<8x8xf32>, vector<8x32xf32>, vector<8x32xf32> -> vector<8x32xf32>
    %541 = arith.addf %522, %540 : vector<8x32xf32>
    %542 = vector.extract_strided_slice %475 {offsets = [0, 24], sizes = [8, 8], strides = [1, 1]} : vector<8x96xf32> to vector<8x8xf32>
    %543 = vector.extract_strided_slice %480 {offsets = [0, 56], sizes = [8, 8], strides = [1, 1]} : vector<8x96xf32> to vector<8x8xf32>
    %544 = vector.extract_strided_slice %480 {offsets = [0, 88], sizes = [8, 8], strides = [1, 1]} : vector<8x96xf32> to vector<8x8xf32>
    %545 = tpu.transpose %543, [1, 0] : vector<8x8xf32> -> vector<8x8xf32>
    %cst_246 = arith.constant dense<0.000000e+00> : vector<8x8xf32>
    %546 = tpu.matmul %542, %545, %cst_246 {dimension_numbers = #tpu.dot_dimension_numbers<[1], [0], [0], [1], [0, 0, 1, 1], [], []>} : vector<8x8xf32>, vector<8x8xf32>, vector<8x8xf32> -> vector<8x8xf32>
    %cst_247 = arith.constant dense<0xFF800000> : vector<8xf32>
    %547 = vector.multi_reduction <maximumf>, %546, %cst_247 [1] : vector<8x8xf32> to vector<8xf32>
    %548 = vector.shape_cast %547 : vector<8xf32> to vector<8x1xf32>
    %549 = vector.broadcast %548 : vector<8x1xf32> to vector<8x8xf32>
    %550 = arith.subf %546, %549 : vector<8x8xf32>
    %551 = math.exp %550 : vector<8x8xf32>
    %cst_248 = arith.constant dense<0.000000e+00> : vector<8xf32>
    %552 = vector.multi_reduction <add>, %551, %cst_248 [1] : vector<8x8xf32> to vector<8xf32>
    %553 = vector.shape_cast %552 : vector<8xf32> to vector<8x1xf32>
    %554 = vector.broadcast %553 : vector<8x1xf32> to vector<8x8xf32>
    %555 = arith.divf %551, %554 : vector<8x8xf32>
    %cst_249 = arith.constant dense<0.000000e+00> : vector<8x8xf32>
    %556 = tpu.matmul %555, %544, %cst_249 {dimension_numbers = #tpu.dot_dimension_numbers<[1], [0], [0], [1], [0, 0, 1, 1], [], []>} : vector<8x8xf32>, vector<8x8xf32>, vector<8x8xf32> -> vector<8x8xf32>
    %c3_250 = arith.constant 3 : index
    %c0_251 = arith.constant 0 : index
    %c0_252 = arith.constant 0 : index
    %557 = vector.load %arg17[%c3_250, %c0_251, %c0_252] : memref<4x8x32xf32, #tpu.memory_space<vmem>>, vector<1x8x32xf32>
    %558 = vector.shape_cast %557 : vector<1x8x32xf32> to vector<8x32xf32>
    %cst_253 = arith.constant dense<0.000000e+00> : vector<8x32xf32>
    %559 = tpu.matmul %556, %558, %cst_253 {dimension_numbers = #tpu.dot_dimension_numbers<[1], [0], [0], [1], [0, 0, 1, 1], [], []>} : vector<8x8xf32>, vector<8x32xf32>, vector<8x32xf32> -> vector<8x32xf32>
    %560 = arith.addf %541, %559 : vector<8x32xf32>
    %561 = arith.addf %469, %560 : vector<8x32xf32>
    %cst_254 = arith.constant dense<0.000000e+00> : vector<8xf32>
    %562 = vector.multi_reduction <add>, %561, %cst_254 [1] : vector<8x32xf32> to vector<8xf32>
    %563 = vector.shape_cast %562 : vector<8xf32> to vector<8x1xf32>
    %cst_255 = arith.constant 3.200000e+01 : f32
    %564 = vector.broadcast %cst_255 : f32 to vector<8x1xf32>
    %565 = arith.divf %563, %564 : vector<8x1xf32>
    %566 = vector.broadcast %565 : vector<8x1xf32> to vector<8x32xf32>
    %567 = arith.subf %561, %566 : vector<8x32xf32>
    %568 = arith.mulf %567, %567 : vector<8x32xf32>
    %cst_256 = arith.constant dense<0.000000e+00> : vector<8xf32>
    %569 = vector.multi_reduction <add>, %568, %cst_256 [1] : vector<8x32xf32> to vector<8xf32>
    %570 = vector.shape_cast %569 : vector<8xf32> to vector<8x1xf32>
    %cst_257 = arith.constant 3.200000e+01 : f32
    %571 = vector.broadcast %cst_257 : f32 to vector<8x1xf32>
    %572 = arith.divf %570, %571 : vector<8x1xf32>
    %573 = vector.broadcast %565 : vector<8x1xf32> to vector<8x32xf32>
    %574 = arith.subf %561, %573 : vector<8x32xf32>
    %cst_258 = arith.constant 9.99999974E-6 : f32
    %575 = vector.broadcast %cst_258 : f32 to vector<8x1xf32>
    %576 = arith.addf %572, %575 : vector<8x1xf32>
    %577 = math.rsqrt %576 : vector<8x1xf32>
    %578 = vector.broadcast %577 : vector<8x1xf32> to vector<8x32xf32>
    %579 = arith.mulf %574, %578 : vector<8x32xf32>
    %c0_259 = arith.constant 0 : index
    %c0_260 = arith.constant 0 : index
    %580 = vector.load %arg19[%c0_259, %c0_260] : memref<1x32xf32, #tpu.memory_space<vmem>>, vector<1x32xf32>
    %581 = vector.broadcast %580 : vector<1x32xf32> to vector<8x32xf32>
    %582 = arith.mulf %579, %581 : vector<8x32xf32>
    %c0_261 = arith.constant 0 : index
    %c0_262 = arith.constant 0 : index
    %583 = vector.load %arg20[%c0_261, %c0_262] : memref<1x32xf32, #tpu.memory_space<vmem>>, vector<1x32xf32>
    %584 = vector.broadcast %583 : vector<1x32xf32> to vector<8x32xf32>
    %585 = arith.addf %582, %584 : vector<8x32xf32>
    %c0_263 = arith.constant 0 : index
    %c0_264 = arith.constant 0 : index
    %586 = vector.load %arg21[%c0_263, %c0_264] : memref<32x64xf32, #tpu.memory_space<vmem>>, vector<32x64xf32>
    %cst_265 = arith.constant dense<0.000000e+00> : vector<8x64xf32>
    %587 = tpu.matmul %585, %586, %cst_265 {dimension_numbers = #tpu.dot_dimension_numbers<[1], [0], [0], [1], [0, 0, 1, 1], [], []>} : vector<8x32xf32>, vector<32x64xf32>, vector<8x64xf32> -> vector<8x64xf32>
    %c0_266 = arith.constant 0 : index
    %c0_267 = arith.constant 0 : index
    %588 = vector.load %arg22[%c0_266, %c0_267] : memref<1x64xf32, #tpu.memory_space<vmem>>, vector<1x64xf32>
    %589 = vector.broadcast %588 : vector<1x64xf32> to vector<8x64xf32>
    %590 = arith.addf %587, %589 : vector<8x64xf32>
    %cst_268 = arith.constant 0.000000e+00 : f32
    %591 = vector.broadcast %cst_268 : f32 to vector<8x64xf32>
    %592 = arith.maximumf %590, %591 : vector<8x64xf32>
    %c0_269 = arith.constant 0 : index
    %c0_270 = arith.constant 0 : index
    %593 = vector.load %arg23[%c0_269, %c0_270] : memref<64x32xf32, #tpu.memory_space<vmem>>, vector<64x32xf32>
    %cst_271 = arith.constant dense<0.000000e+00> : vector<8x32xf32>
    %594 = tpu.matmul %592, %593, %cst_271 {dimension_numbers = #tpu.dot_dimension_numbers<[1], [0], [0], [1], [0, 0, 1, 1], [], []>} : vector<8x64xf32>, vector<64x32xf32>, vector<8x32xf32> -> vector<8x32xf32>
    %c0_272 = arith.constant 0 : index
    %c0_273 = arith.constant 0 : index
    %595 = vector.load %arg24[%c0_272, %c0_273] : memref<1x32xf32, #tpu.memory_space<vmem>>, vector<1x32xf32>
    %596 = vector.broadcast %595 : vector<1x32xf32> to vector<8x32xf32>
    %597 = arith.addf %594, %596 : vector<8x32xf32>
    %598 = arith.addf %585, %597 : vector<8x32xf32>
    %cst_274 = arith.constant dense<0.000000e+00> : vector<8xf32>
    %599 = vector.multi_reduction <add>, %598, %cst_274 [1] : vector<8x32xf32> to vector<8xf32>
    %600 = vector.shape_cast %599 : vector<8xf32> to vector<8x1xf32>
    %cst_275 = arith.constant 3.200000e+01 : f32
    %601 = vector.broadcast %cst_275 : f32 to vector<8x1xf32>
    %602 = arith.divf %600, %601 : vector<8x1xf32>
    %603 = vector.broadcast %602 : vector<8x1xf32> to vector<8x32xf32>
    %604 = arith.subf %598, %603 : vector<8x32xf32>
    %605 = arith.mulf %604, %604 : vector<8x32xf32>
    %cst_276 = arith.constant dense<0.000000e+00> : vector<8xf32>
    %606 = vector.multi_reduction <add>, %605, %cst_276 [1] : vector<8x32xf32> to vector<8xf32>
    %607 = vector.shape_cast %606 : vector<8xf32> to vector<8x1xf32>
    %cst_277 = arith.constant 3.200000e+01 : f32
    %608 = vector.broadcast %cst_277 : f32 to vector<8x1xf32>
    %609 = arith.divf %607, %608 : vector<8x1xf32>
    %610 = vector.broadcast %602 : vector<8x1xf32> to vector<8x32xf32>
    %611 = arith.subf %598, %610 : vector<8x32xf32>
    %cst_278 = arith.constant 9.99999974E-6 : f32
    %612 = vector.broadcast %cst_278 : f32 to vector<8x1xf32>
    %613 = arith.addf %609, %612 : vector<8x1xf32>
    %614 = math.rsqrt %613 : vector<8x1xf32>
    %615 = vector.broadcast %614 : vector<8x1xf32> to vector<8x32xf32>
    %616 = arith.mulf %611, %615 : vector<8x32xf32>
    %c0_279 = arith.constant 0 : index
    %c0_280 = arith.constant 0 : index
    %617 = vector.load %arg25[%c0_279, %c0_280] : memref<1x32xf32, #tpu.memory_space<vmem>>, vector<1x32xf32>
    %618 = vector.broadcast %617 : vector<1x32xf32> to vector<8x32xf32>
    %619 = arith.mulf %616, %618 : vector<8x32xf32>
    %c0_281 = arith.constant 0 : index
    %c0_282 = arith.constant 0 : index
    %620 = vector.load %arg26[%c0_281, %c0_282] : memref<1x32xf32, #tpu.memory_space<vmem>>, vector<1x32xf32>
    %621 = vector.broadcast %620 : vector<1x32xf32> to vector<8x32xf32>
    %622 = arith.addf %619, %621 : vector<8x32xf32>
    %c0_283 = arith.constant 0 : index
    %c0_284 = arith.constant 0 : index
    %623 = vector.load %arg27[%c0_283, %c0_284] : memref<32x96xf32, #tpu.memory_space<vmem>>, vector<32x96xf32>
    %cst_285 = arith.constant dense<0.000000e+00> : vector<8x96xf32>
    %624 = tpu.matmul %622, %623, %cst_285 {dimension_numbers = #tpu.dot_dimension_numbers<[1], [0], [0], [1], [0, 0, 1, 1], [], []>} : vector<8x32xf32>, vector<32x96xf32>, vector<8x96xf32> -> vector<8x96xf32>
    %c0_286 = arith.constant 0 : index
    %c0_287 = arith.constant 0 : index
    %625 = vector.load %arg28[%c0_286, %c0_287] : memref<1x96xf32, #tpu.memory_space<vmem>>, vector<1x96xf32>
    %626 = vector.broadcast %625 : vector<1x96xf32> to vector<8x96xf32>
    %627 = arith.addf %624, %626 : vector<8x96xf32>
    %cst_288 = arith.constant 0.000000e+00 : f32
    %628 = vector.broadcast %cst_288 : f32 to vector<8x32xf32>
    %c0_289 = arith.constant 0 : index
    %c0_290 = arith.constant 0 : index
    %629 = vector.load %arg30[%c0_289, %c0_290] : memref<1x32xf32, #tpu.memory_space<vmem>>, vector<1x32xf32>
    %630 = vector.broadcast %629 : vector<1x32xf32> to vector<8x32xf32>
    %631 = arith.addf %628, %630 : vector<8x32xf32>
    %632 = vector.extract_strided_slice %627 {offsets = [0, 0], sizes = [8, 8], strides = [1, 1]} : vector<8x96xf32> to vector<8x8xf32>
    %633 = vector.extract_strided_slice %627 {offsets = [0, 32], sizes = [8, 8], strides = [1, 1]} : vector<8x96xf32> to vector<8x8xf32>
    %634 = vector.extract_strided_slice %627 {offsets = [0, 64], sizes = [8, 8], strides = [1, 1]} : vector<8x96xf32> to vector<8x8xf32>
    %635 = tpu.transpose %633, [1, 0] : vector<8x8xf32> -> vector<8x8xf32>
    %cst_291 = arith.constant dense<0.000000e+00> : vector<8x8xf32>
    %636 = tpu.matmul %632, %635, %cst_291 {dimension_numbers = #tpu.dot_dimension_numbers<[1], [0], [0], [1], [0, 0, 1, 1], [], []>} : vector<8x8xf32>, vector<8x8xf32>, vector<8x8xf32> -> vector<8x8xf32>
    %cst_292 = arith.constant dense<0xFF800000> : vector<8xf32>
    %637 = vector.multi_reduction <maximumf>, %636, %cst_292 [1] : vector<8x8xf32> to vector<8xf32>
    %638 = vector.shape_cast %637 : vector<8xf32> to vector<8x1xf32>
    %639 = vector.broadcast %638 : vector<8x1xf32> to vector<8x8xf32>
    %640 = arith.subf %636, %639 : vector<8x8xf32>
    %641 = math.exp %640 : vector<8x8xf32>
    %cst_293 = arith.constant dense<0.000000e+00> : vector<8xf32>
    %642 = vector.multi_reduction <add>, %641, %cst_293 [1] : vector<8x8xf32> to vector<8xf32>
    %643 = vector.shape_cast %642 : vector<8xf32> to vector<8x1xf32>
    %644 = vector.broadcast %643 : vector<8x1xf32> to vector<8x8xf32>
    %645 = arith.divf %641, %644 : vector<8x8xf32>
    %cst_294 = arith.constant dense<0.000000e+00> : vector<8x8xf32>
    %646 = tpu.matmul %645, %634, %cst_294 {dimension_numbers = #tpu.dot_dimension_numbers<[1], [0], [0], [1], [0, 0, 1, 1], [], []>} : vector<8x8xf32>, vector<8x8xf32>, vector<8x8xf32> -> vector<8x8xf32>
    %c0_295 = arith.constant 0 : index
    %c0_296 = arith.constant 0 : index
    %c0_297 = arith.constant 0 : index
    %647 = vector.load %arg29[%c0_295, %c0_296, %c0_297] : memref<4x8x32xf32, #tpu.memory_space<vmem>>, vector<1x8x32xf32>
    %648 = vector.shape_cast %647 : vector<1x8x32xf32> to vector<8x32xf32>
    %cst_298 = arith.constant dense<0.000000e+00> : vector<8x32xf32>
    %649 = tpu.matmul %646, %648, %cst_298 {dimension_numbers = #tpu.dot_dimension_numbers<[1], [0], [0], [1], [0, 0, 1, 1], [], []>} : vector<8x8xf32>, vector<8x32xf32>, vector<8x32xf32> -> vector<8x32xf32>
    %650 = arith.addf %631, %649 : vector<8x32xf32>
    %651 = vector.extract_strided_slice %627 {offsets = [0, 8], sizes = [8, 8], strides = [1, 1]} : vector<8x96xf32> to vector<8x8xf32>
    %652 = vector.extract_strided_slice %627 {offsets = [0, 40], sizes = [8, 8], strides = [1, 1]} : vector<8x96xf32> to vector<8x8xf32>
    %653 = vector.extract_strided_slice %627 {offsets = [0, 72], sizes = [8, 8], strides = [1, 1]} : vector<8x96xf32> to vector<8x8xf32>
    %654 = tpu.transpose %652, [1, 0] : vector<8x8xf32> -> vector<8x8xf32>
    %cst_299 = arith.constant dense<0.000000e+00> : vector<8x8xf32>
    %655 = tpu.matmul %651, %654, %cst_299 {dimension_numbers = #tpu.dot_dimension_numbers<[1], [0], [0], [1], [0, 0, 1, 1], [], []>} : vector<8x8xf32>, vector<8x8xf32>, vector<8x8xf32> -> vector<8x8xf32>
    %cst_300 = arith.constant dense<0xFF800000> : vector<8xf32>
    %656 = vector.multi_reduction <maximumf>, %655, %cst_300 [1] : vector<8x8xf32> to vector<8xf32>
    %657 = vector.shape_cast %656 : vector<8xf32> to vector<8x1xf32>
    %658 = vector.broadcast %657 : vector<8x1xf32> to vector<8x8xf32>
    %659 = arith.subf %655, %658 : vector<8x8xf32>
    %660 = math.exp %659 : vector<8x8xf32>
    %cst_301 = arith.constant dense<0.000000e+00> : vector<8xf32>
    %661 = vector.multi_reduction <add>, %660, %cst_301 [1] : vector<8x8xf32> to vector<8xf32>
    %662 = vector.shape_cast %661 : vector<8xf32> to vector<8x1xf32>
    %663 = vector.broadcast %662 : vector<8x1xf32> to vector<8x8xf32>
    %664 = arith.divf %660, %663 : vector<8x8xf32>
    %cst_302 = arith.constant dense<0.000000e+00> : vector<8x8xf32>
    %665 = tpu.matmul %664, %653, %cst_302 {dimension_numbers = #tpu.dot_dimension_numbers<[1], [0], [0], [1], [0, 0, 1, 1], [], []>} : vector<8x8xf32>, vector<8x8xf32>, vector<8x8xf32> -> vector<8x8xf32>
    %c1_303 = arith.constant 1 : index
    %c0_304 = arith.constant 0 : index
    %c0_305 = arith.constant 0 : index
    %666 = vector.load %arg29[%c1_303, %c0_304, %c0_305] : memref<4x8x32xf32, #tpu.memory_space<vmem>>, vector<1x8x32xf32>
    %667 = vector.shape_cast %666 : vector<1x8x32xf32> to vector<8x32xf32>
    %cst_306 = arith.constant dense<0.000000e+00> : vector<8x32xf32>
    %668 = tpu.matmul %665, %667, %cst_306 {dimension_numbers = #tpu.dot_dimension_numbers<[1], [0], [0], [1], [0, 0, 1, 1], [], []>} : vector<8x8xf32>, vector<8x32xf32>, vector<8x32xf32> -> vector<8x32xf32>
    %669 = arith.addf %650, %668 : vector<8x32xf32>
    %670 = vector.extract_strided_slice %627 {offsets = [0, 16], sizes = [8, 8], strides = [1, 1]} : vector<8x96xf32> to vector<8x8xf32>
    %671 = vector.extract_strided_slice %627 {offsets = [0, 48], sizes = [8, 8], strides = [1, 1]} : vector<8x96xf32> to vector<8x8xf32>
    %672 = vector.extract_strided_slice %627 {offsets = [0, 80], sizes = [8, 8], strides = [1, 1]} : vector<8x96xf32> to vector<8x8xf32>
    %673 = tpu.transpose %671, [1, 0] : vector<8x8xf32> -> vector<8x8xf32>
    %cst_307 = arith.constant dense<0.000000e+00> : vector<8x8xf32>
    %674 = tpu.matmul %670, %673, %cst_307 {dimension_numbers = #tpu.dot_dimension_numbers<[1], [0], [0], [1], [0, 0, 1, 1], [], []>} : vector<8x8xf32>, vector<8x8xf32>, vector<8x8xf32> -> vector<8x8xf32>
    %cst_308 = arith.constant dense<0xFF800000> : vector<8xf32>
    %675 = vector.multi_reduction <maximumf>, %674, %cst_308 [1] : vector<8x8xf32> to vector<8xf32>
    %676 = vector.shape_cast %675 : vector<8xf32> to vector<8x1xf32>
    %677 = vector.broadcast %676 : vector<8x1xf32> to vector<8x8xf32>
    %678 = arith.subf %674, %677 : vector<8x8xf32>
    %679 = math.exp %678 : vector<8x8xf32>
    %cst_309 = arith.constant dense<0.000000e+00> : vector<8xf32>
    %680 = vector.multi_reduction <add>, %679, %cst_309 [1] : vector<8x8xf32> to vector<8xf32>
    %681 = vector.shape_cast %680 : vector<8xf32> to vector<8x1xf32>
    %682 = vector.broadcast %681 : vector<8x1xf32> to vector<8x8xf32>
    %683 = arith.divf %679, %682 : vector<8x8xf32>
    %cst_310 = arith.constant dense<0.000000e+00> : vector<8x8xf32>
    %684 = tpu.matmul %683, %672, %cst_310 {dimension_numbers = #tpu.dot_dimension_numbers<[1], [0], [0], [1], [0, 0, 1, 1], [], []>} : vector<8x8xf32>, vector<8x8xf32>, vector<8x8xf32> -> vector<8x8xf32>
    %c2_311 = arith.constant 2 : index
    %c0_312 = arith.constant 0 : index
    %c0_313 = arith.constant 0 : index
    %685 = vector.load %arg29[%c2_311, %c0_312, %c0_313] : memref<4x8x32xf32, #tpu.memory_space<vmem>>, vector<1x8x32xf32>
    %686 = vector.shape_cast %685 : vector<1x8x32xf32> to vector<8x32xf32>
    %cst_314 = arith.constant dense<0.000000e+00> : vector<8x32xf32>
    %687 = tpu.matmul %684, %686, %cst_314 {dimension_numbers = #tpu.dot_dimension_numbers<[1], [0], [0], [1], [0, 0, 1, 1], [], []>} : vector<8x8xf32>, vector<8x32xf32>, vector<8x32xf32> -> vector<8x32xf32>
    %688 = arith.addf %669, %687 : vector<8x32xf32>
    %689 = vector.extract_strided_slice %627 {offsets = [0, 24], sizes = [8, 8], strides = [1, 1]} : vector<8x96xf32> to vector<8x8xf32>
    %690 = vector.extract_strided_slice %627 {offsets = [0, 56], sizes = [8, 8], strides = [1, 1]} : vector<8x96xf32> to vector<8x8xf32>
    %691 = vector.extract_strided_slice %627 {offsets = [0, 88], sizes = [8, 8], strides = [1, 1]} : vector<8x96xf32> to vector<8x8xf32>
    %692 = tpu.transpose %690, [1, 0] : vector<8x8xf32> -> vector<8x8xf32>
    %cst_315 = arith.constant dense<0.000000e+00> : vector<8x8xf32>
    %693 = tpu.matmul %689, %692, %cst_315 {dimension_numbers = #tpu.dot_dimension_numbers<[1], [0], [0], [1], [0, 0, 1, 1], [], []>} : vector<8x8xf32>, vector<8x8xf32>, vector<8x8xf32> -> vector<8x8xf32>
    %cst_316 = arith.constant dense<0xFF800000> : vector<8xf32>
    %694 = vector.multi_reduction <maximumf>, %693, %cst_316 [1] : vector<8x8xf32> to vector<8xf32>
    %695 = vector.shape_cast %694 : vector<8xf32> to vector<8x1xf32>
    %696 = vector.broadcast %695 : vector<8x1xf32> to vector<8x8xf32>
    %697 = arith.subf %693, %696 : vector<8x8xf32>
    %698 = math.exp %697 : vector<8x8xf32>
    %cst_317 = arith.constant dense<0.000000e+00> : vector<8xf32>
    %699 = vector.multi_reduction <add>, %698, %cst_317 [1] : vector<8x8xf32> to vector<8xf32>
    %700 = vector.shape_cast %699 : vector<8xf32> to vector<8x1xf32>
    %701 = vector.broadcast %700 : vector<8x1xf32> to vector<8x8xf32>
    %702 = arith.divf %698, %701 : vector<8x8xf32>
    %cst_318 = arith.constant dense<0.000000e+00> : vector<8x8xf32>
    %703 = tpu.matmul %702, %691, %cst_318 {dimension_numbers = #tpu.dot_dimension_numbers<[1], [0], [0], [1], [0, 0, 1, 1], [], []>} : vector<8x8xf32>, vector<8x8xf32>, vector<8x8xf32> -> vector<8x8xf32>
    %c3_319 = arith.constant 3 : index
    %c0_320 = arith.constant 0 : index
    %c0_321 = arith.constant 0 : index
    %704 = vector.load %arg29[%c3_319, %c0_320, %c0_321] : memref<4x8x32xf32, #tpu.memory_space<vmem>>, vector<1x8x32xf32>
    %705 = vector.shape_cast %704 : vector<1x8x32xf32> to vector<8x32xf32>
    %cst_322 = arith.constant dense<0.000000e+00> : vector<8x32xf32>
    %706 = tpu.matmul %703, %705, %cst_322 {dimension_numbers = #tpu.dot_dimension_numbers<[1], [0], [0], [1], [0, 0, 1, 1], [], []>} : vector<8x8xf32>, vector<8x32xf32>, vector<8x32xf32> -> vector<8x32xf32>
    %707 = arith.addf %688, %706 : vector<8x32xf32>
    %708 = arith.addf %622, %707 : vector<8x32xf32>
    %cst_323 = arith.constant dense<0.000000e+00> : vector<8xf32>
    %709 = vector.multi_reduction <add>, %708, %cst_323 [1] : vector<8x32xf32> to vector<8xf32>
    %710 = vector.shape_cast %709 : vector<8xf32> to vector<8x1xf32>
    %cst_324 = arith.constant 3.200000e+01 : f32
    %711 = vector.broadcast %cst_324 : f32 to vector<8x1xf32>
    %712 = arith.divf %710, %711 : vector<8x1xf32>
    %713 = vector.broadcast %712 : vector<8x1xf32> to vector<8x32xf32>
    %714 = arith.subf %708, %713 : vector<8x32xf32>
    %715 = arith.mulf %714, %714 : vector<8x32xf32>
    %cst_325 = arith.constant dense<0.000000e+00> : vector<8xf32>
    %716 = vector.multi_reduction <add>, %715, %cst_325 [1] : vector<8x32xf32> to vector<8xf32>
    %717 = vector.shape_cast %716 : vector<8xf32> to vector<8x1xf32>
    %cst_326 = arith.constant 3.200000e+01 : f32
    %718 = vector.broadcast %cst_326 : f32 to vector<8x1xf32>
    %719 = arith.divf %717, %718 : vector<8x1xf32>
    %720 = vector.broadcast %712 : vector<8x1xf32> to vector<8x32xf32>
    %721 = arith.subf %708, %720 : vector<8x32xf32>
    %cst_327 = arith.constant 9.99999974E-6 : f32
    %722 = vector.broadcast %cst_327 : f32 to vector<8x1xf32>
    %723 = arith.addf %719, %722 : vector<8x1xf32>
    %724 = math.rsqrt %723 : vector<8x1xf32>
    %725 = vector.broadcast %724 : vector<8x1xf32> to vector<8x32xf32>
    %726 = arith.mulf %721, %725 : vector<8x32xf32>
    %c0_328 = arith.constant 0 : index
    %c0_329 = arith.constant 0 : index
    %727 = vector.load %arg31[%c0_328, %c0_329] : memref<1x32xf32, #tpu.memory_space<vmem>>, vector<1x32xf32>
    %728 = vector.broadcast %727 : vector<1x32xf32> to vector<8x32xf32>
    %729 = arith.mulf %726, %728 : vector<8x32xf32>
    %c0_330 = arith.constant 0 : index
    %c0_331 = arith.constant 0 : index
    %730 = vector.load %arg32[%c0_330, %c0_331] : memref<1x32xf32, #tpu.memory_space<vmem>>, vector<1x32xf32>
    %731 = vector.broadcast %730 : vector<1x32xf32> to vector<8x32xf32>
    %732 = arith.addf %729, %731 : vector<8x32xf32>
    %c0_332 = arith.constant 0 : index
    %c0_333 = arith.constant 0 : index
    %733 = vector.load %arg33[%c0_332, %c0_333] : memref<32x64xf32, #tpu.memory_space<vmem>>, vector<32x64xf32>
    %cst_334 = arith.constant dense<0.000000e+00> : vector<8x64xf32>
    %734 = tpu.matmul %732, %733, %cst_334 {dimension_numbers = #tpu.dot_dimension_numbers<[1], [0], [0], [1], [0, 0, 1, 1], [], []>} : vector<8x32xf32>, vector<32x64xf32>, vector<8x64xf32> -> vector<8x64xf32>
    %c0_335 = arith.constant 0 : index
    %c0_336 = arith.constant 0 : index
    %735 = vector.load %arg34[%c0_335, %c0_336] : memref<1x64xf32, #tpu.memory_space<vmem>>, vector<1x64xf32>
    %736 = vector.broadcast %735 : vector<1x64xf32> to vector<8x64xf32>
    %737 = arith.addf %734, %736 : vector<8x64xf32>
    %cst_337 = arith.constant 0.000000e+00 : f32
    %738 = vector.broadcast %cst_337 : f32 to vector<8x64xf32>
    %739 = arith.maximumf %737, %738 : vector<8x64xf32>
    %c0_338 = arith.constant 0 : index
    %c0_339 = arith.constant 0 : index
    %740 = vector.load %arg35[%c0_338, %c0_339] : memref<64x32xf32, #tpu.memory_space<vmem>>, vector<64x32xf32>
    %cst_340 = arith.constant dense<0.000000e+00> : vector<8x32xf32>
    %741 = tpu.matmul %739, %740, %cst_340 {dimension_numbers = #tpu.dot_dimension_numbers<[1], [0], [0], [1], [0, 0, 1, 1], [], []>} : vector<8x64xf32>, vector<64x32xf32>, vector<8x32xf32> -> vector<8x32xf32>
    %c0_341 = arith.constant 0 : index
    %c0_342 = arith.constant 0 : index
    %742 = vector.load %arg36[%c0_341, %c0_342] : memref<1x32xf32, #tpu.memory_space<vmem>>, vector<1x32xf32>
    %743 = vector.broadcast %742 : vector<1x32xf32> to vector<8x32xf32>
    %744 = arith.addf %741, %743 : vector<8x32xf32>
    %745 = arith.addf %732, %744 : vector<8x32xf32>
    %cst_343 = arith.constant dense<0.000000e+00> : vector<8xf32>
    %746 = vector.multi_reduction <add>, %745, %cst_343 [1] : vector<8x32xf32> to vector<8xf32>
    %747 = vector.shape_cast %746 : vector<8xf32> to vector<8x1xf32>
    %cst_344 = arith.constant 3.200000e+01 : f32
    %748 = vector.broadcast %cst_344 : f32 to vector<8x1xf32>
    %749 = arith.divf %747, %748 : vector<8x1xf32>
    %750 = vector.broadcast %749 : vector<8x1xf32> to vector<8x32xf32>
    %751 = arith.subf %745, %750 : vector<8x32xf32>
    %752 = arith.mulf %751, %751 : vector<8x32xf32>
    %cst_345 = arith.constant dense<0.000000e+00> : vector<8xf32>
    %753 = vector.multi_reduction <add>, %752, %cst_345 [1] : vector<8x32xf32> to vector<8xf32>
    %754 = vector.shape_cast %753 : vector<8xf32> to vector<8x1xf32>
    %cst_346 = arith.constant 3.200000e+01 : f32
    %755 = vector.broadcast %cst_346 : f32 to vector<8x1xf32>
    %756 = arith.divf %754, %755 : vector<8x1xf32>
    %757 = vector.broadcast %749 : vector<8x1xf32> to vector<8x32xf32>
    %758 = arith.subf %745, %757 : vector<8x32xf32>
    %cst_347 = arith.constant 9.99999974E-6 : f32
    %759 = vector.broadcast %cst_347 : f32 to vector<8x1xf32>
    %760 = arith.addf %756, %759 : vector<8x1xf32>
    %761 = math.rsqrt %760 : vector<8x1xf32>
    %762 = vector.broadcast %761 : vector<8x1xf32> to vector<8x32xf32>
    %763 = arith.mulf %758, %762 : vector<8x32xf32>
    %c0_348 = arith.constant 0 : index
    %c0_349 = arith.constant 0 : index
    %764 = vector.load %arg37[%c0_348, %c0_349] : memref<1x32xf32, #tpu.memory_space<vmem>>, vector<1x32xf32>
    %765 = vector.broadcast %764 : vector<1x32xf32> to vector<8x32xf32>
    %766 = arith.mulf %763, %765 : vector<8x32xf32>
    %c0_350 = arith.constant 0 : index
    %c0_351 = arith.constant 0 : index
    %767 = vector.load %arg38[%c0_350, %c0_351] : memref<1x32xf32, #tpu.memory_space<vmem>>, vector<1x32xf32>
    %768 = vector.broadcast %767 : vector<1x32xf32> to vector<8x32xf32>
    %769 = arith.addf %766, %768 : vector<8x32xf32>
    %c0_352 = arith.constant 0 : index
    %c0_353 = arith.constant 0 : index
    %770 = vector.load %arg15[%c0_352, %c0_353] : memref<32x96xf32, #tpu.memory_space<vmem>>, vector<32x96xf32>
    %cst_354 = arith.constant dense<0.000000e+00> : vector<8x96xf32>
    %771 = tpu.matmul %470, %770, %cst_354 {dimension_numbers = #tpu.dot_dimension_numbers<[1], [0], [0], [1], [0, 0, 1, 1], [], []>} : vector<8x32xf32>, vector<32x96xf32>, vector<8x96xf32> -> vector<8x96xf32>
    %c0_355 = arith.constant 0 : index
    %c0_356 = arith.constant 0 : index
    %772 = vector.load %arg16[%c0_355, %c0_356] : memref<1x96xf32, #tpu.memory_space<vmem>>, vector<1x96xf32>
    %773 = vector.broadcast %772 : vector<1x96xf32> to vector<8x96xf32>
    %774 = arith.addf %771, %773 : vector<8x96xf32>
    %c0_357 = arith.constant 0 : index
    %c0_358 = arith.constant 0 : index
    %775 = vector.load %arg15[%c0_357, %c0_358] : memref<32x96xf32, #tpu.memory_space<vmem>>, vector<32x96xf32>
    %cst_359 = arith.constant dense<0.000000e+00> : vector<8x96xf32>
    %776 = tpu.matmul %769, %775, %cst_359 {dimension_numbers = #tpu.dot_dimension_numbers<[1], [0], [0], [1], [0, 0, 1, 1], [], []>} : vector<8x32xf32>, vector<32x96xf32>, vector<8x96xf32> -> vector<8x96xf32>
    %c0_360 = arith.constant 0 : index
    %c0_361 = arith.constant 0 : index
    %777 = vector.load %arg16[%c0_360, %c0_361] : memref<1x96xf32, #tpu.memory_space<vmem>>, vector<1x96xf32>
    %778 = vector.broadcast %777 : vector<1x96xf32> to vector<8x96xf32>
    %779 = arith.addf %776, %778 : vector<8x96xf32>
    %cst_362 = arith.constant 0.000000e+00 : f32
    %780 = vector.broadcast %cst_362 : f32 to vector<8x32xf32>
    %c0_363 = arith.constant 0 : index
    %c0_364 = arith.constant 0 : index
    %781 = vector.load %arg18[%c0_363, %c0_364] : memref<1x32xf32, #tpu.memory_space<vmem>>, vector<1x32xf32>
    %782 = vector.broadcast %781 : vector<1x32xf32> to vector<8x32xf32>
    %783 = arith.addf %780, %782 : vector<8x32xf32>
    %784 = vector.extract_strided_slice %774 {offsets = [0, 0], sizes = [8, 8], strides = [1, 1]} : vector<8x96xf32> to vector<8x8xf32>
    %785 = vector.extract_strided_slice %779 {offsets = [0, 32], sizes = [8, 8], strides = [1, 1]} : vector<8x96xf32> to vector<8x8xf32>
    %786 = vector.extract_strided_slice %779 {offsets = [0, 64], sizes = [8, 8], strides = [1, 1]} : vector<8x96xf32> to vector<8x8xf32>
    %787 = tpu.transpose %785, [1, 0] : vector<8x8xf32> -> vector<8x8xf32>
    %cst_365 = arith.constant dense<0.000000e+00> : vector<8x8xf32>
    %788 = tpu.matmul %784, %787, %cst_365 {dimension_numbers = #tpu.dot_dimension_numbers<[1], [0], [0], [1], [0, 0, 1, 1], [], []>} : vector<8x8xf32>, vector<8x8xf32>, vector<8x8xf32> -> vector<8x8xf32>
    %cst_366 = arith.constant dense<0xFF800000> : vector<8xf32>
    %789 = vector.multi_reduction <maximumf>, %788, %cst_366 [1] : vector<8x8xf32> to vector<8xf32>
    %790 = vector.shape_cast %789 : vector<8xf32> to vector<8x1xf32>
    %791 = vector.broadcast %790 : vector<8x1xf32> to vector<8x8xf32>
    %792 = arith.subf %788, %791 : vector<8x8xf32>
    %793 = math.exp %792 : vector<8x8xf32>
    %cst_367 = arith.constant dense<0.000000e+00> : vector<8xf32>
    %794 = vector.multi_reduction <add>, %793, %cst_367 [1] : vector<8x8xf32> to vector<8xf32>
    %795 = vector.shape_cast %794 : vector<8xf32> to vector<8x1xf32>
    %796 = vector.broadcast %795 : vector<8x1xf32> to vector<8x8xf32>
    %797 = arith.divf %793, %796 : vector<8x8xf32>
    %cst_368 = arith.constant dense<0.000000e+00> : vector<8x8xf32>
    %798 = tpu.matmul %797, %786, %cst_368 {dimension_numbers = #tpu.dot_dimension_numbers<[1], [0], [0], [1], [0, 0, 1, 1], [], []>} : vector<8x8xf32>, vector<8x8xf32>, vector<8x8xf32> -> vector<8x8xf32>
    %c0_369 = arith.constant 0 : index
    %c0_370 = arith.constant 0 : index
    %c0_371 = arith.constant 0 : index
    %799 = vector.load %arg17[%c0_369, %c0_370, %c0_371] : memref<4x8x32xf32, #tpu.memory_space<vmem>>, vector<1x8x32xf32>
    %800 = vector.shape_cast %799 : vector<1x8x32xf32> to vector<8x32xf32>
    %cst_372 = arith.constant dense<0.000000e+00> : vector<8x32xf32>
    %801 = tpu.matmul %798, %800, %cst_372 {dimension_numbers = #tpu.dot_dimension_numbers<[1], [0], [0], [1], [0, 0, 1, 1], [], []>} : vector<8x8xf32>, vector<8x32xf32>, vector<8x32xf32> -> vector<8x32xf32>
    %802 = arith.addf %783, %801 : vector<8x32xf32>
    %803 = vector.extract_strided_slice %774 {offsets = [0, 8], sizes = [8, 8], strides = [1, 1]} : vector<8x96xf32> to vector<8x8xf32>
    %804 = vector.extract_strided_slice %779 {offsets = [0, 40], sizes = [8, 8], strides = [1, 1]} : vector<8x96xf32> to vector<8x8xf32>
    %805 = vector.extract_strided_slice %779 {offsets = [0, 72], sizes = [8, 8], strides = [1, 1]} : vector<8x96xf32> to vector<8x8xf32>
    %806 = tpu.transpose %804, [1, 0] : vector<8x8xf32> -> vector<8x8xf32>
    %cst_373 = arith.constant dense<0.000000e+00> : vector<8x8xf32>
    %807 = tpu.matmul %803, %806, %cst_373 {dimension_numbers = #tpu.dot_dimension_numbers<[1], [0], [0], [1], [0, 0, 1, 1], [], []>} : vector<8x8xf32>, vector<8x8xf32>, vector<8x8xf32> -> vector<8x8xf32>
    %cst_374 = arith.constant dense<0xFF800000> : vector<8xf32>
    %808 = vector.multi_reduction <maximumf>, %807, %cst_374 [1] : vector<8x8xf32> to vector<8xf32>
    %809 = vector.shape_cast %808 : vector<8xf32> to vector<8x1xf32>
    %810 = vector.broadcast %809 : vector<8x1xf32> to vector<8x8xf32>
    %811 = arith.subf %807, %810 : vector<8x8xf32>
    %812 = math.exp %811 : vector<8x8xf32>
    %cst_375 = arith.constant dense<0.000000e+00> : vector<8xf32>
    %813 = vector.multi_reduction <add>, %812, %cst_375 [1] : vector<8x8xf32> to vector<8xf32>
    %814 = vector.shape_cast %813 : vector<8xf32> to vector<8x1xf32>
    %815 = vector.broadcast %814 : vector<8x1xf32> to vector<8x8xf32>
    %816 = arith.divf %812, %815 : vector<8x8xf32>
    %cst_376 = arith.constant dense<0.000000e+00> : vector<8x8xf32>
    %817 = tpu.matmul %816, %805, %cst_376 {dimension_numbers = #tpu.dot_dimension_numbers<[1], [0], [0], [1], [0, 0, 1, 1], [], []>} : vector<8x8xf32>, vector<8x8xf32>, vector<8x8xf32> -> vector<8x8xf32>
    %c1_377 = arith.constant 1 : index
    %c0_378 = arith.constant 0 : index
    %c0_379 = arith.constant 0 : index
    %818 = vector.load %arg17[%c1_377, %c0_378, %c0_379] : memref<4x8x32xf32, #tpu.memory_space<vmem>>, vector<1x8x32xf32>
    %819 = vector.shape_cast %818 : vector<1x8x32xf32> to vector<8x32xf32>
    %cst_380 = arith.constant dense<0.000000e+00> : vector<8x32xf32>
    %820 = tpu.matmul %817, %819, %cst_380 {dimension_numbers = #tpu.dot_dimension_numbers<[1], [0], [0], [1], [0, 0, 1, 1], [], []>} : vector<8x8xf32>, vector<8x32xf32>, vector<8x32xf32> -> vector<8x32xf32>
    %821 = arith.addf %802, %820 : vector<8x32xf32>
    %822 = vector.extract_strided_slice %774 {offsets = [0, 16], sizes = [8, 8], strides = [1, 1]} : vector<8x96xf32> to vector<8x8xf32>
    %823 = vector.extract_strided_slice %779 {offsets = [0, 48], sizes = [8, 8], strides = [1, 1]} : vector<8x96xf32> to vector<8x8xf32>
    %824 = vector.extract_strided_slice %779 {offsets = [0, 80], sizes = [8, 8], strides = [1, 1]} : vector<8x96xf32> to vector<8x8xf32>
    %825 = tpu.transpose %823, [1, 0] : vector<8x8xf32> -> vector<8x8xf32>
    %cst_381 = arith.constant dense<0.000000e+00> : vector<8x8xf32>
    %826 = tpu.matmul %822, %825, %cst_381 {dimension_numbers = #tpu.dot_dimension_numbers<[1], [0], [0], [1], [0, 0, 1, 1], [], []>} : vector<8x8xf32>, vector<8x8xf32>, vector<8x8xf32> -> vector<8x8xf32>
    %cst_382 = arith.constant dense<0xFF800000> : vector<8xf32>
    %827 = vector.multi_reduction <maximumf>, %826, %cst_382 [1] : vector<8x8xf32> to vector<8xf32>
    %828 = vector.shape_cast %827 : vector<8xf32> to vector<8x1xf32>
    %829 = vector.broadcast %828 : vector<8x1xf32> to vector<8x8xf32>
    %830 = arith.subf %826, %829 : vector<8x8xf32>
    %831 = math.exp %830 : vector<8x8xf32>
    %cst_383 = arith.constant dense<0.000000e+00> : vector<8xf32>
    %832 = vector.multi_reduction <add>, %831, %cst_383 [1] : vector<8x8xf32> to vector<8xf32>
    %833 = vector.shape_cast %832 : vector<8xf32> to vector<8x1xf32>
    %834 = vector.broadcast %833 : vector<8x1xf32> to vector<8x8xf32>
    %835 = arith.divf %831, %834 : vector<8x8xf32>
    %cst_384 = arith.constant dense<0.000000e+00> : vector<8x8xf32>
    %836 = tpu.matmul %835, %824, %cst_384 {dimension_numbers = #tpu.dot_dimension_numbers<[1], [0], [0], [1], [0, 0, 1, 1], [], []>} : vector<8x8xf32>, vector<8x8xf32>, vector<8x8xf32> -> vector<8x8xf32>
    %c2_385 = arith.constant 2 : index
    %c0_386 = arith.constant 0 : index
    %c0_387 = arith.constant 0 : index
    %837 = vector.load %arg17[%c2_385, %c0_386, %c0_387] : memref<4x8x32xf32, #tpu.memory_space<vmem>>, vector<1x8x32xf32>
    %838 = vector.shape_cast %837 : vector<1x8x32xf32> to vector<8x32xf32>
    %cst_388 = arith.constant dense<0.000000e+00> : vector<8x32xf32>
    %839 = tpu.matmul %836, %838, %cst_388 {dimension_numbers = #tpu.dot_dimension_numbers<[1], [0], [0], [1], [0, 0, 1, 1], [], []>} : vector<8x8xf32>, vector<8x32xf32>, vector<8x32xf32> -> vector<8x32xf32>
    %840 = arith.addf %821, %839 : vector<8x32xf32>
    %841 = vector.extract_strided_slice %774 {offsets = [0, 24], sizes = [8, 8], strides = [1, 1]} : vector<8x96xf32> to vector<8x8xf32>
    %842 = vector.extract_strided_slice %779 {offsets = [0, 56], sizes = [8, 8], strides = [1, 1]} : vector<8x96xf32> to vector<8x8xf32>
    %843 = vector.extract_strided_slice %779 {offsets = [0, 88], sizes = [8, 8], strides = [1, 1]} : vector<8x96xf32> to vector<8x8xf32>
    %844 = tpu.transpose %842, [1, 0] : vector<8x8xf32> -> vector<8x8xf32>
    %cst_389 = arith.constant dense<0.000000e+00> : vector<8x8xf32>
    %845 = tpu.matmul %841, %844, %cst_389 {dimension_numbers = #tpu.dot_dimension_numbers<[1], [0], [0], [1], [0, 0, 1, 1], [], []>} : vector<8x8xf32>, vector<8x8xf32>, vector<8x8xf32> -> vector<8x8xf32>
    %cst_390 = arith.constant dense<0xFF800000> : vector<8xf32>
    %846 = vector.multi_reduction <maximumf>, %845, %cst_390 [1] : vector<8x8xf32> to vector<8xf32>
    %847 = vector.shape_cast %846 : vector<8xf32> to vector<8x1xf32>
    %848 = vector.broadcast %847 : vector<8x1xf32> to vector<8x8xf32>
    %849 = arith.subf %845, %848 : vector<8x8xf32>
    %850 = math.exp %849 : vector<8x8xf32>
    %cst_391 = arith.constant dense<0.000000e+00> : vector<8xf32>
    %851 = vector.multi_reduction <add>, %850, %cst_391 [1] : vector<8x8xf32> to vector<8xf32>
    %852 = vector.shape_cast %851 : vector<8xf32> to vector<8x1xf32>
    %853 = vector.broadcast %852 : vector<8x1xf32> to vector<8x8xf32>
    %854 = arith.divf %850, %853 : vector<8x8xf32>
    %cst_392 = arith.constant dense<0.000000e+00> : vector<8x8xf32>
    %855 = tpu.matmul %854, %843, %cst_392 {dimension_numbers = #tpu.dot_dimension_numbers<[1], [0], [0], [1], [0, 0, 1, 1], [], []>} : vector<8x8xf32>, vector<8x8xf32>, vector<8x8xf32> -> vector<8x8xf32>
    %c3_393 = arith.constant 3 : index
    %c0_394 = arith.constant 0 : index
    %c0_395 = arith.constant 0 : index
    %856 = vector.load %arg17[%c3_393, %c0_394, %c0_395] : memref<4x8x32xf32, #tpu.memory_space<vmem>>, vector<1x8x32xf32>
    %857 = vector.shape_cast %856 : vector<1x8x32xf32> to vector<8x32xf32>
    %cst_396 = arith.constant dense<0.000000e+00> : vector<8x32xf32>
    %858 = tpu.matmul %855, %857, %cst_396 {dimension_numbers = #tpu.dot_dimension_numbers<[1], [0], [0], [1], [0, 0, 1, 1], [], []>} : vector<8x8xf32>, vector<8x32xf32>, vector<8x32xf32> -> vector<8x32xf32>
    %859 = arith.addf %840, %858 : vector<8x32xf32>
    %860 = arith.addf %470, %859 : vector<8x32xf32>
    %cst_397 = arith.constant dense<0.000000e+00> : vector<8xf32>
    %861 = vector.multi_reduction <add>, %860, %cst_397 [1] : vector<8x32xf32> to vector<8xf32>
    %862 = vector.shape_cast %861 : vector<8xf32> to vector<8x1xf32>
    %cst_398 = arith.constant 3.200000e+01 : f32
    %863 = vector.broadcast %cst_398 : f32 to vector<8x1xf32>
    %864 = arith.divf %862, %863 : vector<8x1xf32>
    %865 = vector.broadcast %864 : vector<8x1xf32> to vector<8x32xf32>
    %866 = arith.subf %860, %865 : vector<8x32xf32>
    %867 = arith.mulf %866, %866 : vector<8x32xf32>
    %cst_399 = arith.constant dense<0.000000e+00> : vector<8xf32>
    %868 = vector.multi_reduction <add>, %867, %cst_399 [1] : vector<8x32xf32> to vector<8xf32>
    %869 = vector.shape_cast %868 : vector<8xf32> to vector<8x1xf32>
    %cst_400 = arith.constant 3.200000e+01 : f32
    %870 = vector.broadcast %cst_400 : f32 to vector<8x1xf32>
    %871 = arith.divf %869, %870 : vector<8x1xf32>
    %872 = vector.broadcast %864 : vector<8x1xf32> to vector<8x32xf32>
    %873 = arith.subf %860, %872 : vector<8x32xf32>
    %cst_401 = arith.constant 9.99999974E-6 : f32
    %874 = vector.broadcast %cst_401 : f32 to vector<8x1xf32>
    %875 = arith.addf %871, %874 : vector<8x1xf32>
    %876 = math.rsqrt %875 : vector<8x1xf32>
    %877 = vector.broadcast %876 : vector<8x1xf32> to vector<8x32xf32>
    %878 = arith.mulf %873, %877 : vector<8x32xf32>
    %c0_402 = arith.constant 0 : index
    %c0_403 = arith.constant 0 : index
    %879 = vector.load %arg19[%c0_402, %c0_403] : memref<1x32xf32, #tpu.memory_space<vmem>>, vector<1x32xf32>
    %880 = vector.broadcast %879 : vector<1x32xf32> to vector<8x32xf32>
    %881 = arith.mulf %878, %880 : vector<8x32xf32>
    %c0_404 = arith.constant 0 : index
    %c0_405 = arith.constant 0 : index
    %882 = vector.load %arg20[%c0_404, %c0_405] : memref<1x32xf32, #tpu.memory_space<vmem>>, vector<1x32xf32>
    %883 = vector.broadcast %882 : vector<1x32xf32> to vector<8x32xf32>
    %884 = arith.addf %881, %883 : vector<8x32xf32>
    %c0_406 = arith.constant 0 : index
    %c0_407 = arith.constant 0 : index
    %885 = vector.load %arg21[%c0_406, %c0_407] : memref<32x64xf32, #tpu.memory_space<vmem>>, vector<32x64xf32>
    %cst_408 = arith.constant dense<0.000000e+00> : vector<8x64xf32>
    %886 = tpu.matmul %884, %885, %cst_408 {dimension_numbers = #tpu.dot_dimension_numbers<[1], [0], [0], [1], [0, 0, 1, 1], [], []>} : vector<8x32xf32>, vector<32x64xf32>, vector<8x64xf32> -> vector<8x64xf32>
    %c0_409 = arith.constant 0 : index
    %c0_410 = arith.constant 0 : index
    %887 = vector.load %arg22[%c0_409, %c0_410] : memref<1x64xf32, #tpu.memory_space<vmem>>, vector<1x64xf32>
    %888 = vector.broadcast %887 : vector<1x64xf32> to vector<8x64xf32>
    %889 = arith.addf %886, %888 : vector<8x64xf32>
    %cst_411 = arith.constant 0.000000e+00 : f32
    %890 = vector.broadcast %cst_411 : f32 to vector<8x64xf32>
    %891 = arith.maximumf %889, %890 : vector<8x64xf32>
    %c0_412 = arith.constant 0 : index
    %c0_413 = arith.constant 0 : index
    %892 = vector.load %arg23[%c0_412, %c0_413] : memref<64x32xf32, #tpu.memory_space<vmem>>, vector<64x32xf32>
    %cst_414 = arith.constant dense<0.000000e+00> : vector<8x32xf32>
    %893 = tpu.matmul %891, %892, %cst_414 {dimension_numbers = #tpu.dot_dimension_numbers<[1], [0], [0], [1], [0, 0, 1, 1], [], []>} : vector<8x64xf32>, vector<64x32xf32>, vector<8x32xf32> -> vector<8x32xf32>
    %c0_415 = arith.constant 0 : index
    %c0_416 = arith.constant 0 : index
    %894 = vector.load %arg24[%c0_415, %c0_416] : memref<1x32xf32, #tpu.memory_space<vmem>>, vector<1x32xf32>
    %895 = vector.broadcast %894 : vector<1x32xf32> to vector<8x32xf32>
    %896 = arith.addf %893, %895 : vector<8x32xf32>
    %897 = arith.addf %884, %896 : vector<8x32xf32>
    %cst_417 = arith.constant dense<0.000000e+00> : vector<8xf32>
    %898 = vector.multi_reduction <add>, %897, %cst_417 [1] : vector<8x32xf32> to vector<8xf32>
    %899 = vector.shape_cast %898 : vector<8xf32> to vector<8x1xf32>
    %cst_418 = arith.constant 3.200000e+01 : f32
    %900 = vector.broadcast %cst_418 : f32 to vector<8x1xf32>
    %901 = arith.divf %899, %900 : vector<8x1xf32>
    %902 = vector.broadcast %901 : vector<8x1xf32> to vector<8x32xf32>
    %903 = arith.subf %897, %902 : vector<8x32xf32>
    %904 = arith.mulf %903, %903 : vector<8x32xf32>
    %cst_419 = arith.constant dense<0.000000e+00> : vector<8xf32>
    %905 = vector.multi_reduction <add>, %904, %cst_419 [1] : vector<8x32xf32> to vector<8xf32>
    %906 = vector.shape_cast %905 : vector<8xf32> to vector<8x1xf32>
    %cst_420 = arith.constant 3.200000e+01 : f32
    %907 = vector.broadcast %cst_420 : f32 to vector<8x1xf32>
    %908 = arith.divf %906, %907 : vector<8x1xf32>
    %909 = vector.broadcast %901 : vector<8x1xf32> to vector<8x32xf32>
    %910 = arith.subf %897, %909 : vector<8x32xf32>
    %cst_421 = arith.constant 9.99999974E-6 : f32
    %911 = vector.broadcast %cst_421 : f32 to vector<8x1xf32>
    %912 = arith.addf %908, %911 : vector<8x1xf32>
    %913 = math.rsqrt %912 : vector<8x1xf32>
    %914 = vector.broadcast %913 : vector<8x1xf32> to vector<8x32xf32>
    %915 = arith.mulf %910, %914 : vector<8x32xf32>
    %c0_422 = arith.constant 0 : index
    %c0_423 = arith.constant 0 : index
    %916 = vector.load %arg25[%c0_422, %c0_423] : memref<1x32xf32, #tpu.memory_space<vmem>>, vector<1x32xf32>
    %917 = vector.broadcast %916 : vector<1x32xf32> to vector<8x32xf32>
    %918 = arith.mulf %915, %917 : vector<8x32xf32>
    %c0_424 = arith.constant 0 : index
    %c0_425 = arith.constant 0 : index
    %919 = vector.load %arg26[%c0_424, %c0_425] : memref<1x32xf32, #tpu.memory_space<vmem>>, vector<1x32xf32>
    %920 = vector.broadcast %919 : vector<1x32xf32> to vector<8x32xf32>
    %921 = arith.addf %918, %920 : vector<8x32xf32>
    %c0_426 = arith.constant 0 : index
    %c0_427 = arith.constant 0 : index
    %922 = vector.load %arg27[%c0_426, %c0_427] : memref<32x96xf32, #tpu.memory_space<vmem>>, vector<32x96xf32>
    %cst_428 = arith.constant dense<0.000000e+00> : vector<8x96xf32>
    %923 = tpu.matmul %921, %922, %cst_428 {dimension_numbers = #tpu.dot_dimension_numbers<[1], [0], [0], [1], [0, 0, 1, 1], [], []>} : vector<8x32xf32>, vector<32x96xf32>, vector<8x96xf32> -> vector<8x96xf32>
    %c0_429 = arith.constant 0 : index
    %c0_430 = arith.constant 0 : index
    %924 = vector.load %arg28[%c0_429, %c0_430] : memref<1x96xf32, #tpu.memory_space<vmem>>, vector<1x96xf32>
    %925 = vector.broadcast %924 : vector<1x96xf32> to vector<8x96xf32>
    %926 = arith.addf %923, %925 : vector<8x96xf32>
    %cst_431 = arith.constant 0.000000e+00 : f32
    %927 = vector.broadcast %cst_431 : f32 to vector<8x32xf32>
    %c0_432 = arith.constant 0 : index
    %c0_433 = arith.constant 0 : index
    %928 = vector.load %arg30[%c0_432, %c0_433] : memref<1x32xf32, #tpu.memory_space<vmem>>, vector<1x32xf32>
    %929 = vector.broadcast %928 : vector<1x32xf32> to vector<8x32xf32>
    %930 = arith.addf %927, %929 : vector<8x32xf32>
    %931 = vector.extract_strided_slice %926 {offsets = [0, 0], sizes = [8, 8], strides = [1, 1]} : vector<8x96xf32> to vector<8x8xf32>
    %932 = vector.extract_strided_slice %926 {offsets = [0, 32], sizes = [8, 8], strides = [1, 1]} : vector<8x96xf32> to vector<8x8xf32>
    %933 = vector.extract_strided_slice %926 {offsets = [0, 64], sizes = [8, 8], strides = [1, 1]} : vector<8x96xf32> to vector<8x8xf32>
    %934 = tpu.transpose %932, [1, 0] : vector<8x8xf32> -> vector<8x8xf32>
    %cst_434 = arith.constant dense<0.000000e+00> : vector<8x8xf32>
    %935 = tpu.matmul %931, %934, %cst_434 {dimension_numbers = #tpu.dot_dimension_numbers<[1], [0], [0], [1], [0, 0, 1, 1], [], []>} : vector<8x8xf32>, vector<8x8xf32>, vector<8x8xf32> -> vector<8x8xf32>
    %cst_435 = arith.constant dense<0xFF800000> : vector<8xf32>
    %936 = vector.multi_reduction <maximumf>, %935, %cst_435 [1] : vector<8x8xf32> to vector<8xf32>
    %937 = vector.shape_cast %936 : vector<8xf32> to vector<8x1xf32>
    %938 = vector.broadcast %937 : vector<8x1xf32> to vector<8x8xf32>
    %939 = arith.subf %935, %938 : vector<8x8xf32>
    %940 = math.exp %939 : vector<8x8xf32>
    %cst_436 = arith.constant dense<0.000000e+00> : vector<8xf32>
    %941 = vector.multi_reduction <add>, %940, %cst_436 [1] : vector<8x8xf32> to vector<8xf32>
    %942 = vector.shape_cast %941 : vector<8xf32> to vector<8x1xf32>
    %943 = vector.broadcast %942 : vector<8x1xf32> to vector<8x8xf32>
    %944 = arith.divf %940, %943 : vector<8x8xf32>
    %cst_437 = arith.constant dense<0.000000e+00> : vector<8x8xf32>
    %945 = tpu.matmul %944, %933, %cst_437 {dimension_numbers = #tpu.dot_dimension_numbers<[1], [0], [0], [1], [0, 0, 1, 1], [], []>} : vector<8x8xf32>, vector<8x8xf32>, vector<8x8xf32> -> vector<8x8xf32>
    %c0_438 = arith.constant 0 : index
    %c0_439 = arith.constant 0 : index
    %c0_440 = arith.constant 0 : index
    %946 = vector.load %arg29[%c0_438, %c0_439, %c0_440] : memref<4x8x32xf32, #tpu.memory_space<vmem>>, vector<1x8x32xf32>
    %947 = vector.shape_cast %946 : vector<1x8x32xf32> to vector<8x32xf32>
    %cst_441 = arith.constant dense<0.000000e+00> : vector<8x32xf32>
    %948 = tpu.matmul %945, %947, %cst_441 {dimension_numbers = #tpu.dot_dimension_numbers<[1], [0], [0], [1], [0, 0, 1, 1], [], []>} : vector<8x8xf32>, vector<8x32xf32>, vector<8x32xf32> -> vector<8x32xf32>
    %949 = arith.addf %930, %948 : vector<8x32xf32>
    %950 = vector.extract_strided_slice %926 {offsets = [0, 8], sizes = [8, 8], strides = [1, 1]} : vector<8x96xf32> to vector<8x8xf32>
    %951 = vector.extract_strided_slice %926 {offsets = [0, 40], sizes = [8, 8], strides = [1, 1]} : vector<8x96xf32> to vector<8x8xf32>
    %952 = vector.extract_strided_slice %926 {offsets = [0, 72], sizes = [8, 8], strides = [1, 1]} : vector<8x96xf32> to vector<8x8xf32>
    %953 = tpu.transpose %951, [1, 0] : vector<8x8xf32> -> vector<8x8xf32>
    %cst_442 = arith.constant dense<0.000000e+00> : vector<8x8xf32>
    %954 = tpu.matmul %950, %953, %cst_442 {dimension_numbers = #tpu.dot_dimension_numbers<[1], [0], [0], [1], [0, 0, 1, 1], [], []>} : vector<8x8xf32>, vector<8x8xf32>, vector<8x8xf32> -> vector<8x8xf32>
    %cst_443 = arith.constant dense<0xFF800000> : vector<8xf32>
    %955 = vector.multi_reduction <maximumf>, %954, %cst_443 [1] : vector<8x8xf32> to vector<8xf32>
    %956 = vector.shape_cast %955 : vector<8xf32> to vector<8x1xf32>
    %957 = vector.broadcast %956 : vector<8x1xf32> to vector<8x8xf32>
    %958 = arith.subf %954, %957 : vector<8x8xf32>
    %959 = math.exp %958 : vector<8x8xf32>
    %cst_444 = arith.constant dense<0.000000e+00> : vector<8xf32>
    %960 = vector.multi_reduction <add>, %959, %cst_444 [1] : vector<8x8xf32> to vector<8xf32>
    %961 = vector.shape_cast %960 : vector<8xf32> to vector<8x1xf32>
    %962 = vector.broadcast %961 : vector<8x1xf32> to vector<8x8xf32>
    %963 = arith.divf %959, %962 : vector<8x8xf32>
    %cst_445 = arith.constant dense<0.000000e+00> : vector<8x8xf32>
    %964 = tpu.matmul %963, %952, %cst_445 {dimension_numbers = #tpu.dot_dimension_numbers<[1], [0], [0], [1], [0, 0, 1, 1], [], []>} : vector<8x8xf32>, vector<8x8xf32>, vector<8x8xf32> -> vector<8x8xf32>
    %c1_446 = arith.constant 1 : index
    %c0_447 = arith.constant 0 : index
    %c0_448 = arith.constant 0 : index
    %965 = vector.load %arg29[%c1_446, %c0_447, %c0_448] : memref<4x8x32xf32, #tpu.memory_space<vmem>>, vector<1x8x32xf32>
    %966 = vector.shape_cast %965 : vector<1x8x32xf32> to vector<8x32xf32>
    %cst_449 = arith.constant dense<0.000000e+00> : vector<8x32xf32>
    %967 = tpu.matmul %964, %966, %cst_449 {dimension_numbers = #tpu.dot_dimension_numbers<[1], [0], [0], [1], [0, 0, 1, 1], [], []>} : vector<8x8xf32>, vector<8x32xf32>, vector<8x32xf32> -> vector<8x32xf32>
    %968 = arith.addf %949, %967 : vector<8x32xf32>
    %969 = vector.extract_strided_slice %926 {offsets = [0, 16], sizes = [8, 8], strides = [1, 1]} : vector<8x96xf32> to vector<8x8xf32>
    %970 = vector.extract_strided_slice %926 {offsets = [0, 48], sizes = [8, 8], strides = [1, 1]} : vector<8x96xf32> to vector<8x8xf32>
    %971 = vector.extract_strided_slice %926 {offsets = [0, 80], sizes = [8, 8], strides = [1, 1]} : vector<8x96xf32> to vector<8x8xf32>
    %972 = tpu.transpose %970, [1, 0] : vector<8x8xf32> -> vector<8x8xf32>
    %cst_450 = arith.constant dense<0.000000e+00> : vector<8x8xf32>
    %973 = tpu.matmul %969, %972, %cst_450 {dimension_numbers = #tpu.dot_dimension_numbers<[1], [0], [0], [1], [0, 0, 1, 1], [], []>} : vector<8x8xf32>, vector<8x8xf32>, vector<8x8xf32> -> vector<8x8xf32>
    %cst_451 = arith.constant dense<0xFF800000> : vector<8xf32>
    %974 = vector.multi_reduction <maximumf>, %973, %cst_451 [1] : vector<8x8xf32> to vector<8xf32>
    %975 = vector.shape_cast %974 : vector<8xf32> to vector<8x1xf32>
    %976 = vector.broadcast %975 : vector<8x1xf32> to vector<8x8xf32>
    %977 = arith.subf %973, %976 : vector<8x8xf32>
    %978 = math.exp %977 : vector<8x8xf32>
    %cst_452 = arith.constant dense<0.000000e+00> : vector<8xf32>
    %979 = vector.multi_reduction <add>, %978, %cst_452 [1] : vector<8x8xf32> to vector<8xf32>
    %980 = vector.shape_cast %979 : vector<8xf32> to vector<8x1xf32>
    %981 = vector.broadcast %980 : vector<8x1xf32> to vector<8x8xf32>
    %982 = arith.divf %978, %981 : vector<8x8xf32>
    %cst_453 = arith.constant dense<0.000000e+00> : vector<8x8xf32>
    %983 = tpu.matmul %982, %971, %cst_453 {dimension_numbers = #tpu.dot_dimension_numbers<[1], [0], [0], [1], [0, 0, 1, 1], [], []>} : vector<8x8xf32>, vector<8x8xf32>, vector<8x8xf32> -> vector<8x8xf32>
    %c2_454 = arith.constant 2 : index
    %c0_455 = arith.constant 0 : index
    %c0_456 = arith.constant 0 : index
    %984 = vector.load %arg29[%c2_454, %c0_455, %c0_456] : memref<4x8x32xf32, #tpu.memory_space<vmem>>, vector<1x8x32xf32>
    %985 = vector.shape_cast %984 : vector<1x8x32xf32> to vector<8x32xf32>
    %cst_457 = arith.constant dense<0.000000e+00> : vector<8x32xf32>
    %986 = tpu.matmul %983, %985, %cst_457 {dimension_numbers = #tpu.dot_dimension_numbers<[1], [0], [0], [1], [0, 0, 1, 1], [], []>} : vector<8x8xf32>, vector<8x32xf32>, vector<8x32xf32> -> vector<8x32xf32>
    %987 = arith.addf %968, %986 : vector<8x32xf32>
    %988 = vector.extract_strided_slice %926 {offsets = [0, 24], sizes = [8, 8], strides = [1, 1]} : vector<8x96xf32> to vector<8x8xf32>
    %989 = vector.extract_strided_slice %926 {offsets = [0, 56], sizes = [8, 8], strides = [1, 1]} : vector<8x96xf32> to vector<8x8xf32>
    %990 = vector.extract_strided_slice %926 {offsets = [0, 88], sizes = [8, 8], strides = [1, 1]} : vector<8x96xf32> to vector<8x8xf32>
    %991 = tpu.transpose %989, [1, 0] : vector<8x8xf32> -> vector<8x8xf32>
    %cst_458 = arith.constant dense<0.000000e+00> : vector<8x8xf32>
    %992 = tpu.matmul %988, %991, %cst_458 {dimension_numbers = #tpu.dot_dimension_numbers<[1], [0], [0], [1], [0, 0, 1, 1], [], []>} : vector<8x8xf32>, vector<8x8xf32>, vector<8x8xf32> -> vector<8x8xf32>
    %cst_459 = arith.constant dense<0xFF800000> : vector<8xf32>
    %993 = vector.multi_reduction <maximumf>, %992, %cst_459 [1] : vector<8x8xf32> to vector<8xf32>
    %994 = vector.shape_cast %993 : vector<8xf32> to vector<8x1xf32>
    %995 = vector.broadcast %994 : vector<8x1xf32> to vector<8x8xf32>
    %996 = arith.subf %992, %995 : vector<8x8xf32>
    %997 = math.exp %996 : vector<8x8xf32>
    %cst_460 = arith.constant dense<0.000000e+00> : vector<8xf32>
    %998 = vector.multi_reduction <add>, %997, %cst_460 [1] : vector<8x8xf32> to vector<8xf32>
    %999 = vector.shape_cast %998 : vector<8xf32> to vector<8x1xf32>
    %1000 = vector.broadcast %999 : vector<8x1xf32> to vector<8x8xf32>
    %1001 = arith.divf %997, %1000 : vector<8x8xf32>
    %cst_461 = arith.constant dense<0.000000e+00> : vector<8x8xf32>
    %1002 = tpu.matmul %1001, %990, %cst_461 {dimension_numbers = #tpu.dot_dimension_numbers<[1], [0], [0], [1], [0, 0, 1, 1], [], []>} : vector<8x8xf32>, vector<8x8xf32>, vector<8x8xf32> -> vector<8x8xf32>
    %c3_462 = arith.constant 3 : index
    %c0_463 = arith.constant 0 : index
    %c0_464 = arith.constant 0 : index
    %1003 = vector.load %arg29[%c3_462, %c0_463, %c0_464] : memref<4x8x32xf32, #tpu.memory_space<vmem>>, vector<1x8x32xf32>
    %1004 = vector.shape_cast %1003 : vector<1x8x32xf32> to vector<8x32xf32>
    %cst_465 = arith.constant dense<0.000000e+00> : vector<8x32xf32>
    %1005 = tpu.matmul %1002, %1004, %cst_465 {dimension_numbers = #tpu.dot_dimension_numbers<[1], [0], [0], [1], [0, 0, 1, 1], [], []>} : vector<8x8xf32>, vector<8x32xf32>, vector<8x32xf32> -> vector<8x32xf32>
    %1006 = arith.addf %987, %1005 : vector<8x32xf32>
    %1007 = arith.addf %921, %1006 : vector<8x32xf32>
    %cst_466 = arith.constant dense<0.000000e+00> : vector<8xf32>
    %1008 = vector.multi_reduction <add>, %1007, %cst_466 [1] : vector<8x32xf32> to vector<8xf32>
    %1009 = vector.shape_cast %1008 : vector<8xf32> to vector<8x1xf32>
    %cst_467 = arith.constant 3.200000e+01 : f32
    %1010 = vector.broadcast %cst_467 : f32 to vector<8x1xf32>
    %1011 = arith.divf %1009, %1010 : vector<8x1xf32>
    %1012 = vector.broadcast %1011 : vector<8x1xf32> to vector<8x32xf32>
    %1013 = arith.subf %1007, %1012 : vector<8x32xf32>
    %1014 = arith.mulf %1013, %1013 : vector<8x32xf32>
    %cst_468 = arith.constant dense<0.000000e+00> : vector<8xf32>
    %1015 = vector.multi_reduction <add>, %1014, %cst_468 [1] : vector<8x32xf32> to vector<8xf32>
    %1016 = vector.shape_cast %1015 : vector<8xf32> to vector<8x1xf32>
    %cst_469 = arith.constant 3.200000e+01 : f32
    %1017 = vector.broadcast %cst_469 : f32 to vector<8x1xf32>
    %1018 = arith.divf %1016, %1017 : vector<8x1xf32>
    %1019 = vector.broadcast %1011 : vector<8x1xf32> to vector<8x32xf32>
    %1020 = arith.subf %1007, %1019 : vector<8x32xf32>
    %cst_470 = arith.constant 9.99999974E-6 : f32
    %1021 = vector.broadcast %cst_470 : f32 to vector<8x1xf32>
    %1022 = arith.addf %1018, %1021 : vector<8x1xf32>
    %1023 = math.rsqrt %1022 : vector<8x1xf32>
    %1024 = vector.broadcast %1023 : vector<8x1xf32> to vector<8x32xf32>
    %1025 = arith.mulf %1020, %1024 : vector<8x32xf32>
    %c0_471 = arith.constant 0 : index
    %c0_472 = arith.constant 0 : index
    %1026 = vector.load %arg31[%c0_471, %c0_472] : memref<1x32xf32, #tpu.memory_space<vmem>>, vector<1x32xf32>
    %1027 = vector.broadcast %1026 : vector<1x32xf32> to vector<8x32xf32>
    %1028 = arith.mulf %1025, %1027 : vector<8x32xf32>
    %c0_473 = arith.constant 0 : index
    %c0_474 = arith.constant 0 : index
    %1029 = vector.load %arg32[%c0_473, %c0_474] : memref<1x32xf32, #tpu.memory_space<vmem>>, vector<1x32xf32>
    %1030 = vector.broadcast %1029 : vector<1x32xf32> to vector<8x32xf32>
    %1031 = arith.addf %1028, %1030 : vector<8x32xf32>
    %c0_475 = arith.constant 0 : index
    %c0_476 = arith.constant 0 : index
    %1032 = vector.load %arg33[%c0_475, %c0_476] : memref<32x64xf32, #tpu.memory_space<vmem>>, vector<32x64xf32>
    %cst_477 = arith.constant dense<0.000000e+00> : vector<8x64xf32>
    %1033 = tpu.matmul %1031, %1032, %cst_477 {dimension_numbers = #tpu.dot_dimension_numbers<[1], [0], [0], [1], [0, 0, 1, 1], [], []>} : vector<8x32xf32>, vector<32x64xf32>, vector<8x64xf32> -> vector<8x64xf32>
    %c0_478 = arith.constant 0 : index
    %c0_479 = arith.constant 0 : index
    %1034 = vector.load %arg34[%c0_478, %c0_479] : memref<1x64xf32, #tpu.memory_space<vmem>>, vector<1x64xf32>
    %1035 = vector.broadcast %1034 : vector<1x64xf32> to vector<8x64xf32>
    %1036 = arith.addf %1033, %1035 : vector<8x64xf32>
    %cst_480 = arith.constant 0.000000e+00 : f32
    %1037 = vector.broadcast %cst_480 : f32 to vector<8x64xf32>
    %1038 = arith.maximumf %1036, %1037 : vector<8x64xf32>
    %c0_481 = arith.constant 0 : index
    %c0_482 = arith.constant 0 : index
    %1039 = vector.load %arg35[%c0_481, %c0_482] : memref<64x32xf32, #tpu.memory_space<vmem>>, vector<64x32xf32>
    %cst_483 = arith.constant dense<0.000000e+00> : vector<8x32xf32>
    %1040 = tpu.matmul %1038, %1039, %cst_483 {dimension_numbers = #tpu.dot_dimension_numbers<[1], [0], [0], [1], [0, 0, 1, 1], [], []>} : vector<8x64xf32>, vector<64x32xf32>, vector<8x32xf32> -> vector<8x32xf32>
    %c0_484 = arith.constant 0 : index
    %c0_485 = arith.constant 0 : index
    %1041 = vector.load %arg36[%c0_484, %c0_485] : memref<1x32xf32, #tpu.memory_space<vmem>>, vector<1x32xf32>
    %1042 = vector.broadcast %1041 : vector<1x32xf32> to vector<8x32xf32>
    %1043 = arith.addf %1040, %1042 : vector<8x32xf32>
    %1044 = arith.addf %1031, %1043 : vector<8x32xf32>
    %cst_486 = arith.constant dense<0.000000e+00> : vector<8xf32>
    %1045 = vector.multi_reduction <add>, %1044, %cst_486 [1] : vector<8x32xf32> to vector<8xf32>
    %1046 = vector.shape_cast %1045 : vector<8xf32> to vector<8x1xf32>
    %cst_487 = arith.constant 3.200000e+01 : f32
    %1047 = vector.broadcast %cst_487 : f32 to vector<8x1xf32>
    %1048 = arith.divf %1046, %1047 : vector<8x1xf32>
    %1049 = vector.broadcast %1048 : vector<8x1xf32> to vector<8x32xf32>
    %1050 = arith.subf %1044, %1049 : vector<8x32xf32>
    %1051 = arith.mulf %1050, %1050 : vector<8x32xf32>
    %cst_488 = arith.constant dense<0.000000e+00> : vector<8xf32>
    %1052 = vector.multi_reduction <add>, %1051, %cst_488 [1] : vector<8x32xf32> to vector<8xf32>
    %1053 = vector.shape_cast %1052 : vector<8xf32> to vector<8x1xf32>
    %cst_489 = arith.constant 3.200000e+01 : f32
    %1054 = vector.broadcast %cst_489 : f32 to vector<8x1xf32>
    %1055 = arith.divf %1053, %1054 : vector<8x1xf32>
    %1056 = vector.broadcast %1048 : vector<8x1xf32> to vector<8x32xf32>
    %1057 = arith.subf %1044, %1056 : vector<8x32xf32>
    %cst_490 = arith.constant 9.99999974E-6 : f32
    %1058 = vector.broadcast %cst_490 : f32 to vector<8x1xf32>
    %1059 = arith.addf %1055, %1058 : vector<8x1xf32>
    %1060 = math.rsqrt %1059 : vector<8x1xf32>
    %1061 = vector.broadcast %1060 : vector<8x1xf32> to vector<8x32xf32>
    %1062 = arith.mulf %1057, %1061 : vector<8x32xf32>
    %c0_491 = arith.constant 0 : index
    %c0_492 = arith.constant 0 : index
    %1063 = vector.load %arg37[%c0_491, %c0_492] : memref<1x32xf32, #tpu.memory_space<vmem>>, vector<1x32xf32>
    %1064 = vector.broadcast %1063 : vector<1x32xf32> to vector<8x32xf32>
    %1065 = arith.mulf %1062, %1064 : vector<8x32xf32>
    %c0_493 = arith.constant 0 : index
    %c0_494 = arith.constant 0 : index
    %1066 = vector.load %arg38[%c0_493, %c0_494] : memref<1x32xf32, #tpu.memory_space<vmem>>, vector<1x32xf32>
    %1067 = vector.broadcast %1066 : vector<1x32xf32> to vector<8x32xf32>
    %1068 = arith.addf %1065, %1067 : vector<8x32xf32>
    %c0_495 = arith.constant 0 : index
    %c0_496 = arith.constant 0 : index
    %1069 = vector.load %arg39[%c0_495, %c0_496] : memref<32x32xf32, #tpu.memory_space<vmem>>, vector<32x32xf32>
    %cst_497 = arith.constant dense<0.000000e+00> : vector<8x32xf32>
    %1070 = tpu.matmul %769, %1069, %cst_497 {dimension_numbers = #tpu.dot_dimension_numbers<[1], [0], [0], [1], [0, 0, 1, 1], [], []>} : vector<8x32xf32>, vector<32x32xf32>, vector<8x32xf32> -> vector<8x32xf32>
    %c0_498 = arith.constant 0 : index
    %c0_499 = arith.constant 0 : index
    %1071 = vector.load %arg40[%c0_498, %c0_499] : memref<32x32xf32, #tpu.memory_space<vmem>>, vector<32x32xf32>
    %cst_500 = arith.constant dense<0.000000e+00> : vector<8x32xf32>
    %1072 = tpu.matmul %1068, %1071, %cst_500 {dimension_numbers = #tpu.dot_dimension_numbers<[1], [0], [0], [1], [0, 0, 1, 1], [], []>} : vector<8x32xf32>, vector<32x32xf32>, vector<8x32xf32> -> vector<8x32xf32>
    %1073 = arith.addf %1070, %1072 : vector<8x32xf32>
    %c0_501 = arith.constant 0 : index
    %c0_502 = arith.constant 0 : index
    %1074 = vector.load %arg41[%c0_501, %c0_502] : memref<1x32xf32, #tpu.memory_space<vmem>>, vector<1x32xf32>
    %1075 = vector.broadcast %1074 : vector<1x32xf32> to vector<8x32xf32>
    %1076 = arith.addf %1073, %1075 : vector<8x32xf32>
    %c0_503 = arith.constant 0 : index
    %c0_504 = arith.constant 0 : index
    %c0_505 = arith.constant 0 : index
    %1077 = vector.load %arg42[%c0_503, %c0_504, %c0_505] : memref<1x8x32xf32, #tpu.memory_space<vmem>>, vector<1x8x32xf32>
    %1078 = vector.shape_cast %1077 : vector<1x8x32xf32> to vector<8x32xf32>
    %1079 = vector.shape_cast %1076 : vector<8x32xf32> to vector<1x8x32xf32>
    tpu.vector_store %arg42[%c0_503, %c0_504, %c0_505], %1079 {strides = array<i32>} : memref<1x8x32xf32, #tpu.memory_space<vmem>>, vector<1x8x32xf32>,
    return
  }
  func.func @transform_0(%arg0: i32) -> (i32, i32, i32) {
    %c0_i32 = arith.constant 0 : i32
    %c0_i32_0 = arith.constant 0 : i32
    %c0_i32_1 = arith.constant 0 : i32
    return %arg0, %c0_i32, %c0_i32_0 : i32, i32, i32
  }
  func.func @transform_1(%arg0: i32) -> (i32, i32, i32) {
    %c0_i32 = arith.constant 0 : i32
    %c0_i32_0 = arith.constant 0 : i32
    %c0_i32_1 = arith.constant 0 : i32
    return %arg0, %c0_i32, %c0_i32_0 : i32, i32, i32
  }
  func.func @transform_2(%arg0: i32) -> (i32, i32) {
    %c0_i32 = arith.constant 0 : i32
    %c0_i32_0 = arith.constant 0 : i32
    %c0_i32_1 = arith.constant 0 : i32
    return %c0_i32, %c0_i32_0 : i32, i32
  }
  func.func @transform_3(%arg0: i32) -> (i32, i32) {
    %c0_i32 = arith.constant 0 : i32
    %c0_i32_0 = arith.constant 0 : i32
    %c0_i32_1 = arith.constant 0 : i32
    return %c0_i32, %c0_i32_0 : i32, i32
  }
  func.func @transform_4(%arg0: i32) -> (i32, i32, i32) {
    %c0_i32 = arith.constant 0 : i32
    %c0_i32_0 = arith.constant 0 : i32
    %c0_i32_1 = arith.constant 0 : i32
    %c0_i32_2 = arith.constant 0 : i32
    return %c0_i32, %c0_i32_0, %c0_i32_1 : i32, i32, i32
  }
  func.func @transform_5(%arg0: i32) -> (i32, i32) {
    %c0_i32 = arith.constant 0 : i32
    %c0_i32_0 = arith.constant 0 : i32
    %c0_i32_1 = arith.constant 0 : i32
    return %c0_i32, %c0_i32_0 : i32, i32
  }
  func.func @transform_6(%arg0: i32) -> (i32, i32) {
    %c0_i32 = arith.constant 0 : i32
    %c0_i32_0 = arith.constant 0 : i32
    %c0_i32_1 = arith.constant 0 : i32
    return %c0_i32, %c0_i32_0 : i32, i32
  }
  func.func @transform_7(%arg0: i32) -> (i32, i32) {
    %c0_i32 = arith.constant 0 : i32
    %c0_i32_0 = arith.constant 0 : i32
    %c0_i32_1 = arith.constant 0 : i32
    return %c0_i32, %c0_i32_0 : i32, i32
  }
  func.func @transform_8(%arg0: i32) -> (i32, i32) {
    %c0_i32 = arith.constant 0 : i32
    %c0_i32_0 = arith.constant 0 : i32
    %c0_i32_1 = arith.constant 0 : i32
    return %c0_i32, %c0_i32_0 : i32, i32
  }
  func.func @transform_9(%arg0: i32) -> (i32, i32) {
    %c0_i32 = arith.constant 0 : i32
    %c0_i32_0 = arith.constant 0 : i32
    %c0_i32_1 = arith.constant 0 : i32
    return %c0_i32, %c0_i32_0 : i32, i32
  }
  func.func @transform_10(%arg0: i32) -> (i32, i32) {
    %c0_i32 = arith.constant 0 : i32
    %c0_i32_0 = arith.constant 0 : i32
    %c0_i32_1 = arith.constant 0 : i32
    return %c0_i32, %c0_i32_0 : i32, i32
  }
  func.func @transform_11(%arg0: i32) -> (i32, i32) {
    %c0_i32 = arith.constant 0 : i32
    %c0_i32_0 = arith.constant 0 : i32
    %c0_i32_1 = arith.constant 0 : i32
    return %c0_i32, %c0_i32_0 : i32, i32
  }
  func.func @transform_12(%arg0: i32) -> (i32, i32) {
    %c0_i32 = arith.constant 0 : i32
    %c0_i32_0 = arith.constant 0 : i32
    %c0_i32_1 = arith.constant 0 : i32
    return %c0_i32, %c0_i32_0 : i32, i32
  }
  func.func @transform_13(%arg0: i32) -> (i32, i32) {
    %c0_i32 = arith.constant 0 : i32
    %c0_i32_0 = arith.constant 0 : i32
    %c0_i32_1 = arith.constant 0 : i32
    return %c0_i32, %c0_i32_0 : i32, i32
  }
  func.func @transform_14(%arg0: i32) -> (i32, i32) {
    %c0_i32 = arith.constant 0 : i32
    %c0_i32_0 = arith.constant 0 : i32
    %c0_i32_1 = arith.constant 0 : i32
    return %c0_i32, %c0_i32_0 : i32, i32
  }
  func.func @transform_15(%arg0: i32) -> (i32, i32) {
    %c0_i32 = arith.constant 0 : i32
    %c0_i32_0 = arith.constant 0 : i32
    %c0_i32_1 = arith.constant 0 : i32
    return %c0_i32, %c0_i32_0 : i32, i32
  }
  func.func @transform_16(%arg0: i32) -> (i32, i32, i32) {
    %c0_i32 = arith.constant 0 : i32
    %c0_i32_0 = arith.constant 0 : i32
    %c0_i32_1 = arith.constant 0 : i32
    %c0_i32_2 = arith.constant 0 : i32
    return %c0_i32, %c0_i32_0, %c0_i32_1 : i32, i32, i32
  }
  func.func @transform_17(%arg0: i32) -> (i32, i32) {
    %c0_i32 = arith.constant 0 : i32
    %c0_i32_0 = arith.constant 0 : i32
    %c0_i32_1 = arith.constant 0 : i32
    return %c0_i32, %c0_i32_0 : i32, i32
  }
  func.func @transform_18(%arg0: i32) -> (i32, i32) {
    %c0_i32 = arith.constant 0 : i32
    %c0_i32_0 = arith.constant 0 : i32
    %c0_i32_1 = arith.constant 0 : i32
    return %c0_i32, %c0_i32_0 : i32, i32
  }
  func.func @transform_19(%arg0: i32) -> (i32, i32) {
    %c0_i32 = arith.constant 0 : i32
    %c0_i32_0 = arith.constant 0 : i32
    %c0_i32_1 = arith.constant 0 : i32
    return %c0_i32, %c0_i32_0 : i32, i32
  }
  func.func @transform_20(%arg0: i32) -> (i32, i32) {
    %c0_i32 = arith.constant 0 : i32
    %c0_i32_0 = arith.constant 0 : i32
    %c0_i32_1 = arith.constant 0 : i32
    return %c0_i32, %c0_i32_0 : i32, i32
  }
  func.func @transform_21(%arg0: i32) -> (i32, i32) {
    %c0_i32 = arith.constant 0 : i32
    %c0_i32_0 = arith.constant 0 : i32
    %c0_i32_1 = arith.constant 0 : i32
    return %c0_i32, %c0_i32_0 : i32, i32
  }
  func.func @transform_22(%arg0: i32) -> (i32, i32) {
    %c0_i32 = arith.constant 0 : i32
    %c0_i32_0 = arith.constant 0 : i32
    %c0_i32_1 = arith.constant 0 : i32
    return %c0_i32, %c0_i32_0 : i32, i32
  }
  func.func @transform_23(%arg0: i32) -> (i32, i32) {
    %c0_i32 = arith.constant 0 : i32
    %c0_i32_0 = arith.constant 0 : i32
    %c0_i32_1 = arith.constant 0 : i32
    return %c0_i32, %c0_i32_0 : i32, i32
  }
  func.func @transform_24(%arg0: i32) -> (i32, i32) {
    %c0_i32 = arith.constant 0 : i32
    %c0_i32_0 = arith.constant 0 : i32
    %c0_i32_1 = arith.constant 0 : i32
    return %c0_i32, %c0_i32_0 : i32, i32
  }
  func.func @transform_25(%arg0: i32) -> (i32, i32) {
    %c0_i32 = arith.constant 0 : i32
    %c0_i32_0 = arith.constant 0 : i32
    %c0_i32_1 = arith.constant 0 : i32
    return %c0_i32, %c0_i32_0 : i32, i32
  }
  func.func @transform_26(%arg0: i32) -> (i32, i32) {
    %c0_i32 = arith.constant 0 : i32
    %c0_i32_0 = arith.constant 0 : i32
    %c0_i32_1 = arith.constant 0 : i32
    return %c0_i32, %c0_i32_0 : i32, i32
  }
  func.func @transform_27(%arg0: i32) -> (i32, i32) {
    %c0_i32 = arith.constant 0 : i32
    %c0_i32_0 = arith.constant 0 : i32
    %c0_i32_1 = arith.constant 0 : i32
    return %c0_i32, %c0_i32_0 : i32, i32
  }
  func.func @transform_28(%arg0: i32) -> (i32, i32, i32) {
    %c0_i32 = arith.constant 0 : i32
    %c0_i32_0 = arith.constant 0 : i32
    %c0_i32_1 = arith.constant 0 : i32
    %c0_i32_2 = arith.constant 0 : i32
    return %c0_i32, %c0_i32_0, %c0_i32_1 : i32, i32, i32
  }
  func.func @transform_29(%arg0: i32) -> (i32, i32) {
    %c0_i32 = arith.constant 0 : i32
    %c0_i32_0 = arith.constant 0 : i32
    %c0_i32_1 = arith.constant 0 : i32
    return %c0_i32, %c0_i32_0 : i32, i32
  }
  func.func @transform_30(%arg0: i32) -> (i32, i32) {
    %c0_i32 = arith.constant 0 : i32
    %c0_i32_0 = arith.constant 0 : i32
    %c0_i32_1 = arith.constant 0 : i32
    return %c0_i32, %c0_i32_0 : i32, i32
  }
  func.func @transform_31(%arg0: i32) -> (i32, i32) {
    %c0_i32 = arith.constant 0 : i32
    %c0_i32_0 = arith.constant 0 : i32
    %c0_i32_1 = arith.constant 0 : i32
    return %c0_i32, %c0_i32_0 : i32, i32
  }
  func.func @transform_32(%arg0: i32) -> (i32, i32) {
    %c0_i32 = arith.constant 0 : i32
    %c0_i32_0 = arith.constant 0 : i32
    %c0_i32_1 = arith.constant 0 : i32
    return %c0_i32, %c0_i32_0 : i32, i32
  }
  func.func @transform_33(%arg0: i32) -> (i32, i32) {
    %c0_i32 = arith.constant 0 : i32
    %c0_i32_0 = arith.constant 0 : i32
    %c0_i32_1 = arith.constant 0 : i32
    return %c0_i32, %c0_i32_0 : i32, i32
  }
  func.func @transform_34(%arg0: i32) -> (i32, i32) {
    %c0_i32 = arith.constant 0 : i32
    %c0_i32_0 = arith.constant 0 : i32
    %c0_i32_1 = arith.constant 0 : i32
    return %c0_i32, %c0_i32_0 : i32, i32
  }
  func.func @transform_35(%arg0: i32) -> (i32, i32) {
    %c0_i32 = arith.constant 0 : i32
    %c0_i32_0 = arith.constant 0 : i32
    %c0_i32_1 = arith.constant 0 : i32
    return %c0_i32, %c0_i32_0 : i32, i32
  }
  func.func @transform_36(%arg0: i32) -> (i32, i32) {
    %c0_i32 = arith.constant 0 : i32
    %c0_i32_0 = arith.constant 0 : i32
    %c0_i32_1 = arith.constant 0 : i32
    return %c0_i32, %c0_i32_0 : i32, i32
  }
  func.func @transform_37(%arg0: i32) -> (i32, i32) {
    %c0_i32 = arith.constant 0 : i32
    %c0_i32_0 = arith.constant 0 : i32
    %c0_i32_1 = arith.constant 0 : i32
    return %c0_i32, %c0_i32_0 : i32, i32
  }
  func.func @transform_38(%arg0: i32) -> (i32, i32) {
    %c0_i32 = arith.constant 0 : i32
    %c0_i32_0 = arith.constant 0 : i32
    %c0_i32_1 = arith.constant 0 : i32
    return %c0_i32, %c0_i32_0 : i32, i32
  }
  func.func @transform_39(%arg0: i32) -> (i32, i32) {
    %c0_i32 = arith.constant 0 : i32
    %c0_i32_0 = arith.constant 0 : i32
    %c0_i32_1 = arith.constant 0 : i32
    return %c0_i32, %c0_i32_0 : i32, i32
  }
  func.func @transform_40(%arg0: i32) -> (i32, i32) {
    %c0_i32 = arith.constant 0 : i32
    %c0_i32_0 = arith.constant 0 : i32
    %c0_i32_1 = arith.constant 0 : i32
    return %c0_i32, %c0_i32_0 : i32, i32
  }
  func.func @transform_41(%arg0: i32) -> (i32, i32, i32) {
    %c0_i32 = arith.constant 0 : i32
    %c0_i32_0 = arith.constant 0 : i32
    %c0_i32_1 = arith.constant 0 : i32
    return %arg0, %c0_i32, %c0_i32_0 : i32, i32, i32
  }
}

</mosaic_0001>

<bundles_post_ra>
// kernel: parallel_transformer.1
= control target key start
LH: loop header
LB: loop body
LE: loop exit
PB: predicated region body
PF: predicated region fallthrough
CT: control target
= control target key end

     0   :  { %s14153_s6 = smov 1   ;;  %s14154_s10 = smov 2   ;;  %s16128_s0 = inlined_call_operand.smem [shape: u32[42], index: -1, kind: input, shape index: {}] }
   0x1   :  { %s14238_s5 = sld [smem:[%s16128_s0]]   ;;  %s14155_s14 = smov 3  }
   0x2   :  { %s14243_s9 = sld [smem:[%s16128_s0 + %s14153_s6]]   ;;  %s14156_s18 = smov 4  }
   0x3   :  { %s14248_s13 = sld [smem:[%s16128_s0 + %s14154_s10]]   ;;  %s14157_s22 = smov 5  }
   0x4   :  { %s14253_s17 = sld [smem:[%s16128_s0 + %s14155_s14]]   ;;  %s14158_s26 = smov 6  }
   0x5   :  { %s14258_s21 = sld [smem:[%s16128_s0 + %s14156_s18]]   ;;  %s14159_s30 = smov 7  }
   0x6   :  { %s14263_s25 = sld [smem:[%s16128_s0 + %s14157_s22]]   ;;  %s14160_s4 = smov 8  }
   0x7   :  { %16202 = sst [smem:[#allocation45_spill]] %s14238_s5  ;;  %s14161_s10 = smov 9  }
   0x8   :  { %16203 = sst [smem:[#allocation46_spill]] %s14243_s9  ;;  %s14162_s15 = smov 10  }
   0x9   :  { %16204 = sst [smem:[#allocation47_spill]] %s14248_s13  ;;  %s14163_s20 = smov 11  }
   0xa   :  { %16205 = sst [smem:[#allocation48_spill]] %s14253_s17  ;;  %s14165_s1 = smov 13  }
   0xb   :  { %16206 = sst [smem:[#allocation49_spill]] %s14258_s21  ;;  %s14166_s7 = smov 14  }
   0xc   :  { %16207 = sst [smem:[#allocation50_spill]] %s14263_s25  ;;  %s14168_s22 = smov 16  }
   0xd   :  { %s14268_s29 = sld [smem:[%s16128_s0 + %s14158_s26]]   ;;  %s14164_s26 = smov 12  }
   0xe   :  { %s14273_s3 = sld [smem:[%s16128_s0 + %s14159_s30]]   ;;  %s14169_s28 = smov 17  }
   0xf   :  { %s14278_s8 = sld [smem:[%s16128_s0 + %s14160_s4]]  }
  0x10   :  { %s14283_s14 = sld [smem:[%s16128_s0 + %s14161_s10]]  }
  0x11   :  { %s14288_s19 = sld [smem:[%s16128_s0 + %s14162_s15]]   ;;  %s14167_s15 = smov 15  }
  0x12   :  { %s14293_s24 = sld [smem:[%s16128_s0 + %s14163_s20]]  }
  0x13   :  { %s14298_s30 = sld [smem:[%s16128_s0 + %s14164_s26]]  }
  0x14   :  { %16208 = sst [smem:[#allocation51_spill]] %s14273_s3 }
  0x15   :  { %16209 = sst [smem:[#allocation52_spill]] %s14278_s8 }
  0x16   :  { %16210 = sst [smem:[#allocation53_spill]] %s14283_s14 }
  0x17   :  { %16211 = sst [smem:[#allocation54_spill]] %s14288_s19 }
  0x18   :  { %16212 = sst [smem:[#allocation55_spill]] %s14293_s24 }
  0x19   :  { %s14303_s6 = sld [smem:[%s16128_s0 + %s14165_s1]]  }
  0x1a   :  { %s14308_s12 = sld [smem:[%s16128_s0 + %s14166_s7]]   ;;  %s14170_s7 = smov 18  }
  0x1b   :  { %s14313_s20 = sld [smem:[%s16128_s0 + %s14167_s15]]   ;;  %s14171_s15 = smov 19  }
  0x1c   :  { %s14318_s27 = sld [smem:[%s16128_s0 + %s14168_s22]]   ;;  %s14172_s22 = smov 20  }
  0x1d   :  { %s14323_s4 = sld [smem:[%s16128_s0 + %s14169_s28]]   ;;  %s14173_s28 = smov 21  }
  0x1e   :  { %s14333_s19 = sld [smem:[%s16128_s0 + %s14171_s15]]   ;;  %s14175_s15 = smov 23  }
  0x1f   :  { %16213 = sst [smem:[#allocation56_spill]] %s14303_s6 }
  0x20   :  { %16214 = sst [smem:[#allocation57_spill]] %s14308_s12 }
  0x21   :  { %16215 = sst [smem:[#allocation58_spill]] %s14313_s20 }
  0x22   :  { %16216 = sst [smem:[#allocation59_spill]] %s14318_s27 }
  0x23   :  { %16217 = sst [smem:[#allocation60_spill]] %s14323_s4 }
  0x24   :  { %s14328_s12 = sld [smem:[%s16128_s0 + %s14170_s7]]   ;;  %s14174_s7 = smov 22  }
  0x25   :  { %16219 = sst [smem:[#allocation62_spill]] %s14333_s19 }
  0x26   :  { %s14338_s27 = sld [smem:[%s16128_s0 + %s14172_s22]]   ;;  %s14176_s22 = smov 24  }
  0x27   :  { %s14343_s8 = sld [smem:[%s16128_s0 + %s14173_s28]]   ;;  %s14177_s28 = smov 25  }
  0x28   :  { %s14348_s25 = sld [smem:[%s16128_s0 + %s14174_s7]]   ;;  %s14178_s7 = smov 26  }
  0x29   :  { %s14353_s21 = sld [smem:[%s16128_s0 + %s14175_s15]]   ;;  %s14179_s15 = smov 27  }
  0x2a   :  { %16218 = sst [smem:[#allocation61_spill]] %s14328_s12 }
  0x2b   :  { %s14363_s17 = sld [smem:[%s16128_s0 + %s14177_s28]]   ;;  %s14181_s28 = smov 29  }
  0x2c   :  { %16220 = sst [smem:[#allocation63_spill]] %s14338_s27 }
  0x2d   :  { %16221 = sst [smem:[#allocation64_spill]] %s14343_s8 }
  0x2e   :  { %16222 = sst [smem:[#allocation65_spill]] %s14348_s25 }
  0x2f   :  { %16223 = sst [smem:[#allocation66_spill]] %s14353_s21 }
  0x30   :  { %s14358_s27 = sld [smem:[%s16128_s0 + %s14176_s22]]   ;;  %s14180_s22 = smov 28  }
  0x31   :  { %16224 = sst [smem:[#allocation67_spill]] %s14363_s17 }
  0x32   :  { %s14368_s25 = sld [smem:[%s16128_s0 + %s14178_s7]]   ;;  %s14182_s7 = smov 30  }
  0x33   :  { %s14373_s13 = sld [smem:[%s16128_s0 + %s14179_s15]]   ;;  %s14183_s15 = smov 31  }
  0x34   :  { %s14378_s9 = sld [smem:[%s16128_s0 + %s14180_s22]]   ;;  %s14184_s22 = smov 32  }
  0x35   :  { %s14383_s5 = sld [smem:[%s16128_s0 + %s14181_s28]]   ;;  %s14185_s28 = smov 33  }
  0x38   :  { %16225 = sst [smem:[#allocation68_spill]] %s14368_s25 }
  0x39   :  { %16226 = sst [smem:[#allocation69_spill]] %s14373_s13 }
  0x3a   :  { %16227 = sst [smem:[#allocation70_spill]] %s14378_s9 }
  0x3b   :  { %16228 = sst [smem:[#allocation71_spill]] %s14383_s5 }
  0x3c   :  { %s14388_s25 = sld [smem:[%s16128_s0 + %s14182_s7]]   ;;  %s14186_s7 = smov 34  }
  0x3d   :  { %s14393_s13 = sld [smem:[%s16128_s0 + %s14183_s15]]   ;;  %s14187_s15 = smov 35  }
  0x3e   :  { %s14398_s9 = sld [smem:[%s16128_s0 + %s14184_s22]]   ;;  %s14188_s22 = smov 36  }
  0x3f   :  { %s14403_s5 = sld [smem:[%s16128_s0 + %s14185_s28]]   ;;  %s14189_s28 = smov 37  }
  0x42   :  { %16229 = sst [smem:[#allocation72_spill]] %s14388_s25 }
  0x43   :  { %16230 = sst [smem:[#allocation73_spill]] %s14393_s13 }
  0x44   :  { %16231 = sst [smem:[#allocation74_spill]] %s14398_s9 }
  0x45   :  { %16232 = sst [smem:[#allocation75_spill]] %s14403_s5 }
  0x46   :  { %s14408_s25 = sld [smem:[%s16128_s0 + %s14186_s7]]   ;;  %s14190_s7 = smov 38  }
  0x47   :  { %s14413_s13 = sld [smem:[%s16128_s0 + %s14187_s15]]   ;;  %s14191_s15 = smov 39  }
  0x48   :  { %s14418_s9 = sld [smem:[%s16128_s0 + %s14188_s22]]   ;;  %s14192_s22 = smov 40  }
  0x49   :  { %s14423_s5 = sld [smem:[%s16128_s0 + %s14189_s28]]   ;;  %s14193_s28 = smov 41  }
  0x4c   :  { %16233 = sst [smem:[#allocation76_spill]] %s14408_s25 }
  0x4d   :  { %16234 = sst [smem:[#allocation77_spill]] %s14413_s13 }
  0x4e   :  { %16235 = sst [smem:[#allocation78_spill]] %s14418_s9 }
  0x4f   :  { %16236 = sst [smem:[#allocation79_spill]] %s14423_s5 }
  0x50   :  { %s14428_s25 = sld [smem:[%s16128_s0 + %s14190_s7]]  }
  0x51   :  { %s14433_s13 = sld [smem:[%s16128_s0 + %s14191_s15]]  }
  0x52   :  { %s14438_s9 = sld [smem:[%s16128_s0 + %s14192_s22]]  }
  0x53   :  { %s14443_s5 = sld [smem:[%s16128_s0 + %s14193_s28]]  }
  0x57   :  { %16237 = sst [smem:[#allocation80_spill]] %s14433_s13 }
  0x58   :  { %16238 = sst [smem:[#allocation81_spill]] %s14438_s9 }
  0x59   :  { %16239 = sst [smem:[#allocation82_spill]] %s14443_s5 }
  0x5a   :  { %88 = vsyncpa [#allocation3], 0 }
  0x5b   :  { %90 = vsyncpa [#allocation3 + $0x1], 0 }
  0x5c   :  { %91 = vsyncpa [#allocation6], 0 }
  0x5d   :  { %93 = vsyncpa [#allocation6 + $0x1], 0 }
  0x5e   :  { %94 = vsyncpa [#allocation9], 0 }
  0x5f   :  { %95 = vsyncpa [#allocation12], 0 }
  0x60   :  { %96 = vsyncpa [#allocation15], 0 }
  0x61   :  { %97 = vsyncpa [#allocation18], 0 }
  0x62   :  { %98 = vsyncpa [#allocation21], 0 }
  0x63   :  { %99 = vsyncpa [#allocation24], 0 }
  0x64   :  { %100 = vsyncpa [#allocation27], 0 }
  0x65   :  { %101 = vsyncpa [#allocation30], 0 }
  0x66   :  { %102 = vsyncpa [#allocation4], 0 }
  0x67   :  { %104 = vsyncpa [#allocation4 + $0x1], 0  ;;  %s14445_s7 = smov 0   ;;  %s14447_s10 = smov 0  }
  0x68   :  { %s14449_s0 = smov 0   ;;  %s14451_s11 = smov 0  }
  0x69 LB: > { %s16240_s24 = sld [smem:[#allocation55_spill]]  ;;  %s16241_s21 = sld [smem:[#allocation66_spill]]  ;;  %s14139_s7 = sphi %s14445_s7, %s16323_s7   ;;  %s14151_s11 = sphi %s14451_s11, %s16326_s11   ;;  %s14147_s0 = sphi %s14449_s0, %s16325_s0   ;;  %s14143_s10 = sphi %s14447_s10, %s16324_s10  }
  0x6a   : > { %s16242_s20 = sld [smem:[#allocation58_spill]]  ;;  %s16243_s19 = sld [smem:[#allocation62_spill]] }
  0x6b   : > { %s16244_s17 = sld [smem:[#allocation67_spill]]  ;;  %s16245_s14 = sld [smem:[#allocation53_spill]] }
  0x6c   : > { %s16246_s13 = sld [smem:[#allocation80_spill]]  ;;  %s16247_s12 = sld [smem:[#allocation61_spill]] }
  0x6d   : > { %s16248_s9 = sld [smem:[#allocation81_spill]]  ;;  %s16249_s8 = sld [smem:[#allocation64_spill]] }
  0x6e   : > { %s16250_s6 = sld [smem:[#allocation56_spill]]  ;;  %s16251_s4 = sld [smem:[#allocation60_spill]] }
  0x6f   : > { %s16252_s3 = sld [smem:[#allocation51_spill]]  ;;  %s14194_s15 = smov [#allocation7]  }
  0x70   : > { %s1037_s16 = sshll.u32 %s14194_s15, 4  ;;  %s14466_s18 = sadd.s32 4294967295, %s14151_s11   ;;  %s14471_s16 = int_to_ptr.vmem [resolvable:$true] %s1037_s16 }
  0x71   : > { %p11563_p0 = scmp.ge.s32.totalorder %s14151_s11, 1  ;;  %p16147_p1 = scmp.eq.s32.totalorder %s14466_s18, 0 }
  0x72   : > { %p1012_p2 = scmp.lt.s32.totalorder %s14151_s11, 3  ;;  %s14195_s23 = smov [#allocation8]  }
  0x73   : > { %s1048_s26 = sshll.u32 %s14195_s23, 4  ;;  %s14196_s28 = smov [#allocation11]   ;;  %s14480_s26 = int_to_ptr.vmem [resolvable:$true] %s1048_s26 }
  0x74   : > { %p14473_p3 = pnand %p11563_p0, %p1012_p2  ;;  %s1076_s1 = sshll.u32 %s14196_s28, 4  ;;  %s14488_s1 = int_to_ptr.vmem [resolvable:$true] %s1076_s1 }
  0x75   : > { %s14197_s15 = smov [#allocation14]  }
  0x76   : > { %s16253_s22 = scalar_select %p14473_p3, 1, 0 }
  0x77   : > { %p13138_p5 = pneg %p14473_p3  ;;  %s14490_s5 = sshll.u32 %s14197_s15, 4  ;;  %s1099_s5 = int_to_ptr.vmem [resolvable:$true] %s14490_s5 }
  0x78   : > { %16254 = sst [smem:[#allocation83_spill]] %s16253_s22  ;;  %s13509_s22 = scalar_lea.hbm %s14268_s29, 16 }
  0x79   : > { %p14484_p6 = pnand %p13138_p5, %p16147_p1  ;;  %p13510_p7 = scmp.ne.s32.totalorder %s14268_s29, %s13509_s22 }
  0x7a   : > { %p13516_p11 = scmp.lt.u32.totalorder %s13509_s22, %s14268_s29 }
  0x7b   : > { %p14496_p8 = pneg %p14484_p6 }
  0x7d   : > { %p13512_p9 = pnand %p14496_p8, %p13510_p7 }
  0x7f   : > { %p13513_p10 = pneg %p13512_p9 }
  0x81   : > { %p13518_p12 = pnand %p13516_p11, %p13513_p10 }
  0x83   : > { %13521 = shalt.err (!%p13518_p12)
}
  0x84   : > { %s13522_s28 = scalar_lea.vmem %s14471_s16, 16  ;;  %s13529_s15 = scalar_lea.vmem %s14471_s16, 32 }
  0x85   : > { %p13523_p13 = scmp.ne.s32.totalorder %s14471_s16, %s13522_s28  ;;  %p13530_p5 = scmp.lt.s32.totalorder %s14471_s16, %s14471_s16 }
  0x86   : > { %p13531_p4 = scmp.lt.s32.totalorder %s13529_s15, %s13522_s28 }
  0x87   : > { %p13525_p0 = pnand %p13523_p13, %p14496_p8 }
  0x88   : > { %p13532_p1 = por %p13531_p4, %p13530_p5 }
  0x89   : > { %p13526_p2 = pneg %p13525_p0 }
  0x8b   : > { %p13533_p7 = pnand %p13532_p1, %p13526_p2 }
  0x8d   : > { %13536 = shalt.err (!%p13533_p7)
}
  0x8e   : > { %13141 = dma.hbm_to_vmem [thread:$0]  (!%p14484_p6), %s14268_s29, 16, %s14471_s16, [#allocation6]  }
  0x8f   : > { %s13537_s22 = scalar_lea.hbm %s16252_s3, 16 }
  0x90   : > { %p13538_p9 = scmp.ne.s32.totalorder %s16252_s3, %s13537_s22  ;;  %p13544_p12 = scmp.lt.u32.totalorder %s13537_s22, %s16252_s3 }
  0x92   : > { %p13540_p10 = pnand %p13538_p9, %p14496_p8 }
  0x94   : > { %p13541_p11 = pneg %p13540_p10 }
  0x96   : > { %p13546_p13 = pnand %p13544_p12, %p13541_p11 }
  0x98   : > { %13549 = shalt.err (!%p13546_p13)
}
  0x99   : > { %s13550_s28 = scalar_lea.vmem %s14480_s26, 16  ;;  %s13557_s15 = scalar_lea.vmem %s14480_s26, 32 }
  0x9a   : > { %p13551_p1 = scmp.ne.s32.totalorder %s14480_s26, %s13550_s28  ;;  %p13558_p2 = scmp.lt.s32.totalorder %s14480_s26, %s14480_s26 }
  0x9b   : > { %p13559_p5 = scmp.lt.s32.totalorder %s13557_s15, %s13550_s28 }
  0x9c   : > { %p13553_p4 = pnand %p13551_p1, %p14496_p8 }
  0x9d   : > { %p13560_p7 = por %p13559_p5, %p13558_p2 }
  0x9e   : > { %p13554_p0 = pneg %p13553_p4 }
  0xa0   : > { %p13561_p9 = pnand %p13560_p7, %p13554_p0 }
  0xa2   : > { %13564 = shalt.err (!%p13561_p9)
}
  0xa3   : > { %13144 = dma.hbm_to_vmem [thread:$0]  (!%p14484_p6), %s16252_s3, 16, %s14480_s26, [#allocation9]  }
  0xa4   : > { %s13565_s16 = scalar_lea.hbm %s16240_s24, 16 }
  0xa5   : > { %p13566_p10 = scmp.ne.s32.totalorder %s16240_s24, %s13565_s16  ;;  %p13572_p13 = scmp.lt.u32.totalorder %s13565_s16, %s16240_s24 }
  0xa7   : > { %p13568_p11 = pnand %p13566_p10, %p14496_p8 }
  0xa9   : > { %p13569_p12 = pneg %p13568_p11 }
  0xab   : > { %p13574_p1 = pnand %p13572_p13, %p13569_p12 }
  0xad   : > { %13577 = shalt.err (!%p13574_p1)
}
  0xae   : > { %s13578_s22 = scalar_lea.vmem %s14488_s1, 16  ;;  %s13585_s28 = scalar_lea.vmem %s14488_s1, 32 }
  0xaf   : > { %p13579_p4 = scmp.ne.s32.totalorder %s14488_s1, %s13578_s22  ;;  %p13586_p5 = scmp.lt.s32.totalorder %s14488_s1, %s14488_s1 }
  0xb0   : > { %p13587_p7 = scmp.lt.s32.totalorder %s13585_s28, %s13578_s22 }
  0xb1   : > { %p13581_p0 = pnand %p13579_p4, %p14496_p8 }
  0xb2   : > { %p13588_p9 = por %p13587_p7, %p13586_p5 }
  0xb3   : > { %p13582_p2 = pneg %p13581_p0 }
  0xb5   : > { %p13589_p10 = pnand %p13588_p9, %p13582_p2 }
  0xb7   : > { %13592 = shalt.err (!%p13589_p10)
}
  0xb8   : > { %13150 = dma.hbm_to_vmem [thread:$0]  (!%p14484_p6), %s16240_s24, 16, %s14488_s1, [#allocation12]  }
  0xb9   : > { %s14198_s26 = smov [#allocation17]   ;;  %s13593_s16 = scalar_lea.hbm %s16250_s6, 16 }
  0xba   : > { %s1126_s15 = sshll.u32 %s14198_s26, 4  ;;  %p13594_p11 = scmp.ne.s32.totalorder %s16250_s6, %s13593_s16  ;;  %s1127_s15 = int_to_ptr.vmem [resolvable:$true] %s1126_s15 }
  0xbb   : > { %p13600_p1 = scmp.lt.u32.totalorder %s13593_s16, %s16250_s6 }
  0xbc   : > { %p13596_p12 = pnand %p13594_p11, %p14496_p8 }
  0xbe   : > { %p13597_p13 = pneg %p13596_p12 }
  0xc0   : > { %p13602_p4 = pnand %p13600_p1, %p13597_p13 }
  0xc2   : > { %13605 = shalt.err (!%p13602_p4)
}
  0xc3   : > { %s13606_s22 = scalar_lea.vmem %s1099_s5, 16  ;;  %s13613_s28 = scalar_lea.vmem %s1099_s5, 32 }
  0xc4   : > { %p13607_p0 = scmp.ne.s32.totalorder %s1099_s5, %s13606_s22  ;;  %p13614_p7 = scmp.lt.s32.totalorder %s1099_s5, %s1099_s5 }
  0xc5   : > { %p13615_p9 = scmp.lt.s32.totalorder %s13613_s28, %s13606_s22 }
  0xc6   : > { %p13609_p2 = pnand %p13607_p0, %p14496_p8 }
  0xc7   : > { %p13616_p10 = por %p13615_p9, %p13614_p7 }
  0xc8   : > { %p13610_p5 = pneg %p13609_p2 }
  0xca   : > { %p13617_p3 = pnand %p13616_p10, %p13610_p5 }
  0xcc   : > { %13620 = shalt.err (!%p13617_p3)
}
  0xcd   : > { %13156 = dma.hbm_to_vmem [thread:$0]  (!%p14484_p6), %s16250_s6, 16, %s1099_s5, [#allocation15]  }
  0xce   : > { %s13621_s1 = scalar_lea.hbm %s16251_s4, 16 }
  0xcf   : > { %p13622_p11 = scmp.ne.s32.totalorder %s16251_s4, %s13621_s1  ;;  %p13628_p1 = scmp.lt.u32.totalorder %s13621_s1, %s16251_s4 }
  0xd1   : > { %p13624_p12 = pnand %p13622_p11, %p14496_p8 }
  0xd3   : > { %p13625_p13 = pneg %p13624_p12 }
  0xd5   : > { %p13630_p4 = pnand %p13628_p1, %p13625_p13 }
  0xd7   : > { %13633 = shalt.err (!%p13630_p4)
}
  0xd8   : > { %s13634_s26 = scalar_lea.vmem %s1127_s15, 16  ;;  %s13641_s16 = scalar_lea.vmem %s1127_s15, 32 }
  0xd9   : > { %p13635_p3 = scmp.ne.s32.totalorder %s1127_s15, %s13634_s26  ;;  %p13642_p5 = scmp.lt.s32.totalorder %s1127_s15, %s1127_s15 }
  0xda   : > { %p13643_p7 = scmp.lt.s32.totalorder %s13641_s16, %s13634_s26 }
  0xdb   : > { %p13637_p0 = pnand %p13635_p3, %p14496_p8 }
  0xdc   : > { %p13644_p9 = por %p13643_p7, %p13642_p5 }
  0xdd   : > { %p13638_p2 = pneg %p13637_p0 }
  0xdf   : > { %p13645_p10 = pnand %p13644_p9, %p13638_p2 }
  0xe1   : > { %13648 = shalt.err (!%p13645_p10)
}
  0xe2   : > { %13162 = dma.hbm_to_vmem [thread:$0]  (!%p14484_p6), %s16251_s4, 16, %s1127_s15, [#allocation18]  }
  0xe3   : > { %s14199_s5 = smov [#allocation20]   ;;  %s14200_s28 = smov [#allocation23]  }
  0xe4   : > { %s1148_s22 = sshll.u32 %s14199_s5, 4  ;;  %s1176_s1 = sshll.u32 %s14200_s28, 4  ;;  %s1149_s22 = int_to_ptr.vmem [resolvable:$true] %s1148_s22  ;;  %s1177_s1 = int_to_ptr.vmem [resolvable:$true] %s1176_s1 }
  0xe5   : > { %s13649_s3 = scalar_lea.hbm %s16243_s19, 16 }
  0xe6   : > { %p13650_p11 = scmp.ne.s32.totalorder %s16243_s19, %s13649_s3  ;;  %p13656_p1 = scmp.lt.u32.totalorder %s13649_s3, %s16243_s19 }
  0xe8   : > { %p13652_p12 = pnand %p13650_p11, %p14496_p8 }
  0xea   : > { %p13653_p13 = pneg %p13652_p12 }
  0xec   : > { %p13658_p4 = pnand %p13656_p1, %p13653_p13 }
  0xee   : > { %13661 = shalt.err (!%p13658_p4)
}
  0xef   : > { %s13662_s26 = scalar_lea.vmem %s1149_s22, 16  ;;  %s13669_s15 = scalar_lea.vmem %s1149_s22, 32 }
  0xf0   : > { %p13663_p3 = scmp.ne.s32.totalorder %s1149_s22, %s13662_s26  ;;  %p13670_p5 = scmp.lt.s32.totalorder %s1149_s22, %s1149_s22 }
  0xf1   : > { %p13671_p7 = scmp.lt.s32.totalorder %s13669_s15, %s13662_s26 }
  0xf2   : > { %p13665_p0 = pnand %p13663_p3, %p14496_p8 }
  0xf3   : > { %p13672_p9 = por %p13671_p7, %p13670_p5 }
  0xf4   : > { %p13666_p2 = pneg %p13665_p0 }
  0xf6   : > { %p13673_p10 = pnand %p13672_p9, %p13666_p2 }
  0xf8   : > { %13676 = shalt.err (!%p13673_p10)
}
  0xf9   : > { %13168 = dma.hbm_to_vmem [thread:$0]  (!%p14484_p6), %s16243_s19, 16, %s1149_s22, [#allocation21]  }
  0xfa   : > { %s13677_s3 = scalar_lea.hbm %s16241_s21, 16 }
  0xfb   : > { %p13678_p11 = scmp.ne.s32.totalorder %s16241_s21, %s13677_s3  ;;  %p13684_p1 = scmp.lt.u32.totalorder %s13677_s3, %s16241_s21 }
  0xfd   : > { %p13680_p12 = pnand %p13678_p11, %p14496_p8 }
  0xff   : > { %p13681_p13 = pneg %p13680_p12 }
 0x101   : > { %p13686_p4 = pnand %p13684_p1, %p13681_p13 }
 0x103   : > { %13689 = shalt.err (!%p13686_p4)
}
 0x104   : > { %s13690_s16 = scalar_lea.vmem %s1177_s1, 16  ;;  %s13697_s5 = scalar_lea.vmem %s1177_s1, 32 }
 0x105   : > { %p13691_p3 = scmp.ne.s32.totalorder %s1177_s1, %s13690_s16  ;;  %p13698_p5 = scmp.lt.s32.totalorder %s1177_s1, %s1177_s1 }
 0x106   : > { %p13699_p7 = scmp.lt.s32.totalorder %s13697_s5, %s13690_s16 }
 0x107   : > { %p13693_p0 = pnand %p13691_p3, %p14496_p8 }
 0x108   : > { %p13700_p9 = por %p13699_p7, %p13698_p5 }
 0x109   : > { %p13694_p2 = pneg %p13693_p0 }
 0x10b   : > { %p13701_p10 = pnand %p13700_p9, %p13694_p2 }
 0x10d   : > { %13704 = shalt.err (!%p13701_p10)
}
 0x10e   : > { %13174 = dma.hbm_to_vmem [thread:$0]  (!%p14484_p6), %s16241_s21, 16, %s1177_s1, [#allocation24]  }
 0x10f   : > { %s14201_s22 = smov [#allocation26]   ;;  %s13705_s26 = scalar_lea.hbm %s16244_s17, 16 }
 0x110   : > { %s1198_s28 = sshll.u32 %s14201_s22, 4  ;;  %p13706_p11 = scmp.ne.s32.totalorder %s16244_s17, %s13705_s26  ;;  %s1199_s28 = int_to_ptr.vmem [resolvable:$true] %s1198_s28 }
 0x111   : > { %p13712_p1 = scmp.lt.u32.totalorder %s13705_s26, %s16244_s17 }
 0x112   : > { %p13708_p12 = pnand %p13706_p11, %p14496_p8 }
 0x114   : > { %p13709_p13 = pneg %p13708_p12 }
 0x116   : > { %p13714_p4 = pnand %p13712_p1, %p13709_p13 }
 0x118   : > { %13717 = shalt.err (!%p13714_p4)
}
 0x119   : > { %s13718_s15 = scalar_lea.vmem %s1199_s28, 16  ;;  %s13725_s3 = scalar_lea.vmem %s1199_s28, 32 }
 0x11a   : > { %p13719_p3 = scmp.ne.s32.totalorder %s1199_s28, %s13718_s15  ;;  %p13726_p5 = scmp.lt.s32.totalorder %s1199_s28, %s1199_s28 }
 0x11b   : > { %p13727_p7 = scmp.lt.s32.totalorder %s13725_s3, %s13718_s15 }
 0x11c   : > { %p13721_p0 = pnand %p13719_p3, %p14496_p8 }
 0x11d   : > { %p13728_p9 = por %p13727_p7, %p13726_p5 }
 0x11e   : > { %p13722_p2 = pneg %p13721_p0 }
 0x120   : > { %p13729_p10 = pnand %p13728_p9, %p13722_p2 }
 0x122   : > { %13732 = shalt.err (!%p13729_p10)
}
 0x123   : > { %13180 = dma.hbm_to_vmem [thread:$0]  (!%p14484_p6), %s16244_s17, 16, %s1199_s28, [#allocation27]  }
 0x124   : > { %s14202_s1 = smov [#allocation29]   ;;  %s14203_s5 = smov [#allocation10]  }
 0x125   : > { %s1257_s16 = sshll.u32 %s14202_s1, 4  ;;  %s1062_s22 = sshll.u32 %s14203_s5, 4  ;;  %s1258_s16 = int_to_ptr.vmem [resolvable:$true] %s1257_s16  ;;  %s14597_s22 = int_to_ptr.vmem [resolvable:$true] %s1062_s22 }
 0x126   : > { %s13733_s26 = scalar_lea.hbm %s16246_s13, 512 }
 0x127   : > { %p13734_p11 = scmp.ne.s32.totalorder %s16246_s13, %s13733_s26  ;;  %p13740_p1 = scmp.lt.u32.totalorder %s13733_s26, %s16246_s13 }
 0x129   : > { %p13736_p12 = pnand %p13734_p11, %p14496_p8 }
 0x12b   : > { %p13737_p13 = pneg %p13736_p12 }
 0x12d   : > { %p13742_p4 = pnand %p13740_p1, %p13737_p13 }
 0x12f   : > { %13745 = shalt.err (!%p13742_p4)
}
 0x130   : > { %s13746_s15 = scalar_lea.vmem %s1258_s16, 512  ;;  %p13754_p5 = scmp.lt.s32.totalorder %s1258_s16, %s1258_s16 }
 0x131   : > { %p13747_p3 = scmp.ne.s32.totalorder %s1258_s16, %s13746_s15  ;;  %p13755_p7 = scmp.lt.s32.totalorder %s13746_s15, %s13746_s15 }
 0x133   : > { %p13749_p0 = pnand %p13747_p3, %p14496_p8  ;;  %p13756_p9 = por %p13755_p7, %p13754_p5 }
 0x135   : > { %p13750_p2 = pneg %p13749_p0 }
 0x137   : > { %p13757_p10 = pnand %p13756_p9, %p13750_p2 }
 0x139   : > { %13760 = shalt.err (!%p13757_p10)
}
 0x13a   : > { %s16150_s28 = smov 128   ;;  %s14205_s3 = smov 8  }
 0x13b   : > { %13186 = dma.hbm_to_vmem [thread:$0]  (!%p14484_p6), %s16246_s13, 512, %s1258_s16, [#allocation30], %s16150_s28, %s16150_s28, %s14205_s3  }
 0x13c   : > { %s13761_s1 = scalar_lea.hbm %s16245_s14, 16 }
 0x13d   : > { %p13762_p11 = scmp.ne.s32.totalorder %s16245_s14, %s13761_s1  ;;  %p13768_p1 = scmp.lt.u32.totalorder %s13761_s1, %s16245_s14 }
 0x13f   : > { %p13764_p12 = pnand %p13762_p11, %p14496_p8 }
 0x141   : > { %p13765_p13 = pneg %p13764_p12 }
 0x143   : > { %p13770_p4 = pnand %p13768_p1, %p13765_p13 }
 0x145   : > { %13773 = shalt.err (!%p13770_p4)
}
 0x146   : > { %s13774_s5 = scalar_lea.vmem %s14597_s22, 16  ;;  %s13781_s26 = scalar_lea.vmem %s14597_s22, 32 }
 0x147   : > { %p13775_p3 = scmp.ne.s32.totalorder %s14597_s22, %s13774_s5  ;;  %p13782_p5 = scmp.lt.s32.totalorder %s14597_s22, %s14597_s22 }
 0x148   : > { %p13783_p7 = scmp.lt.s32.totalorder %s13781_s26, %s13774_s5 }
 0x149   : > { %p13777_p0 = pnand %p13775_p3, %p14496_p8 }
 0x14a   : > { %p13784_p9 = por %p13783_p7, %p13782_p5 }
 0x14b   : > { %p13778_p2 = pneg %p13777_p0 }
 0x14d   : > { %p13785_p10 = pnand %p13784_p9, %p13778_p2 }
 0x14f   : > { %13788 = shalt.err (!%p13785_p10)
}
 0x150   : > { %13147 = dma.hbm_to_vmem [thread:$0]  (!%p14484_p6), %s16245_s14, 16, %s14597_s22, [#allocation9]  }
 0x151   : > { %s14206_s16 = smov [#allocation13]   ;;  %s14207_s1 = smov [#allocation16]  }
 0x152   : > { %s1087_s15 = sshll.u32 %s14206_s16, 4  ;;  %s1112_s28 = sshll.u32 %s14207_s1, 4  ;;  %s1088_s15 = int_to_ptr.vmem [resolvable:$true] %s1087_s15  ;;  %s14628_s28 = int_to_ptr.vmem [resolvable:$true] %s1112_s28 }
 0x153   : > { %s13789_s5 = scalar_lea.hbm %s14298_s30, 16 }
 0x154   : > { %p13790_p11 = scmp.ne.s32.totalorder %s14298_s30, %s13789_s5  ;;  %p13796_p1 = scmp.lt.u32.totalorder %s13789_s5, %s14298_s30 }
 0x156   : > { %p13792_p12 = pnand %p13790_p11, %p14496_p8 }
 0x158   : > { %p13793_p13 = pneg %p13792_p12 }
 0x15a   : > { %p13798_p4 = pnand %p13796_p1, %p13793_p13 }
 0x15c   : > { %13801 = shalt.err (!%p13798_p4)
}
 0x15d   : > { %s13802_s26 = scalar_lea.vmem %s1088_s15, 16  ;;  %s13809_s22 = scalar_lea.vmem %s1088_s15, 32 }
 0x15e   : > { %p13803_p3 = scmp.ne.s32.totalorder %s1088_s15, %s13802_s26  ;;  %p13810_p5 = scmp.lt.s32.totalorder %s1088_s15, %s1088_s15 }
 0x15f   : > { %p13811_p7 = scmp.lt.s32.totalorder %s13809_s22, %s13802_s26 }
 0x160   : > { %p13805_p0 = pnand %p13803_p3, %p14496_p8 }
 0x161   : > { %p13812_p9 = por %p13811_p7, %p13810_p5 }
 0x162   : > { %p13806_p2 = pneg %p13805_p0 }
 0x164   : > { %p13813_p10 = pnand %p13812_p9, %p13806_p2 }
 0x166   : > { %13816 = shalt.err (!%p13813_p10)
}
 0x167   : > { %13153 = dma.hbm_to_vmem [thread:$0]  (!%p14484_p6), %s14298_s30, 16, %s1088_s15, [#allocation12]  }
 0x168   : > { %s13817_s16 = scalar_lea.hbm %s16242_s20, 16 }
 0x169   : > { %p13818_p11 = scmp.ne.s32.totalorder %s16242_s20, %s13817_s16  ;;  %p13824_p1 = scmp.lt.u32.totalorder %s13817_s16, %s16242_s20 }
 0x16b   : > { %p13820_p12 = pnand %p13818_p11, %p14496_p8 }
 0x16d   : > { %p13821_p13 = pneg %p13820_p12 }
 0x16f   : > { %p13826_p4 = pnand %p13824_p1, %p13821_p13 }
 0x171   : > { %13829 = shalt.err (!%p13826_p4)
}
 0x172   : > { %s13830_s1 = scalar_lea.vmem %s14628_s28, 16  ;;  %s13837_s5 = scalar_lea.vmem %s14628_s28, 32 }
 0x173   : > { %p13831_p3 = scmp.ne.s32.totalorder %s14628_s28, %s13830_s1  ;;  %p13838_p5 = scmp.lt.s32.totalorder %s14628_s28, %s14628_s28 }
 0x174   : > { %p13839_p7 = scmp.lt.s32.totalorder %s13837_s5, %s13830_s1 }
 0x175   : > { %p13833_p0 = pnand %p13831_p3, %p14496_p8 }
 0x176   : > { %p13840_p9 = por %p13839_p7, %p13838_p5 }
 0x177   : > { %p13834_p2 = pneg %p13833_p0 }
 0x179   : > { %p13841_p10 = pnand %p13840_p9, %p13834_p2 }
 0x17b   : > { %13844 = shalt.err (!%p13841_p10)
}
 0x17c   : > { %13159 = dma.hbm_to_vmem [thread:$0]  (!%p14484_p6), %s16242_s20, 16, %s14628_s28, [#allocation15]  }
 0x17d   : > { %s14208_s15 = smov [#allocation19]   ;;  %s14209_s22 = smov [#allocation22]  }
 0x17e   : > { %s1137_s26 = sshll.u32 %s14208_s15, 4  ;;  %s1162_s16 = sshll.u32 %s14209_s22, 4  ;;  %s1138_s26 = int_to_ptr.vmem [resolvable:$true] %s1137_s26  ;;  %s14656_s16 = int_to_ptr.vmem [resolvable:$true] %s1162_s16 }
 0x17f   : > { %s13845_s1 = scalar_lea.hbm %s16247_s12, 16 }
 0x180   : > { %p13846_p11 = scmp.ne.s32.totalorder %s16247_s12, %s13845_s1  ;;  %p13852_p1 = scmp.lt.u32.totalorder %s13845_s1, %s16247_s12 }
 0x182   : > { %p13848_p12 = pnand %p13846_p11, %p14496_p8 }
 0x184   : > { %p13849_p13 = pneg %p13848_p12 }
 0x186   : > { %p13854_p4 = pnand %p13852_p1, %p13849_p13 }
 0x188   : > { %13857 = shalt.err (!%p13854_p4)
}
 0x189   : > { %s13858_s5 = scalar_lea.vmem %s1138_s26, 16  ;;  %s13865_s28 = scalar_lea.vmem %s1138_s26, 32 }
 0x18a   : > { %p13859_p3 = scmp.ne.s32.totalorder %s1138_s26, %s13858_s5  ;;  %p13866_p5 = scmp.lt.s32.totalorder %s1138_s26, %s1138_s26 }
 0x18b   : > { %p13867_p7 = scmp.lt.s32.totalorder %s13865_s28, %s13858_s5 }
 0x18c   : > { %p13861_p0 = pnand %p13859_p3, %p14496_p8 }
 0x18d   : > { %p13868_p9 = por %p13867_p7, %p13866_p5 }
 0x18e   : > { %p13862_p2 = pneg %p13861_p0 }
 0x190   : > { %p13869_p10 = pnand %p13868_p9, %p13862_p2 }
 0x192   : > { %13872 = shalt.err (!%p13869_p10)
}
 0x193   : > { %13165 = dma.hbm_to_vmem [thread:$0]  (!%p14484_p6), %s16247_s12, 16, %s1138_s26, [#allocation18]  }
 0x194   : > { %s13873_s15 = scalar_lea.hbm %s16249_s8, 16 }
 0x195   : > { %p13874_p11 = scmp.ne.s32.totalorder %s16249_s8, %s13873_s15  ;;  %p13880_p1 = scmp.lt.u32.totalorder %s13873_s15, %s16249_s8 }
 0x197   : > { %p13876_p12 = pnand %p13874_p11, %p14496_p8 }
 0x199   : > { %p13877_p13 = pneg %p13876_p12 }
 0x19b   : > { %p13882_p4 = pnand %p13880_p1, %p13877_p13 }
 0x19d   : > { %13885 = shalt.err (!%p13882_p4)
}
 0x19e   : > { %s13886_s22 = scalar_lea.vmem %s14656_s16, 16  ;;  %s13893_s1 = scalar_lea.vmem %s14656_s16, 32 }
 0x19f   : > { %p13887_p3 = scmp.ne.s32.totalorder %s14656_s16, %s13886_s22  ;;  %p13894_p5 = scmp.lt.s32.totalorder %s14656_s16, %s14656_s16 }
 0x1a0   : > { %p13895_p7 = scmp.lt.s32.totalorder %s13893_s1, %s13886_s22 }
 0x1a1   : > { %p13889_p0 = pnand %p13887_p3, %p14496_p8 }
 0x1a2   : > { %p13896_p9 = por %p13895_p7, %p13894_p5 }
 0x1a3   : > { %p13890_p2 = pneg %p13889_p0 }
 0x1a5   : > { %p13897_p10 = pnand %p13896_p9, %p13890_p2 }
 0x1a7   : > { %13900 = shalt.err (!%p13897_p10)
}
 0x1a8   : > { %13171 = dma.hbm_to_vmem [thread:$0]  (!%p14484_p6), %s16249_s8, 16, %s14656_s16, [#allocation21]  }
 0x1a9   : > { %s14210_s26 = smov [#allocation25]   ;;  %s14211_s28 = smov [#allocation28]  }
 0x1aa   : > { %s1187_s5 = sshll.u32 %s14210_s26, 4  ;;  %s1244_s15 = sshll.u32 %s14211_s28, 4  ;;  %s1188_s5 = int_to_ptr.vmem [resolvable:$true] %s1187_s5  ;;  %s14684_s15 = int_to_ptr.vmem [resolvable:$true] %s1244_s15 }
 0x1ab   : > { %s13901_s22 = scalar_lea.hbm %s14358_s27, 16 }
 0x1ac   : > { %p13902_p11 = scmp.ne.s32.totalorder %s14358_s27, %s13901_s22  ;;  %p13908_p1 = scmp.lt.u32.totalorder %s13901_s22, %s14358_s27 }
 0x1ae   : > { %p13904_p12 = pnand %p13902_p11, %p14496_p8 }
 0x1b0   : > { %p13905_p13 = pneg %p13904_p12 }
 0x1b2   : > { %p13910_p4 = pnand %p13908_p1, %p13905_p13 }
 0x1b4   : > { %13913 = shalt.err (!%p13910_p4)
}
 0x1b5   : > { %s13914_s1 = scalar_lea.vmem %s1188_s5, 16  ;;  %s13921_s16 = scalar_lea.vmem %s1188_s5, 32 }
 0x1b6   : > { %p13915_p3 = scmp.ne.s32.totalorder %s1188_s5, %s13914_s1  ;;  %p13922_p5 = scmp.lt.s32.totalorder %s1188_s5, %s1188_s5 }
 0x1b7   : > { %p13923_p7 = scmp.lt.s32.totalorder %s13921_s16, %s13914_s1 }
 0x1b8   : > { %p13917_p0 = pnand %p13915_p3, %p14496_p8 }
 0x1b9   : > { %p13924_p9 = por %p13923_p7, %p13922_p5 }
 0x1ba   : > { %p13918_p2 = pneg %p13917_p0 }
 0x1bc   : > { %p13925_p10 = pnand %p13924_p9, %p13918_p2 }
 0x1be   : > { %13928 = shalt.err (!%p13925_p10)
}
 0x1bf   : > { %13177 = dma.hbm_to_vmem [thread:$0]  (!%p14484_p6), %s14358_s27, 16, %s1188_s5, [#allocation24]  }
 0x1c0   : > { %s13929_s26 = scalar_lea.hbm %s14428_s25, 512 }
 0x1c1   : > { %p13930_p11 = scmp.ne.s32.totalorder %s14428_s25, %s13929_s26  ;;  %p13936_p1 = scmp.lt.u32.totalorder %s13929_s26, %s14428_s25 }
 0x1c3   : > { %p13932_p12 = pnand %p13930_p11, %p14496_p8 }
 0x1c5   : > { %p13933_p13 = pneg %p13932_p12 }
 0x1c7   : > { %p13938_p4 = pnand %p13936_p1, %p13933_p13 }
 0x1c9   : > { %13941 = shalt.err (!%p13938_p4)
}
 0x1ca   : > { %s13942_s28 = scalar_lea.vmem %s14684_s15, 512  ;;  %p13950_p5 = scmp.lt.s32.totalorder %s14684_s15, %s14684_s15 }
 0x1cb   : > { %p13943_p3 = scmp.ne.s32.totalorder %s14684_s15, %s13942_s28  ;;  %p13951_p7 = scmp.lt.s32.totalorder %s13942_s28, %s13942_s28 }
 0x1cd   : > { %p13945_p0 = pnand %p13943_p3, %p14496_p8  ;;  %p13952_p9 = por %p13951_p7, %p13950_p5 }
 0x1cf   : > { %p13946_p2 = pneg %p13945_p0 }
 0x1d1   : > { %p13953_p10 = pnand %p13952_p9, %p13946_p2 }
 0x1d3   : > { %13956 = shalt.err (!%p13953_p10)
}
 0x1d4   : > { %s16257_s5 = smov 128   ;;  %s14212_s22 = smov [#allocation31]  }
 0x1d5   : > { %13183 = dma.hbm_to_vmem [thread:$0]  (!%p14484_p6), %s14428_s25, 512, %s14684_s15, [#allocation27], %s16257_s5, %s16257_s5, %s14205_s3  }
 0x1d6   : > { %s1271_s1 = sshll.u32 %s14212_s22, 4  ;;  %s13957_s16 = scalar_lea.hbm %s16248_s9, 16  ;;  %s1272_s1 = int_to_ptr.vmem [resolvable:$true] %s1271_s1 }
 0x1d7   : > { %p13958_p11 = scmp.ne.s32.totalorder %s16248_s9, %s13957_s16  ;;  %p13964_p1 = scmp.lt.u32.totalorder %s13957_s16, %s16248_s9 }
 0x1d9   : > { %p13960_p12 = pnand %p13958_p11, %p14496_p8 }
 0x1db   : > { %p13961_p13 = pneg %p13960_p12 }
 0x1dd   : > { %p13966_p4 = pnand %p13964_p1, %p13961_p13 }
 0x1df   : > { %13969 = shalt.err (!%p13966_p4)
}
 0x1e0   : > { %s13970_s26 = scalar_lea.vmem %s1272_s1, 16  ;;  %s13977_s28 = scalar_lea.vmem %s1272_s1, 32 }
 0x1e1   : > { %p13971_p3 = scmp.ne.s32.totalorder %s1272_s1, %s13970_s26  ;;  %p13978_p5 = scmp.lt.s32.totalorder %s1272_s1, %s1272_s1 }
 0x1e2   : > { %p13979_p7 = scmp.lt.s32.totalorder %s13977_s28, %s13970_s26 }
 0x1e3   : > { %p13973_p0 = pnand %p13971_p3, %p14496_p8 }
 0x1e4   : > { %p13980_p9 = por %p13979_p7, %p13978_p5 }
 0x1e5   : > { %p13974_p2 = pneg %p13973_p0 }
 0x1e7   : > { %p13981_p10 = pnand %p13980_p9, %p13974_p2 }
 0x1e9   : > { %13984 = shalt.err (!%p13981_p10)
}
 0x1ea   : > { %13189 = dma.hbm_to_vmem [thread:$0]  (!%p14484_p6), %s16248_s9, 16, %s1272_s1, [#allocation30]  }
 0x1eb   : > { %s11562_s23 = sadd.s32 4294967294, %s14151_s11   ;;  %s14726_s3 = sadd.s32 1, %s14151_s11  }
 0x1ec   : > { %s117_s2 = sadd.s32 1, %s14147_s0  ;;  %s114_s15 = ssub.s32 %s14151_s11, %s14726_s3 }
 0x1ed   : > { %s16258_s5 = sld [smem:[#allocation45_spill]]  ;;  %p124_p8 = scmp.ne.s32.totalorder %s14147_s0, %s14143_s10 }
 0x1ee   : > { %p115_p11 = scmp.eq.s32.totalorder %s114_s15, 0  ;;  %p125_p12 = scmp.eq.s32.totalorder %s14151_s11, 0 }
 0x1ef   : > { %p130_p13 = scmp.ne.s32.totalorder %s14143_s10, %s14139_s7  ;;  %p999_p1 = scmp.eq.s32.totalorder %s14466_s18, 1 }
 0x1f0   : > { %s16259_s22 = sld [smem:[#allocation46_spill]]  ;;  %p126_p4 = por %p125_p12, %p124_p8 }
 0x1f1   : > { %s14738_s16 = scalar_select %p115_p11, %s14147_s0, %s117_s2  }
 0x1f2   : > { %p16260_p3 = scmp.eq.s32.totalorder %s14466_s18, 0  ;;  %p14746_p0 = por %p999_p1, %p124_p8 }
 0x1f3   : > { %p1005_p2 = scmp.eq.s32.totalorder %s11562_s23, 1  ;;  %p13218_p5 = scmp.lt.s32.totalorder %s14151_s11, 2 }
 0x1f4   : > { %p14742_p6 = por %p16260_p3, %p130_p13  ;;  %s1282_s28 = sand.u32 1, %s14147_s0  }
 0x1f5   : > { %s16262_s26 = scalar_select %p14746_p0, 1, 0 }
 0x1f6   : > { %s16261_s1 = scalar_select %p14742_p6, 1, 0 }
 0x1f7   : > { %p14752_p7 = por %p1005_p2, %p130_p13  ;;  %s14756_s2 = sshll.u32 %s1282_s28, 3 }
 0x1f8   : > { %s11583_s4 = sshll.u32 %s14151_s11, 7  ;;  %s1286_s8 = scalar_lea.vmem [#allocation2], %s14756_s2 }
 0x1f9   : > { %s16263_s15 = scalar_select %p14752_p7, 1, 0 }
 0x1fa   : > { %s14760_s6 = scalar_lea.hbm %s16258_s5, %s11583_s4  ;;  %s1293_s23 = sshll.u32 %s1286_s8, 4  ;;  %s14767_s23 = int_to_ptr.vmem [resolvable:$true] %s1293_s23 }
 0x1fb   : > { %p14763_p9 = pnand %p13218_p5, %p126_p4  ;;  %s14770_s12 = scalar_lea.hbm %s16259_s22, %s11583_s4 }
 0x1fc   : > { %s1283_s13 = scalar_lea.sflag [#allocation3], %s1282_s28  ;;  %s13985_s14 = scalar_lea.hbm %s14760_s6, 128 }
 0x1fd   : > { %p13986_p10 = scmp.ne.s32.totalorder %s14760_s6, %s13985_s14  ;;  %p13987_p8 = pneg %p14763_p9 }
 0x1fe   : > { %s13990_s8 = scalar_lea.hbm %s16258_s5, 256  ;;  %p13991_p13 = scmp.lt.u32.totalorder %s14760_s6, %s16258_s5 }
 0x1ff   : > { %p13988_p11 = pnand %p13987_p8, %p13986_p10  ;;  %p13992_p1 = scmp.lt.u32.totalorder %s13990_s8, %s13985_s14 }
 0x200   : > { %p13994_p3 = scmp.lt.u32.totalorder %s13985_s14, %s14760_s6 }
 0x201   : > { %p13989_p12 = pneg %p13988_p11  ;;  %p13993_p4 = por %p13992_p1, %p13991_p13 }
 0x203   : > { %p13995_p2 = por %p13994_p3, %p13993_p4 }
 0x205   : > { %p13996_p5 = pnand %p13995_p2, %p13989_p12 }
 0x207   : > { %13999 = shalt.err (!%p13996_p5)
}
 0x208   : > { %s14000_s4 = scalar_lea.vmem %s14767_s23, 128  ;;  %s14213_s28 = smov [#allocation2]  }
 0x209   : > { %p14001_p7 = scmp.ne.s32.totalorder %s14767_s23, %s14000_s4  ;;  %s14005_s17 = sshll.u32 %s14213_s28, 4  ;;  %s14006_s17 = int_to_ptr.vmem [resolvable:$false] %s14005_s17 }
 0x20a   : > { %s14007_s5 = scalar_lea.vmem %s14006_s17, 256  ;;  %p14008_p10 = scmp.lt.s32.totalorder %s14767_s23, %s14006_s17 }
 0x20b   : > { %p14003_p0 = pnand %p14001_p7, %p13987_p8  ;;  %p14009_p11 = scmp.lt.s32.totalorder %s14007_s5, %s14000_s4 }
 0x20d   : > { %p14004_p6 = pneg %p14003_p0  ;;  %p14010_p13 = por %p14009_p11, %p14008_p10 }
 0x20f   : > { %p14011_p1 = pnand %p14010_p13, %p14004_p6 }
 0x211   : > { %14014 = shalt.err (!%p14011_p1)
}
 0x212   : > { %13193 = dma.hbm_to_vmem [thread:$0]  (!%p14763_p9), %s14760_s6, 128, %s14767_s23, %s1283_s13  }
 0x213   : > { %s1300_s14 = sand.u32 1, %s14151_s11   ;;  %s1304_s17 = scalar_lea.vmem [#allocation5], %s14756_s2 }
 0x214   : > { %s1311_s5 = sshll.u32 %s1304_s17, 4  ;;  %s1301_s8 = scalar_lea.sflag [#allocation6], %s1300_s14  ;;  %s1312_s5 = int_to_ptr.vmem [resolvable:$true] %s1311_s5 }
 0x215   : > { %s14015_s4 = scalar_lea.hbm %s14770_s12, 128  ;;  %s14020_s28 = scalar_lea.hbm %s16259_s22, 256 }
 0x216   : > { %p14016_p6 = scmp.ne.s32.totalorder %s14770_s12, %s14015_s4  ;;  %p14021_p12 = scmp.lt.u32.totalorder %s14770_s12, %s16259_s22 }
 0x217   : > { %p14022_p4 = scmp.lt.u32.totalorder %s14020_s28, %s14015_s4  ;;  %p14024_p2 = scmp.lt.u32.totalorder %s14015_s4, %s14770_s12 }
 0x218   : > { %p14018_p0 = pnand %p14016_p6, %p13987_p8 }
 0x219   : > { %p14023_p3 = por %p14022_p4, %p14021_p12 }
 0x21a   : > { %p14019_p7 = pneg %p14018_p0 }
 0x21b   : > { %p14025_p5 = por %p14024_p2, %p14023_p3 }
 0x21d   : > { %p14026_p10 = pnand %p14025_p5, %p14019_p7 }
 0x21f   : > { %14029 = shalt.err (!%p14026_p10)
}
 0x220   : > { %s14030_s13 = scalar_lea.vmem %s1312_s5, 128  ;;  %s14214_s6 = smov [#allocation5]  }
 0x221   : > { %p14031_p11 = scmp.ne.s32.totalorder %s1312_s5, %s14030_s13  ;;  %s14035_s2 = sshll.u32 %s14214_s6, 4  ;;  %s14036_s2 = int_to_ptr.vmem [resolvable:$false] %s14035_s2 }
 0x222   : > { %s14037_s23 = scalar_lea.vmem %s14036_s2, 256  ;;  %p14038_p6 = scmp.lt.s32.totalorder %s1312_s5, %s14036_s2 }
 0x223   : > { %p14033_p13 = pnand %p14031_p11, %p13987_p8  ;;  %p14039_p0 = scmp.lt.s32.totalorder %s14037_s23, %s14030_s13 }
 0x225   : > { %p14034_p1 = pneg %p14033_p13  ;;  %p14040_p4 = por %p14039_p0, %p14038_p6 }
 0x227   : > { %p14041_p12 = pnand %p14040_p4, %p14034_p1 }
 0x229   : > { %14044 = shalt.err (!%p14041_p12)
}
 0x22a   : > { %13196 = dma.hbm_to_vmem [thread:$0]  (!%p14763_p9), %s14770_s12, 128, %s1312_s5, %s1301_s8  }
 0x22b   : > { %s16265_s14 = sld [smem:[#allocation83_spill]] }
 0x231   : > { %p16266_p7 = scmp.ne.s32.totalorder %s16265_s14, 0 }
 0x232   : > { %s14813_s17 = sand.u32 (!%p16266_p7), 1, %s14143_s10   ;;  %p16267_p8 = scmp.ne.s32.totalorder (!%p16266_p7), %s16261_s1, 0 }
 0x233   : > { %1320 = sbr.rel (%p16266_p7) target bundleno = 28934 (0x7106), region = 184  ;;  %s14816_s4 = sshll.u32 (!%p16266_p7), %s14813_s17, 3 }
 0x234   : > { %s1323_s28 = scalar_lea.sflag (!%p16266_p7), [#allocation3], %s14813_s17  ;;  %s1326_s13 = scalar_lea.vmem (!%p16266_p7), [#allocation2], %s14816_s4 }
 0x23a   : > { %14090 = dma.done.wait (%p16267_p8), %s1323_s28, 128  }
 0x23b   : > { %14092 = vsyncadd (%p16267_p8), %s1323_s28, 4294967168  ;;  %s1331_s9 = sand.u32 1, %s14466_s18   ;;  %s1335_s5 = scalar_lea.vmem [#allocation5], %s14816_s4 }
 0x23c   : > { %s1332_s12 = scalar_lea.sflag [#allocation6], %s1331_s9 }
 0x23d   : > { %14094 = dma.done.wait (%p16267_p8), %s1332_s12, 128  }
 0x23e   : > { %14096 = vsyncadd (%p16267_p8), %s1332_s12, 4294967168  ;;  %p16268_p9 = scmp.eq.s32.totalorder %s14466_s18, 0 }
 0x240   : > { %14098 = dma.done.wait (%p16268_p9), [#allocation6], 16   ;;  %p16269_p3 = pmov %p16268_p9 }
 0x242   : > { %14100 = vsyncadd (%p16269_p3), [#allocation6], 4294967280  ;;  %p16270_p2 = pmov %p16269_p3 }
 0x244   : > { %14102 = dma.done.wait (%p16270_p2), [#allocation9], 32   ;;  %p16271_p5 = pmov %p16270_p2 }
 0x245   : > { %p16272_p10 = pmov %p16270_p2 }
 0x246   : > { %14104 = vsyncadd (%p16271_p5), [#allocation9], 4294967264 }
 0x247   : > { %14106 = dma.done.wait (%p16272_p10), [#allocation12], 32   ;;  %p16273_p11 = pmov %p16270_p2 }
 0x248   : > { %p16274_p13 = pmov %p16270_p2 }
 0x249   : > { %14108 = vsyncadd (%p16273_p11), [#allocation12], 4294967264 }
 0x24a   : > { %14110 = dma.done.wait (%p16274_p13), [#allocation15], 32   ;;  %p16275_p1 = pmov %p16270_p2 }
 0x24c   : > { %14112 = vsyncadd (%p16275_p1), [#allocation15], 4294967264  ;;  %p16276_p6 = pmov %p16275_p1 }
 0x24d   : > { %p16277_p0 = pmov %p16275_p1 }
 0x24e   : > { %14114 = dma.done.wait (%p16276_p6), [#allocation18], 32  }
 0x24f   : > { %14116 = vsyncadd (%p16277_p0), [#allocation18], 4294967264  ;;  %p16278_p4 = pmov %p16277_p0 }
 0x250   : > { %p16279_p12 = pmov %p16277_p0 }
 0x251   : > { %14118 = dma.done.wait (%p16278_p4), [#allocation21], 32  }
 0x252   : > { %14120 = vsyncadd (%p16279_p12), [#allocation21], 4294967264  ;;  %p16280_p7 = pmov %p16277_p0 }
 0x253   : > { %p16281_p8 = pmov %p16277_p0 }
 0x254   : > { %14122 = dma.done.wait (%p16280_p7), [#allocation24], 32  }
 0x255   : > { %14124 = vsyncadd (%p16281_p8), [#allocation24], 4294967264  ;;  %p16282_p9 = pmov %p16277_p0 }
 0x256   : > { %p16283_p3 = pmov %p16277_p0 }
 0x257   : > { %14126 = dma.done.wait (%p16282_p9), [#allocation27], 528  }
 0x258   : > { %14128 = vsyncadd (%p16283_p3), [#allocation27], 4294966768  ;;  %p16284_p2 = pmov %p16277_p0 }
 0x259   : > { %p16285_p5 = pmov %p16277_p0 }
 0x25a   : > { %14130 = dma.done.wait (%p16284_p2), [#allocation30], 528  }
 0x25b   : > { %14132 = vsyncadd (%p16285_p5), [#allocation30], 4294966768  ;;  %s16286_s1 = sld [smem:[#allocation47_spill]]  ;;  %vm1520_vm0 = vcmask 261120   ;;  %s16287_s8 = sld [smem:[#allocation48_spill]]  ;;  %v14874_v5 = vld [vmem:[%s1326_s13] sm:$0xff] }
 0x25c   : > { %12135 = vmatprep.mubr.msk.f32.mxu0 %vm1520_vm0, %v14874_v5  ;;  %v14886_v7 = vld [vmem:[%s1335_s5] sm:$0xff]  ;;  %v14215_v8 = vmov 0.0   ;;  %vm14216_vm1 = vmmov 0   ;;  %s16176_s6 = smov 96   ;;  %vm1613_vm2 = vcmask 64512   ;;  %s16174_s2 = smov 56  }
 0x25d   : > { %12138 = vmatprep.subr.mxu1 %v14215_v8  ;;  %12140 = vmatprep.mubr.msk.f32.mxu1 %vm14216_vm1, %v14215_v8  ;;  %s16166_s23 = smov 80   ;;  %s16288_s14 = sld [smem:[#allocation49_spill]]  ;;  %vm3684_vm3 = vcmask 523264  }
 0x25e   : > { %s16170_s28 = smov 64   ;;  %s16172_s13 = smov 88  }
 0x25f   : > { %s16164_s9 = smov 120   ;;  %s16162_s12 = smov 112  }
 0x260   : > { %s16168_s5 = smov 48   ;;  %s16300_s19 = smov 72  }
 0x261   : > { %v1509_v0 = vld [vmem:[%s16286_s1] sm:$0xff]  ;;  %v1510_v1 = vld [vmem:[%s16286_s1 + $0x8] sm:$0xff]  ;;  %v1511_v2 = vld [vmem:[%s16286_s1 + $0x10] sm:$0xff]  ;;  %s16301_s20 = smov 104   ;;  %s16302_s21 = smov 40  }
 0x262   : > { %v14869_v3 = vpack.c.bf16 %v1510_v1, %v1509_v0  ;;  %v1512_v4 = vld [vmem:[%s16286_s1 + $0x18] sm:$0xff]  ;;  %v14897_v9 = vld [vmem:[%s16287_s8] ss:$0 sm:$0xff]  ;;  %s16297_s1 = smov 88   ;;  %s16313_s22 = sld [smem:[#allocation72_spill]] }
 0x263   : > { %v14876_v6 = vpack.c.bf16 %v1512_v4, %v1511_v2  ;;  %v14927_v27 = vld [vmem:[%s16288_s14] sm:$0xff]  ;;  %v14955_v47 = vld [vmem:[%s16288_s14 + $0x8] sm:$0xff]  ;;  %v14974_v59 = vld [vmem:[%s16288_s14 + $0x10] sm:$0xff]  ;;  %s16316_s24 = sld [smem:[#allocation77_spill]]  ;;  %p16320_p11 = scmp.ne.s32.totalorder %s16262_s26, 0 }
 0x264   : > { %12887 = vmatprep.subr.bf16.mxu0 %v14869_v3 }
 0x265   : > { %12889 = vmatpush3.bf16.msra.mxu0 %v14869_v3 }
 0x266   : > { %12891 = vmatprep.subr.bf16.mxu0 %v14876_v6 }
 0x269   : > { %12893 = vmatpush3.bf16.msra.mxu0 %v14876_v6 }
 0x26a   : > { %12158 = vmatprep.subr.mxu0 %v14215_v8 }
 0x26c   : > { %12136 = vmatmul.mubr.msk.f32.vlgmr.msra.gmra.mrb[0].mxu0 %vm1520_vm0, %v14886_v7 }
 0x26d   : > { %12160 = vmatprep.mubr.msk.f32.mxu0 %vm14216_vm1, %v14215_v8 }
 0x33f   : > { %v14899_v10 = vpop.f32.mrb[0].mxu0 }
 0x340   : > { %v1593_v11 = vpop.f32.mrb[1].mxu0 }
 0x341   : > { %v14902_v12 = vadd.f32 %v14897_v9, %v1593_v11 }
 0x343   : > { %1611 = vrot.lane.b32.xlu0 %v14902_v12, %s16176_s6 }
 0x3b5   : > { %v1612_v13 = vpop.permute.xlu0 %1611 }
 0x3b6   : > { %12139 = vmatpush3.xpose.msk.msra.mxu1 %vm1613_vm2, %v1612_v13 }
 0x3b7   : > { %12143 = vmatprep.subr.mxu1 %v14215_v8 }
 0x3b9   : > { %12141 = vmatmul.mubr.msk.f32.vlgmr.msra.gmra.mrb[0].mxu1 %vm1613_vm2, %v14902_v12 }
 0x3ba   : > { %12145 = vmatprep.mubr.msk.f32.mxu1 %vm14216_vm1, %v14215_v8 }
 0x48c   : > { %v1684_v14 = vpop.f32.mrb[0].mxu1 }
 0x48d   : > { %v12142_v15 = vpop.f32.mrb[1].mxu1  ;;  %v1688_v16 = vsel %vm1613_vm2, %v1684_v14, -inf }
 0x48e   : > { %1689 = vmax.xlane.f32.xlu0 %v1688_v16 }
 0x4a4   : > { %1939 = vrot.lane.b32.xlu0 %v14902_v12, %s16174_s2 }
 0x4a8   : > { %2093 = vrot.lane.b32.xlu0 %v14902_v12, %s16166_s23  ;;  %s16289_s23 = sld [smem:[#allocation50_spill]] }
 0x4ae   : > { %v14979_v60 = vld [vmem:[%s16289_s23] ss:$0 sm:$0xff] }
 0x51b   : > { %v1690_v17 = vpop.xlane.xlu0 %1689 }
 0x51c   : > { %v1691_v18 = vsub.f32 %v1684_v14, %v1690_v17 }
 0x51e   : > { %v1692_v19 = vmul.f32 1.442695, %v1691_v18 }
 0x51f   : > { %v1940_v20 = vpop.permute.xlu0 %1939 }
 0x520   : > { %13343 = vpow2.f32 %v1692_v19  ;;  %12159 = vmatpush3.msra.mxu0 %v1940_v20  ;;  %v14997_v19 = vadd.f32 %v14899_v10, %v14897_v9 }
 0x521   : > { %12168 = vmatprep.subr.mxu0 %v14215_v8 }
 0x523   : > { %v2094_v42 = vpop.permute.xlu0 %2093 }
 0x52a   : > { %v13344_v21 = vpop.eup %13343 }
 0x52b   : > { %v1694_v22 = vsel %vm1613_vm2, %v13344_v21, 0.0 }
 0x52c   : > { %1695 = vadd.xlane.f32.xlu1 %v1694_v22 }
 0x53d   : > { %1699 = vrot.lane.b32.xlu1 %v14902_v12, %s16170_s28 }
 0x541   : > { %1852 = vrot.lane.b32.xlu1 %v14902_v12, %s16172_s13 }
 0x545   : > { %1850 = vrot.lane.b32.xlu1 %v14902_v12, %s16164_s9  ;;  %s16180_s9 = smov 104  }
 0x5b9   : > { %v1696_v23 = vpop.xlane.xlu1 %1695 }
 0x5ba   : > { %13345 = vrcp.f32 %v1696_v23 }
 0x5bd   : > { %v1700_v24 = vpop.permute.xlu1 %1699 }
 0x5be   : > { %12144 = vmatpush3.msra.mxu1 %v1700_v24 }
 0x5bf   : > { %12148 = vmatprep.subr.mxu1 %v14215_v8 }
 0x5c1   : > { %v1853_v28 = vpop.permute.xlu1 %1852 }
 0x5c4   : > { %v13346_v25 = vpop.eup %13345 }
 0x5c5   : > { %v1698_v26 = vmul.f32 %v13346_v25, %v13344_v21  ;;  %v1851_v31 = vpop.permute.xlu1 %1850  ;;  %v15007_v25 = vld [vmem:[%s16288_s14 + $0x18] sm:$0xff] }
 0x5c7   : > { %12146 = vmatmul.mubr.msk.f32.vlgmr.msra.gmra.mrb[2].mxu1 %vm1613_vm2, %v1698_v26 }
 0x5c8   : > { %12149 = vmatpush3.msra.mxu1 %v14927_v27  ;;  %12150 = vmatprep.mubr.msk.f32.mxu1 %vm14216_vm1, %v14215_v8 }
 0x5c9   : > { %12153 = vmatprep.subr.mxu1 %v14215_v8 }
 0x69a   : > { %v1771_v29 = vpop.f32.mrb[2].mxu1 }
 0x69b   : > { %v12147_v30 = vpop.f32.mrb[3].mxu1  ;;  %12151 = vmatmul.mubr.msk.f32.vlgmr.msra.gmra.mrb[4].mxu1 %vm1613_vm2, %v1771_v29 }
 0x69c   : > { %12154 = vmatpush3.xpose.msk.msra.mxu1 %vm1613_vm2, %v1853_v28  ;;  %12155 = vmatprep.mubr.msk.f32.mxu1 %vm14216_vm1, %v14215_v8 }
 0x69d   : > { %12163 = vmatprep.subr.mxu1 %v14215_v8 }
 0x69f   : > { %12156 = vmatmul.mubr.msk.f32.vlgmr.msra.gmra.mrb[6].mxu1 %vm1613_vm2, %v1851_v31 }
 0x6a0   : > { %12165 = vmatprep.mubr.msk.f32.mxu1 %vm14216_vm1, %v14215_v8  ;;  %12164 = vmatpush3.msra.mxu1 %v14955_v47 }
 0x6a1   : > { %12173 = vmatprep.subr.mxu1 %v14215_v8 }
 0x76e   : > { %v1845_v32 = vpop.f32.mrb[4].mxu1 }
 0x76f   : > { %v12152_v33 = vpop.f32.mrb[5].mxu1  ;;  %v1849_v61 = vadd.f32 %v14979_v60, %v1845_v32 }
 0x772   : > { %v1924_v34 = vpop.f32.mrb[6].mxu1 }
 0x773   : > { %v12157_v35 = vpop.f32.mrb[7].mxu1  ;;  %v1928_v36 = vsel %vm1613_vm2, %v1924_v34, -inf }
 0x774   : > { %1929 = vmax.xlane.f32.xlu1 %v1928_v36 }
 0x801   : > { %v1930_v37 = vpop.xlane.xlu1 %1929 }
 0x802   : > { %v1931_v38 = vsub.f32 %v1924_v34, %v1930_v37 }
 0x804   : > { %v1932_v39 = vmul.f32 1.442695, %v1931_v38 }
 0x806   : > { %13347 = vpow2.f32 %v1932_v39 }
 0x810   : > { %v13348_v40 = vpop.eup %13347 }
 0x811   : > { %v1934_v41 = vsel %vm1613_vm2, %v13348_v40, 0.0 }
 0x812   : > { %1935 = vadd.xlane.f32.xlu0 %v1934_v41 }
 0x828   : > { %2091 = vrot.lane.b32.xlu0 %v14902_v12, %s16162_s12  ;;  %s16182_s12 = smov 72  }
 0x89f   : > { %v1936_v43 = vpop.xlane.xlu0 %1935 }
 0x8a0   : > { %13349 = vrcp.f32 %v1936_v43 }
 0x8a3   : > { %v2092_v46 = vpop.permute.xlu0 %2091 }
 0x8aa   : > { %v13350_v44 = vpop.eup %13349 }
 0x8ab   : > { %v1938_v45 = vmul.f32 %v13350_v44, %v13348_v40 }
 0x8ad   : > { %12161 = vmatmul.mubr.msk.f32.vlgmr.msra.gmra.mrb[2].mxu0 %vm1613_vm2, %v1938_v45 }
 0x8ae   : > { %12169 = vmatpush3.xpose.msk.msra.mxu0 %vm1613_vm2, %v2094_v42  ;;  %12170 = vmatprep.mubr.msk.f32.mxu0 %vm14216_vm1, %v14215_v8 }
 0x8af   : > { %12178 = vmatprep.subr.mxu0 %v14215_v8 }
 0x8b1   : > { %12171 = vmatmul.mubr.msk.f32.vlgmr.msra.gmra.mrb[4].mxu0 %vm1613_vm2, %v2092_v46 }
 0x8b2   : > { %12180 = vmatprep.mubr.msk.f32.mxu0 %vm14216_vm1, %v14215_v8  ;;  %12179 = vmatpush3.msra.mxu0 %v14974_v59 }
 0x8b3   : > { %12188 = vmatprep.subr.mxu0 %v14215_v8 }
 0x980   : > { %v2011_v48 = vpop.f32.mrb[2].mxu0 }
 0x981   : > { %v12162_v49 = vpop.f32.mrb[3].mxu0  ;;  %12166 = vmatmul.mubr.msk.f32.vlgmr.msra.gmra.mrb[8].mxu1 %vm1613_vm2, %v2011_v48 }
 0x982   : > { %12175 = vmatprep.mubr.msk.f32.mxu1 %vm14216_vm1, %v14215_v8 }
 0x984   : > { %v2165_v50 = vpop.f32.mrb[4].mxu0 }
 0x985   : > { %v12172_v51 = vpop.f32.mrb[5].mxu0  ;;  %v2169_v52 = vsel %vm1613_vm2, %v2165_v50, -inf }
 0x986   : > { %2170 = vmax.xlane.f32.xlu1 %v2169_v52 }
 0x997   : > { %2180 = vrot.lane.b32.xlu1 %v14902_v12, %s16168_s5  ;;  %s16178_s5 = smov 40  }
 0x99b   : > { %2334 = vrot.lane.b32.xlu1 %v14902_v12, %s16182_s12 }
 0x99f   : > { %2332 = vrot.lane.b32.xlu1 %v14902_v12, %s16180_s9 }
 0xa13   : > { %v2171_v53 = vpop.xlane.xlu1 %2170 }
 0xa14   : > { %v2172_v54 = vsub.f32 %v2165_v50, %v2171_v53 }
 0xa16   : > { %v2173_v55 = vmul.f32 1.442695, %v2172_v54 }
 0xa17   : > { %v2181_v56 = vpop.permute.xlu1 %2180 }
 0xa18   : > { %13351 = vpow2.f32 %v2173_v55  ;;  %12174 = vmatpush3.msra.mxu1 %v2181_v56 }
 0xa19   : > { %12183 = vmatprep.subr.mxu1 %v14215_v8 }
 0xa1b   : > { %v2335_v4 = vpop.permute.xlu1 %2334 }
 0xa22   : > { %v13352_v57 = vpop.eup %13351 }
 0xa23   : > { %v2175_v58 = vsel %vm1613_vm2, %v13352_v57, 0.0 }
 0xa24   : > { %2176 = vadd.xlane.f32.xlu0 %v2175_v58 }
 0xa3a   : > { %2421 = vrot.lane.b32.xlu0 %v14902_v12, %s16178_s5  ;;  %v2333_v12 = vpop.permute.xlu1 %2332 }
 0xa54   : > { %v2086_v62 = vpop.f32.mrb[8].mxu1 }
 0xa55   : > { %v2090_v63 = vadd.f32 %v2086_v62, %v1849_v61  ;;  %v12167_v0 = vpop.f32.mrb[9].mxu1 }
 0xab1   : > { %v2177_v1 = vpop.xlane.xlu0 %2176 }
 0xab2   : > { %13353 = vrcp.f32 %v2177_v1 }
 0xab5   : > { %v2422_v14 = vpop.permute.xlu0 %2421 }
 0xabc   : > { %v13354_v2 = vpop.eup %13353 }
 0xabd   : > { %v2179_v11 = vmul.f32 %v13354_v2, %v13352_v57 }
 0xabf   : > { %12176 = vmatmul.mubr.msk.f32.vlgmr.msra.gmra.mrb[10].mxu1 %vm1613_vm2, %v2179_v11 }
 0xac0   : > { %12184 = vmatpush3.xpose.msk.msra.mxu1 %vm1613_vm2, %v2335_v4  ;;  %12185 = vmatprep.mubr.msk.f32.mxu1 %vm14216_vm1, %v14215_v8 }
 0xac1   : > { %12193 = vmatprep.subr.mxu1 %v14215_v8 }
 0xac3   : > { %12186 = vmatmul.mubr.msk.f32.vlgmr.msra.gmra.mrb[12].mxu1 %vm1613_vm2, %v2333_v12 }
 0xac4   : > { %12195 = vmatprep.mubr.msk.f32.mxu1 %vm14216_vm1, %v14215_v8  ;;  %12194 = vmatpush3.msra.mxu1 %v15007_v25 }
 0xac5   : > { %12203 = vmatprep.subr.mxu1 %v14215_v8 }
 0xb92   : > { %v2252_v13 = vpop.f32.mrb[10].mxu1 }
 0xb93   : > { %v12177_v15 = vpop.f32.mrb[11].mxu1  ;;  %12181 = vmatmul.mubr.msk.f32.vlgmr.msra.gmra.mrb[6].mxu0 %vm1613_vm2, %v2252_v13 }
 0xb94   : > { %12189 = vmatpush3.msra.mxu0 %v2422_v14  ;;  %12190 = vmatprep.mubr.msk.f32.mxu0 %vm14216_vm1, %v14215_v8 }
 0xb95   : > { %12198 = vmatprep.subr.mxu0 %v14215_v8 }
 0xb96   : > { %v2406_v16 = vpop.f32.mrb[12].mxu1 }
 0xb97   : > { %v12187_v17 = vpop.f32.mrb[13].mxu1  ;;  %v2410_v18 = vsel %vm1613_vm2, %v2406_v16, -inf }
 0xb98   : > { %2411 = vmax.xlane.f32.xlu1 %v2410_v18 }
 0xba9   : > { %2661 = vrot.lane.b32.xlu1 %v14997_v19, %s16170_s28  ;;  %s16290_s28 = smov 80  }
 0xbad   : > { %2813 = vrot.lane.b32.xlu1 %v14997_v19, %s16172_s13  ;;  %s16291_s13 = smov 120  }
 0xc25   : > { %v2412_v20 = vpop.xlane.xlu1 %2411 }
 0xc26   : > { %v2413_v21 = vsub.f32 %v2406_v16, %v2412_v20 }
 0xc28   : > { %v2414_v22 = vmul.f32 1.442695, %v2413_v21 }
 0xc29   : > { %v2662_v34 = vpop.permute.xlu1 %2661 }
 0xc2a   : > { %13355 = vpow2.f32 %v2414_v22 }
 0xc2d   : > { %v2814_v48 = vpop.permute.xlu1 %2813 }
 0xc34   : > { %v13356_v23 = vpop.eup %13355 }
 0xc35   : > { %v2416_v24 = vsel %vm1613_vm2, %v13356_v23, 0.0 }
 0xc36   : > { %2417 = vadd.xlane.f32.xlu0 %v2416_v24 }
 0xc4c   : > { %2574 = vrot.lane.b32.xlu0 %v14997_v19, %s16176_s6  ;;  %s16293_s6 = smov 112  }
 0xc66   : > { %v2327_v10 = vpop.f32.mrb[6].mxu0 }
 0xc67   : > { %v2331_v26 = vadd.f32 %v2327_v10, %v2090_v63  ;;  %v12182_v28 = vpop.f32.mrb[7].mxu0 }
 0xcc3   : > { %v2418_v29 = vpop.xlane.xlu0 %2417 }
 0xcc4   : > { %13357 = vrcp.f32 %v2418_v29 }
 0xcc7   : > { %v2575_v32 = vpop.permute.xlu0 %2574 }
 0xcce   : > { %v13358_v30 = vpop.eup %13357 }
 0xccf   : > { %v2420_v31 = vmul.f32 %v13358_v30, %v13356_v23 }
 0xcd1   : > { %12191 = vmatmul.mubr.msk.f32.vlgmr.msra.gmra.mrb[8].mxu0 %vm1613_vm2, %v2420_v31 }
 0xcd2   : > { %12199 = vmatpush3.xpose.msk.msra.mxu0 %vm1613_vm2, %v2575_v32  ;;  %12200 = vmatprep.mubr.msk.f32.mxu0 %vm14216_vm1, %v14215_v8 }
 0xcd3   : > { %12208 = vmatprep.subr.mxu0 %v14215_v8 }
 0xcd5   : > { %12201 = vmatmul.mubr.msk.f32.vlgmr.msra.gmra.mrb[10].mxu0 %vm1613_vm2, %v14997_v19 }
 0xcd6   : > { %12209 = vmatpush3.msra.mxu0 %v14927_v27  ;;  %12210 = vmatprep.mubr.msk.f32.mxu0 %vm14216_vm1, %v14215_v8 }
 0xcd7   : > { %12218 = vmatprep.subr.mxu0 %v14215_v8 }
 0xda4   : > { %v2493_v33 = vpop.f32.mrb[8].mxu0 }
 0xda5   : > { %v12192_v35 = vpop.f32.mrb[9].mxu0  ;;  %12196 = vmatmul.mubr.msk.f32.vlgmr.msra.gmra.mrb[14].mxu1 %vm1613_vm2, %v2493_v33 }
 0xda6   : > { %12204 = vmatpush3.msra.mxu1 %v2662_v34  ;;  %12205 = vmatprep.mubr.msk.f32.mxu1 %vm14216_vm1, %v14215_v8 }
 0xda7   : > { %12213 = vmatprep.subr.mxu1 %v14215_v8 }
 0xda8   : > { %v2646_v36 = vpop.f32.mrb[10].mxu0 }
 0xda9   : > { %v12202_v37 = vpop.f32.mrb[11].mxu0  ;;  %v2650_v38 = vsel %vm1613_vm2, %v2646_v36, -inf }
 0xdaa   : > { %2651 = vmax.xlane.f32.xlu0 %v2650_v38 }
 0xdc0   : > { %2900 = vrot.lane.b32.xlu0 %v14997_v19, %s16174_s2  ;;  %s16292_s2 = smov 48  }
 0xdc4   : > { %3052 = vrot.lane.b32.xlu0 %v14997_v19, %s16290_s28 }
 0xe37   : > { %v2652_v39 = vpop.xlane.xlu0 %2651 }
 0xe38   : > { %v2653_v40 = vsub.f32 %v2646_v36, %v2652_v39 }
 0xe3a   : > { %v2654_v41 = vmul.f32 1.442695, %v2653_v40 }
 0xe3b   : > { %v2901_v54 = vpop.permute.xlu0 %2900 }
 0xe3c   : > { %13359 = vpow2.f32 %v2654_v41 }
 0xe3f   : > { %v3053_v11 = vpop.permute.xlu0 %3052 }
 0xe46   : > { %v13360_v42 = vpop.eup %13359 }
 0xe47   : > { %v2656_v43 = vsel %vm1613_vm2, %v13360_v42, 0.0 }
 0xe48   : > { %2657 = vadd.xlane.f32.xlu1 %v2656_v43 }
 0xe59   : > { %2811 = vrot.lane.b32.xlu1 %v14997_v19, %s16291_s13 }
 0xe78   : > { %v2568_v44 = vpop.f32.mrb[14].mxu1 }
 0xe79   : > { %v15034_v45 = vadd.f32 %v2568_v44, %v2331_v26  ;;  %v12197_v46 = vpop.f32.mrb[15].mxu1 }
 0xed5   : > { %v2658_v49 = vpop.xlane.xlu1 %2657 }
 0xed6   : > { %13361 = vrcp.f32 %v2658_v49 }
 0xed9   : > { %v2812_v52 = vpop.permute.xlu1 %2811 }
 0xee0   : > { %v13362_v50 = vpop.eup %13361 }
 0xee1   : > { %v2660_v51 = vmul.f32 %v13362_v50, %v13360_v42 }
 0xee3   : > { %12206 = vmatmul.mubr.msk.f32.vlgmr.msra.gmra.mrb[16].mxu1 %vm1613_vm2, %v2660_v51  ;;  %v3528_v51 = vadd.f32 %v15034_v45, %v14874_v5 }
 0xee4   : > { %12214 = vmatpush3.xpose.msk.msra.mxu1 %vm1613_vm2, %v2814_v48  ;;  %12215 = vmatprep.mubr.msk.f32.mxu1 %vm14216_vm1, %v14215_v8 }
 0xee5   : > { %12223 = vmatprep.subr.mxu1 %v14215_v8 }
 0xee7   : > { %12216 = vmatmul.mubr.msk.f32.vlgmr.msra.gmra.mrb[18].mxu1 %vm1613_vm2, %v2812_v52 }
 0xee8   : > { %12224 = vmatpush3.msra.mxu1 %v14955_v47  ;;  %12225 = vmatprep.mubr.msk.f32.mxu1 %vm14216_vm1, %v14215_v8 }
 0xee9   : > { %12233 = vmatprep.subr.mxu1 %v14215_v8 }
 0xfb6   : > { %v2733_v53 = vpop.f32.mrb[16].mxu1 }
 0xfb7   : > { %v12207_v55 = vpop.f32.mrb[17].mxu1  ;;  %12211 = vmatmul.mubr.msk.f32.vlgmr.msra.gmra.mrb[12].mxu0 %vm1613_vm2, %v2733_v53 }
 0xfb8   : > { %12219 = vmatpush3.msra.mxu0 %v2901_v54  ;;  %12220 = vmatprep.mubr.msk.f32.mxu0 %vm14216_vm1, %v14215_v8  ;;  %v3530_v54 = vsel %vm1520_vm0, %v3528_v51, 0.0 }
 0xfb9   : > { %12228 = vmatprep.subr.mxu0 %v14215_v8 }
 0xfba   : > { %v2885_v56 = vpop.f32.mrb[18].mxu1 }
 0xfbb   : > { %v12217_v57 = vpop.f32.mrb[19].mxu1  ;;  %v2889_v58 = vsel %vm1613_vm2, %v2885_v56, -inf }
 0xfbc   : > { %2890 = vmax.xlane.f32.xlu1 %v2889_v58 }
 0xfcd   : > { %3139 = vrot.lane.b32.xlu1 %v14997_v19, %s16292_s2 }
 0xfd1   : > { %3291 = vrot.lane.b32.xlu1 %v14997_v19, %s16182_s12  ;;  %s16296_s12 = smov 96  }
0x1049   : > { %v2891_v61 = vpop.xlane.xlu1 %2890 }
0x104a   : > { %v2892_v62 = vsub.f32 %v2885_v56, %v2891_v61 }
0x104c   : > { %v2893_v63 = vmul.f32 1.442695, %v2892_v62 }
0x104d   : > { %v3140_v17 = vpop.permute.xlu1 %3139 }
0x104e   : > { %13363 = vpow2.f32 %v2893_v63 }
0x1051   : > { %v3292_v33 = vpop.permute.xlu1 %3291 }
0x1058   : > { %v13364_v0 = vpop.eup %13363 }
0x1059   : > { %v2895_v1 = vsel %vm1613_vm2, %v13364_v0, 0.0 }
0x105a   : > { %2896 = vadd.xlane.f32.xlu0 %v2895_v1 }
0x1070   : > { %3050 = vrot.lane.b32.xlu0 %v14997_v19, %s16293_s6 }
0x108a   : > { %v2806_v2 = vpop.f32.mrb[12].mxu0 }
0x108b   : > { %v12212_v4 = vpop.f32.mrb[13].mxu0  ;;  %v2810_v29 = vadd.f32 %v14979_v60, %v2806_v2 }
0x10e7   : > { %v2897_v12 = vpop.xlane.xlu0 %2896 }
0x10e8   : > { %13365 = vrcp.f32 %v2897_v12 }
0x10eb   : > { %v3051_v15 = vpop.permute.xlu0 %3050 }
0x10f2   : > { %v13366_v13 = vpop.eup %13365 }
0x10f3   : > { %v2899_v14 = vmul.f32 %v13366_v13, %v13364_v0 }
0x10f5   : > { %12221 = vmatmul.mubr.msk.f32.vlgmr.msra.gmra.mrb[14].mxu0 %vm1613_vm2, %v2899_v14 }
0x10f6   : > { %12229 = vmatpush3.xpose.msk.msra.mxu0 %vm1613_vm2, %v3053_v11  ;;  %12230 = vmatprep.mubr.msk.f32.mxu0 %vm14216_vm1, %v14215_v8 }
0x10f7   : > { %12238 = vmatprep.subr.mxu0 %v14215_v8 }
0x10f9   : > { %12231 = vmatmul.mubr.msk.f32.vlgmr.msra.gmra.mrb[16].mxu0 %vm1613_vm2, %v3051_v15 }
0x10fa   : > { %12239 = vmatpush3.msra.mxu0 %v14974_v59  ;;  %12240 = vmatprep.mubr.msk.f32.mxu0 %vm14216_vm1, %v14215_v8 }
0x10fb   : > { %12248 = vmatprep.subr.mxu0 %v14215_v8 }
0x11c8   : > { %v2972_v16 = vpop.f32.mrb[14].mxu0 }
0x11c9   : > { %v12222_v18 = vpop.f32.mrb[15].mxu0  ;;  %12226 = vmatmul.mubr.msk.f32.vlgmr.msra.gmra.mrb[20].mxu1 %vm1613_vm2, %v2972_v16 }
0x11ca   : > { %12234 = vmatpush3.msra.mxu1 %v3140_v17  ;;  %12235 = vmatprep.mubr.msk.f32.mxu1 %vm14216_vm1, %v14215_v8 }
0x11cb   : > { %12243 = vmatprep.subr.mxu1 %v14215_v8 }
0x11cc   : > { %v3124_v20 = vpop.f32.mrb[16].mxu0 }
0x11cd   : > { %v12232_v21 = vpop.f32.mrb[17].mxu0  ;;  %v3128_v22 = vsel %vm1613_vm2, %v3124_v20, -inf }
0x11ce   : > { %3129 = vmax.xlane.f32.xlu0 %v3128_v22  ;;  %v15102_v22 = vld [vmem:[#allocation7] ss:$0 sm:$0xff] }
0x125b   : > { %v3130_v23 = vpop.xlane.xlu0 %3129 }
0x125c   : > { %v3131_v24 = vsub.f32 %v3124_v20, %v3130_v23 }
0x125e   : > { %v3132_v10 = vmul.f32 1.442695, %v3131_v24  ;;  %v15104_v24 = vld [vmem:[#allocation8] ss:$0 sm:$0xff] }
0x1260   : > { %13367 = vpow2.f32 %v3132_v10 }
0x126a   : > { %v13368_v26 = vpop.eup %13367 }
0x126b   : > { %v3134_v28 = vsel %vm1613_vm2, %v13368_v26, 0.0 }
0x126c   : > { %3135 = vadd.xlane.f32.xlu1 %v3134_v28 }
0x127d   : > { %3289 = vrot.lane.b32.xlu1 %v14997_v19, %s16180_s9  ;;  %s16295_s9 = sld [smem:[#allocation54_spill]] }
0x129c   : > { %v3045_v30 = vpop.f32.mrb[20].mxu1 }
0x129d   : > { %v3049_v31 = vadd.f32 %v3045_v30, %v2810_v29  ;;  %v12227_v32 = vpop.f32.mrb[21].mxu1 }
0x12f9   : > { %v3136_v34 = vpop.xlane.xlu1 %3135 }
0x12fa   : > { %13369 = vrcp.f32 %v3136_v34  ;;  %v3669_v34 = vld [vmem:[%s16295_s9] sm:$0xff] }
0x12fd   : > { %v3290_v37 = vpop.permute.xlu1 %3289 }
0x1304   : > { %v13370_v35 = vpop.eup %13369 }
0x1305   : > { %v3138_v36 = vmul.f32 %v13370_v35, %v13368_v26  ;;  %v3670_v35 = vld [vmem:[%s16295_s9 + $0x8] sm:$0xff] }
0x1307   : > { %12236 = vmatmul.mubr.msk.f32.vlgmr.msra.gmra.mrb[22].mxu1 %vm1613_vm2, %v3138_v36  ;;  %v3671_v36 = vld [vmem:[%s16295_s9 + $0x10] sm:$0xff] }
0x1308   : > { %12244 = vmatpush3.xpose.msk.msra.mxu1 %vm1613_vm2, %v3292_v33  ;;  %12245 = vmatprep.mubr.msk.f32.mxu1 %vm14216_vm1, %v14215_v8 }
0x1309   : > { %12253 = vmatprep.subr.mxu1 %v14215_v8 }
0x130b   : > { %12246 = vmatmul.mubr.msk.f32.vlgmr.msra.gmra.mrb[24].mxu1 %vm1613_vm2, %v3290_v37  ;;  %v15128_v37 = vpack.c.bf16 %v3670_v35, %v3669_v34  ;;  %v15176_v35 = vld [vmem:[#allocation14] ss:$0 sm:$0xff] }
0x130c   : > { %12254 = vmatpush3.msra.mxu1 %v15007_v25  ;;  %12255 = vmatprep.mubr.msk.f32.mxu1 %vm14216_vm1, %v14215_v8 }
0x130d   : > { %12903 = vmatprep.subr.bf16.mxu1 %v15128_v37 }
0x13da   : > { %v3211_v38 = vpop.f32.mrb[22].mxu1 }
0x13db   : > { %v12237_v39 = vpop.f32.mrb[23].mxu1  ;;  %12241 = vmatmul.mubr.msk.f32.vlgmr.msra.gmra.mrb[18].mxu0 %vm1613_vm2, %v3211_v38  ;;  %v3672_v38 = vld [vmem:[%s16295_s9 + $0x18] sm:$0xff] }
0x13dc   : > { %12250 = vmatprep.mubr.msk.f32.mxu0 %vm14216_vm1, %v14215_v8  ;;  %v15131_v39 = vpack.c.bf16 %v3672_v38, %v3671_v36 }
0x13de   : > { %v3363_v40 = vpop.f32.mrb[24].mxu1 }
0x13df   : > { %v12247_v41 = vpop.f32.mrb[25].mxu1  ;;  %v3367_v42 = vsel %vm1613_vm2, %v3363_v40, -inf }
0x13e0   : > { %3368 = vmax.xlane.f32.xlu1 %v3367_v42  ;;  %v3674_v41 = vld [vmem:[%s16295_s9 + $0x28] sm:$0xff] }
0x146d   : > { %v3369_v43 = vpop.xlane.xlu1 %3368 }
0x146e   : > { %v3370_v44 = vsub.f32 %v3363_v40, %v3369_v43  ;;  %v3673_v40 = vld [vmem:[%s16295_s9 + $0x20] sm:$0xff] }
0x146f   : > { %v15138_v42 = vpack.c.bf16 %v3674_v41, %v3673_v40 }
0x1470   : > { %v3371_v46 = vmul.f32 1.442695, %v3370_v44 }
0x1472   : > { %13371 = vpow2.f32 %v3371_v46 }
0x147c   : > { %v13372_v48 = vpop.eup %13371 }
0x147d   : > { %v3373_v49 = vsel %vm1613_vm2, %v13372_v48, 0.0 }
0x147e   : > { %3374 = vadd.xlane.f32.xlu0 %v3373_v49 }
0x1494   : > { %3378 = vrot.lane.b32.xlu0 %v14997_v19, %s16178_s5  ;;  %s16294_s5 = sld [smem:[#allocation52_spill]] }
0x149a   : > { %v3575_v28 = vld [vmem:[%s16294_s5] sm:$0xff]  ;;  %v3576_v29 = vld [vmem:[%s16294_s5 + $0x8] sm:$0xff]  ;;  %v3578_v32 = vld [vmem:[%s16294_s5 + $0x18] sm:$0xff] }
0x149b   : > { %v15114_v30 = vpack.c.bf16 %v3576_v29, %v3575_v28 }
0x14ae   : > { %v3284_v50 = vpop.f32.mrb[18].mxu0 }
0x14af   : > { %v3288_v52 = vadd.f32 %v3284_v50, %v3049_v31  ;;  %v12242_v53 = vpop.f32.mrb[19].mxu0  ;;  %v3577_v31 = vld [vmem:[%s16294_s5 + $0x10] sm:$0xff]  ;;  %s16298_s5 = smov 64  }
0x14b0   : > { %v15120_v33 = vpack.c.bf16 %v3578_v32, %v3577_v31  ;;  %v3676_v53 = vld [vmem:[%s16295_s9 + $0x38] sm:$0xff]  ;;  %v15174_v32 = vld [vmem:[#allocation13] ss:$0 sm:$0xff] }
0x14b3   : > { %3531 = vadd.xlane.f32.xlu0 %v3530_v54 }
0x150b   : > { %v3375_v55 = vpop.xlane.xlu0 %3374 }
0x150c   : > { %13373 = vrcp.f32 %v3375_v55  ;;  %v15157_v55 = vld [vmem:[#allocation10] ss:$0 sm:$0xff] }
0x150f   : > { %v3379_v56 = vpop.permute.xlu0 %3378 }
0x1510   : > { %12249 = vmatpush3.msra.mxu0 %v3379_v56 }
0x1511   : > { %12895 = vmatprep.subr.bf16.mxu0 %v15114_v30 }
0x1516   : > { %v13374_v57 = vpop.eup %13373 }
0x1517   : > { %v3377_v58 = vmul.f32 %v13374_v57, %v13372_v48 }
0x1519   : > { %12251 = vmatmul.mubr.msk.f32.vlgmr.msra.gmra.mrb[20].mxu0 %vm1613_vm2, %v3377_v58 }
0x151a   : > { %12897 = vmatpush3.bf16.msra.mxu0 %v15114_v30 }
0x151b   : > { %12899 = vmatprep.subr.bf16.mxu0 %v15120_v33 }
0x151e   : > { %12901 = vmatpush3.bf16.msra.mxu0 %v15120_v33 }
0x151f   : > { %12919 = vmatprep.subr.bf16.mxu0 %v14869_v3 }
0x1540   : > { %v3532_v19 = vpop.xlane.xlu0 %3531 }
0x1541   : > { %v3537_v63 = vmul.f32 0.03125, %v3532_v19 }
0x1543   : > { %v3539_v45 = vsub.f32 %v3528_v51, %v3537_v63 }
0x1545   : > { %v3541_v11 = vmul.f32 %v3539_v45, %v3539_v45 }
0x1547   : > { %v3543_v12 = vsel %vm1520_vm0, %v3541_v11, 0.0 }
0x15ec   : > { %v3450_v61 = vpop.f32.mrb[20].mxu0 }
0x15ed   : > { %v12252_v62 = vpop.f32.mrb[21].mxu0  ;;  %12256 = vmatmul.mubr.msk.f32.vlgmr.msra.gmra.mrb[26].mxu1 %vm1613_vm2, %v3450_v61 }
0x15ee   : > { %12905 = vmatpush3.bf16.msra.mxu1 %v15128_v37  ;;  %v15165_v62 = vld [vmem:[#allocation11] ss:$0 sm:$0xff] }
0x15ef   : > { %12907 = vmatprep.subr.bf16.mxu1 %v15131_v39 }
0x15f2   : > { %12909 = vmatpush3.bf16.msra.mxu1 %v15131_v39 }
0x15f3   : > { %12911 = vmatprep.subr.bf16.mxu1 %v15138_v42 }
0x15f6   : > { %12913 = vmatpush3.bf16.msra.mxu1 %v15138_v42 }
0x16c0   : > { %v3523_v5 = vpop.f32.mrb[26].mxu1 }
0x16c1   : > { %v3527_v0 = vadd.f32 %v3523_v5, %v3288_v52  ;;  %v12257_v1 = vpop.f32.mrb[27].mxu1  ;;  %v3675_v52 = vld [vmem:[%s16295_s9 + $0x30] sm:$0xff]  ;;  %s16299_s9 = smov 56  }
0x16c2   : > { %v15152_v54 = vpack.c.bf16 %v3676_v53, %v3675_v52 }
0x16c3   : > { %v3529_v2 = vadd.f32 %v3527_v0, %v14886_v7 }
0x16c4   : > { %12915 = vmatprep.subr.bf16.mxu1 %v15152_v54 }
0x16c5   : > { %v3533_v4 = vsel %vm1520_vm0, %v3529_v2, 0.0  ;;  %12917 = vmatpush3.bf16.msra.mxu1 %v15152_v54 }
0x16c6   : > { %3534 = vadd.xlane.f32.xlu1 %v3533_v4  ;;  %12304 = vmatprep.subr.mxu1 %v14215_v8 }
0x16ca   : > { %3544 = vadd.xlane.f32.xlu1 %v3543_v12 }
0x1753   : > { %v3535_v13 = vpop.xlane.xlu1 %3534 }
0x1754   : > { %v3538_v14 = vmul.f32 0.03125, %v3535_v13 }
0x1756   : > { %v3540_v15 = vsub.f32 %v3529_v2, %v3538_v14 }
0x1757   : > { %v3545_v16 = vpop.xlane.xlu1 %3544 }
0x1758   : > { %v3549_v17 = vmul.f32 0.03125, %v3545_v16  ;;  %v3542_v18 = vmul.f32 %v3540_v15, %v3540_v15 }
0x175a   : > { %v3551_v20 = vadd.f32 1e-05, %v3549_v17  ;;  %v3546_v21 = vsel %vm1520_vm0, %v3542_v18, 0.0 }
0x175b   : > { %3547 = vadd.xlane.f32.xlu1 %v3546_v21 }
0x175c   : > { %13375 = vrsqrt.f32 %v3551_v20 }
0x1766   : > { %v13376_v7 = vpop.eup %13375 }
0x1767   : > { %v3555_v23 = vmul.f32 %v13376_v7, %v3539_v45 }
0x1769   : > { %v3564_v10 = vmul.f32 %v15102_v22, %v3555_v23 }
0x176b   : > { %v15108_v26 = vadd.f32 %v15104_v24, %v3564_v10 }
0x176d   : > { %12266 = vmatprep.mubr.msk.f32.mxu0 %vm1520_vm0, %v15108_v26 }
0x17e8   : > { %v3548_v43 = vpop.xlane.xlu1 %3547 }
0x17e9   : > { %v3550_v44 = vmul.f32 0.03125, %v3548_v43 }
0x17eb   : > { %v3552_v46 = vadd.f32 1e-05, %v3550_v44 }
0x17ed   : > { %13377 = vrsqrt.f32 %v3552_v46 }
0x17f7   : > { %v13378_v48 = vpop.eup %13377 }
0x17f8   : > { %v3556_v49 = vmul.f32 %v13378_v48, %v3540_v15 }
0x17fa   : > { %v3565_v50 = vmul.f32 %v15102_v22, %v3556_v49 }
0x17fc   : > { %v3574_v51 = vadd.f32 %v15104_v24, %v3565_v50 }
0x17fe   : > { %12267 = vmatmul.mubr.msk.f32.vlgmr.msra.gmra.mrb[22].mxu0 %vm1520_vm0, %v3574_v51 }
0x17ff   : > { %12921 = vmatpush3.bf16.msra.mxu0 %v14869_v3 }
0x1800   : > { %12923 = vmatprep.subr.bf16.mxu0 %v14876_v6 }
0x1803   : > { %12925 = vmatpush3.bf16.msra.mxu0 %v14876_v6 }
0x1804   : > { %12299 = vmatprep.subr.mxu0 %v14215_v8 }
0x18d1   : > { %v12268_v56 = vpop.f32.mrb[22].mxu0 }
0x18d2   : > { %v3664_v3 = vadd.f32 %v12268_v56, %v15157_v55  ;;  %v3658_v57 = vpop.f32.mrb[23].mxu0 }
0x18d3   : > { %v3659_v6 = vadd.f32 %v15157_v55, %v3658_v57 }
0x18d4   : > { %v3668_v61 = vmax.f32 %v3664_v3, 0.0 }
0x18d5   : > { %v3667_v58 = vmax.f32 %v3659_v6, 0.0 }
0x18d7   : > { %12285 = vmatprep.mubr.msk.f32.mxu1 %vm3684_vm3, %v3667_v58 }
0x18d8   : > { %12286 = vmatmul.mubr.msk.f32.vlgmr.msra.gmra.mrb[28].mxu1 %vm3684_vm3, %v3668_v61 }
0x18d9   : > { %12306 = vmatprep.mubr.msk.f32.mxu1 %vm14216_vm1, %v14215_v8 }
0x19ab   : > { %v12287_v19 = vpop.f32.mrb[28].mxu1 }
0x19ac   : > { %v3757_v63 = vpop.f32.mrb[29].mxu1  ;;  %v3763_v5 = vadd.f32 %v12287_v19, %v15165_v62 }
0x19ad   : > { %v3758_v45 = vadd.f32 %v15165_v62, %v3757_v63 }
0x19ae   : > { %v3767_v2 = vadd.f32 %v3763_v5, %v3574_v51 }
0x19af   : > { %v3766_v0 = vadd.f32 %v3758_v45, %v15108_v26 }
0x19b0   : > { %v3771_v4 = vsel %vm1520_vm0, %v3767_v2, 0.0 }
0x19b1   : > { %v3768_v1 = vsel %vm1520_vm0, %v3766_v0, 0.0 }
0x19b2   : > { %3769 = vadd.xlane.f32.xlu1 %v3768_v1 }
0x19b6   : > { %3772 = vadd.xlane.f32.xlu1 %v3771_v4 }
0x1a3f   : > { %v3770_v11 = vpop.xlane.xlu1 %3769 }
0x1a40   : > { %v3774_v12 = vmul.f32 0.03125, %v3770_v11 }
0x1a42   : > { %v3776_v13 = vsub.f32 %v3766_v0, %v3774_v12 }
0x1a43   : > { %v3773_v14 = vpop.xlane.xlu1 %3772 }
0x1a44   : > { %v3775_v15 = vmul.f32 0.03125, %v3773_v14  ;;  %v3778_v16 = vmul.f32 %v3776_v13, %v3776_v13 }
0x1a46   : > { %v3777_v17 = vsub.f32 %v3767_v2, %v3775_v15  ;;  %v3780_v18 = vsel %vm1520_vm0, %v3778_v16, 0.0 }
0x1a47   : > { %3781 = vadd.xlane.f32.xlu1 %v3780_v18 }
0x1a48   : > { %v3779_v20 = vmul.f32 %v3777_v17, %v3777_v17 }
0x1a4a   : > { %v3783_v21 = vsel %vm1520_vm0, %v3779_v20, 0.0 }
0x1a4b   : > { %3784 = vadd.xlane.f32.xlu0 %v3783_v21 }
0x1ad4   : > { %v3782_v7 = vpop.xlane.xlu1 %3781 }
0x1ad5   : > { %v3786_v23 = vmul.f32 0.03125, %v3782_v7 }
0x1ad7   : > { %v3788_v10 = vadd.f32 1e-05, %v3786_v23 }
0x1ad8   : > { %v3785_v26 = vpop.xlane.xlu0 %3784 }
0x1ad9   : > { %13379 = vrsqrt.f32 %v3788_v10  ;;  %v3787_v28 = vmul.f32 0.03125, %v3785_v26 }
0x1adb   : > { %v3789_v29 = vadd.f32 1e-05, %v3787_v28 }
0x1add   : > { %13381 = vrsqrt.f32 %v3789_v29 }
0x1ae3   : > { %v13380_v31 = vpop.eup %13379 }
0x1ae4   : > { %v3792_v34 = vmul.f32 %v13380_v31, %v3776_v13 }
0x1ae6   : > { %v3801_v36 = vmul.f32 %v15174_v32, %v3792_v34 }
0x1ae7   : > { %v13382_v38 = vpop.eup %13381 }
0x1ae8   : > { %v3793_v40 = vmul.f32 %v13382_v38, %v3777_v17  ;;  %v15180_v41 = vadd.f32 %v15176_v35, %v3801_v36 }
0x1aea   : > { %12296 = vmatprep.mubr.msk.f32.mxu0 %vm1520_vm0, %v15180_v41  ;;  %v3802_v43 = vmul.f32 %v15174_v32, %v3793_v40 }
0x1aec   : > { %v15186_v44 = vadd.f32 %v15176_v35, %v3802_v43 }
0x1aee   : > { %12297 = vmatmul.mubr.msk.f32.vlgmr.msra.gmra.mrb[24].mxu0 %vm1520_vm0, %v15186_v44 }
0x1aef   : > { %12301 = vmatprep.mubr.msk.f32.mxu0 %vm14216_vm1, %v14215_v8 }
0x1bc1   : > { %v15192_v46 = vpop.f32.mrb[24].mxu0 }
0x1bc2   : > { %v3884_v48 = vpop.f32.mrb[25].mxu0 }
0x1bc3   : > { %v15195_v49 = vadd.f32 %v14897_v9, %v3884_v48 }
0x1bc5   : > { %3894 = vrot.lane.b32.xlu1 %v15195_v49, %s16296_s12 }
0x1bc9   : > { %4133 = vrot.lane.b32.xlu1 %v15195_v49, %s16297_s1 }
0x1bcd   : > { %4131 = vrot.lane.b32.xlu1 %v15195_v49, %s16291_s13 }
0x1c37   : > { %v3895_v50 = vpop.permute.xlu1 %3894 }
0x1c38   : > { %12300 = vmatpush3.xpose.msk.msra.mxu0 %vm1613_vm2, %v3895_v50 }
0x1c39   : > { %12309 = vmatprep.subr.mxu0 %v14215_v8 }
0x1c3b   : > { %12302 = vmatmul.mubr.msk.f32.vlgmr.msra.gmra.mrb[26].mxu0 %vm1613_vm2, %v15195_v49  ;;  %v4134_v19 = vpop.permute.xlu1 %4133 }
0x1c3c   : > { %12310 = vmatpush3.msra.mxu0 %v14927_v27  ;;  %12311 = vmatprep.mubr.msk.f32.mxu0 %vm14216_vm1, %v14215_v8 }
0x1c3d   : > { %12319 = vmatprep.subr.mxu0 %v14215_v8 }
0x1c3f   : > { %v4132_v5 = vpop.permute.xlu1 %4131 }
0x1d0e   : > { %v3966_v9 = vpop.f32.mrb[26].mxu0 }
0x1d0f   : > { %v12303_v51 = vpop.f32.mrb[27].mxu0  ;;  %v3970_v52 = vsel %vm1613_vm2, %v3966_v9, -inf }
0x1d10   : > { %3971 = vmax.xlane.f32.xlu0 %v3970_v52 }
0x1d9d   : > { %v3972_v53 = vpop.xlane.xlu0 %3971 }
0x1d9e   : > { %v3973_v56 = vsub.f32 %v3966_v9, %v3972_v53 }
0x1da0   : > { %v3974_v3 = vmul.f32 1.442695, %v3973_v56 }
0x1da2   : > { %13383 = vpow2.f32 %v3974_v3 }
0x1dac   : > { %v13384_v57 = vpop.eup %13383 }
0x1dad   : > { %v3976_v6 = vsel %vm1613_vm2, %v13384_v57, 0.0 }
0x1dae   : > { %3977 = vadd.xlane.f32.xlu0 %v3976_v6 }
0x1dc4   : > { %3981 = vrot.lane.b32.xlu0 %v15195_v49, %s16298_s5 }
0x1e3b   : > { %v3978_v27 = vpop.xlane.xlu0 %3977 }
0x1e3c   : > { %13385 = vrcp.f32 %v3978_v27 }
0x1e3f   : > { %v3982_v58 = vpop.permute.xlu0 %3981 }
0x1e40   : > { %12305 = vmatpush3.msra.mxu1 %v3982_v58 }
0x1e41   : > { %12314 = vmatprep.subr.mxu1 %v14215_v8 }
0x1e46   : > { %v13386_v61 = vpop.eup %13385 }
0x1e47   : > { %v3980_v63 = vmul.f32 %v13386_v61, %v13384_v57 }
0x1e49   : > { %12307 = vmatmul.mubr.msk.f32.vlgmr.msra.gmra.mrb[30].mxu1 %vm1613_vm2, %v3980_v63 }
0x1e4a   : > { %12315 = vmatpush3.xpose.msk.msra.mxu1 %vm1613_vm2, %v4134_v19  ;;  %12316 = vmatprep.mubr.msk.f32.mxu1 %vm14216_vm1, %v14215_v8 }
0x1e4b   : > { %12324 = vmatprep.subr.mxu1 %v14215_v8 }
0x1e4d   : > { %12317 = vmatmul.mubr.msk.f32.vlgmr.msra.gmra.mrb[32].mxu1 %vm1613_vm2, %v4132_v5 }
0x1e4e   : > { %12325 = vmatpush3.msra.mxu1 %v14955_v47  ;;  %12326 = vmatprep.mubr.msk.f32.mxu1 %vm14216_vm1, %v14215_v8 }
0x1e4f   : > { %12334 = vmatprep.subr.mxu1 %v14215_v8 }
0x1f1c   : > { %v4053_v45 = vpop.f32.mrb[30].mxu1 }
0x1f1d   : > { %v12308_v0 = vpop.f32.mrb[31].mxu1  ;;  %12312 = vmatmul.mubr.msk.f32.vlgmr.msra.gmra.mrb[28].mxu0 %vm1613_vm2, %v4053_v45 }
0x1f1e   : > { %12321 = vmatprep.mubr.msk.f32.mxu0 %vm14216_vm1, %v14215_v8 }
0x1f20   : > { %v4205_v1 = vpop.f32.mrb[32].mxu1 }
0x1f21   : > { %v12318_v2 = vpop.f32.mrb[33].mxu1  ;;  %v4209_v4 = vsel %vm1613_vm2, %v4205_v1, -inf }
0x1f22   : > { %4210 = vmax.xlane.f32.xlu1 %v4209_v4 }
0x1f33   : > { %4220 = vrot.lane.b32.xlu1 %v15195_v49, %s16299_s9 }
0x1f37   : > { %4370 = vrot.lane.b32.xlu1 %v15195_v49, %s16293_s6 }
0x1faf   : > { %v4211_v47 = vpop.xlane.xlu1 %4210 }
0x1fb0   : > { %v4212_v11 = vsub.f32 %v4205_v1, %v4211_v47  ;;  %v13503_v1 = vld [vmem:[%s16287_s8] ss:$0 sm:$0xff]  ;;  %s16303_s8 = sld [smem:[#allocation57_spill]] }
0x1fb1   : > { %v15281_v2 = vadd.f32 %v13503_v1, %v15192_v46  ;;  %v13504_v46 = vld [vmem:[%s16288_s14] sm:$0xff] }
0x1fb2   : > { %v4213_v12 = vmul.f32 1.442695, %v4212_v11 }
0x1fb3   : > { %v4221_v13 = vpop.permute.xlu1 %4220 }
0x1fb4   : > { %13387 = vpow2.f32 %v4213_v12  ;;  %12320 = vmatpush3.msra.mxu0 %v4221_v13 }
0x1fb5   : > { %12329 = vmatprep.subr.mxu0 %v14215_v8 }
0x1fb7   : > { %v4371_v23 = vpop.permute.xlu1 %4370 }
0x1fbe   : > { %v13388_v14 = vpop.eup %13387 }
0x1fbf   : > { %v4215_v15 = vsel %vm1613_vm2, %v13388_v14, 0.0 }
0x1fc0   : > { %4216 = vadd.xlane.f32.xlu0 %v4215_v15 }
0x1fd6   : > { %4372 = vrot.lane.b32.xlu0 %v15195_v49, %s16290_s28 }
0x1ff0   : > { %v4126_v16 = vpop.f32.mrb[28].mxu0 }
0x1ff1   : > { %v12313_v17 = vpop.f32.mrb[29].mxu0  ;;  %v4130_v43 = vadd.f32 %v14979_v60, %v4126_v16 }
0x204d   : > { %v4217_v18 = vpop.xlane.xlu0 %4216 }
0x204e   : > { %13389 = vrcp.f32 %v4217_v18 }
0x2051   : > { %v4373_v7 = vpop.permute.xlu0 %4372 }
0x2058   : > { %v13390_v20 = vpop.eup %13389 }
0x2059   : > { %v4219_v21 = vmul.f32 %v13390_v20, %v13388_v14 }
0x205b   : > { %12322 = vmatmul.mubr.msk.f32.vlgmr.msra.gmra.mrb[30].mxu0 %vm1613_vm2, %v4219_v21 }
0x205c   : > { %12330 = vmatpush3.xpose.msk.msra.mxu0 %vm1613_vm2, %v4373_v7  ;;  %12331 = vmatprep.mubr.msk.f32.mxu0 %vm14216_vm1, %v14215_v8 }
0x205d   : > { %12339 = vmatprep.subr.mxu0 %v14215_v8 }
0x205f   : > { %12332 = vmatmul.mubr.msk.f32.vlgmr.msra.gmra.mrb[32].mxu0 %vm1613_vm2, %v4371_v23 }
0x2060   : > { %12340 = vmatpush3.msra.mxu0 %v14974_v59  ;;  %12341 = vmatprep.mubr.msk.f32.mxu0 %vm14216_vm1, %v14215_v8 }
0x2061   : > { %12349 = vmatprep.subr.mxu0 %v14215_v8 }
0x212e   : > { %v4292_v10 = vpop.f32.mrb[30].mxu0 }
0x212f   : > { %v12323_v26 = vpop.f32.mrb[31].mxu0  ;;  %12327 = vmatmul.mubr.msk.f32.vlgmr.msra.gmra.mrb[34].mxu1 %vm1613_vm2, %v4292_v10 }
0x2130   : > { %12336 = vmatprep.mubr.msk.f32.mxu1 %vm14216_vm1, %v14215_v8 }
0x2132   : > { %v4444_v28 = vpop.f32.mrb[32].mxu0 }
0x2133   : > { %v12333_v29 = vpop.f32.mrb[33].mxu0  ;;  %v4448_v31 = vsel %vm1613_vm2, %v4444_v28, -inf }
0x2134   : > { %4449 = vmax.xlane.f32.xlu1 %v4448_v31 }
0x2145   : > { %4611 = vrot.lane.b32.xlu1 %v15195_v49, %s16300_s19 }
0x2149   : > { %4609 = vrot.lane.b32.xlu1 %v15195_v49, %s16301_s20 }
0x21c1   : > { %v4450_v59 = vpop.xlane.xlu1 %4449 }
0x21c2   : > { %v4451_v34 = vsub.f32 %v4444_v28, %v4450_v59 }
0x21c4   : > { %v4452_v36 = vmul.f32 1.442695, %v4451_v34 }
0x21c5   : > { %v4612_v56 = vpop.permute.xlu1 %4611 }
0x21c6   : > { %13391 = vpow2.f32 %v4452_v36 }
0x21c9   : > { %v4610_v60 = vpop.permute.xlu1 %4609 }
0x21d0   : > { %v13392_v38 = vpop.eup %13391 }
0x21d1   : > { %v4454_v40 = vsel %vm1613_vm2, %v13392_v38, 0.0 }
0x21d2   : > { %4455 = vadd.xlane.f32.xlu0 %v4454_v40 }
0x21e8   : > { %4459 = vrot.lane.b32.xlu0 %v15195_v49, %s16292_s2 }
0x2202   : > { %v4365_v48 = vpop.f32.mrb[34].mxu1 }
0x2203   : > { %v4369_v50 = vadd.f32 %v4365_v48, %v4130_v43  ;;  %v12328_v9 = vpop.f32.mrb[35].mxu1  ;;  %v13505_v48 = vld [vmem:[%s16288_s14 + $0x8] sm:$0xff] }
0x225f   : > { %v4456_v51 = vpop.xlane.xlu0 %4455 }
0x2260   : > { %13393 = vrcp.f32 %v4456_v51 }
0x2263   : > { %v4460_v52 = vpop.permute.xlu0 %4459 }
0x2264   : > { %12335 = vmatpush3.msra.mxu1 %v4460_v52 }
0x2265   : > { %12344 = vmatprep.subr.mxu1 %v14215_v8 }
0x226a   : > { %v13394_v53 = vpop.eup %13393 }
0x226b   : > { %v4458_v3 = vmul.f32 %v13394_v53, %v13392_v38 }
0x226d   : > { %12337 = vmatmul.mubr.msk.f32.vlgmr.msra.gmra.mrb[36].mxu1 %vm1613_vm2, %v4458_v3 }
0x226e   : > { %12345 = vmatpush3.xpose.msk.msra.mxu1 %vm1613_vm2, %v4612_v56  ;;  %12346 = vmatprep.mubr.msk.f32.mxu1 %vm14216_vm1, %v14215_v8 }
0x226f   : > { %12354 = vmatprep.subr.mxu1 %v14215_v8 }
0x2271   : > { %12347 = vmatmul.mubr.msk.f32.vlgmr.msra.gmra.mrb[38].mxu1 %vm1613_vm2, %v4610_v60 }
0x2272   : > { %12355 = vmatpush3.msra.mxu1 %v15007_v25  ;;  %12356 = vmatprep.mubr.msk.f32.mxu1 %vm14216_vm1, %v14215_v8 }
0x2273   : > { %12364 = vmatprep.subr.mxu1 %v14215_v8 }
0x2340   : > { %v4531_v57 = vpop.f32.mrb[36].mxu1 }
0x2341   : > { %v12338_v6 = vpop.f32.mrb[37].mxu1  ;;  %12342 = vmatmul.mubr.msk.f32.vlgmr.msra.gmra.mrb[34].mxu0 %vm1613_vm2, %v4531_v57 }
0x2342   : > { %12351 = vmatprep.mubr.msk.f32.mxu0 %vm14216_vm1, %v14215_v8 }
0x2344   : > { %v4683_v27 = vpop.f32.mrb[38].mxu1 }
0x2345   : > { %v12348_v58 = vpop.f32.mrb[39].mxu1  ;;  %v4687_v61 = vsel %vm1613_vm2, %v4683_v27, -inf }
0x2346   : > { %4688 = vmax.xlane.f32.xlu0 %v4687_v61 }
0x235c   : > { %4698 = vrot.lane.b32.xlu0 %v15195_v49, %s16302_s21 }
0x23d3   : > { %v4689_v25 = vpop.xlane.xlu0 %4688 }
0x23d4   : > { %v4690_v19 = vsub.f32 %v4683_v27, %v4689_v25 }
0x23d6   : > { %v4691_v63 = vmul.f32 1.442695, %v4690_v19 }
0x23d7   : > { %v4699_v5 = vpop.permute.xlu0 %4698 }
0x23d8   : > { %13395 = vpow2.f32 %v4691_v63  ;;  %12350 = vmatpush3.msra.mxu0 %v4699_v5 }
0x23d9   : > { %12359 = vmatprep.subr.mxu0 %v14215_v8 }
0x23e2   : > { %v13396_v45 = vpop.eup %13395 }
0x23e3   : > { %v4693_v0 = vsel %vm1613_vm2, %v13396_v45, 0.0 }
0x23e4   : > { %4694 = vadd.xlane.f32.xlu1 %v4693_v0  ;;  %v13506_v0 = vld [vmem:[%s16288_s14 + $0x10] sm:$0xff] }
0x23f5   : > { %4849 = vrot.lane.b32.xlu1 %v15281_v2, %s16296_s12 }
0x2414   : > { %v4604_v49 = vpop.f32.mrb[34].mxu0 }
0x2415   : > { %v4608_v4 = vadd.f32 %v4604_v49, %v4369_v50  ;;  %v12343_v47 = vpop.f32.mrb[35].mxu0 }
0x2471   : > { %v4695_v11 = vpop.xlane.xlu1 %4694 }
0x2472   : > { %13397 = vrcp.f32 %v4695_v11 }
0x2475   : > { %v4850_v14 = vpop.permute.xlu1 %4849 }
0x247c   : > { %v13398_v12 = vpop.eup %13397 }
0x247d   : > { %v4697_v13 = vmul.f32 %v13398_v12, %v13396_v45 }
0x247f   : > { %12352 = vmatmul.mubr.msk.f32.vlgmr.msra.gmra.mrb[36].mxu0 %vm1613_vm2, %v4697_v13 }
0x2480   : > { %12360 = vmatpush3.xpose.msk.msra.mxu0 %vm1613_vm2, %v4850_v14  ;;  %12361 = vmatprep.mubr.msk.f32.mxu0 %vm14216_vm1, %v14215_v8 }
0x2481   : > { %12369 = vmatprep.subr.mxu0 %v14215_v8 }
0x2483   : > { %12362 = vmatmul.mubr.msk.f32.vlgmr.msra.gmra.mrb[38].mxu0 %vm1613_vm2, %v15281_v2 }
0x2484   : > { %12370 = vmatpush3.msra.mxu0 %v13504_v46  ;;  %12371 = vmatprep.mubr.msk.f32.mxu0 %vm14216_vm1, %v14215_v8 }
0x2485   : > { %12379 = vmatprep.subr.mxu0 %v14215_v8 }
0x2552   : > { %v4770_v15 = vpop.f32.mrb[36].mxu0 }
0x2553   : > { %v12353_v16 = vpop.f32.mrb[37].mxu0  ;;  %12357 = vmatmul.mubr.msk.f32.vlgmr.msra.gmra.mrb[40].mxu1 %vm1613_vm2, %v4770_v15 }
0x2554   : > { %12366 = vmatprep.mubr.msk.f32.mxu1 %vm14216_vm1, %v14215_v8 }
0x2556   : > { %v4921_v17 = vpop.f32.mrb[38].mxu0 }
0x2557   : > { %v12363_v18 = vpop.f32.mrb[39].mxu0  ;;  %v4925_v20 = vsel %vm1613_vm2, %v4921_v17, -inf }
0x2558   : > { %4926 = vmax.xlane.f32.xlu0 %v4925_v20 }
0x256e   : > { %4936 = vrot.lane.b32.xlu0 %v15281_v2, %s16298_s5 }
0x2572   : > { %5086 = vrot.lane.b32.xlu0 %v15281_v2, %s16291_s13 }
0x25e5   : > { %v4927_v21 = vpop.xlane.xlu0 %4926 }
0x25e6   : > { %v4928_v7 = vsub.f32 %v4921_v17, %v4927_v21  ;;  %v13507_v17 = vld [vmem:[%s16289_s23] ss:$0 sm:$0xff]  ;;  %s16315_s23 = sld [smem:[#allocation75_spill]] }
0x25e8   : > { %v4929_v23 = vmul.f32 1.442695, %v4928_v7 }
0x25e9   : > { %v4937_v10 = vpop.permute.xlu0 %4936 }
0x25ea   : > { %13399 = vpow2.f32 %v4929_v23  ;;  %12365 = vmatpush3.msra.mxu1 %v4937_v10 }
0x25eb   : > { %12374 = vmatprep.subr.mxu1 %v14215_v8 }
0x25ed   : > { %v5087_v43 = vpop.permute.xlu0 %5086 }
0x25f4   : > { %v13400_v26 = vpop.eup %13399 }
0x25f5   : > { %v4931_v28 = vsel %vm1613_vm2, %v13400_v26, 0.0 }
0x25f6   : > { %4932 = vadd.xlane.f32.xlu1 %v4931_v28 }
0x2607   : > { %5088 = vrot.lane.b32.xlu1 %v15281_v2, %s16297_s1 }
0x2626   : > { %v4843_v29 = vpop.f32.mrb[40].mxu1 }
0x2627   : > { %v15308_v31 = vadd.f32 %v4843_v29, %v4608_v4  ;;  %v12358_v59 = vpop.f32.mrb[41].mxu1 }
0x2628   : > { %v13508_v59 = vld [vmem:[%s16288_s14 + $0x18] sm:$0xff]  ;;  %s16305_s14 = sld [smem:[#allocation63_spill]] }
0x2683   : > { %v4933_v34 = vpop.xlane.xlu1 %4932 }
0x2684   : > { %13401 = vrcp.f32 %v4933_v34 }
0x2687   : > { %v5089_v40 = vpop.permute.xlu1 %5088 }
0x268e   : > { %v13402_v36 = vpop.eup %13401 }
0x268f   : > { %v4935_v38 = vmul.f32 %v13402_v36, %v13400_v26 }
0x2691   : > { %12367 = vmatmul.mubr.msk.f32.vlgmr.msra.gmra.mrb[42].mxu1 %vm1613_vm2, %v4935_v38 }
0x2692   : > { %12375 = vmatpush3.xpose.msk.msra.mxu1 %vm1613_vm2, %v5089_v40  ;;  %12376 = vmatprep.mubr.msk.f32.mxu1 %vm14216_vm1, %v14215_v8 }
0x2693   : > { %12384 = vmatprep.subr.mxu1 %v14215_v8 }
0x2695   : > { %12377 = vmatmul.mubr.msk.f32.vlgmr.msra.gmra.mrb[44].mxu1 %vm1613_vm2, %v5087_v43 }
0x2696   : > { %12385 = vmatpush3.msra.mxu1 %v13505_v48  ;;  %12386 = vmatprep.mubr.msk.f32.mxu1 %vm14216_vm1, %v14215_v8  ;;  %v5803_v48 = vadd.f32 %v15308_v31, %v15180_v41 }
0x2697   : > { %12394 = vmatprep.subr.mxu1 %v14215_v8 }
0x2764   : > { %v5008_v50 = vpop.f32.mrb[42].mxu1 }
0x2765   : > { %v12368_v9 = vpop.f32.mrb[43].mxu1  ;;  %12372 = vmatmul.mubr.msk.f32.vlgmr.msra.gmra.mrb[40].mxu0 %vm1613_vm2, %v5008_v50  ;;  %v5805_v50 = vsel %vm1520_vm0, %v5803_v48, 0.0 }
0x2766   : > { %12381 = vmatprep.mubr.msk.f32.mxu0 %vm14216_vm1, %v14215_v8 }
0x2768   : > { %v5160_v51 = vpop.f32.mrb[44].mxu1 }
0x2769   : > { %v12378_v52 = vpop.f32.mrb[45].mxu1  ;;  %v5164_v53 = vsel %vm1613_vm2, %v5160_v51, -inf }
0x276a   : > { %5165 = vmax.xlane.f32.xlu1 %v5164_v53 }
0x277b   : > { %5327 = vrot.lane.b32.xlu1 %v15281_v2, %s16290_s28 }
0x277f   : > { %5325 = vrot.lane.b32.xlu1 %v15281_v2, %s16293_s6 }
0x27f7   : > { %v5166_v56 = vpop.xlane.xlu1 %5165 }
0x27f8   : > { %v5167_v3 = vsub.f32 %v5160_v51, %v5166_v56 }
0x27fa   : > { %v5168_v60 = vmul.f32 1.442695, %v5167_v3 }
0x27fb   : > { %v5328_v63 = vpop.permute.xlu1 %5327 }
0x27fc   : > { %13403 = vpow2.f32 %v5168_v60 }
0x27ff   : > { %v5326_v45 = vpop.permute.xlu1 %5325 }
0x2806   : > { %v13404_v57 = vpop.eup %13403 }
0x2807   : > { %v5170_v6 = vsel %vm1613_vm2, %v13404_v57, 0.0 }
0x2808   : > { %5171 = vadd.xlane.f32.xlu0 %v5170_v6 }
0x281e   : > { %5175 = vrot.lane.b32.xlu0 %v15281_v2, %s16299_s9 }
0x2838   : > { %v5081_v27 = vpop.f32.mrb[40].mxu0 }
0x2839   : > { %v12373_v58 = vpop.f32.mrb[41].mxu0  ;;  %v5085_v18 = vadd.f32 %v13507_v17, %v5081_v27 }
0x2895   : > { %v5172_v61 = vpop.xlane.xlu0 %5171 }
0x2896   : > { %13405 = vrcp.f32 %v5172_v61 }
0x2899   : > { %v5176_v25 = vpop.permute.xlu0 %5175 }
0x289a   : > { %12380 = vmatpush3.msra.mxu0 %v5176_v25 }
0x289b   : > { %12389 = vmatprep.subr.mxu0 %v14215_v8 }
0x28a0   : > { %v13406_v19 = vpop.eup %13405 }
0x28a1   : > { %v5174_v5 = vmul.f32 %v13406_v19, %v13404_v57 }
0x28a3   : > { %12382 = vmatmul.mubr.msk.f32.vlgmr.msra.gmra.mrb[42].mxu0 %vm1613_vm2, %v5174_v5 }
0x28a4   : > { %12390 = vmatpush3.xpose.msk.msra.mxu0 %vm1613_vm2, %v5328_v63  ;;  %12391 = vmatprep.mubr.msk.f32.mxu0 %vm14216_vm1, %v14215_v8 }
0x28a5   : > { %12399 = vmatprep.subr.mxu0 %v14215_v8 }
0x28a7   : > { %12392 = vmatmul.mubr.msk.f32.vlgmr.msra.gmra.mrb[44].mxu0 %vm1613_vm2, %v5326_v45 }
0x28a8   : > { %12400 = vmatpush3.msra.mxu0 %v13506_v0  ;;  %12401 = vmatprep.mubr.msk.f32.mxu0 %vm14216_vm1, %v14215_v8 }
0x28a9   : > { %12409 = vmatprep.subr.mxu0 %v14215_v8 }
0x2976   : > { %v5247_v1 = vpop.f32.mrb[42].mxu0 }
0x2977   : > { %v12383_v49 = vpop.f32.mrb[43].mxu0  ;;  %12387 = vmatmul.mubr.msk.f32.vlgmr.msra.gmra.mrb[46].mxu1 %vm1613_vm2, %v5247_v1 }
0x2978   : > { %12396 = vmatprep.mubr.msk.f32.mxu1 %vm14216_vm1, %v14215_v8 }
0x297a   : > { %v5399_v4 = vpop.f32.mrb[44].mxu0 }
0x297b   : > { %v12393_v47 = vpop.f32.mrb[45].mxu0  ;;  %v5403_v11 = vsel %vm1613_vm2, %v5399_v4, -inf }
0x297c   : > { %5404 = vmax.xlane.f32.xlu0 %v5403_v11 }
0x2992   : > { %5414 = vrot.lane.b32.xlu0 %v15281_v2, %s16292_s2 }
0x2996   : > { %5564 = vrot.lane.b32.xlu0 %v15281_v2, %s16301_s20 }
0x2a09   : > { %v5405_v12 = vpop.xlane.xlu0 %5404 }
0x2a0a   : > { %v5406_v13 = vsub.f32 %v5399_v4, %v5405_v12 }
0x2a0c   : > { %v5407_v14 = vmul.f32 1.442695, %v5406_v13 }
0x2a0d   : > { %v5415_v46 = vpop.permute.xlu0 %5414 }
0x2a0e   : > { %13407 = vpow2.f32 %v5407_v14  ;;  %12395 = vmatpush3.msra.mxu1 %v5415_v46 }
0x2a0f   : > { %12404 = vmatprep.subr.mxu1 %v14215_v8 }
0x2a11   : > { %v5565_v29 = vpop.permute.xlu0 %5564 }
0x2a18   : > { %v13408_v15 = vpop.eup %13407 }
0x2a19   : > { %v5409_v16 = vsel %vm1613_vm2, %v13408_v15, 0.0 }
0x2a1a   : > { %5410 = vadd.xlane.f32.xlu1 %v5409_v16 }
0x2a2b   : > { %5566 = vrot.lane.b32.xlu1 %v15281_v2, %s16300_s19 }
0x2a4a   : > { %v5320_v20 = vpop.f32.mrb[46].mxu1 }
0x2a4b   : > { %v5324_v21 = vadd.f32 %v5320_v20, %v5085_v18  ;;  %v12388_v7 = vpop.f32.mrb[47].mxu1 }
0x2aa7   : > { %v5411_v23 = vpop.xlane.xlu1 %5410 }
0x2aa8   : > { %13409 = vrcp.f32 %v5411_v23 }
0x2aab   : > { %v5567_v28 = vpop.permute.xlu1 %5566 }
0x2ab2   : > { %v13410_v10 = vpop.eup %13409 }
0x2ab3   : > { %v5413_v26 = vmul.f32 %v13410_v10, %v13408_v15 }
0x2ab5   : > { %12397 = vmatmul.mubr.msk.f32.vlgmr.msra.gmra.mrb[48].mxu1 %vm1613_vm2, %v5413_v26 }
0x2ab6   : > { %12405 = vmatpush3.xpose.msk.msra.mxu1 %vm1613_vm2, %v5567_v28  ;;  %12406 = vmatprep.mubr.msk.f32.mxu1 %vm14216_vm1, %v14215_v8 }
0x2ab7   : > { %12414 = vmatprep.subr.mxu1 %v14215_v8 }
0x2ab9   : > { %12407 = vmatmul.mubr.msk.f32.vlgmr.msra.gmra.mrb[50].mxu1 %vm1613_vm2, %v5565_v29 }
0x2aba   : > { %12415 = vmatpush3.msra.mxu1 %v13508_v59  ;;  %12416 = vmatprep.mubr.msk.f32.mxu1 %vm14216_vm1, %v14215_v8 }
0x2abb   : > { %12935 = vmatprep.subr.bf16.mxu1 %v15128_v37 }
0x2b88   : > { %v5486_v34 = vpop.f32.mrb[48].mxu1 }
0x2b89   : > { %v12398_v36 = vpop.f32.mrb[49].mxu1  ;;  %12402 = vmatmul.mubr.msk.f32.vlgmr.msra.gmra.mrb[46].mxu0 %vm1613_vm2, %v5486_v34 }
0x2b8a   : > { %12411 = vmatprep.mubr.msk.f32.mxu0 %vm14216_vm1, %v14215_v8 }
0x2b8c   : > { %v5638_v38 = vpop.f32.mrb[50].mxu1 }
0x2b8d   : > { %v12408_v40 = vpop.f32.mrb[51].mxu1  ;;  %v5642_v43 = vsel %vm1613_vm2, %v5638_v38, -inf }
0x2b8e   : > { %5643 = vmax.xlane.f32.xlu1 %v5642_v43 }
0x2b92   : > { %5806 = vadd.xlane.f32.xlu1 %v5805_v50 }
0x2c1b   : > { %v5644_v9 = vpop.xlane.xlu1 %5643 }
0x2c1c   : > { %v5645_v51 = vsub.f32 %v5638_v38, %v5644_v9 }
0x2c1e   : > { %v5646_v52 = vmul.f32 1.442695, %v5645_v51 }
0x2c20   : > { %13411 = vpow2.f32 %v5646_v52 }
0x2c2a   : > { %v13412_v53 = vpop.eup %13411 }
0x2c2b   : > { %v5648_v56 = vsel %vm1613_vm2, %v13412_v53, 0.0 }
0x2c2c   : > { %5649 = vadd.xlane.f32.xlu0 %v5648_v56 }
0x2c42   : > { %5653 = vrot.lane.b32.xlu0 %v15281_v2, %s16302_s21 }
0x2c5c   : > { %v5559_v3 = vpop.f32.mrb[46].mxu0 }
0x2c5d   : > { %v5563_v60 = vadd.f32 %v5559_v3, %v5324_v21  ;;  %v12403_v57 = vpop.f32.mrb[47].mxu0 }
0x2c5e   : > { %v6032_v57 = vld [vmem:[%s16303_s8 + $0x8] sm:$0xff] }
0x2cb9   : > { %v5650_v6 = vpop.xlane.xlu0 %5649 }
0x2cba   : > { %13413 = vrcp.f32 %v5650_v6 }
0x2cbd   : > { %v5654_v41 = vpop.permute.xlu0 %5653 }
0x2cbe   : > { %12410 = vmatpush3.msra.mxu0 %v5654_v41  ;;  %v14228_v41 = vmov 0.0|0.0  }
0x2cbf   : > { %12927 = vmatprep.subr.bf16.mxu0 %v15114_v30 }
0x2cc4   : > { %v13414_v31 = vpop.eup %13413 }
0x2cc5   : > { %v5652_v27 = vmul.f32 %v13414_v31, %v13412_v53  ;;  %v6033_v31 = vld [vmem:[%s16303_s8 + $0x10] sm:$0xff] }
0x2cc7   : > { %12412 = vmatmul.mubr.msk.f32.vlgmr.msra.gmra.mrb[48].mxu0 %vm1613_vm2, %v5652_v27  ;;  %v6034_v27 = vld [vmem:[%s16303_s8 + $0x18] sm:$0xff] }
0x2cc8   : > { %12929 = vmatpush3.bf16.msra.mxu0 %v15114_v30  ;;  %v5807_v30 = vpop.xlane.xlu1 %5806 }
0x2cc9   : > { %12931 = vmatprep.subr.bf16.mxu0 %v15120_v33 }
0x2ccc   : > { %12933 = vmatpush3.bf16.msra.mxu0 %v15120_v33  ;;  %v5811_v33 = vmul.f32 0.03125, %v5807_v30 }
0x2ccd   : > { %12950 = vmatprep.subr.bf16.mxu0 %v14228_v41 }
0x2cce   : > { %v5813_v25 = vsub.f32 %v5803_v48, %v5811_v33 }
0x2cd0   : > { %v5815_v5 = vmul.f32 %v5813_v25, %v5813_v25 }
0x2d9a   : > { %v5725_v2 = vpop.f32.mrb[48].mxu0 }
0x2d9b   : > { %v12413_v58 = vpop.f32.mrb[49].mxu0  ;;  %12417 = vmatmul.mubr.msk.f32.vlgmr.msra.gmra.mrb[52].mxu1 %vm1613_vm2, %v5725_v2  ;;  %v15422_v2 = vpack.c.bf16 %v6034_v27, %v6033_v31 }
0x2d9c   : > { %12937 = vmatpush3.bf16.msra.mxu1 %v15128_v37 }
0x2d9d   : > { %12939 = vmatprep.subr.bf16.mxu1 %v15131_v39 }
0x2da0   : > { %12941 = vmatpush3.bf16.msra.mxu1 %v15131_v39 }
0x2da1   : > { %12943 = vmatprep.subr.bf16.mxu1 %v15138_v42 }
0x2da4   : > { %12945 = vmatpush3.bf16.msra.mxu1 %v15138_v42  ;;  %v5817_v42 = vsel %vm1520_vm0, %v5815_v5, 0.0 }
0x2da5   : > { %12947 = vmatprep.subr.bf16.mxu1 %v15152_v54 }
0x2da8   : > { %12949 = vmatpush3.bf16.msra.mxu1 %v15152_v54 }
0x2da9   : > { %12471 = vmatprep.subr.mxu1 %v14215_v8 }
0x2e6e   : > { %v5798_v61 = vpop.f32.mrb[52].mxu1 }
0x2e6f   : > { %v5802_v19 = vadd.f32 %v5798_v61, %v5563_v60  ;;  %v12418_v37 = vpop.f32.mrb[53].mxu1  ;;  %v6031_v60 = vld [vmem:[%s16303_s8] sm:$0xff]  ;;  %s16304_s8 = sld [smem:[#allocation59_spill]] }
0x2e70   : > { %v15415_v6 = vpack.c.bf16 %v6032_v57, %v6031_v60 }
0x2e71   : > { %v5804_v63 = vadd.f32 %v5802_v19, %v15186_v44 }
0x2e73   : > { %v5808_v39 = vsel %vm1520_vm0, %v5804_v63, 0.0 }
0x2e74   : > { %5809 = vadd.xlane.f32.xlu1 %v5808_v39 }
0x2e78   : > { %5818 = vadd.xlane.f32.xlu1 %v5817_v42 }
0x2f01   : > { %v5810_v45 = vpop.xlane.xlu1 %5809 }
0x2f02   : > { %v5812_v0 = vmul.f32 0.03125, %v5810_v45 }
0x2f04   : > { %v5814_v54 = vsub.f32 %v5804_v63, %v5812_v0 }
0x2f05   : > { %v5819_v1 = vpop.xlane.xlu1 %5818 }
0x2f06   : > { %v5823_v49 = vmul.f32 0.03125, %v5819_v1  ;;  %v5816_v4 = vmul.f32 %v5814_v54, %v5814_v54 }
0x2f08   : > { %v5825_v47 = vadd.f32 1e-05, %v5823_v49  ;;  %v5820_v11 = vsel %vm1520_vm0, %v5816_v4, 0.0  ;;  %v15446_v4 = vld [vmem:[#allocation16] ss:$0 sm:$0xff] }
0x2f09   : > { %5821 = vadd.xlane.f32.xlu1 %v5820_v11 }
0x2f0a   : > { %13415 = vrsqrt.f32 %v5825_v47 }
0x2f14   : > { %v13416_v12 = vpop.eup %13415 }
0x2f15   : > { %v5829_v44 = vmul.f32 %v13416_v12, %v5813_v25 }
0x2f17   : > { %v5831_v13 = vmul.f32 %v15102_v22, %v5829_v44 }
0x2f19   : > { %v5833_v14 = vadd.f32 %v15104_v24, %v5831_v13 }
0x2f1b   : > { %12427 = vmatprep.mubr.msk.f32.mxu0 %vm1520_vm0, %v5833_v14 }
0x2f96   : > { %v5822_v46 = vpop.xlane.xlu1 %5821 }
0x2f97   : > { %v5824_v15 = vmul.f32 0.03125, %v5822_v46 }
0x2f99   : > { %v5826_v16 = vadd.f32 1e-05, %v5824_v15 }
0x2f9b   : > { %13417 = vrsqrt.f32 %v5826_v16 }
0x2fa5   : > { %v13418_v17 = vpop.eup %13417 }
0x2fa6   : > { %v5830_v18 = vmul.f32 %v13418_v17, %v5814_v54 }
0x2fa8   : > { %v5832_v20 = vmul.f32 %v15102_v22, %v5830_v18 }
0x2faa   : > { %v5834_v21 = vadd.f32 %v15104_v24, %v5832_v20 }
0x2fac   : > { %12428 = vmatmul.mubr.msk.f32.vlgmr.msra.gmra.mrb[50].mxu0 %vm1520_vm0, %v5834_v21 }
0x2fad   : > { %12457 = vmatprep.mubr.msk.f32.mxu0 %vm14216_vm1, %v14215_v8  ;;  %12952 = vmatpush3.bf16.msra.mxu0 %v15415_v6 }
0x2fae   : > { %12953 = vmatprep.subr.bf16.mxu0 %v14228_v41 }
0x2fb1   : > { %12955 = vmatpush3.bf16.msra.mxu0 %v15422_v2 }
0x2fb2   : > { %12956 = vmatprep.subr.bf16.mxu0 %v14228_v41 }
0x307f   : > { %v12429_v7 = vpop.f32.mrb[50].mxu0 }
0x3080   : > { %v5913_v23 = vadd.f32 %v12429_v7, %v15157_v55  ;;  %v5907_v10 = vpop.f32.mrb[51].mxu0 }
0x3081   : > { %v5908_v26 = vadd.f32 %v15157_v55, %v5907_v10 }
0x3082   : > { %v5917_v29 = vmax.f32 %v5913_v23, 0.0 }
0x3083   : > { %v5916_v28 = vmax.f32 %v5908_v26, 0.0 }
0x3085   : > { %12446 = vmatprep.mubr.msk.f32.mxu1 %vm3684_vm3, %v5916_v28  ;;  %v15480_v28 = vld [vmem:[%s16304_s8] sm:$0xff] }
0x3086   : > { %12447 = vmatmul.mubr.msk.f32.vlgmr.msra.gmra.mrb[54].mxu1 %vm3684_vm3, %v5917_v29 }
0x3087   : > { %12473 = vmatprep.mubr.msk.f32.mxu1 %vm14216_vm1, %v14215_v8 }
0x3159   : > { %v12448_v22 = vpop.f32.mrb[54].mxu1 }
0x315a   : > { %v5990_v24 = vpop.f32.mrb[55].mxu1  ;;  %v5996_v59 = vadd.f32 %v12448_v22, %v15165_v62 }
0x315b   : > { %v5991_v34 = vadd.f32 %v15165_v62, %v5990_v24 }
0x315c   : > { %v6000_v38 = vadd.f32 %v5996_v59, %v5834_v21 }
0x315d   : > { %v5999_v36 = vadd.f32 %v5991_v34, %v5833_v14 }
0x315e   : > { %v6004_v55 = vsel %vm1520_vm0, %v6000_v38, 0.0 }
0x315f   : > { %v6001_v40 = vsel %vm1520_vm0, %v5999_v36, 0.0 }
0x3160   : > { %6002 = vadd.xlane.f32.xlu1 %v6001_v40 }
0x3164   : > { %6005 = vadd.xlane.f32.xlu1 %v6004_v55 }
0x31ed   : > { %v6003_v43 = vpop.xlane.xlu1 %6002 }
0x31ee   : > { %v6007_v48 = vmul.f32 0.03125, %v6003_v43 }
0x31f0   : > { %v6009_v50 = vsub.f32 %v5999_v36, %v6007_v48 }
0x31f1   : > { %v6006_v9 = vpop.xlane.xlu1 %6005 }
0x31f2   : > { %v6008_v51 = vmul.f32 0.03125, %v6006_v9  ;;  %v6011_v52 = vmul.f32 %v6009_v50, %v6009_v50 }
0x31f4   : > { %v6010_v53 = vsub.f32 %v6000_v38, %v6008_v51  ;;  %v6013_v62 = vsel %vm1520_vm0, %v6011_v52, 0.0 }
0x31f5   : > { %6014 = vadd.xlane.f32.xlu0 %v6013_v62 }
0x31f6   : > { %v6012_v56 = vmul.f32 %v6010_v53, %v6010_v53 }
0x31f8   : > { %v6016_v3 = vsel %vm1520_vm0, %v6012_v56, 0.0 }
0x31f9   : > { %6017 = vadd.xlane.f32.xlu1 %v6016_v3  ;;  %v15505_v3 = vld [vmem:[%s16304_s8 + $0x8] sm:$0xff] }
0x3282   : > { %v6015_v58 = vpop.xlane.xlu0 %6014 }
0x3283   : > { %v6019_v30 = vmul.f32 0.03125, %v6015_v58 }
0x3285   : > { %v6021_v33 = vadd.f32 1e-05, %v6019_v30 }
0x3286   : > { %v6018_v61 = vpop.xlane.xlu1 %6017 }
0x3287   : > { %13419 = vrsqrt.f32 %v6021_v33  ;;  %v6020_v25 = vmul.f32 0.03125, %v6018_v61 }
0x3289   : > { %v6022_v19 = vadd.f32 1e-05, %v6020_v25 }
0x328b   : > { %13421 = vrsqrt.f32 %v6022_v19 }
0x3291   : > { %v13420_v37 = vpop.eup %13419 }
0x3292   : > { %v6025_v63 = vmul.f32 %v13420_v37, %v6009_v50 }
0x3294   : > { %v6027_v39 = vmul.f32 %v15174_v32, %v6025_v63  ;;  %v15521_v63 = vld [vmem:[#allocation17] ss:$0 sm:$0xff] }
0x3295   : > { %v13422_v5 = vpop.eup %13421 }
0x3296   : > { %v6026_v42 = vmul.f32 %v13422_v5, %v6010_v53  ;;  %v15428_v45 = vadd.f32 %v15176_v35, %v6027_v39 }
0x3298   : > { %12458 = vmatmul.mubr.msk.f32.vlgmr.msra.gmra.mrb[52].mxu0 %vm1520_vm0, %v15428_v45  ;;  %v6028_v0 = vmul.f32 %v15174_v32, %v6026_v42 }
0x3299   : > { %12958 = vmatpush3.bf16.msra.mxu0 %v15415_v6  ;;  %12468 = vmatprep.mubr.msk.f32.mxu0 %vm14216_vm1, %v14215_v8 }
0x329a   : > { %12959 = vmatprep.subr.bf16.mxu0 %v14228_v41  ;;  %v15439_v54 = vadd.f32 %v15176_v35, %v6028_v0 }
0x329d   : > { %12961 = vmatpush3.bf16.msra.mxu0 %v15422_v2 }
0x329e   : > { %12481 = vmatprep.subr.mxu0 %v14215_v8 }
0x32a0   : > { %12469 = vmatmul.mubr.msk.f32.vlgmr.msra.gmra.mrb[54].mxu0 %vm1520_vm0, %v15439_v54 }
0x32a1   : > { %12483 = vmatprep.mubr.msk.f32.mxu0 %vm14216_vm1, %v14215_v8  ;;  %12482 = vmatpush3.msra.mxu0 %v15480_v28 }
0x32a2   : > { %12491 = vmatprep.subr.mxu0 %v14215_v8 }
0x336b   : > { %v6111_v1 = vpop.f32.mrb[52].mxu0 }
0x336c   : > { %v12459_v49 = vpop.f32.mrb[53].mxu0  ;;  %v15457_v12 = vadd.f32 %v15446_v4, %v6111_v1 }
0x3373   : > { %v6184_v47 = vpop.f32.mrb[54].mxu0 }
0x3374   : > { %v15449_v32 = vadd.f32 %v15446_v4, %v6184_v47  ;;  %v12470_v11 = vpop.f32.mrb[55].mxu0 }
0x3376   : > { %6285 = vrot.lane.b32.xlu0 %v15449_v32, %s16298_s5  ;;  %6197 = vrot.lane.b32.xlu1 %v15449_v32, %s16296_s12 }
0x33e8   : > { %v6198_v35 = vpop.permute.xlu1 %6197  ;;  %v6286_v44 = vpop.permute.xlu0 %6285 }
0x33e9   : > { %12472 = vmatpush3.xpose.msk.msra.mxu1 %vm1613_vm2, %v6198_v35 }
0x33ea   : > { %12476 = vmatprep.subr.mxu1 %v14215_v8 }
0x33ec   : > { %12474 = vmatmul.mubr.msk.f32.vlgmr.msra.gmra.mrb[56].mxu1 %vm1613_vm2, %v15457_v12 }
0x33ed   : > { %12477 = vmatpush3.msra.mxu1 %v6286_v44  ;;  %12478 = vmatprep.mubr.msk.f32.mxu1 %vm14216_vm1, %v14215_v8 }
0x33ee   : > { %12486 = vmatprep.subr.mxu1 %v14215_v8 }
0x34bf   : > { %v6270_v13 = vpop.f32.mrb[56].mxu1 }
0x34c0   : > { %v12475_v14 = vpop.f32.mrb[57].mxu1  ;;  %v6274_v46 = vsel %vm1613_vm2, %v6270_v13, -inf }
0x34c1   : > { %6275 = vmax.xlane.f32.xlu1 %v6274_v46 }
0x34d2   : > { %6436 = vrot.lane.b32.xlu1 %v15457_v12, %s16291_s13 }
0x354e   : > { %v6276_v15 = vpop.xlane.xlu1 %6275 }
0x354f   : > { %v6277_v16 = vsub.f32 %v6270_v13, %v6276_v15 }
0x3551   : > { %v6278_v17 = vmul.f32 1.442695, %v6277_v16 }
0x3552   : > { %v6437_v26 = vpop.permute.xlu1 %6436 }
0x3553   : > { %13423 = vpow2.f32 %v6278_v17 }
0x355d   : > { %v13424_v18 = vpop.eup %13423 }
0x355e   : > { %v6280_v20 = vsel %vm1613_vm2, %v13424_v18, 0.0 }
0x355f   : > { %6281 = vadd.xlane.f32.xlu0 %v6280_v20 }
0x3575   : > { %6438 = vrot.lane.b32.xlu0 %v15449_v32, %s16297_s1 }
0x35ec   : > { %v6282_v21 = vpop.xlane.xlu0 %6281 }
0x35ed   : > { %13425 = vrcp.f32 %v6282_v21 }
0x35f0   : > { %v6439_v10 = vpop.permute.xlu0 %6438 }
0x35f7   : > { %v13426_v7 = vpop.eup %13425 }
0x35f8   : > { %v6284_v23 = vmul.f32 %v13426_v7, %v13424_v18 }
0x35fa   : > { %12479 = vmatmul.mubr.msk.f32.vlgmr.msra.gmra.mrb[58].mxu1 %vm1613_vm2, %v6284_v23  ;;  %v15546_v23 = vld [vmem:[%s16304_s8 + $0x18] sm:$0xff] }
0x35fb   : > { %12487 = vmatpush3.xpose.msk.msra.mxu1 %vm1613_vm2, %v6439_v10  ;;  %12488 = vmatprep.mubr.msk.f32.mxu1 %vm14216_vm1, %v14215_v8 }
0x35fc   : > { %12496 = vmatprep.subr.mxu1 %v14215_v8 }
0x35fe   : > { %12489 = vmatmul.mubr.msk.f32.vlgmr.msra.gmra.mrb[60].mxu1 %vm1613_vm2, %v6437_v26 }
0x35ff   : > { %12498 = vmatprep.mubr.msk.f32.mxu1 %vm14216_vm1, %v14215_v8  ;;  %12497 = vmatpush3.msra.mxu1 %v15505_v3 }
0x3600   : > { %12506 = vmatprep.subr.mxu1 %v14215_v8 }
0x36cd   : > { %v6357_v29 = vpop.f32.mrb[58].mxu1 }
0x36ce   : > { %v12480_v22 = vpop.f32.mrb[59].mxu1  ;;  %12484 = vmatmul.mubr.msk.f32.vlgmr.msra.gmra.mrb[56].mxu0 %vm1613_vm2, %v6357_v29 }
0x36cf   : > { %12493 = vmatprep.mubr.msk.f32.mxu0 %vm14216_vm1, %v14215_v8 }
0x36d1   : > { %v6510_v24 = vpop.f32.mrb[60].mxu1 }
0x36d2   : > { %v12490_v59 = vpop.f32.mrb[61].mxu1  ;;  %v6514_v34 = vsel %vm1613_vm2, %v6510_v24, -inf }
0x36d3   : > { %6515 = vmax.xlane.f32.xlu0 %v6514_v34 }
0x36e9   : > { %6525 = vrot.lane.b32.xlu0 %v15449_v32, %s16299_s9 }
0x36ed   : > { %6677 = vrot.lane.b32.xlu0 %v15457_v12, %s16293_s6 }
0x3760   : > { %v6516_v36 = vpop.xlane.xlu0 %6515 }
0x3761   : > { %v6517_v38 = vsub.f32 %v6510_v24, %v6516_v36 }
0x3763   : > { %v6518_v40 = vmul.f32 1.442695, %v6517_v38 }
0x3764   : > { %v6526_v55 = vpop.permute.xlu0 %6525 }
0x3765   : > { %13427 = vpow2.f32 %v6518_v40  ;;  %12492 = vmatpush3.msra.mxu0 %v6526_v55 }
0x3766   : > { %12501 = vmatprep.subr.mxu0 %v14215_v8 }
0x3768   : > { %v6678_v56 = vpop.permute.xlu0 %6677 }
0x376f   : > { %v13428_v43 = vpop.eup %13427 }
0x3770   : > { %v6520_v48 = vsel %vm1613_vm2, %v13428_v43, 0.0 }
0x3771   : > { %6521 = vadd.xlane.f32.xlu1 %v6520_v48 }
0x3782   : > { %6679 = vrot.lane.b32.xlu1 %v15449_v32, %s16290_s28 }
0x37a1   : > { %v6431_v50 = vpop.f32.mrb[56].mxu0 }
0x37a2   : > { %v12485_v9 = vpop.f32.mrb[57].mxu0  ;;  %v6435_v39 = vadd.f32 %v15521_v63, %v6431_v50 }
0x37fe   : > { %v6522_v51 = vpop.xlane.xlu1 %6521 }
0x37ff   : > { %13429 = vrcp.f32 %v6522_v51 }
0x3802   : > { %v6680_v62 = vpop.permute.xlu1 %6679 }
0x3809   : > { %v13430_v52 = vpop.eup %13429 }
0x380a   : > { %v6524_v53 = vmul.f32 %v13430_v52, %v13428_v43 }
0x380c   : > { %12494 = vmatmul.mubr.msk.f32.vlgmr.msra.gmra.mrb[58].mxu0 %vm1613_vm2, %v6524_v53 }
0x380d   : > { %12502 = vmatpush3.xpose.msk.msra.mxu0 %vm1613_vm2, %v6680_v62  ;;  %12503 = vmatprep.mubr.msk.f32.mxu0 %vm14216_vm1, %v14215_v8  ;;  %v7189_v62 = vld [vmem:[%s16305_s14] sm:$0xff] }
0x380e   : > { %12511 = vmatprep.subr.mxu0 %v14215_v8 }
0x3810   : > { %12504 = vmatmul.mubr.msk.f32.vlgmr.msra.gmra.mrb[60].mxu0 %vm1613_vm2, %v6678_v56  ;;  %v7190_v56 = vld [vmem:[%s16305_s14 + $0x8] sm:$0xff] }
0x3811   : > { %12513 = vmatprep.mubr.msk.f32.mxu0 %vm14216_vm1, %v14215_v8 }
0x38df   : > { %v6597_v60 = vpop.f32.mrb[58].mxu0 }
0x38e0   : > { %v12495_v57 = vpop.f32.mrb[59].mxu0  ;;  %12499 = vmatmul.mubr.msk.f32.vlgmr.msra.gmra.mrb[62].mxu1 %vm1613_vm2, %v6597_v60  ;;  %v15561_v60 = vpack.c.bf16 %v7190_v56, %v7189_v62  ;;  %v15627_v56 = vld [vmem:[#allocation25] ss:$0 sm:$0xff] }
0x38e1   : > { %12508 = vmatprep.mubr.msk.f32.mxu1 %vm14216_vm1, %v14215_v8  ;;  %v7192_v57 = vld [vmem:[%s16305_s14 + $0x18] sm:$0xff] }
0x38e3   : > { %v6751_v31 = vpop.f32.mrb[60].mxu0 }
0x38e4   : > { %v12505_v27 = vpop.f32.mrb[61].mxu0  ;;  %v6755_v58 = vsel %vm1613_vm2, %v6751_v31, -inf }
0x38e5   : > { %6756 = vmax.xlane.f32.xlu0 %v6755_v58 }
0x38fb   : > { %6766 = vrot.lane.b32.xlu0 %v15449_v32, %s16292_s2 }
0x38ff   : > { %6918 = vrot.lane.b32.xlu0 %v15457_v12, %s16301_s20  ;;  %v15533_v12 = vld [vmem:[%s16304_s8 + $0x10] sm:$0xff]  ;;  %s16306_s8 = sld [smem:[#allocation65_spill]] }
0x3900   : > { %12512 = vmatpush3.msra.mxu0 %v15533_v12 }
0x3901   : > { %12521 = vmatprep.subr.mxu0 %v14215_v8 }
0x3905   : > { %v7274_v27 = vld [vmem:[%s16306_s8] sm:$0xff]  ;;  %v7275_v58 = vld [vmem:[%s16306_s8 + $0x8] sm:$0xff] }
0x3972   : > { %v6757_v30 = vpop.xlane.xlu0 %6756 }
0x3973   : > { %v6758_v33 = vsub.f32 %v6751_v31, %v6757_v30  ;;  %v7276_v30 = vld [vmem:[%s16306_s8 + $0x10] sm:$0xff] }
0x3975   : > { %v6759_v61 = vmul.f32 1.442695, %v6758_v33  ;;  %v15574_v33 = vpack.c.bf16 %v7275_v58, %v7274_v27 }
0x3976   : > { %v6767_v25 = vpop.permute.xlu0 %6766 }
0x3977   : > { %13431 = vpow2.f32 %v6759_v61  ;;  %12507 = vmatpush3.msra.mxu1 %v6767_v25  ;;  %v7277_v61 = vld [vmem:[%s16306_s8 + $0x18] sm:$0xff] }
0x3978   : > { %12516 = vmatprep.subr.mxu1 %v14215_v8  ;;  %v15578_v25 = vpack.c.bf16 %v7277_v61, %v7276_v30 }
0x397a   : > { %v6919_v35 = vpop.permute.xlu0 %6918 }
0x3981   : > { %v13432_v19 = vpop.eup %13431 }
0x3982   : > { %v6761_v37 = vsel %vm1613_vm2, %v13432_v19, 0.0 }
0x3983   : > { %6762 = vadd.xlane.f32.xlu1 %v6761_v37  ;;  %v7279_v37 = vld [vmem:[%s16306_s8 + $0x28] sm:$0xff] }
0x3994   : > { %6920 = vrot.lane.b32.xlu1 %v15449_v32, %s16300_s19 }
0x39b3   : > { %v6672_v5 = vpop.f32.mrb[62].mxu1 }
0x39b4   : > { %v6676_v42 = vadd.f32 %v6672_v5, %v6435_v39  ;;  %v12500_v0 = vpop.f32.mrb[63].mxu1 }
0x3a10   : > { %v6763_v1 = vpop.xlane.xlu1 %6762 }
0x3a11   : > { %13433 = vrcp.f32 %v6763_v1 }
0x3a14   : > { %v6921_v11 = vpop.permute.xlu1 %6920 }
0x3a1b   : > { %v13434_v49 = vpop.eup %13433 }
0x3a1c   : > { %v6765_v47 = vmul.f32 %v13434_v49, %v13432_v19  ;;  %v7278_v19 = vld [vmem:[%s16306_s8 + $0x20] sm:$0xff]  ;;  %v15589_v49 = vld [vmem:[#allocation19] ss:$0 sm:$0xff] }
0x3a1d   : > { %v15584_v39 = vpack.c.bf16 %v7279_v37, %v7278_v19 }
0x3a1e   : > { %12509 = vmatmul.mubr.msk.f32.vlgmr.msra.gmra.mrb[64].mxu1 %vm1613_vm2, %v6765_v47 }
0x3a1f   : > { %12517 = vmatpush3.xpose.msk.msra.mxu1 %vm1613_vm2, %v6921_v11  ;;  %12518 = vmatprep.mubr.msk.f32.mxu1 %vm14216_vm1, %v14215_v8  ;;  %v15591_v11 = vld [vmem:[#allocation20] ss:$0 sm:$0xff] }
0x3a20   : > { %12526 = vmatprep.subr.mxu1 %v14215_v8 }
0x3a22   : > { %12519 = vmatmul.mubr.msk.f32.vlgmr.msra.gmra.mrb[66].mxu1 %vm1613_vm2, %v6919_v35 }
0x3a23   : > { %12528 = vmatprep.mubr.msk.f32.mxu1 %vm14216_vm1, %v14215_v8  ;;  %12527 = vmatpush3.msra.mxu1 %v15546_v23 }
0x3a24   : > { %12968 = vmatprep.subr.bf16.mxu1 %v14228_v41 }
0x3af1   : > { %v6838_v44 = vpop.f32.mrb[64].mxu1 }
0x3af2   : > { %v12510_v13 = vpop.f32.mrb[65].mxu1  ;;  %12514 = vmatmul.mubr.msk.f32.vlgmr.msra.gmra.mrb[62].mxu0 %vm1613_vm2, %v6838_v44 }
0x3af3   : > { %12523 = vmatprep.mubr.msk.f32.mxu0 %vm14216_vm1, %v14215_v8  ;;  %v7280_v13 = vld [vmem:[%s16306_s8 + $0x30] sm:$0xff] }
0x3af5   : > { %v6992_v14 = vpop.f32.mrb[66].mxu1 }
0x3af6   : > { %v12520_v46 = vpop.f32.mrb[67].mxu1  ;;  %v6996_v15 = vsel %vm1613_vm2, %v6992_v14, -inf }
0x3af7   : > { %6997 = vmax.xlane.f32.xlu0 %v6996_v15  ;;  %v15604_v15 = vld [vmem:[#allocation22] ss:$0 sm:$0xff] }
0x3b0d   : > { %7007 = vrot.lane.b32.xlu0 %v15449_v32, %s16302_s21 }
0x3b84   : > { %v6998_v16 = vpop.xlane.xlu0 %6997 }
0x3b85   : > { %v6999_v17 = vsub.f32 %v6992_v14, %v6998_v16  ;;  %v7281_v14 = vld [vmem:[%s16306_s8 + $0x38] sm:$0xff]  ;;  %s16308_s8 = sld [smem:[#allocation69_spill]] }
0x3b86   : > { %v15600_v46 = vpack.c.bf16 %v7281_v14, %v7280_v13 }
0x3b87   : > { %v7000_v18 = vmul.f32 1.442695, %v6999_v17 }
0x3b88   : > { %v7008_v20 = vpop.permute.xlu0 %7007 }
0x3b89   : > { %13435 = vpow2.f32 %v7000_v18  ;;  %12522 = vmatpush3.msra.mxu0 %v7008_v20 }
0x3b8a   : > { %12962 = vmatprep.subr.bf16.mxu0 %v14228_v41 }
0x3b8b   : > { %v15640_v30 = vld [vmem:[%s16308_s8] ss:$0 sm:$0xff]  ;;  %s16309_s8 = sld [smem:[#allocation70_spill]] }
0x3b93   : > { %v13436_v21 = vpop.eup %13435 }
0x3b94   : > { %v7002_v7 = vsel %vm1613_vm2, %v13436_v21, 0.0 }
0x3b95   : > { %7003 = vadd.xlane.f32.xlu1 %v7002_v7 }
0x3bc5   : > { %v6913_v10 = vpop.f32.mrb[62].mxu0 }
0x3bc6   : > { %v6917_v26 = vadd.f32 %v6913_v10, %v6676_v42  ;;  %v12515_v29 = vpop.f32.mrb[63].mxu0 }
0x3c22   : > { %v7004_v22 = vpop.xlane.xlu1 %7003 }
0x3c23   : > { %13437 = vrcp.f32 %v7004_v22 }
0x3c2d   : > { %v13438_v24 = vpop.eup %13437 }
0x3c2e   : > { %v7006_v59 = vmul.f32 %v13438_v24, %v13436_v21  ;;  %v15610_v21 = vld [vmem:[#allocation23] ss:$0 sm:$0xff] }
0x3c30   : > { %12524 = vmatmul.mubr.msk.f32.vlgmr.msra.gmra.mrb[64].mxu0 %vm1613_vm2, %v7006_v59 }
0x3c31   : > { %12539 = vmatprep.mubr.msk.f32.mxu0 %vm14216_vm1, %v14215_v8  ;;  %12964 = vmatpush3.bf16.msra.mxu0 %v15561_v60 }
0x3c32   : > { %12965 = vmatprep.subr.bf16.mxu0 %v14228_v41 }
0x3d03   : > { %v7079_v34 = vpop.f32.mrb[64].mxu0 }
0x3d04   : > { %v12525_v36 = vpop.f32.mrb[65].mxu0  ;;  %12529 = vmatmul.mubr.msk.f32.vlgmr.msra.gmra.mrb[68].mxu1 %vm1613_vm2, %v7079_v34 }
0x3d05   : > { %12558 = vmatprep.mubr.msk.f32.mxu1 %vm14216_vm1, %v14215_v8  ;;  %12970 = vmatpush3.bf16.msra.mxu1 %v15574_v33 }
0x3d06   : > { %12971 = vmatprep.subr.bf16.mxu1 %v14228_v41 }
0x3d09   : > { %12973 = vmatpush3.bf16.msra.mxu1 %v15578_v25 }
0x3d0a   : > { %12974 = vmatprep.subr.bf16.mxu1 %v14228_v41 }
0x3d0d   : > { %12976 = vmatpush3.bf16.msra.mxu1 %v15584_v39 }
0x3d0e   : > { %12977 = vmatprep.subr.bf16.mxu1 %v14228_v41 }
0x3d11   : > { %12979 = vmatpush3.bf16.msra.mxu1 %v15600_v46 }
0x3d12   : > { %12577 = vmatprep.subr.mxu1 %v14215_v8 }
0x3dd7   : > { %v7154_v38 = vpop.f32.mrb[68].mxu1 }
0x3dd8   : > { %v7158_v40 = vadd.f32 %v7154_v38, %v6917_v26  ;;  %v12530_v55 = vpop.f32.mrb[69].mxu1 }
0x3dda   : > { %v7159_v43 = vadd.f32 %v7158_v40, %v15428_v45  ;;  %v7191_v45 = vld [vmem:[%s16305_s14 + $0x10] sm:$0xff]  ;;  %s16307_s14 = sld [smem:[#allocation68_spill]] }
0x3ddb   : > { %v15567_v31 = vpack.c.bf16 %v7192_v57, %v7191_v45  ;;  %v15629_v57 = vld [vmem:[#allocation26] ss:$0 sm:$0xff] }
0x3ddc   : > { %v7160_v48 = vsel %vm1520_vm0, %v7159_v43, 0.0 }
0x3ddd   : > { %7161 = vadd.xlane.f32.xlu1 %v7160_v48  ;;  %12967 = vmatpush3.bf16.msra.mxu0 %v15567_v31 }
0x3dde   : > { %12980 = vmatprep.subr.bf16.mxu0 %v14228_v41 }
0x3de0   : > { %v7392_v40 = vld [vmem:[%s16307_s14] sm:$0xff]  ;;  %v7393_v55 = vld [vmem:[%s16307_s14 + $0x8] sm:$0xff]  ;;  %v7394_v48 = vld [vmem:[%s16307_s14 + $0x10] sm:$0xff] }
0x3e6a   : > { %v7162_v50 = vpop.xlane.xlu1 %7161 }
0x3e6b   : > { %v7163_v9 = vmul.f32 0.03125, %v7162_v50  ;;  %v7395_v50 = vld [vmem:[%s16307_s14 + $0x18] sm:$0xff]  ;;  %s16310_s14 = sld [smem:[#allocation71_spill]] }
0x3e6d   : > { %v7164_v51 = vsub.f32 %v7159_v43, %v7163_v9  ;;  %v15617_v43 = vpack.c.bf16 %v7393_v55, %v7392_v40  ;;  %v15623_v9 = vpack.c.bf16 %v7395_v50, %v7394_v48 }
0x3e6f   : > { %v7165_v52 = vmul.f32 %v7164_v51, %v7164_v51 }
0x3e71   : > { %v7166_v53 = vsel %vm1520_vm0, %v7165_v52, 0.0 }
0x3e72   : > { %7167 = vadd.xlane.f32.xlu1 %v7166_v53 }
0x3eff   : > { %v7168_v5 = vpop.xlane.xlu1 %7167 }
0x3f00   : > { %v7169_v42 = vmul.f32 0.03125, %v7168_v5 }
0x3f02   : > { %v7170_v0 = vadd.f32 1e-05, %v7169_v42 }
0x3f04   : > { %13439 = vrsqrt.f32 %v7170_v0 }
0x3f0e   : > { %v13440_v1 = vpop.eup %13439 }
0x3f0f   : > { %v7172_v47 = vmul.f32 %v13440_v1, %v7164_v51 }
0x3f11   : > { %v7180_v35 = vmul.f32 %v15589_v49, %v7172_v47 }
0x3f13   : > { %v7188_v44 = vadd.f32 %v15591_v11, %v7180_v35 }
0x3f15   : > { %12540 = vmatmul.mubr.msk.f32.vlgmr.msra.gmra.mrb[66].mxu0 %vm1520_vm0, %v7188_v44 }
0x3f16   : > { %12569 = vmatprep.mubr.msk.f32.mxu0 %vm14216_vm1, %v14215_v8  ;;  %12982 = vmatpush3.bf16.msra.mxu0 %v15617_v43 }
0x3f17   : > { %12983 = vmatprep.subr.bf16.mxu0 %v14228_v41 }
0x3f1a   : > { %12985 = vmatpush3.bf16.msra.mxu0 %v15623_v9 }
0x3f1b   : > { %12572 = vmatprep.subr.mxu0 %v14215_v8 }
0x3fe8   : > { %v7269_v16 = vpop.f32.mrb[66].mxu0 }
0x3fe9   : > { %v7270_v17 = vadd.f32 %v15604_v15, %v7269_v16  ;;  %v12541_v18 = vpop.f32.mrb[67].mxu0 }
0x3feb   : > { %v7273_v20 = vmax.f32 %v7270_v17, 0.0 }
0x3fed   : > { %12559 = vmatmul.mubr.msk.f32.vlgmr.msra.gmra.mrb[70].mxu1 %vm3684_vm3, %v7273_v20 }
0x3fee   : > { %12579 = vmatprep.mubr.msk.f32.mxu1 %vm14216_vm1, %v14215_v8 }
0x40c0   : > { %v7358_v7 = vpop.f32.mrb[70].mxu1 }
0x40c1   : > { %v7359_v10 = vadd.f32 %v15610_v21, %v7358_v7  ;;  %v12560_v26 = vpop.f32.mrb[71].mxu1 }
0x40c2   : > { %v15671_v26 = vld [vmem:[%s16309_s8] sm:$0xff] }
0x40c3   : > { %v7362_v29 = vadd.f32 %v7359_v10, %v7188_v44 }
0x40c5   : > { %v7363_v22 = vsel %vm1520_vm0, %v7362_v29, 0.0 }
0x40c6   : > { %7364 = vadd.xlane.f32.xlu1 %v7363_v22 }
0x4153   : > { %v7365_v24 = vpop.xlane.xlu1 %7364 }
0x4154   : > { %v7366_v59 = vmul.f32 0.03125, %v7365_v24 }
0x4156   : > { %v7367_v34 = vsub.f32 %v7362_v29, %v7366_v59 }
0x4158   : > { %v7368_v36 = vmul.f32 %v7367_v34, %v7367_v34 }
0x415a   : > { %v7369_v38 = vsel %vm1520_vm0, %v7368_v36, 0.0 }
0x415b   : > { %7370 = vadd.xlane.f32.xlu0 %v7369_v38 }
0x41e8   : > { %v7371_v51 = vpop.xlane.xlu0 %7370 }
0x41e9   : > { %v7372_v52 = vmul.f32 0.03125, %v7371_v51 }
0x41eb   : > { %v7373_v53 = vadd.f32 1e-05, %v7372_v52 }
0x41ed   : > { %13441 = vrsqrt.f32 %v7373_v53 }
0x41f7   : > { %v13442_v62 = vpop.eup %13441 }
0x41f8   : > { %v7375_v45 = vmul.f32 %v13442_v62, %v7367_v34 }
0x41fa   : > { %v7383_v27 = vmul.f32 %v15627_v56, %v7375_v45 }
0x41fc   : > { %v15633_v58 = vadd.f32 %v15629_v57, %v7383_v27 }
0x41fe   : > { %12570 = vmatmul.mubr.msk.f32.vlgmr.msra.gmra.mrb[68].mxu0 %vm1520_vm0, %v15633_v58 }
0x41ff   : > { %12574 = vmatprep.mubr.msk.f32.mxu0 %vm14216_vm1, %v14215_v8 }
0x42d1   : > { %v7472_v61 = vpop.f32.mrb[68].mxu0 }
0x42d2   : > { %v15643_v19 = vadd.f32 %v15640_v30, %v7472_v61  ;;  %v12571_v37 = vpop.f32.mrb[69].mxu0 }
0x42d3   : > { %v15696_v37 = vld [vmem:[%s16309_s8 + $0x8] sm:$0xff] }
0x42d4   : > { %7572 = vrot.lane.b32.xlu0 %v15643_v19, %s16298_s5  ;;  %7485 = vrot.lane.b32.xlu1 %v15643_v19, %s16296_s12 }
0x4346   : > { %v7573_v5 = vpop.permute.xlu0 %7572  ;;  %v7486_v42 = vpop.permute.xlu1 %7485 }
0x4347   : > { %12573 = vmatpush3.xpose.msk.msra.mxu0 %vm1613_vm2, %v7486_v42  ;;  %12578 = vmatpush3.msra.mxu1 %v7573_v5 }
0x4348   : > { %12587 = vmatprep.subr.mxu1 %v14215_v8  ;;  %12582 = vmatprep.subr.mxu0 %v14215_v8 }
0x434a   : > { %12575 = vmatmul.mubr.msk.f32.vlgmr.msra.gmra.mrb[70].mxu0 %vm1613_vm2, %v15643_v19 }
0x434b   : > { %12584 = vmatprep.mubr.msk.f32.mxu0 %vm14216_vm1, %v14215_v8  ;;  %12583 = vmatpush3.msra.mxu0 %v15671_v26 }
0x434c   : > { %12592 = vmatprep.subr.mxu0 %v14215_v8 }
0x441d   : > { %v7557_v0 = vpop.f32.mrb[70].mxu0 }
0x441e   : > { %v12576_v1 = vpop.f32.mrb[71].mxu0  ;;  %v7561_v47 = vsel %vm1613_vm2, %v7557_v0, -inf }
0x441f   : > { %7562 = vmax.xlane.f32.xlu1 %v7561_v47 }
0x4430   : > { %7725 = vrot.lane.b32.xlu1 %v15643_v19, %s16297_s1 }
0x44ac   : > { %v7563_v35 = vpop.xlane.xlu1 %7562 }
0x44ad   : > { %v7564_v44 = vsub.f32 %v7557_v0, %v7563_v35 }
0x44af   : > { %v7565_v13 = vmul.f32 1.442695, %v7564_v44 }
0x44b0   : > { %v7726_v7 = vpop.permute.xlu1 %7725 }
0x44b1   : > { %13443 = vpow2.f32 %v7565_v13 }
0x44bb   : > { %v13444_v14 = vpop.eup %13443 }
0x44bc   : > { %v7567_v16 = vsel %vm1613_vm2, %v13444_v14, 0.0 }
0x44bd   : > { %7568 = vadd.xlane.f32.xlu0 %v7567_v16 }
0x44d3   : > { %7723 = vrot.lane.b32.xlu0 %v15643_v19, %s16291_s13 }
0x454a   : > { %v7569_v17 = vpop.xlane.xlu0 %7568 }
0x454b   : > { %13445 = vrcp.f32 %v7569_v17 }
0x454e   : > { %v7724_v10 = vpop.permute.xlu0 %7723 }
0x4555   : > { %v13446_v18 = vpop.eup %13445 }
0x4556   : > { %v7571_v20 = vmul.f32 %v13446_v18, %v13444_v14  ;;  %v15713_v18 = vld [vmem:[%s16310_s14] ss:$0 sm:$0xff]  ;;  %s16311_s14 = sld [smem:[#allocation74_spill]] }
0x4558   : > { %12580 = vmatmul.mubr.msk.f32.vlgmr.msra.gmra.mrb[72].mxu1 %vm1613_vm2, %v7571_v20 }
0x4559   : > { %12588 = vmatpush3.xpose.msk.msra.mxu1 %vm1613_vm2, %v7726_v7  ;;  %12589 = vmatprep.mubr.msk.f32.mxu1 %vm14216_vm1, %v14215_v8 }
0x455a   : > { %12597 = vmatprep.subr.mxu1 %v14215_v8 }
0x455c   : > { %12590 = vmatmul.mubr.msk.f32.vlgmr.msra.gmra.mrb[74].mxu1 %vm1613_vm2, %v7724_v10 }
0x455d   : > { %12599 = vmatprep.mubr.msk.f32.mxu1 %vm14216_vm1, %v14215_v8  ;;  %12598 = vmatpush3.msra.mxu1 %v15696_v37 }
0x455e   : > { %12607 = vmatprep.subr.mxu1 %v14215_v8 }
0x462b   : > { %v7644_v29 = vpop.f32.mrb[72].mxu1 }
0x462c   : > { %v12581_v22 = vpop.f32.mrb[73].mxu1  ;;  %12585 = vmatmul.mubr.msk.f32.vlgmr.msra.gmra.mrb[72].mxu0 %vm1613_vm2, %v7644_v29 }
0x462d   : > { %12594 = vmatprep.mubr.msk.f32.mxu0 %vm14216_vm1, %v14215_v8 }
0x462f   : > { %v7797_v24 = vpop.f32.mrb[74].mxu1 }
0x4630   : > { %v12591_v59 = vpop.f32.mrb[75].mxu1  ;;  %v7801_v34 = vsel %vm1613_vm2, %v7797_v24, -inf }
0x4631   : > { %7802 = vmax.xlane.f32.xlu0 %v7801_v34 }
0x4647   : > { %7812 = vrot.lane.b32.xlu0 %v15643_v19, %s16299_s9 }
0x464b   : > { %7964 = vrot.lane.b32.xlu0 %v15643_v19, %s16293_s6 }
0x46be   : > { %v7803_v36 = vpop.xlane.xlu0 %7802 }
0x46bf   : > { %v7804_v38 = vsub.f32 %v7797_v24, %v7803_v36 }
0x46c1   : > { %v7805_v40 = vmul.f32 1.442695, %v7804_v38  ;;  %v15725_v38 = vld [vmem:[%s16309_s8 + $0x10] sm:$0xff] }
0x46c2   : > { %v7813_v55 = vpop.permute.xlu0 %7812 }
0x46c3   : > { %13447 = vpow2.f32 %v7805_v40  ;;  %12593 = vmatpush3.msra.mxu0 %v7813_v55 }
0x46c4   : > { %12602 = vmatprep.subr.mxu0 %v14215_v8 }
0x46c6   : > { %v7965_v61 = vpop.permute.xlu0 %7964 }
0x46cd   : > { %v13448_v48 = vpop.eup %13447 }
0x46ce   : > { %v7807_v50 = vsel %vm1613_vm2, %v13448_v48, 0.0 }
0x46cf   : > { %7808 = vadd.xlane.f32.xlu1 %v7807_v50 }
0x46e0   : > { %7966 = vrot.lane.b32.xlu1 %v15643_v19, %s16290_s28 }
0x46ff   : > { %v7718_v51 = vpop.f32.mrb[72].mxu0 }
0x4700   : > { %v12586_v52 = vpop.f32.mrb[73].mxu0  ;;  %v7722_v20 = vadd.f32 %v15713_v18, %v7718_v51 }
0x475c   : > { %v7809_v53 = vpop.xlane.xlu1 %7808 }
0x475d   : > { %13449 = vrcp.f32 %v7809_v53 }
0x4760   : > { %v7967_v27 = vpop.permute.xlu1 %7966 }
0x4767   : > { %v13450_v62 = vpop.eup %13449 }
0x4768   : > { %v7811_v45 = vmul.f32 %v13450_v62, %v13448_v48 }
0x476a   : > { %12595 = vmatmul.mubr.msk.f32.vlgmr.msra.gmra.mrb[74].mxu0 %vm1613_vm2, %v7811_v45 }
0x476b   : > { %12603 = vmatpush3.xpose.msk.msra.mxu0 %vm1613_vm2, %v7967_v27  ;;  %12604 = vmatprep.mubr.msk.f32.mxu0 %vm14216_vm1, %v14215_v8 }
0x476c   : > { %12612 = vmatprep.subr.mxu0 %v14215_v8 }
0x476e   : > { %12605 = vmatmul.mubr.msk.f32.vlgmr.msra.gmra.mrb[76].mxu0 %vm1613_vm2, %v7965_v61 }
0x476f   : > { %12614 = vmatprep.mubr.msk.f32.mxu0 %vm14216_vm1, %v14215_v8  ;;  %12613 = vmatpush3.msra.mxu0 %v15725_v38 }
0x4770   : > { %12622 = vmatprep.subr.mxu0 %v14215_v8 }
0x483d   : > { %v7884_v5 = vpop.f32.mrb[74].mxu0 }
0x483e   : > { %v12596_v42 = vpop.f32.mrb[75].mxu0  ;;  %12600 = vmatmul.mubr.msk.f32.vlgmr.msra.gmra.mrb[76].mxu1 %vm1613_vm2, %v7884_v5  ;;  %v15738_v5 = vld [vmem:[%s16309_s8 + $0x18] sm:$0xff]  ;;  %s16312_s8 = sld [smem:[#allocation76_spill]] }
0x483f   : > { %12609 = vmatprep.mubr.msk.f32.mxu1 %vm14216_vm1, %v14215_v8 }
0x4841   : > { %v8038_v0 = vpop.f32.mrb[76].mxu0 }
0x4842   : > { %v12606_v1 = vpop.f32.mrb[77].mxu0  ;;  %v8042_v47 = vsel %vm1613_vm2, %v8038_v0, -inf }
0x4843   : > { %8043 = vmax.xlane.f32.xlu0 %v8042_v47 }
0x4859   : > { %8053 = vrot.lane.b32.xlu0 %v15643_v19, %s16292_s2 }
0x485d   : > { %8205 = vrot.lane.b32.xlu0 %v15643_v19, %s16301_s20 }
0x48d0   : > { %v8044_v35 = vpop.xlane.xlu0 %8043 }
0x48d1   : > { %v8045_v44 = vsub.f32 %v8038_v0, %v8044_v35 }
0x48d3   : > { %v8046_v13 = vmul.f32 1.442695, %v8045_v44 }
0x48d4   : > { %v8054_v14 = vpop.permute.xlu0 %8053 }
0x48d5   : > { %13451 = vpow2.f32 %v8046_v13  ;;  %12608 = vmatpush3.msra.mxu1 %v8054_v14 }
0x48d6   : > { %12617 = vmatprep.subr.mxu1 %v14215_v8 }
0x48d8   : > { %v8206_v36 = vpop.permute.xlu0 %8205 }
0x48df   : > { %v13452_v16 = vpop.eup %13451 }
0x48e0   : > { %v8048_v17 = vsel %vm1613_vm2, %v13452_v16, 0.0 }
0x48e1   : > { %8049 = vadd.xlane.f32.xlu1 %v8048_v17 }
0x48f2   : > { %8207 = vrot.lane.b32.xlu1 %v15643_v19, %s16300_s19 }
0x4911   : > { %v7959_v7 = vpop.f32.mrb[76].mxu1 }
0x4912   : > { %v7963_v10 = vadd.f32 %v7959_v7, %v7722_v20  ;;  %v12601_v29 = vpop.f32.mrb[77].mxu1 }
0x496e   : > { %v8050_v22 = vpop.xlane.xlu1 %8049 }
0x496f   : > { %13453 = vrcp.f32 %v8050_v22 }
0x4972   : > { %v8208_v34 = vpop.permute.xlu1 %8207 }
0x4979   : > { %v13454_v24 = vpop.eup %13453 }
0x497a   : > { %v8052_v59 = vmul.f32 %v13454_v24, %v13452_v16 }
0x497c   : > { %12610 = vmatmul.mubr.msk.f32.vlgmr.msra.gmra.mrb[78].mxu1 %vm1613_vm2, %v8052_v59 }
0x497d   : > { %12618 = vmatpush3.xpose.msk.msra.mxu1 %vm1613_vm2, %v8208_v34  ;;  %12619 = vmatprep.mubr.msk.f32.mxu1 %vm14216_vm1, %v14215_v8  ;;  %v8476_v34 = vld [vmem:[%s16311_s14] sm:$0xff] }
0x497e   : > { %12627 = vmatprep.subr.mxu1 %v14215_v8 }
0x4980   : > { %12620 = vmatmul.mubr.msk.f32.vlgmr.msra.gmra.mrb[80].mxu1 %vm1613_vm2, %v8206_v36  ;;  %v8477_v36 = vld [vmem:[%s16311_s14 + $0x8] sm:$0xff] }
0x4981   : > { %12629 = vmatprep.mubr.msk.f32.mxu1 %vm14216_vm1, %v14215_v8  ;;  %12628 = vmatpush3.msra.mxu1 %v15738_v5 }
0x4982   : > { %12992 = vmatprep.subr.bf16.mxu1 %v14228_v41 }
0x4a4f   : > { %v8125_v40 = vpop.f32.mrb[78].mxu1 }
0x4a50   : > { %v12611_v55 = vpop.f32.mrb[79].mxu1  ;;  %12615 = vmatmul.mubr.msk.f32.vlgmr.msra.gmra.mrb[78].mxu0 %vm1613_vm2, %v8125_v40  ;;  %v15753_v40 = vpack.c.bf16 %v8477_v36, %v8476_v34 }
0x4a51   : > { %12624 = vmatprep.mubr.msk.f32.mxu0 %vm14216_vm1, %v14215_v8  ;;  %v8479_v55 = vld [vmem:[%s16311_s14 + $0x18] sm:$0xff] }
0x4a53   : > { %v8279_v48 = vpop.f32.mrb[80].mxu1 }
0x4a54   : > { %v12621_v50 = vpop.f32.mrb[81].mxu1  ;;  %v8283_v51 = vsel %vm1613_vm2, %v8279_v48, -inf }
0x4a55   : > { %8284 = vmax.xlane.f32.xlu0 %v8283_v51  ;;  %v8561_v50 = vld [vmem:[%s16312_s8] sm:$0xff]  ;;  %v8562_v51 = vld [vmem:[%s16312_s8 + $0x8] sm:$0xff] }
0x4a6b   : > { %8294 = vrot.lane.b32.xlu0 %v15643_v19, %s16302_s21 }
0x4ae2   : > { %v8285_v52 = vpop.xlane.xlu0 %8284 }
0x4ae3   : > { %v8286_v53 = vsub.f32 %v8279_v48, %v8285_v52  ;;  %v8563_v52 = vld [vmem:[%s16312_s8 + $0x10] sm:$0xff] }
0x4ae5   : > { %v8287_v62 = vmul.f32 1.442695, %v8286_v53  ;;  %v15766_v53 = vpack.c.bf16 %v8562_v51, %v8561_v50 }
0x4ae6   : > { %v8295_v45 = vpop.permute.xlu0 %8294 }
0x4ae7   : > { %13455 = vpow2.f32 %v8287_v62  ;;  %12623 = vmatpush3.msra.mxu0 %v8295_v45  ;;  %v8564_v62 = vld [vmem:[%s16312_s8 + $0x18] sm:$0xff] }
0x4ae8   : > { %12986 = vmatprep.subr.bf16.mxu0 %v14228_v41  ;;  %v15770_v45 = vpack.c.bf16 %v8564_v62, %v8563_v52 }
0x4af1   : > { %v13456_v27 = vpop.eup %13455 }
0x4af2   : > { %v8289_v61 = vsel %vm1613_vm2, %v13456_v27, 0.0 }
0x4af3   : > { %8290 = vadd.xlane.f32.xlu1 %v8289_v61  ;;  %v8566_v61 = vld [vmem:[%s16312_s8 + $0x28] sm:$0xff] }
0x4b23   : > { %v8200_v42 = vpop.f32.mrb[78].mxu0 }
0x4b24   : > { %v8204_v19 = vadd.f32 %v8200_v42, %v7963_v10  ;;  %v12616_v0 = vpop.f32.mrb[79].mxu0 }
0x4b80   : > { %v8291_v1 = vpop.xlane.xlu1 %8290 }
0x4b81   : > { %13457 = vrcp.f32 %v8291_v1 }
0x4b8b   : > { %v13458_v47 = vpop.eup %13457 }
0x4b8c   : > { %v8293_v35 = vmul.f32 %v13458_v47, %v13456_v27  ;;  %v8565_v27 = vld [vmem:[%s16312_s8 + $0x20] sm:$0xff] }
0x4b8d   : > { %v15776_v42 = vpack.c.bf16 %v8566_v61, %v8565_v27 }
0x4b8e   : > { %12625 = vmatmul.mubr.msk.f32.vlgmr.msra.gmra.mrb[80].mxu0 %vm1613_vm2, %v8293_v35  ;;  %v15782_v35 = vld [vmem:[%s16313_s22] ss:$0 sm:$0xff]  ;;  %s16317_s22 = sld [smem:[#allocation78_spill]] }
0x4b8f   : > { %12640 = vmatprep.mubr.msk.f32.mxu0 %vm14216_vm1, %v14215_v8  ;;  %12988 = vmatpush3.bf16.msra.mxu0 %v15753_v40 }
0x4b90   : > { %12989 = vmatprep.subr.bf16.mxu0 %v14228_v41 }
0x4c61   : > { %v8366_v44 = vpop.f32.mrb[80].mxu0 }
0x4c62   : > { %v12626_v13 = vpop.f32.mrb[81].mxu0  ;;  %12630 = vmatmul.mubr.msk.f32.vlgmr.msra.gmra.mrb[82].mxu1 %vm1613_vm2, %v8366_v44 }
0x4c63   : > { %12659 = vmatprep.mubr.msk.f32.mxu1 %vm14216_vm1, %v14215_v8  ;;  %12994 = vmatpush3.bf16.msra.mxu1 %v15766_v53 }
0x4c64   : > { %12995 = vmatprep.subr.bf16.mxu1 %v14228_v41 }
0x4c67   : > { %12997 = vmatpush3.bf16.msra.mxu1 %v15770_v45 }
0x4c68   : > { %12998 = vmatprep.subr.bf16.mxu1 %v14228_v41 }
0x4c6b   : > { %13000 = vmatpush3.bf16.msra.mxu1 %v15776_v42 }
0x4c6c   : > { %13001 = vmatprep.subr.bf16.mxu1 %v14228_v41 }
0x4d35   : > { %v8441_v14 = vpop.f32.mrb[82].mxu1 }
0x4d36   : > { %v8445_v16 = vadd.f32 %v8441_v14, %v8204_v19  ;;  %v12631_v17 = vpop.f32.mrb[83].mxu1 }
0x4d37   : > { %v8567_v17 = vld [vmem:[%s16312_s8 + $0x30] sm:$0xff] }
0x4d38   : > { %v8446_v20 = vadd.f32 %v8445_v16, %v15633_v58  ;;  %v8478_v58 = vld [vmem:[%s16311_s14 + $0x10] sm:$0xff]  ;;  %s16314_s14 = sld [smem:[#allocation73_spill]] }
0x4d39   : > { %v15759_v48 = vpack.c.bf16 %v8479_v55, %v8478_v58 }
0x4d3a   : > { %v8447_v7 = vsel %vm1520_vm0, %v8446_v20, 0.0 }
0x4d3b   : > { %8448 = vadd.xlane.f32.xlu1 %v8447_v7  ;;  %12991 = vmatpush3.bf16.msra.mxu0 %v15759_v48 }
0x4d3c   : > { %13004 = vmatprep.subr.bf16.mxu0 %v14228_v41 }
0x4d3e   : > { %v15785_v13 = vld [vmem:[%s16314_s14] ss:$0 sm:$0xff] }
0x4dc8   : > { %v8449_v10 = vpop.xlane.xlu1 %8448 }
0x4dc9   : > { %v8450_v29 = vmul.f32 0.03125, %v8449_v10  ;;  %v15803_v10 = vld [vmem:[%s16315_s23] ss:$0 sm:$0xff]  ;;  %s16318_s23 = sld [smem:[#allocation79_spill]] }
0x4dcb   : > { %v8451_v22 = vsub.f32 %v8446_v20, %v8450_v29  ;;  %v8568_v20 = vld [vmem:[%s16312_s8 + $0x38] sm:$0xff] }
0x4dcc   : > { %v15798_v7 = vpack.c.bf16 %v8568_v20, %v8567_v17 }
0x4dcd   : > { %v8452_v24 = vmul.f32 %v8451_v22, %v8451_v22 }
0x4dce   : > { %13003 = vmatpush3.bf16.msra.mxu1 %v15798_v7 }
0x4dcf   : > { %v8453_v59 = vsel %vm1520_vm0, %v8452_v24, 0.0  ;;  %12678 = vmatprep.subr.mxu1 %v14215_v8 }
0x4dd0   : > { %8454 = vadd.xlane.f32.xlu1 %v8453_v59 }
0x4e5d   : > { %v8455_v19 = vpop.xlane.xlu1 %8454 }
0x4e5e   : > { %v8456_v0 = vmul.f32 0.03125, %v8455_v19 }
0x4e60   : > { %v8457_v1 = vadd.f32 1e-05, %v8456_v0 }
0x4e62   : > { %13459 = vrsqrt.f32 %v8457_v1 }
0x4e6c   : > { %v13460_v47 = vpop.eup %13459 }
0x4e6d   : > { %v8459_v44 = vmul.f32 %v13460_v47, %v8451_v22  ;;  %v15816_v47 = vld [vmem:[%s16317_s22] ss:$0 sm:$0xff] }
0x4e6f   : > { %v8467_v14 = vmul.f32 %v15782_v35, %v8459_v44 }
0x4e71   : > { %v8475_v16 = vadd.f32 %v15785_v13, %v8467_v14  ;;  %v15819_v14 = vld [vmem:[%s16318_s23] ss:$0 sm:$0xff] }
0x4e73   : > { %12641 = vmatmul.mubr.msk.f32.vlgmr.msra.gmra.mrb[82].mxu0 %vm1520_vm0, %v8475_v16 }
0x4e74   : > { %13006 = vmatpush3.bf16.msra.mxu0 %v15415_v6  ;;  %12670 = vmatprep.mubr.msk.f32.mxu0 %vm14216_vm1, %v14215_v8 }
0x4e75   : > { %13007 = vmatprep.subr.bf16.mxu0 %v14228_v41 }
0x4e78   : > { %13009 = vmatpush3.bf16.msra.mxu0 %v15422_v2  ;;  %v15810_v2 = vld [vmem:[%s16316_s24] ss:$0 sm:$0xff]  ;;  %s1506_s24 = scalar_lea.vmem [#allocation32], %s14816_s4 }
0x4e79   : > { %12673 = vmatprep.subr.mxu0 %v14215_v8 }
0x4f46   : > { %v8556_v6 = vpop.f32.mrb[82].mxu0 }
0x4f47   : > { %v8557_v29 = vadd.f32 %v15803_v10, %v8556_v6  ;;  %v12642_v22 = vpop.f32.mrb[83].mxu0 }
0x4f49   : > { %v8560_v24 = vmax.f32 %v8557_v29, 0.0 }
0x4f4b   : > { %12660 = vmatmul.mubr.msk.f32.vlgmr.msra.gmra.mrb[84].mxu1 %vm3684_vm3, %v8560_v24 }
0x4f4c   : > { %12680 = vmatprep.mubr.msk.f32.mxu1 %vm14216_vm1, %v14215_v8 }
0x501e   : > { %v8645_v59 = vpop.f32.mrb[84].mxu1 }
0x501f   : > { %v8646_v34 = vadd.f32 %v15810_v2, %v8645_v59  ;;  %v12661_v36 = vpop.f32.mrb[85].mxu1 }
0x5021   : > { %v8649_v58 = vadd.f32 %v8646_v34, %v8475_v16 }
0x5023   : > { %v8650_v55 = vsel %vm1520_vm0, %v8649_v58, 0.0 }
0x5024   : > { %8651 = vadd.xlane.f32.xlu1 %v8650_v55 }
0x50b1   : > { %v8652_v50 = vpop.xlane.xlu1 %8651 }
0x50b2   : > { %v8653_v51 = vmul.f32 0.03125, %v8652_v50 }
0x50b4   : > { %v8654_v52 = vsub.f32 %v8649_v58, %v8653_v51 }
0x50b6   : > { %v8655_v62 = vmul.f32 %v8654_v52, %v8654_v52 }
0x50b8   : > { %v8656_v27 = vsel %vm1520_vm0, %v8655_v62, 0.0 }
0x50b9   : > { %8657 = vadd.xlane.f32.xlu1 %v8656_v27 }
0x5146   : > { %v8658_v61 = vpop.xlane.xlu1 %8657 }
0x5147   : > { %v8659_v19 = vmul.f32 0.03125, %v8658_v61 }
0x5149   : > { %v8660_v0 = vadd.f32 1e-05, %v8659_v19 }
0x514b   : > { %13461 = vrsqrt.f32 %v8660_v0 }
0x5155   : > { %v13462_v1 = vpop.eup %13461 }
0x5156   : > { %v8662_v44 = vmul.f32 %v13462_v1, %v8654_v52 }
0x5158   : > { %v8670_v16 = vmul.f32 %v15816_v47, %v8662_v44 }
0x515a   : > { %v15823_v17 = vadd.f32 %v15819_v14, %v8670_v16 }
0x515c   : > { %12671 = vmatmul.mubr.msk.f32.vlgmr.msra.gmra.mrb[84].mxu0 %vm1520_vm0, %v15823_v17 }
0x515d   : > { %12675 = vmatprep.mubr.msk.f32.mxu0 %vm14216_vm1, %v14215_v8 }
0x522f   : > { %v8748_v20 = vpop.f32.mrb[84].mxu0 }
0x5230   : > { %v15830_v6 = vadd.f32 %v15446_v4, %v8748_v20  ;;  %v12672_v29 = vpop.f32.mrb[85].mxu0 }
0x5232   : > { %8753 = vrot.lane.b32.xlu0 %v15830_v6, %s16296_s12 }
0x52a4   : > { %v8754_v22 = vpop.permute.xlu0 %8753 }
0x52a5   : > { %12674 = vmatpush3.xpose.msk.msra.mxu0 %vm1613_vm2, %v8754_v22 }
0x52a6   : > { %12683 = vmatprep.subr.mxu0 %v14215_v8 }
0x52a8   : > { %12676 = vmatmul.mubr.msk.f32.vlgmr.msra.gmra.mrb[86].mxu0 %vm1613_vm2, %v15449_v32 }
0x52a9   : > { %12684 = vmatpush3.msra.mxu0 %v15480_v28  ;;  %12685 = vmatprep.mubr.msk.f32.mxu0 %vm14216_vm1, %v14215_v8 }
0x52aa   : > { %12693 = vmatprep.subr.mxu0 %v14215_v8 }
0x537b   : > { %v8825_v4 = vpop.f32.mrb[86].mxu0 }
0x537c   : > { %v12677_v24 = vpop.f32.mrb[87].mxu0  ;;  %v8829_v59 = vsel %vm1613_vm2, %v8825_v4, -inf }
0x537d   : > { %8830 = vmax.xlane.f32.xlu1 %v8829_v59 }
0x538e   : > { %8840 = vrot.lane.b32.xlu1 %v15830_v6, %s16298_s5 }
0x5392   : > { %8992 = vrot.lane.b32.xlu1 %v15830_v6, %s16297_s1 }
0x5396   : > { %8990 = vrot.lane.b32.xlu1 %v15449_v32, %s16291_s13 }
0x540a   : > { %v8831_v28 = vpop.xlane.xlu1 %8830 }
0x540b   : > { %v8832_v34 = vsub.f32 %v8825_v4, %v8831_v28 }
0x540d   : > { %v8833_v36 = vmul.f32 1.442695, %v8832_v34 }
0x540e   : > { %v8841_v58 = vpop.permute.xlu1 %8840 }
0x540f   : > { %13463 = vpow2.f32 %v8833_v36  ;;  %12679 = vmatpush3.msra.mxu1 %v8841_v58 }
0x5410   : > { %12688 = vmatprep.subr.mxu1 %v14215_v8 }
0x5412   : > { %v8993_v62 = vpop.permute.xlu1 %8992 }
0x5416   : > { %v8991_v61 = vpop.permute.xlu1 %8990 }
0x5419   : > { %v13464_v55 = vpop.eup %13463 }
0x541a   : > { %v8835_v50 = vsel %vm1613_vm2, %v13464_v55, 0.0 }
0x541b   : > { %8836 = vadd.xlane.f32.xlu0 %v8835_v50 }
0x5431   : > { %9079 = vrot.lane.b32.xlu0 %v15830_v6, %s16299_s9 }
0x5435   : > { %9231 = vrot.lane.b32.xlu0 %v15830_v6, %s16290_s28 }
0x54a8   : > { %v8837_v51 = vpop.xlane.xlu0 %8836 }
0x54a9   : > { %13465 = vrcp.f32 %v8837_v51 }
0x54ac   : > { %v9080_v0 = vpop.permute.xlu0 %9079 }
0x54b0   : > { %v9232_v34 = vpop.permute.xlu0 %9231 }
0x54b3   : > { %v13466_v52 = vpop.eup %13465 }
0x54b4   : > { %v8839_v27 = vmul.f32 %v13466_v52, %v13464_v55 }
0x54b6   : > { %12681 = vmatmul.mubr.msk.f32.vlgmr.msra.gmra.mrb[86].mxu1 %vm1613_vm2, %v8839_v27 }
0x54b7   : > { %12689 = vmatpush3.xpose.msk.msra.mxu1 %vm1613_vm2, %v8993_v62  ;;  %12690 = vmatprep.mubr.msk.f32.mxu1 %vm14216_vm1, %v14215_v8 }
0x54b8   : > { %12698 = vmatprep.subr.mxu1 %v14215_v8 }
0x54ba   : > { %12691 = vmatmul.mubr.msk.f32.vlgmr.msra.gmra.mrb[88].mxu1 %vm1613_vm2, %v8991_v61 }
0x54bb   : > { %12699 = vmatpush3.msra.mxu1 %v15505_v3  ;;  %12700 = vmatprep.mubr.msk.f32.mxu1 %vm14216_vm1, %v14215_v8 }
0x54bc   : > { %12708 = vmatprep.subr.mxu1 %v14215_v8 }
0x5589   : > { %v8912_v19 = vpop.f32.mrb[86].mxu1 }
0x558a   : > { %v12682_v1 = vpop.f32.mrb[87].mxu1  ;;  %12686 = vmatmul.mubr.msk.f32.vlgmr.msra.gmra.mrb[88].mxu0 %vm1613_vm2, %v8912_v19 }
0x558b   : > { %12694 = vmatpush3.msra.mxu0 %v9080_v0  ;;  %12695 = vmatprep.mubr.msk.f32.mxu0 %vm14216_vm1, %v14215_v8 }
0x558c   : > { %12703 = vmatprep.subr.mxu0 %v14215_v8 }
0x558d   : > { %v9064_v44 = vpop.f32.mrb[88].mxu1 }
0x558e   : > { %v12692_v16 = vpop.f32.mrb[89].mxu1  ;;  %v9068_v3 = vsel %vm1613_vm2, %v9064_v44, -inf }
0x558f   : > { %9069 = vmax.xlane.f32.xlu1 %v9068_v3 }
0x561c   : > { %v9070_v20 = vpop.xlane.xlu1 %9069 }
0x561d   : > { %v9071_v29 = vsub.f32 %v9064_v44, %v9070_v20 }
0x561f   : > { %v9072_v22 = vmul.f32 1.442695, %v9071_v29 }
0x5621   : > { %13467 = vpow2.f32 %v9072_v22 }
0x562b   : > { %v13468_v4 = vpop.eup %13467 }
0x562c   : > { %v9074_v24 = vsel %vm1613_vm2, %v13468_v4, 0.0 }
0x562d   : > { %9075 = vadd.xlane.f32.xlu0 %v9074_v24 }
0x5643   : > { %9229 = vrot.lane.b32.xlu0 %v15449_v32, %s16293_s6 }
0x565d   : > { %v8985_v59 = vpop.f32.mrb[88].mxu0 }
0x565e   : > { %v12687_v28 = vpop.f32.mrb[89].mxu0  ;;  %v8989_v3 = vadd.f32 %v15521_v63, %v8985_v59 }
0x56ba   : > { %v9076_v36 = vpop.xlane.xlu0 %9075 }
0x56bb   : > { %13469 = vrcp.f32 %v9076_v36 }
0x56be   : > { %v9230_v50 = vpop.permute.xlu0 %9229 }
0x56c5   : > { %v13470_v58 = vpop.eup %13469 }
0x56c6   : > { %v9078_v55 = vmul.f32 %v13470_v58, %v13468_v4 }
0x56c8   : > { %12696 = vmatmul.mubr.msk.f32.vlgmr.msra.gmra.mrb[90].mxu0 %vm1613_vm2, %v9078_v55 }
0x56c9   : > { %12704 = vmatpush3.xpose.msk.msra.mxu0 %vm1613_vm2, %v9232_v34  ;;  %12705 = vmatprep.mubr.msk.f32.mxu0 %vm14216_vm1, %v14215_v8 }
0x56ca   : > { %12713 = vmatprep.subr.mxu0 %v14215_v8 }
0x56cc   : > { %12706 = vmatmul.mubr.msk.f32.vlgmr.msra.gmra.mrb[92].mxu0 %vm1613_vm2, %v9230_v50 }
0x56cd   : > { %12714 = vmatpush3.msra.mxu0 %v15533_v12  ;;  %12715 = vmatprep.mubr.msk.f32.mxu0 %vm14216_vm1, %v14215_v8 }
0x56ce   : > { %12723 = vmatprep.subr.mxu0 %v14215_v8 }
0x579b   : > { %v9151_v51 = vpop.f32.mrb[90].mxu0 }
0x579c   : > { %v12697_v52 = vpop.f32.mrb[91].mxu0  ;;  %12701 = vmatmul.mubr.msk.f32.vlgmr.msra.gmra.mrb[90].mxu1 %vm1613_vm2, %v9151_v51 }
0x579d   : > { %12710 = vmatprep.mubr.msk.f32.mxu1 %vm14216_vm1, %v14215_v8 }
0x579f   : > { %v9303_v62 = vpop.f32.mrb[92].mxu0 }
0x57a0   : > { %v12707_v27 = vpop.f32.mrb[93].mxu0  ;;  %v9307_v61 = vsel %vm1613_vm2, %v9303_v62, -inf }
0x57a1   : > { %9308 = vmax.xlane.f32.xlu1 %v9307_v61 }
0x57b2   : > { %9318 = vrot.lane.b32.xlu1 %v15830_v6, %s16292_s2 }
0x57b6   : > { %9470 = vrot.lane.b32.xlu1 %v15830_v6, %s16300_s19 }
0x57ba   : > { %9468 = vrot.lane.b32.xlu1 %v15449_v32, %s16301_s20 }
0x582e   : > { %v9309_v12 = vpop.xlane.xlu1 %9308 }
0x582f   : > { %v9310_v19 = vsub.f32 %v9303_v62, %v9309_v12 }
0x5831   : > { %v9311_v0 = vmul.f32 1.442695, %v9310_v19 }
0x5832   : > { %v9319_v1 = vpop.permute.xlu1 %9318 }
0x5833   : > { %13471 = vpow2.f32 %v9311_v0  ;;  %12709 = vmatpush3.msra.mxu1 %v9319_v1 }
0x5834   : > { %12718 = vmatprep.subr.mxu1 %v14215_v8 }
0x5836   : > { %v9471_v24 = vpop.permute.xlu1 %9470 }
0x583a   : > { %v9469_v34 = vpop.permute.xlu1 %9468 }
0x583d   : > { %v13472_v44 = vpop.eup %13471 }
0x583e   : > { %v9313_v16 = vsel %vm1613_vm2, %v13472_v44, 0.0 }
0x583f   : > { %9314 = vadd.xlane.f32.xlu0 %v9313_v16 }
0x586f   : > { %v9224_v20 = vpop.f32.mrb[90].mxu1 }
0x5870   : > { %v9228_v29 = vadd.f32 %v9224_v20, %v8989_v3  ;;  %v12702_v22 = vpop.f32.mrb[91].mxu1 }
0x58cc   : > { %v9315_v4 = vpop.xlane.xlu0 %9314 }
0x58cd   : > { %13473 = vrcp.f32 %v9315_v4 }
0x58d7   : > { %v13474_v32 = vpop.eup %13473 }
0x58d8   : > { %v9317_v28 = vmul.f32 %v13474_v32, %v13472_v44 }
0x58da   : > { %12711 = vmatmul.mubr.msk.f32.vlgmr.msra.gmra.mrb[92].mxu1 %vm1613_vm2, %v9317_v28 }
0x58db   : > { %12719 = vmatpush3.xpose.msk.msra.mxu1 %vm1613_vm2, %v9471_v24  ;;  %12720 = vmatprep.mubr.msk.f32.mxu1 %vm14216_vm1, %v14215_v8 }
0x58dc   : > { %12728 = vmatprep.subr.mxu1 %v14215_v8 }
0x58de   : > { %12721 = vmatmul.mubr.msk.f32.vlgmr.msra.gmra.mrb[94].mxu1 %vm1613_vm2, %v9469_v34 }
0x58df   : > { %12729 = vmatpush3.msra.mxu1 %v15546_v23  ;;  %12730 = vmatprep.mubr.msk.f32.mxu1 %vm14216_vm1, %v14215_v8 }
0x58e0   : > { %13016 = vmatprep.subr.bf16.mxu1 %v14228_v41 }
0x59ad   : > { %v9390_v63 = vpop.f32.mrb[92].mxu1 }
0x59ae   : > { %v12712_v59 = vpop.f32.mrb[93].mxu1  ;;  %12716 = vmatmul.mubr.msk.f32.vlgmr.msra.gmra.mrb[94].mxu0 %vm1613_vm2, %v9390_v63 }
0x59af   : > { %12725 = vmatprep.mubr.msk.f32.mxu0 %vm14216_vm1, %v14215_v8 }
0x59b1   : > { %v9542_v36 = vpop.f32.mrb[94].mxu1 }
0x59b2   : > { %v12722_v58 = vpop.f32.mrb[95].mxu1  ;;  %v9546_v55 = vsel %vm1613_vm2, %v9542_v36, -inf }
0x59b3   : > { %9547 = vmax.xlane.f32.xlu1 %v9546_v55 }
0x5a40   : > { %v9548_v50 = vpop.xlane.xlu1 %9547 }
0x5a41   : > { %v9549_v51 = vsub.f32 %v9542_v36, %v9548_v50 }
0x5a43   : > { %v9550_v23 = vmul.f32 1.442695, %v9549_v51 }
0x5a45   : > { %13475 = vpow2.f32 %v9550_v23 }
0x5a4f   : > { %v13476_v52 = vpop.eup %13475 }
0x5a50   : > { %v9552_v62 = vsel %vm1613_vm2, %v13476_v52, 0.0 }
0x5a51   : > { %9553 = vadd.xlane.f32.xlu0 %v9552_v62 }
0x5a67   : > { %9557 = vrot.lane.b32.xlu0 %v15830_v6, %s16302_s21 }
0x5a81   : > { %v9463_v27 = vpop.f32.mrb[94].mxu0 }
0x5a82   : > { %v9467_v61 = vadd.f32 %v9463_v27, %v9228_v29  ;;  %v12717_v12 = vpop.f32.mrb[95].mxu0 }
0x5ade   : > { %v9554_v19 = vpop.xlane.xlu0 %9553 }
0x5adf   : > { %13477 = vrcp.f32 %v9554_v19 }
0x5ae2   : > { %v9558_v0 = vpop.permute.xlu0 %9557 }
0x5ae3   : > { %12724 = vmatpush3.msra.mxu0 %v9558_v0 }
0x5ae4   : > { %13010 = vmatprep.subr.bf16.mxu0 %v14228_v41 }
0x5ae9   : > { %v13478_v1 = vpop.eup %13477 }
0x5aea   : > { %v9556_v44 = vmul.f32 %v13478_v1, %v13476_v52 }
0x5aec   : > { %12726 = vmatmul.mubr.msk.f32.vlgmr.msra.gmra.mrb[96].mxu0 %vm1613_vm2, %v9556_v44 }
0x5aed   : > { %13012 = vmatpush3.bf16.msra.mxu0 %v15561_v60  ;;  %12741 = vmatprep.mubr.msk.f32.mxu0 %vm14216_vm1, %v14215_v8 }
0x5aee   : > { %13013 = vmatprep.subr.bf16.mxu0 %v14228_v41 }
0x5af1   : > { %13015 = vmatpush3.bf16.msra.mxu0 %v15567_v31 }
0x5af2   : > { %13028 = vmatprep.subr.bf16.mxu0 %v14228_v41 }
0x5bbf   : > { %v9629_v6 = vpop.f32.mrb[96].mxu0 }
0x5bc0   : > { %v12727_v16 = vpop.f32.mrb[97].mxu0  ;;  %12731 = vmatmul.mubr.msk.f32.vlgmr.msra.gmra.mrb[96].mxu1 %vm1613_vm2, %v9629_v6 }
0x5bc1   : > { %13018 = vmatpush3.bf16.msra.mxu1 %v15574_v33  ;;  %12760 = vmatprep.mubr.msk.f32.mxu1 %vm14216_vm1, %v14215_v8 }
0x5bc2   : > { %13019 = vmatprep.subr.bf16.mxu1 %v14228_v41 }
0x5bc5   : > { %13021 = vmatpush3.bf16.msra.mxu1 %v15578_v25 }
0x5bc6   : > { %13022 = vmatprep.subr.bf16.mxu1 %v14228_v41 }
0x5bc9   : > { %13024 = vmatpush3.bf16.msra.mxu1 %v15584_v39 }
0x5bca   : > { %13025 = vmatprep.subr.bf16.mxu1 %v14228_v41 }
0x5bcd   : > { %13027 = vmatpush3.bf16.msra.mxu1 %v15600_v46 }
0x5bce   : > { %12779 = vmatprep.subr.mxu1 %v14215_v8 }
0x5c93   : > { %v9702_v60 = vpop.f32.mrb[96].mxu1 }
0x5c94   : > { %v9706_v31 = vadd.f32 %v9702_v60, %v9467_v61  ;;  %v12732_v33 = vpop.f32.mrb[97].mxu1 }
0x5c96   : > { %v9707_v3 = vadd.f32 %v9706_v31, %v15439_v54 }
0x5c98   : > { %v9708_v20 = vsel %vm1520_vm0, %v9707_v3, 0.0 }
0x5c99   : > { %9709 = vadd.xlane.f32.xlu0 %v9708_v20 }
0x5d26   : > { %v9710_v29 = vpop.xlane.xlu0 %9709 }
0x5d27   : > { %v9711_v25 = vmul.f32 0.03125, %v9710_v29 }
0x5d29   : > { %v9712_v22 = vsub.f32 %v9707_v3, %v9711_v25 }
0x5d2b   : > { %v9713_v4 = vmul.f32 %v9712_v22, %v9712_v22 }
0x5d2d   : > { %v9714_v39 = vsel %vm1520_vm0, %v9713_v4, 0.0 }
0x5d2e   : > { %9715 = vadd.xlane.f32.xlu1 %v9714_v39 }
0x5dbb   : > { %v9716_v32 = vpop.xlane.xlu1 %9715 }
0x5dbc   : > { %v9717_v24 = vmul.f32 0.03125, %v9716_v32 }
0x5dbe   : > { %v9718_v46 = vadd.f32 1e-05, %v9717_v24 }
0x5dc0   : > { %13479 = vrsqrt.f32 %v9718_v46 }
0x5dca   : > { %v13480_v28 = vpop.eup %13479 }
0x5dcb   : > { %v9720_v34 = vmul.f32 %v13480_v28, %v9712_v22 }
0x5dcd   : > { %v9721_v63 = vmul.f32 %v15589_v49, %v9720_v34 }
0x5dcf   : > { %v9722_v54 = vadd.f32 %v15591_v11, %v9721_v63 }
0x5dd1   : > { %12742 = vmatmul.mubr.msk.f32.vlgmr.msra.gmra.mrb[98].mxu0 %vm1520_vm0, %v9722_v54 }
0x5dd2   : > { %13030 = vmatpush3.bf16.msra.mxu0 %v15617_v43  ;;  %12771 = vmatprep.mubr.msk.f32.mxu0 %vm14216_vm1, %v14215_v8 }
0x5dd3   : > { %13031 = vmatprep.subr.bf16.mxu0 %v14228_v41 }
0x5dd6   : > { %13033 = vmatpush3.bf16.msra.mxu0 %v15623_v9 }
0x5dd7   : > { %12774 = vmatprep.subr.mxu0 %v14215_v8 }
0x5ea4   : > { %v9792_v59 = vpop.f32.mrb[98].mxu0 }
0x5ea5   : > { %v9793_v36 = vadd.f32 %v15604_v15, %v9792_v59  ;;  %v12743_v58 = vpop.f32.mrb[99].mxu0 }
0x5ea7   : > { %v9796_v49 = vmax.f32 %v9793_v36, 0.0 }
0x5ea9   : > { %12761 = vmatmul.mubr.msk.f32.vlgmr.msra.gmra.mrb[98].mxu1 %vm3684_vm3, %v9796_v49 }
0x5eaa   : > { %12781 = vmatprep.mubr.msk.f32.mxu1 %vm14216_vm1, %v14215_v8 }
0x5f7c   : > { %v9866_v11 = vpop.f32.mrb[98].mxu1 }
0x5f7d   : > { %v9867_v43 = vadd.f32 %v15610_v21, %v9866_v11  ;;  %v12762_v55 = vpop.f32.mrb[99].mxu1 }
0x5f7f   : > { %v9870_v50 = vadd.f32 %v9867_v43, %v9722_v54 }
0x5f81   : > { %v9871_v51 = vsel %vm1520_vm0, %v9870_v50, 0.0 }
0x5f82   : > { %9872 = vadd.xlane.f32.xlu1 %v9871_v51 }
0x600f   : > { %v9873_v9 = vpop.xlane.xlu1 %9872 }
0x6010   : > { %v9874_v23 = vmul.f32 0.03125, %v9873_v9 }
0x6012   : > { %v9875_v52 = vsub.f32 %v9870_v50, %v9874_v23 }
0x6014   : > { %v9876_v62 = vmul.f32 %v9875_v52, %v9875_v52 }
0x6016   : > { %v9877_v15 = vsel %vm1520_vm0, %v9876_v62, 0.0 }
0x6017   : > { %9878 = vadd.xlane.f32.xlu1 %v9877_v15 }
0x60a4   : > { %v9879_v27 = vpop.xlane.xlu1 %9878 }
0x60a5   : > { %v9880_v61 = vmul.f32 0.03125, %v9879_v27 }
0x60a7   : > { %v9881_v12 = vadd.f32 1e-05, %v9880_v61 }
0x60a9   : > { %13481 = vrsqrt.f32 %v9881_v12 }
0x60b3   : > { %v13482_v19 = vpop.eup %13481 }
0x60b4   : > { %v9883_v0 = vmul.f32 %v13482_v19, %v9875_v52 }
0x60b6   : > { %v9884_v21 = vmul.f32 %v15627_v56, %v9883_v0 }
0x60b8   : > { %v15953_v1 = vadd.f32 %v15629_v57, %v9884_v21 }
0x60ba   : > { %12772 = vmatmul.mubr.msk.f32.vlgmr.msra.gmra.mrb[100].mxu0 %vm1520_vm0, %v15953_v1 }
0x60bb   : > { %12776 = vmatprep.mubr.msk.f32.mxu0 %vm14216_vm1, %v14215_v8 }
0x618d   : > { %v9955_v44 = vpop.f32.mrb[100].mxu0 }
0x618e   : > { %v15960_v6 = vadd.f32 %v15640_v30, %v9955_v44  ;;  %v12773_v16 = vpop.f32.mrb[101].mxu0 }
0x6190   : > { %9960 = vrot.lane.b32.xlu1 %v15960_v6, %s16296_s12 }
0x6194   : > { %10047 = vrot.lane.b32.xlu1 %v15960_v6, %s16298_s5 }
0x6198   : > { %10197 = vrot.lane.b32.xlu1 %v15960_v6, %s16291_s13 }
0x6202   : > { %v9961_v56 = vpop.permute.xlu1 %9960 }
0x6203   : > { %12775 = vmatpush3.xpose.msk.msra.mxu0 %vm1613_vm2, %v9961_v56 }
0x6204   : > { %12784 = vmatprep.subr.mxu0 %v14215_v8 }
0x6206   : > { %12777 = vmatmul.mubr.msk.f32.vlgmr.msra.gmra.mrb[102].mxu0 %vm1613_vm2, %v15960_v6  ;;  %v10048_v57 = vpop.permute.xlu1 %10047 }
0x6207   : > { %12780 = vmatpush3.msra.mxu1 %v10048_v57  ;;  %12785 = vmatpush3.msra.mxu0 %v15671_v26 }
0x6208   : > { %12789 = vmatprep.subr.mxu1 %v14215_v8  ;;  %12786 = vmatprep.mubr.msk.f32.mxu0 %vm14216_vm1, %v14215_v8 }
0x6209   : > { %12794 = vmatprep.subr.mxu0 %v14215_v8 }
0x620a   : > { %v10198_v32 = vpop.permute.xlu1 %10197 }
0x62d9   : > { %v10032_v30 = vpop.f32.mrb[102].mxu0 }
0x62da   : > { %v12778_v60 = vpop.f32.mrb[103].mxu0  ;;  %v10036_v31 = vsel %vm1613_vm2, %v10032_v30, -inf }
0x62db   : > { %10037 = vmax.xlane.f32.xlu0 %v10036_v31 }
0x6368   : > { %v10038_v33 = vpop.xlane.xlu0 %10037 }
0x6369   : > { %v10039_v3 = vsub.f32 %v10032_v30, %v10038_v33 }
0x636b   : > { %v10040_v20 = vmul.f32 1.442695, %v10039_v3 }
0x636d   : > { %13483 = vpow2.f32 %v10040_v20 }
0x6377   : > { %v13484_v29 = vpop.eup %13483 }
0x6378   : > { %v10042_v25 = vsel %vm1613_vm2, %v13484_v29, 0.0 }
0x6379   : > { %10043 = vadd.xlane.f32.xlu0 %v10042_v25 }
0x638f   : > { %10199 = vrot.lane.b32.xlu0 %v15960_v6, %s16297_s1 }
0x6406   : > { %v10044_v26 = vpop.xlane.xlu0 %10043 }
0x6407   : > { %13485 = vrcp.f32 %v10044_v26 }
0x640a   : > { %v10200_v39 = vpop.permute.xlu0 %10199 }
0x6411   : > { %v13486_v22 = vpop.eup %13485 }
0x6412   : > { %v10046_v4 = vmul.f32 %v13486_v22, %v13484_v29 }
0x6414   : > { %12782 = vmatmul.mubr.msk.f32.vlgmr.msra.gmra.mrb[100].mxu1 %vm1613_vm2, %v10046_v4 }
0x6415   : > { %12790 = vmatpush3.xpose.msk.msra.mxu1 %vm1613_vm2, %v10200_v39  ;;  %12791 = vmatprep.mubr.msk.f32.mxu1 %vm14216_vm1, %v14215_v8 }
0x6416   : > { %12799 = vmatprep.subr.mxu1 %v14215_v8 }
0x6418   : > { %12792 = vmatmul.mubr.msk.f32.vlgmr.msra.gmra.mrb[102].mxu1 %vm1613_vm2, %v10198_v32 }
0x6419   : > { %12800 = vmatpush3.msra.mxu1 %v15696_v37  ;;  %12801 = vmatprep.mubr.msk.f32.mxu1 %vm14216_vm1, %v14215_v8 }
0x641a   : > { %12809 = vmatprep.subr.mxu1 %v14215_v8 }
0x64e7   : > { %v10119_v24 = vpop.f32.mrb[100].mxu1 }
0x64e8   : > { %v12783_v46 = vpop.f32.mrb[101].mxu1  ;;  %12787 = vmatmul.mubr.msk.f32.vlgmr.msra.gmra.mrb[104].mxu0 %vm1613_vm2, %v10119_v24 }
0x64e9   : > { %12796 = vmatprep.mubr.msk.f32.mxu0 %vm14216_vm1, %v14215_v8 }
0x64eb   : > { %v10271_v28 = vpop.f32.mrb[102].mxu1 }
0x64ec   : > { %v12793_v34 = vpop.f32.mrb[103].mxu1  ;;  %v10275_v63 = vsel %vm1613_vm2, %v10271_v28, -inf }
0x64ed   : > { %10276 = vmax.xlane.f32.xlu1 %v10275_v63 }
0x64fe   : > { %10286 = vrot.lane.b32.xlu1 %v15960_v6, %s16299_s9 }
0x6502   : > { %10436 = vrot.lane.b32.xlu1 %v15960_v6, %s16293_s6  ;;  %s11254_s6 = scalar_lea.sflag [#allocation4], %s14813_s17 }
0x657a   : > { %v10277_v37 = vpop.xlane.xlu1 %10276 }
0x657b   : > { %v10278_v54 = vsub.f32 %v10271_v28, %v10277_v37 }
0x657d   : > { %v10279_v59 = vmul.f32 1.442695, %v10278_v54 }
0x657e   : > { %v10287_v36 = vpop.permute.xlu1 %10286 }
0x657f   : > { %13487 = vpow2.f32 %v10279_v59  ;;  %12795 = vmatpush3.msra.mxu0 %v10287_v36 }
0x6580   : > { %12804 = vmatprep.subr.mxu0 %v14215_v8 }
0x6582   : > { %v10437_v23 = vpop.permute.xlu1 %10436 }
0x6589   : > { %v13488_v58 = vpop.eup %13487 }
0x658a   : > { %v10281_v49 = vsel %vm1613_vm2, %v13488_v58, 0.0 }
0x658b   : > { %10282 = vadd.xlane.f32.xlu0 %v10281_v49 }
0x65a1   : > { %10438 = vrot.lane.b32.xlu0 %v15960_v6, %s16290_s28 }
0x65bb   : > { %v10192_v11 = vpop.f32.mrb[104].mxu0 }
0x65bc   : > { %v12788_v43 = vpop.f32.mrb[105].mxu0  ;;  %v10196_v16 = vadd.f32 %v15713_v18, %v10192_v11 }
0x6618   : > { %v10283_v55 = vpop.xlane.xlu0 %10282 }
0x6619   : > { %13489 = vrcp.f32 %v10283_v55 }
0x661c   : > { %v10439_v9 = vpop.permute.xlu0 %10438 }
0x6623   : > { %v13490_v50 = vpop.eup %13489 }
0x6624   : > { %v10285_v51 = vmul.f32 %v13490_v50, %v13488_v58 }
0x6626   : > { %12797 = vmatmul.mubr.msk.f32.vlgmr.msra.gmra.mrb[106].mxu0 %vm1613_vm2, %v10285_v51 }
0x6627   : > { %12805 = vmatpush3.xpose.msk.msra.mxu0 %vm1613_vm2, %v10439_v9  ;;  %12806 = vmatprep.mubr.msk.f32.mxu0 %vm14216_vm1, %v14215_v8 }
0x6628   : > { %12814 = vmatprep.subr.mxu0 %v14215_v8 }
0x662a   : > { %12807 = vmatmul.mubr.msk.f32.vlgmr.msra.gmra.mrb[108].mxu0 %vm1613_vm2, %v10437_v23 }
0x662b   : > { %12815 = vmatpush3.msra.mxu0 %v15725_v38  ;;  %12816 = vmatprep.mubr.msk.f32.mxu0 %vm14216_vm1, %v14215_v8 }
0x662c   : > { %12824 = vmatprep.subr.mxu0 %v14215_v8 }
0x66f9   : > { %v10358_v52 = vpop.f32.mrb[106].mxu0 }
0x66fa   : > { %v12798_v62 = vpop.f32.mrb[107].mxu0  ;;  %12802 = vmatmul.mubr.msk.f32.vlgmr.msra.gmra.mrb[104].mxu1 %vm1613_vm2, %v10358_v52 }
0x66fb   : > { %12811 = vmatprep.mubr.msk.f32.mxu1 %vm14216_vm1, %v14215_v8 }
0x66fd   : > { %v10510_v15 = vpop.f32.mrb[108].mxu0 }
0x66fe   : > { %v12808_v27 = vpop.f32.mrb[109].mxu0  ;;  %v10514_v61 = vsel %vm1613_vm2, %v10510_v15, -inf }
0x66ff   : > { %10515 = vmax.xlane.f32.xlu1 %v10514_v61 }
0x6710   : > { %10525 = vrot.lane.b32.xlu1 %v15960_v6, %s16292_s2 }
0x6714   : > { %10675 = vrot.lane.b32.xlu1 %v15960_v6, %s16301_s20  ;;  %s11267_s20 = sshll.u32 %s1506_s24, 4  ;;  %s16089_s20 = int_to_ptr.vmem [resolvable:$true] %s11267_s20 }
0x6715   : > { %s14045_s2 = scalar_lea.vmem %s16089_s20, 128 }
0x6716   : > { %p14046_p10 = scmp.ne.s32.totalorder %s16089_s20, %s14045_s2 }
0x6718   : > { %p14047_p13 = pnand %p14046_p10, %p16320_p11 }
0x671a   : > { %p14048_p1 = pneg %p14047_p13 }
0x678c   : > { %v10516_v38 = vpop.xlane.xlu1 %10515 }
0x678d   : > { %v10517_v12 = vsub.f32 %v10510_v15, %v10516_v38 }
0x678f   : > { %v10518_v19 = vmul.f32 1.442695, %v10517_v12 }
0x6790   : > { %v10526_v0 = vpop.permute.xlu1 %10525 }
0x6791   : > { %13491 = vpow2.f32 %v10518_v19  ;;  %12810 = vmatpush3.msra.mxu1 %v10526_v0 }
0x6792   : > { %12819 = vmatprep.subr.mxu1 %v14215_v8 }
0x6794   : > { %v10676_v20 = vpop.permute.xlu1 %10675 }
0x679b   : > { %v13492_v21 = vpop.eup %13491 }
0x679c   : > { %v10520_v44 = vsel %vm1613_vm2, %v13492_v21, 0.0 }
0x679d   : > { %10521 = vadd.xlane.f32.xlu0 %v10520_v44 }
0x67b3   : > { %10677 = vrot.lane.b32.xlu0 %v15960_v6, %s16300_s19  ;;  %s11797_s19 = sshll.u32 %s14466_s18, 7  ;;  %s14229_s18 = smov [#allocation32]  }
0x67b4   : > { %s14049_s4 = sshll.u32 %s14229_s18, 4  ;;  %s14050_s4 = int_to_ptr.vmem [resolvable:$false] %s14049_s4 }
0x67b5   : > { %s14051_s28 = scalar_lea.vmem %s14050_s4, 256  ;;  %p14052_p6 = scmp.lt.s32.totalorder %s16089_s20, %s14050_s4 }
0x67b6   : > { %p14053_p0 = scmp.lt.s32.totalorder %s14051_s28, %s14045_s2 }
0x67b8   : > { %p14054_p4 = por %p14053_p0, %p14052_p6 }
0x67ba   : > { %p14055_p12 = pnand %p14054_p4, %p14048_p1 }
0x67cd   : > { %v10431_v56 = vpop.f32.mrb[104].mxu1 }
0x67ce   : > { %v10435_v57 = vadd.f32 %v10431_v56, %v10196_v16  ;;  %v12803_v30 = vpop.f32.mrb[105].mxu1 }
0x682a   : > { %v10522_v60 = vpop.xlane.xlu0 %10521 }
0x682b   : > { %13493 = vrcp.f32 %v10522_v60  ;;  %v11099_v60 = vld [vmem:[#allocation29 + $0x10] sm:$0xff] }
0x682e   : > { %v10678_v3 = vpop.permute.xlu0 %10677 }
0x6835   : > { %v13494_v31 = vpop.eup %13493 }
0x6836   : > { %v10524_v33 = vmul.f32 %v13494_v31, %v13492_v21 }
0x6838   : > { %12812 = vmatmul.mubr.msk.f32.vlgmr.msra.gmra.mrb[106].mxu1 %vm1613_vm2, %v10524_v33 }
0x6839   : > { %12820 = vmatpush3.xpose.msk.msra.mxu1 %vm1613_vm2, %v10678_v3  ;;  %12821 = vmatprep.mubr.msk.f32.mxu1 %vm14216_vm1, %v14215_v8 }
0x683a   : > { %12829 = vmatprep.subr.mxu1 %v14215_v8 }
0x683c   : > { %12822 = vmatmul.mubr.msk.f32.vlgmr.msra.gmra.mrb[108].mxu1 %vm1613_vm2, %v10676_v20 }
0x683d   : > { %12830 = vmatpush3.msra.mxu1 %v15738_v5  ;;  %12831 = vmatprep.mubr.msk.f32.mxu1 %vm14216_vm1, %v14215_v8 }
0x683e   : > { %13040 = vmatprep.subr.bf16.mxu1 %v14228_v41 }
0x690b   : > { %v10597_v18 = vpop.f32.mrb[106].mxu1 }
0x690c   : > { %v12813_v29 = vpop.f32.mrb[107].mxu1  ;;  %12817 = vmatmul.mubr.msk.f32.vlgmr.msra.gmra.mrb[110].mxu0 %vm1613_vm2, %v10597_v18 }
0x690d   : > { %12826 = vmatprep.mubr.msk.f32.mxu0 %vm14216_vm1, %v14215_v8 }
0x690f   : > { %v10749_v25 = vpop.f32.mrb[108].mxu1 }
0x6910   : > { %v12823_v26 = vpop.f32.mrb[109].mxu1  ;;  %v10753_v22 = vsel %vm1613_vm2, %v10749_v25, -inf }
0x6911   : > { %10754 = vmax.xlane.f32.xlu1 %v10753_v22  ;;  %v11094_v26 = vld [vmem:[#allocation28 + $0x8] sm:$0xff] }
0x6922   : > { %10764 = vrot.lane.b32.xlu1 %v15960_v6, %s16302_s21  ;;  %s16319_s21 = sld [smem:[#allocation82_spill]] }
0x6928   : > { %s16087_s1 = scalar_lea.hbm %s16319_s21, %s11797_s19 }
0x699e   : > { %v10755_v5 = vpop.xlane.xlu1 %10754 }
0x699f   : > { %v10756_v4 = vsub.f32 %v10749_v25, %v10755_v5  ;;  %v11093_v25 = vld [vmem:[#allocation28] sm:$0xff] }
0x69a0   : > { %v13059_v5 = vpack.c.bf16 %v11094_v26, %v11093_v25 }
0x69a1   : > { %v10757_v39 = vmul.f32 1.442695, %v10756_v4 }
0x69a2   : > { %v10765_v32 = vpop.permute.xlu1 %10764 }
0x69a3   : > { %13495 = vpow2.f32 %v10757_v39  ;;  %12825 = vmatpush3.msra.mxu0 %v10765_v32  ;;  %v11095_v39 = vld [vmem:[#allocation28 + $0x10] sm:$0xff]  ;;  %v11096_v32 = vld [vmem:[#allocation28 + $0x18] sm:$0xff] }
0x69a4   : > { %13034 = vmatprep.subr.bf16.mxu0 %v14228_v41 }
0x69ad   : > { %v13496_v24 = vpop.eup %13495 }
0x69ae   : > { %v10759_v46 = vsel %vm1613_vm2, %v13496_v24, 0.0 }
0x69af   : > { %10760 = vadd.xlane.f32.xlu0 %v10759_v46 }
0x69df   : > { %v10670_v28 = vpop.f32.mrb[110].mxu0 }
0x69e0   : > { %v10674_v34 = vadd.f32 %v10670_v28, %v10435_v57  ;;  %v12818_v63 = vpop.f32.mrb[111].mxu0  ;;  %v11098_v57 = vld [vmem:[#allocation29 + $0x8] sm:$0xff]  ;;  %v11795_v28 = vld [vmem:[#allocation31] ss:$0 sm:$0xff] }
0x6a3c   : > { %v10761_v37 = vpop.xlane.xlu0 %10760 }
0x6a3d   : > { %13497 = vrcp.f32 %v10761_v37 }
0x6a47   : > { %v13498_v54 = vpop.eup %13497 }
0x6a48   : > { %v10763_v59 = vmul.f32 %v13498_v54, %v13496_v24  ;;  %v13062_v24 = vpack.c.bf16 %v11096_v32, %v11095_v39 }
0x6a4a   : > { %12827 = vmatmul.mubr.msk.f32.vlgmr.msra.gmra.mrb[112].mxu0 %vm1613_vm2, %v10763_v59 }
0x6a4b   : > { %13036 = vmatpush3.bf16.msra.mxu0 %v15753_v40  ;;  %12842 = vmatprep.mubr.msk.f32.mxu0 %vm14216_vm1, %v14215_v8 }
0x6a4c   : > { %13037 = vmatprep.subr.bf16.mxu0 %v14228_v41 }
0x6a4f   : > { %13039 = vmatpush3.bf16.msra.mxu0 %v15759_v48 }
0x6a50   : > { %13052 = vmatprep.subr.bf16.mxu0 %v14228_v41 }
0x6b1d   : > { %v10836_v6 = vpop.f32.mrb[112].mxu0 }
0x6b1e   : > { %v12828_v36 = vpop.f32.mrb[113].mxu0  ;;  %12832 = vmatmul.mubr.msk.f32.vlgmr.msra.gmra.mrb[110].mxu1 %vm1613_vm2, %v10836_v6 }
0x6b1f   : > { %13042 = vmatpush3.bf16.msra.mxu1 %v15766_v53  ;;  %12861 = vmatprep.mubr.msk.f32.mxu1 %vm14216_vm1, %v14215_v8 }
0x6b20   : > { %13043 = vmatprep.subr.bf16.mxu1 %v14228_v41 }
0x6b23   : > { %13045 = vmatpush3.bf16.msra.mxu1 %v15770_v45 }
0x6b24   : > { %13046 = vmatprep.subr.bf16.mxu1 %v14228_v41 }
0x6b27   : > { %13048 = vmatpush3.bf16.msra.mxu1 %v15776_v42 }
0x6b28   : > { %13049 = vmatprep.subr.bf16.mxu1 %v14228_v41 }
0x6b2b   : > { %13051 = vmatpush3.bf16.msra.mxu1 %v15798_v7 }
0x6bf1   : > { %v10909_v40 = vpop.f32.mrb[110].mxu1 }
0x6bf2   : > { %v10913_v48 = vadd.f32 %v10909_v40, %v10674_v34  ;;  %v12833_v58 = vpop.f32.mrb[111].mxu1 }
0x6bf4   : > { %v10914_v53 = vadd.f32 %v10913_v48, %v15953_v1 }
0x6bf6   : > { %v10915_v49 = vsel %vm1520_vm0, %v10914_v53, 0.0 }
0x6bf7   : > { %10916 = vadd.xlane.f32.xlu0 %v10915_v49 }
0x6c84   : > { %v10917_v11 = vpop.xlane.xlu0 %10916 }
0x6c85   : > { %v10918_v43 = vmul.f32 0.03125, %v10917_v11 }
0x6c87   : > { %v10919_v55 = vsub.f32 %v10914_v53, %v10918_v43 }
0x6c89   : > { %v10920_v45 = vmul.f32 %v10919_v55, %v10919_v55 }
0x6c8b   : > { %v10921_v50 = vsel %vm1520_vm0, %v10920_v45, 0.0 }
0x6c8c   : > { %10922 = vadd.xlane.f32.xlu0 %v10921_v50 }
0x6d19   : > { %v10923_v42 = vpop.xlane.xlu0 %10922 }
0x6d1a   : > { %v10924_v51 = vmul.f32 0.03125, %v10923_v42 }
0x6d1c   : > { %v10925_v9 = vadd.f32 1e-05, %v10924_v51 }
0x6d1e   : > { %13499 = vrsqrt.f32 %v10925_v9 }
0x6d28   : > { %v13500_v7 = vpop.eup %13499 }
0x6d29   : > { %v10927_v23 = vmul.f32 %v13500_v7, %v10919_v55 }
0x6d2b   : > { %v10928_v52 = vmul.f32 %v15782_v35, %v10927_v23 }
0x6d2d   : > { %v10929_v1 = vadd.f32 %v15785_v13, %v10928_v52 }
0x6d2f   : > { %12843 = vmatmul.mubr.msk.f32.vlgmr.msra.gmra.mrb[114].mxu0 %vm1520_vm0, %v10929_v1 }
0x6d30   : > { %12872 = vmatprep.mubr.msk.f32.mxu0 %vm14216_vm1, %v14215_v8 }
0x6e02   : > { %v10999_v62 = vpop.f32.mrb[114].mxu0 }
0x6e03   : > { %v11000_v15 = vadd.f32 %v15803_v10, %v10999_v62  ;;  %v12844_v27 = vpop.f32.mrb[115].mxu0  ;;  %v11097_v10 = vld [vmem:[#allocation29] sm:$0xff] }
0x6e04   : > { %v13053_v30 = vpack.c.bf16 %v11098_v57, %v11097_v10 }
0x6e05   : > { %v11003_v61 = vmax.f32 %v11000_v15, 0.0 }
0x6e06   : > { %13054 = vmatpush3.bf16.msra.mxu0 %v13053_v30 }
0x6e07   : > { %12862 = vmatmul.mubr.msk.f32.vlgmr.msra.gmra.mrb[112].mxu1 %vm3684_vm3, %v11003_v61  ;;  %13055 = vmatprep.subr.bf16.mxu0 %v14228_v41 }
0x6eda   : > { %v11073_v38 = vpop.f32.mrb[112].mxu1 }
0x6edb   : > { %v11074_v12 = vadd.f32 %v15810_v2, %v11073_v38  ;;  %v12863_v19 = vpop.f32.mrb[113].mxu1  ;;  %v11100_v2 = vld [vmem:[#allocation29 + $0x18] sm:$0xff] }
0x6edc   : > { %v13056_v31 = vpack.c.bf16 %v11100_v2, %v11099_v60 }
0x6edd   : > { %v11077_v0 = vadd.f32 %v11074_v12, %v10929_v1 }
0x6ede   : > { %13057 = vmatpush3.bf16.msra.mxu0 %v13056_v31 }
0x6edf   : > { %v11078_v35 = vsel %vm1520_vm0, %v11077_v0, 0.0  ;;  %13058 = vmatprep.subr.bf16.mxu0 %v14228_v41 }
0x6ee0   : > { %11079 = vadd.xlane.f32.xlu0 %v11078_v35 }
0x6f6d   : > { %v11080_v13 = vpop.xlane.xlu0 %11079 }
0x6f6e   : > { %v11081_v21 = vmul.f32 0.03125, %v11080_v13 }
0x6f70   : > { %v11082_v44 = vsub.f32 %v11077_v0, %v11081_v21 }
0x6f72   : > { %v11083_v16 = vmul.f32 %v11082_v44, %v11082_v44 }
0x6f74   : > { %v11084_v56 = vsel %vm1520_vm0, %v11083_v16, 0.0 }
0x6f75   : > { %11085 = vadd.xlane.f32.xlu0 %v11084_v56 }
0x7002   : > { %v11086_v33 = vpop.xlane.xlu0 %11085 }
0x7003   : > { %v11087_v3 = vmul.f32 0.03125, %v11086_v33 }
0x7005   : > { %v11088_v20 = vadd.f32 1e-05, %v11087_v3 }
0x7007   : > { %13501 = vrsqrt.f32 %v11088_v20 }
0x7011   : > { %v13502_v18 = vpop.eup %13501 }
0x7012   : > { %v11090_v29 = vmul.f32 %v13502_v18, %v11082_v44 }
0x7014   : > { %v11091_v22 = vmul.f32 %v15816_v47, %v11090_v29 }
0x7016   : > { %v11092_v4 = vadd.f32 %v15819_v14, %v11091_v22 }
0x7018   : > { %12873 = vmatmul.mubr.msk.f32.vlgmr.msra.gmra.mrb[116].mxu0 %vm1520_vm0, %v11092_v4 }
0x7019   : > { %13060 = vmatpush3.bf16.msra.mxu0 %v13059_v5  ;;  %12883 = vmatprep.mubr.msk.f32.mxu0 %vm14216_vm1, %v14215_v8 }
0x701a   : > { %13061 = vmatprep.subr.bf16.mxu0 %v14228_v41 }
0x701d   : > { %13063 = vmatpush3.bf16.msra.mxu0 %v13062_v24 }
0x7020   : > { %12884 = vmatmul.mubr.msk.f32.vlgmr.msra.gmra.mrb[118].mxu0 %vm1520_vm0, %v15823_v17 }
0x70eb   : > { %v11170_v47 = vpop.f32.mrb[116].mxu0 }
0x70ec   : > { %v12874_v14 = vpop.f32.mrb[117].mxu0 }
0x70f3   : > { %v11240_v46 = vpop.f32.mrb[118].mxu0 }
0x70f4   : > { %v11241_v34 = vadd.f32 %v11240_v46, %v11170_v47  ;;  %v12885_v63 = vpop.f32.mrb[119].mxu0 }
0x70f6   : > { %v11251_v37 = vadd.f32 %v11795_v28, %v11241_v34 }
0x70f8   : > { %11252 = vst.msk [vmem:[%s1506_s24] sm:$0xff] %vm1520_vm0, %v11251_v37 }
0x70f9   : > { %14058 = shalt.err (!%p14055_p12)
}
0x70fa   : > { %s14059_s17 = scalar_lea.hbm %s16087_s1, 128  ;;  %s14063_s13 = scalar_lea.hbm %s16319_s21, 256 }
0x70fb   : > { %p14060_p7 = scmp.ne.s32.totalorder %s16087_s1, %s14059_s17  ;;  %p14064_p3 = scmp.lt.u32.totalorder %s16087_s1, %s16319_s21 }
0x70fc   : > { %p14065_p2 = scmp.lt.u32.totalorder %s14063_s13, %s14059_s17  ;;  %p14067_p10 = scmp.lt.u32.totalorder %s14059_s17, %s16087_s1 }
0x70fd   : > { %p14061_p8 = pnand %p14060_p7, %p16320_p11 }
0x70fe   : > { %p14066_p5 = por %p14065_p2, %p14064_p3 }
0x70ff   : > { %p14062_p9 = pneg %p14061_p8 }
0x7100   : > { %p14068_p13 = por %p14067_p10, %p14066_p5 }
0x7102   : > { %p14069_p1 = pnand %p14068_p13, %p14062_p9 }
0x7104   : > { %14072 = shalt.err (!%p14069_p1)
}
0x7105   : > { %13136 = dma.vmem_to_hbm [thread:$0]  (%p16320_p11), %s16089_s20, 128, %s16087_s1, %s11254_s6  }
0x7106 PF: > { %s11279_s9 = sand.u32 1, %s14139_s7   ;;  %p16321_p6 = scmp.ne.s32.totalorder %s16263_s15, 0 }
0x7107   : > { %p16322_p0 = scmp.ge.s32.totalorder %s14151_s11, 2  ;;  %s11280_s12 = scalar_lea.sflag [#allocation4], %s11279_s9 }
0x7109   : > { %p13198_p4 = pnand %p16322_p0, %p16321_p6 }
0x710b   : > { %14134 = dma.done.wait (!%p13198_p4), %s11280_s12, 128  }
0x710c   : > { %14136 = vsyncadd (!%p13198_p4), %s11280_s12, 4294967168  ;;  %p107_p12 = scmp.ge.s32.totalorder %s14726_s3, 4   ;;  %s16323_s7 = smov %s14143_s10 }
0x710d   : > { %s16324_s10 = smov %s14147_s0  ;;  %s16325_s0 = smov %s14738_s16 }
0x710e   : > { %s16326_s11 = smov %s14726_s3  ;;  %109 = sbr.rel (!%p107_p12) target bundleno = 105 (0x69), region = 360 }
0x7115   :  { %11285 = vsyncpa [#allocation3], 1 }
0x7116   :  { %11287 = vsyncpa [#allocation3 + $0x1], 1 }
0x7117   :  { %11288 = vsyncpa [#allocation6], 1 }
0x7118   :  { %11290 = vsyncpa [#allocation6 + $0x1], 1 }
0x7119   :  { %11291 = vsyncpa [#allocation9], 1 }
0x711a   :  { %11292 = vsyncpa [#allocation12], 1 }
0x711b   :  { %11293 = vsyncpa [#allocation15], 1 }
0x711c   :  { %11294 = vsyncpa [#allocation18], 1 }
0x711d   :  { %11295 = vsyncpa [#allocation21], 1 }
0x711e   :  { %11296 = vsyncpa [#allocation24], 1 }
0x711f   :  { %11297 = vsyncpa [#allocation27], 1 }
0x7120   :  { %11298 = vsyncpa [#allocation30], 1 }
0x7121   :  { %11299 = vsyncpa [#allocation4], 1 }
0x7122   :  { %11301 = vsyncpa [#allocation4 + $0x1], 1 }

</bundles_post_ra>
